<compile_context>
chip_gen: v5e
topology: v5e:2x2
jax: 0.10.0
libtpu: 0.0.40
codegen_flags: <defaults>
</compile_context>

<pallas_src>
import jax
import jax.numpy as jnp
import numpy as np
from jax.experimental import pallas as pl
from jax.experimental.pallas import tpu as pltpu

LANE = 128  # TPU lane width: the internal bottleneck width is padded to this.


def _round_up(x, m):
    return (x + m - 1) // m * m


def _pick_batch_block(n, max_bb=8):
    """Images per grid step: as large as possible while keeping pipeline depth."""
    divs = [d for d in range(1, min(n, max_bb) + 1) if n % d == 0]
    for min_steps in (4, 2, 1):
        cand = [d for d in divs if n // d >= min_steps]
        if cand:
            return max(cand)
    return 1


def bottleneck_kernel(x_ref, w1_ref, w2_ref, w3_ref, b1_ref, b2_ref, b3_ref,
                      o_ref, pad_ref):
    """One grid step == BB images. x/o are unpadded (lane dim = Cin/Cout)."""
    BB, H, W, Cin = x_ref.shape
    Wp = w1_ref.shape[1]          # padded bottleneck width (multiple of 128)
    Cout = w3_ref.shape[1]
    M = BB * H * W

    # ---- conv1x1 (bn1 scale folded into w1) + bias + relu -----------------
    # 1x1 conv == per-pixel channel matmul; K = Cin stays unpadded (the MXU
    # masks the short contraction), so no activation padding is materialized.
    x_bf16 = x_ref[...].reshape(M, Cin).astype(jnp.bfloat16)
    h1 = jnp.dot(x_bf16, w1_ref[...], preferred_element_type=jnp.float32)
    h1 = jnp.maximum(h1 + b1_ref[...], 0.0)

    # ---- conv3x3 (stride 1, pad 1, groups 1) ------------------------------
    # Stage h1 once, in bf16, into a zero-haloed VMEM scratch.  Every halo
    # cell and the whole interior are rewritten each step, so the (parallel)
    # grid never reads stale scratch data.
    zero_row = jnp.zeros((BB, 1, W + 2, Wp), jnp.bfloat16)
    zero_col = jnp.zeros((BB, H, 1, Wp), jnp.bfloat16)
    pad_ref[:, 0:1, :, :] = zero_row
    pad_ref[:, H + 1:H + 2, :, :] = zero_row
    pad_ref[:, 1:H + 1, 0:1, :] = zero_col
    pad_ref[:, 1:H + 1, W + 1:W + 2, :] = zero_col
    pad_ref[:, 1:H + 1, 1:W + 1, :] = (
        h1.astype(jnp.bfloat16).reshape(BB, H, W, Wp))

    # Nine accumulated K=Wp dots (one per kernel tap) read directly from the
    # shifted scratch views -> no (M, 9*Wp) patches buffer is materialized.
    # Tap order k = dy*3 + dx matches the wrapper's (3,3,Wp,Wp)->(9,Wp,Wp)
    # reshape of the HWIO weights.
    h2 = None
    for k in range(9):
        dy, dx = k // 3, k % 3
        tap = pad_ref[:, dy:dy + H, dx:dx + W, :].reshape(M, Wp)
        contrib = jnp.dot(tap, w2_ref[k], preferred_element_type=jnp.float32)
        h2 = contrib if h2 is None else h2 + contrib
    h2 = jnp.maximum(h2 + b2_ref[...], 0.0)

    # ---- conv1x1 (bn3 scale folded into w3) + bias ------------------------
    h3 = jnp.dot(h2.astype(jnp.bfloat16), w3_ref[...],
                 preferred_element_type=jnp.float32) + b3_ref[...]

    # ---- residual add (identity shortcut) + relu; re-read x here so its
    # f32 copy does not stay live across the whole kernel. ------------------
    x_res = x_ref[...].reshape(M, Cin)
    out = jnp.maximum(h3 + x_res, 0.0)
    o_ref[...] = out.reshape(BB, H, W, Cout)


def bottleneck_pallas(x_nchw, params, batch_block=None):
    w1, w2, w3, s1, b1, s2, b2, s3, b3 = params
    x = jnp.transpose(x_nchw, (0, 2, 3, 1)).astype(jnp.float32)   # NCHW -> NHWC
    N, H, W, Cin = x.shape
    width = w1.shape[1]
    Cout = w3.shape[1]
    assert Cin == Cout, "identity shortcut requires inplanes == planes*expansion"

    # Internal bottleneck width padded to the 128-lane width (weights only).
    # Zero-padded weight columns/rows + zero bias keep padded channels exactly
    # zero through conv/bias/relu, so the unpadded final matmul is exact.
    Wp = _round_up(width, LANE)

    # Fold BN scales into the conv output columns in f32, then cast bf16 once.
    w1p = jnp.pad(w1 * s1[None, :],
                  ((0, 0), (0, Wp - width))).astype(jnp.bfloat16)        # (Cin, Wp)
    w2s = w2 * s2[None, None, None, :]                                   # HWIO
    w2p = jnp.pad(w2s, ((0, 0), (0, 0), (0, Wp - width), (0, Wp - width)))
    w2p = w2p.reshape(9, Wp, Wp).astype(jnp.bfloat16)                    # (9, Wp, Wp)
    w3p = jnp.pad(w3 * s3[None, :],
                  ((0, Wp - width), (0, 0))).astype(jnp.bfloat16)        # (Wp, Cout)

    b1p = jnp.pad(b1.astype(jnp.float32), (0, Wp - width)).reshape(1, Wp)
    b2p = jnp.pad(b2.astype(jnp.float32), (0, Wp - width)).reshape(1, Wp)
    b3p = b3.astype(jnp.float32).reshape(1, Cout)

    bb = _pick_batch_block(N) if batch_block is None else batch_block
    assert N % bb == 0

    def full(shape):
        return pl.BlockSpec(shape, lambda n: (0,) * len(shape))

    out = pl.pallas_call(
        bottleneck_kernel,
        out_shape=jax.ShapeDtypeStruct((N, H, W, Cout), jnp.float32),
        grid_spec=pltpu.PrefetchScalarGridSpec(
            num_scalar_prefetch=0,
            grid=(N // bb,),                                 # pipelined over batch
            in_specs=[
                pl.BlockSpec((bb, H, W, Cin), lambda n: (n, 0, 0, 0)),
                full((Cin, Wp)),          # w1 (bn1 scale folded)
                full((9, Wp, Wp)),        # w2 taps (bn2 scale folded)
                full((Wp, Cout)),         # w3 (bn3 scale folded)
                full((1, Wp)),            # bn1 bias
                full((1, Wp)),            # bn2 bias
                full((1, Cout)),          # bn3 bias
            ],
            out_specs=pl.BlockSpec((bb, H, W, Cout), lambda n: (n, 0, 0, 0)),
            scratch_shapes=[pltpu.VMEM((bb, H + 2, W + 2, Wp), jnp.bfloat16)],
        ),
        compiler_params=pltpu.CompilerParams(
            dimension_semantics=("parallel",),               # megacore on v7x
            vmem_limit_bytes=16 * 1024 * 1024,               # ~4 MiB actual use
        ),
    )(x, w1p, w2p, w3p, b1p, b2p, b3p)

    return jnp.transpose(out, (0, 3, 1, 2))                  # NHWC -> NCHW


def make_params(key, inplanes=16, planes=4, base_width=64, groups=1):
    width = int(planes * (base_width / 64.0)) * groups
    cout = planes * 4  # expansion = 4
    ks = jax.random.split(key, 15)

    def bn_fold(kg, kb, km, kv, c, eps=1e-5):
        gamma = 1.0 + 0.1 * jax.random.normal(kg, (c,), jnp.float32)
        beta = 0.1 * jax.random.normal(kb, (c,), jnp.float32)
        mean = 0.1 * jax.random.normal(km, (c,), jnp.float32)
        var = jnp.abs(jax.random.normal(kv, (c,), jnp.float32)) + 0.5
        scale = gamma * jax.lax.rsqrt(var + eps)
        bias = beta - mean * scale
        return scale, bias

    # conv1x1 -> (Cin, Cout); conv3x3 -> HWIO (3, 3, Cin, Cout)
    w1 = 0.1 * jax.random.normal(ks[0], (inplanes, width), jnp.float32)
    w2 = 0.1 * jax.random.normal(ks[1], (3, 3, width, width), jnp.float32)
    w3 = 0.1 * jax.random.normal(ks[2], (width, cout), jnp.float32)
    s1, b1 = bn_fold(ks[3], ks[4], ks[5], ks[6], width)
    s2, b2 = bn_fold(ks[7], ks[8], ks[9], ks[10], width)
    s3, b3 = bn_fold(ks[11], ks[12], ks[13], ks[14], cout)
    return (w1, w2, w3, s1, b1, s2, b2, s3, b3)


def ref_forward(x_nchw, params):
    """Pure-JAX (XLA, f32) reference of the same eval-mode Bottleneck forward."""
    w1, w2, w3, s1, b1, s2, b2, s3, b3 = params
    x = jnp.transpose(x_nchw, (0, 2, 3, 1))
    dn = ('NHWC', 'HWIO', 'NHWC')
    h = jax.lax.conv_general_dilated(x, w1[None, None], (1, 1), 'VALID',
                                     dimension_numbers=dn)
    h = jnp.maximum(h * s1 + b1, 0.0)
    h = jax.lax.conv_general_dilated(h, w2, (1, 1), ((1, 1), (1, 1)),
                                     dimension_numbers=dn)
    h = jnp.maximum(h * s2 + b2, 0.0)
    h = jax.lax.conv_general_dilated(h, w3[None, None], (1, 1), 'VALID',
                                     dimension_numbers=dn)
    h = h * s3 + b3
    out = jnp.maximum(h + x, 0.0)
    return jnp.transpose(out, (0, 3, 1, 2))


if __name__ == "__main__":
    key = jax.random.PRNGKey(0)
    kx, kp = jax.random.split(key)

    inplanes, planes = 16, 4          # width = 4, out channels = 16 (= inplanes)
    N, H, W = 8, 16, 16               # 8 images -> block batch 2, grid of 4 steps
    x = jax.random.normal(kx, (N, inplanes, H, W), jnp.float32)   # NCHW
    params = make_params(kp, inplanes=inplanes, planes=planes)

    fwd = jax.jit(bottleneck_pallas)
    out = jax.block_until_ready(fwd(x, params))

    ref = ref_forward(x, params)
    # bf16 matmul operands with f32 accumulation -> loosened tolerance.
    np.testing.assert_allclose(np.asarray(out), np.asarray(ref),
                               rtol=2e-2, atol=2e-2)
    print("KERNEL_OK")
</pallas_src>

<mosaic_0001>
module attributes {stable_mosaic.version = 11 : i64} {
  func.func @bottleneck_kernel(%arg0: i32, %arg1: memref<2x16x16x16xf32, #tpu.memory_space<vmem>>, %arg2: memref<16x128xbf16, #tpu.memory_space<vmem>>, %arg3: memref<9x128x128xbf16, #tpu.memory_space<vmem>>, %arg4: memref<128x16xbf16, #tpu.memory_space<vmem>>, %arg5: memref<1x128xf32, #tpu.memory_space<vmem>>, %arg6: memref<1x128xf32, #tpu.memory_space<vmem>>, %arg7: memref<1x16xf32, #tpu.memory_space<vmem>>, %arg8: memref<2x16x16x16xf32, #tpu.memory_space<vmem>>, %arg9: memref<2x18x18x128xbf16, #tpu.memory_space<vmem>>) attributes {dimension_semantics = [#tpu.dimension_semantics<parallel>], iteration_bounds = array<i64: 4>, scalar_prefetch = 0 : i64, scratch_operands = 1 : i64, tpu.core_type = #tpu.core_type<tc>, window_params = [{transform_indices = @transform_0, window_bounds = array<i64: 2, 16, 16, 16>}, {pipeline_mode = #tpu.pipeline_mode<synchronous>, transform_indices = @transform_1, window_bounds = array<i64: 16, 128>}, {pipeline_mode = #tpu.pipeline_mode<synchronous>, transform_indices = @transform_2, window_bounds = array<i64: 9, 128, 128>}, {pipeline_mode = #tpu.pipeline_mode<synchronous>, transform_indices = @transform_3, window_bounds = array<i64: 128, 16>}, {pipeline_mode = #tpu.pipeline_mode<synchronous>, transform_indices = @transform_4, window_bounds = array<i64: 1, 128>}, {pipeline_mode = #tpu.pipeline_mode<synchronous>, transform_indices = @transform_5, window_bounds = array<i64: 1, 128>}, {pipeline_mode = #tpu.pipeline_mode<synchronous>, transform_indices = @transform_6, window_bounds = array<i64: 1, 16>}, {transform_indices = @transform_7, window_bounds = array<i64: 2, 16, 16, 16>}]} {
    %c0 = arith.constant 0 : index
    %c0_0 = arith.constant 0 : index
    %c0_1 = arith.constant 0 : index
    %c0_2 = arith.constant 0 : index
    %0 = vector.load %arg1[%c0, %c0_0, %c0_1, %c0_2] : memref<2x16x16x16xf32, #tpu.memory_space<vmem>>, vector<2x16x16x16xf32>
    %1 = vector.shape_cast %0 : vector<2x16x16x16xf32> to vector<512x16xf32>
    %2 = arith.truncf %1 : vector<512x16xf32> to vector<512x16xbf16>
    %c0_3 = arith.constant 0 : index
    %c0_4 = arith.constant 0 : index
    %3 = vector.load %arg2[%c0_3, %c0_4] : memref<16x128xbf16, #tpu.memory_space<vmem>>, vector<16x128xbf16>
    %cst = arith.constant dense<0.000000e+00> : vector<512x128xf32>
    %4 = tpu.matmul %2, %3, %cst {dimension_numbers = #tpu.dot_dimension_numbers<[1], [0], [0], [1], [0, 0, 1, 1], [], []>} : vector<512x16xbf16>, vector<16x128xbf16>, vector<512x128xf32> -> vector<512x128xf32>
    %c0_5 = arith.constant 0 : index
    %c0_6 = arith.constant 0 : index
    %5 = vector.load %arg5[%c0_5, %c0_6] : memref<1x128xf32, #tpu.memory_space<vmem>>, vector<1x128xf32>
    %6 = vector.broadcast %5 : vector<1x128xf32> to vector<512x128xf32>
    %7 = arith.addf %4, %6 : vector<512x128xf32>
    %cst_7 = arith.constant 0.000000e+00 : f32
    %8 = vector.broadcast %cst_7 : f32 to vector<512x128xf32>
    %9 = arith.maximumf %7, %8 : vector<512x128xf32>
    %cst_8 = arith.constant 0.000000e+00 : bf16
    %10 = vector.broadcast %cst_8 : bf16 to vector<2x1x18x128xbf16>
    %cst_9 = arith.constant 0.000000e+00 : bf16
    %11 = vector.broadcast %cst_9 : bf16 to vector<2x16x1x128xbf16>
    %c0_10 = arith.constant 0 : index
    %c0_11 = arith.constant 0 : index
    %c0_12 = arith.constant 0 : index
    %c0_13 = arith.constant 0 : index
    %12 = vector.load %arg9[%c0_10, %c0_11, %c0_12, %c0_13] : memref<2x18x18x128xbf16, #tpu.memory_space<vmem>>, vector<2x1x18x128xbf16>
    tpu.vector_store %arg9[%c0_10, %c0_11, %c0_12, %c0_13], %10 {strides = array<i32>} : memref<2x18x18x128xbf16, #tpu.memory_space<vmem>>, vector<2x1x18x128xbf16>,
    %c0_14 = arith.constant 0 : index
    %c17 = arith.constant 17 : index
    %c0_15 = arith.constant 0 : index
    %c0_16 = arith.constant 0 : index
    %13 = vector.load %arg9[%c0_14, %c17, %c0_15, %c0_16] : memref<2x18x18x128xbf16, #tpu.memory_space<vmem>>, vector<2x1x18x128xbf16>
    tpu.vector_store %arg9[%c0_14, %c17, %c0_15, %c0_16], %10 {strides = array<i32>} : memref<2x18x18x128xbf16, #tpu.memory_space<vmem>>, vector<2x1x18x128xbf16>,
    %c0_17 = arith.constant 0 : index
    %c1 = arith.constant 1 : index
    %c0_18 = arith.constant 0 : index
    %c0_19 = arith.constant 0 : index
    %14 = vector.load %arg9[%c0_17, %c1, %c0_18, %c0_19] : memref<2x18x18x128xbf16, #tpu.memory_space<vmem>>, vector<2x16x1x128xbf16>
    tpu.vector_store %arg9[%c0_17, %c1, %c0_18, %c0_19], %11 {strides = array<i32>} : memref<2x18x18x128xbf16, #tpu.memory_space<vmem>>, vector<2x16x1x128xbf16>,
    %c0_20 = arith.constant 0 : index
    %c1_21 = arith.constant 1 : index
    %c17_22 = arith.constant 17 : index
    %c0_23 = arith.constant 0 : index
    %15 = vector.load %arg9[%c0_20, %c1_21, %c17_22, %c0_23] : memref<2x18x18x128xbf16, #tpu.memory_space<vmem>>, vector<2x16x1x128xbf16>
    tpu.vector_store %arg9[%c0_20, %c1_21, %c17_22, %c0_23], %11 {strides = array<i32>} : memref<2x18x18x128xbf16, #tpu.memory_space<vmem>>, vector<2x16x1x128xbf16>,
    %16 = arith.truncf %9 : vector<512x128xf32> to vector<512x128xbf16>
    %17 = vector.shape_cast %16 : vector<512x128xbf16> to vector<2x16x16x128xbf16>
    %c0_24 = arith.constant 0 : index
    %c1_25 = arith.constant 1 : index
    %c1_26 = arith.constant 1 : index
    %c0_27 = arith.constant 0 : index
    %18 = vector.load %arg9[%c0_24, %c1_25, %c1_26, %c0_27] : memref<2x18x18x128xbf16, #tpu.memory_space<vmem>>, vector<2x16x16x128xbf16>
    tpu.vector_store %arg9[%c0_24, %c1_25, %c1_26, %c0_27], %17 {strides = array<i32>} : memref<2x18x18x128xbf16, #tpu.memory_space<vmem>>, vector<2x16x16x128xbf16>,
    %c0_28 = arith.constant 0 : index
    %c0_29 = arith.constant 0 : index
    %c0_30 = arith.constant 0 : index
    %c0_31 = arith.constant 0 : index
    %19 = vector.load %arg9[%c0_28, %c0_29, %c0_30, %c0_31] : memref<2x18x18x128xbf16, #tpu.memory_space<vmem>>, vector<2x16x16x128xbf16>
    %20 = vector.shape_cast %19 : vector<2x16x16x128xbf16> to vector<512x128xbf16>
    %c0_32 = arith.constant 0 : index
    %c0_33 = arith.constant 0 : index
    %c0_34 = arith.constant 0 : index
    %21 = vector.load %arg3[%c0_32, %c0_33, %c0_34] : memref<9x128x128xbf16, #tpu.memory_space<vmem>>, vector<1x128x128xbf16>
    %22 = vector.shape_cast %21 : vector<1x128x128xbf16> to vector<128x128xbf16>
    %cst_35 = arith.constant dense<0.000000e+00> : vector<512x128xf32>
    %23 = tpu.matmul %20, %22, %cst_35 {dimension_numbers = #tpu.dot_dimension_numbers<[1], [0], [0], [1], [0, 0, 1, 1], [], []>} : vector<512x128xbf16>, vector<128x128xbf16>, vector<512x128xf32> -> vector<512x128xf32>
    %c0_36 = arith.constant 0 : index
    %c0_37 = arith.constant 0 : index
    %c1_38 = arith.constant 1 : index
    %c0_39 = arith.constant 0 : index
    %24 = vector.load %arg9[%c0_36, %c0_37, %c1_38, %c0_39] : memref<2x18x18x128xbf16, #tpu.memory_space<vmem>>, vector<2x16x16x128xbf16>
    %25 = vector.shape_cast %24 : vector<2x16x16x128xbf16> to vector<512x128xbf16>
    %c1_40 = arith.constant 1 : index
    %c0_41 = arith.constant 0 : index
    %c0_42 = arith.constant 0 : index
    %26 = vector.load %arg3[%c1_40, %c0_41, %c0_42] : memref<9x128x128xbf16, #tpu.memory_space<vmem>>, vector<1x128x128xbf16>
    %27 = vector.shape_cast %26 : vector<1x128x128xbf16> to vector<128x128xbf16>
    %cst_43 = arith.constant dense<0.000000e+00> : vector<512x128xf32>
    %28 = tpu.matmul %25, %27, %cst_43 {dimension_numbers = #tpu.dot_dimension_numbers<[1], [0], [0], [1], [0, 0, 1, 1], [], []>} : vector<512x128xbf16>, vector<128x128xbf16>, vector<512x128xf32> -> vector<512x128xf32>
    %29 = arith.addf %23, %28 : vector<512x128xf32>
    %c0_44 = arith.constant 0 : index
    %c0_45 = arith.constant 0 : index
    %c2 = arith.constant 2 : index
    %c0_46 = arith.constant 0 : index
    %30 = vector.load %arg9[%c0_44, %c0_45, %c2, %c0_46] : memref<2x18x18x128xbf16, #tpu.memory_space<vmem>>, vector<2x16x16x128xbf16>
    %31 = vector.shape_cast %30 : vector<2x16x16x128xbf16> to vector<512x128xbf16>
    %c2_47 = arith.constant 2 : index
    %c0_48 = arith.constant 0 : index
    %c0_49 = arith.constant 0 : index
    %32 = vector.load %arg3[%c2_47, %c0_48, %c0_49] : memref<9x128x128xbf16, #tpu.memory_space<vmem>>, vector<1x128x128xbf16>
    %33 = vector.shape_cast %32 : vector<1x128x128xbf16> to vector<128x128xbf16>
    %cst_50 = arith.constant dense<0.000000e+00> : vector<512x128xf32>
    %34 = tpu.matmul %31, %33, %cst_50 {dimension_numbers = #tpu.dot_dimension_numbers<[1], [0], [0], [1], [0, 0, 1, 1], [], []>} : vector<512x128xbf16>, vector<128x128xbf16>, vector<512x128xf32> -> vector<512x128xf32>
    %35 = arith.addf %29, %34 : vector<512x128xf32>
    %c0_51 = arith.constant 0 : index
    %c1_52 = arith.constant 1 : index
    %c0_53 = arith.constant 0 : index
    %c0_54 = arith.constant 0 : index
    %36 = vector.load %arg9[%c0_51, %c1_52, %c0_53, %c0_54] : memref<2x18x18x128xbf16, #tpu.memory_space<vmem>>, vector<2x16x16x128xbf16>
    %37 = vector.shape_cast %36 : vector<2x16x16x128xbf16> to vector<512x128xbf16>
    %c3 = arith.constant 3 : index
    %c0_55 = arith.constant 0 : index
    %c0_56 = arith.constant 0 : index
    %38 = vector.load %arg3[%c3, %c0_55, %c0_56] : memref<9x128x128xbf16, #tpu.memory_space<vmem>>, vector<1x128x128xbf16>
    %39 = vector.shape_cast %38 : vector<1x128x128xbf16> to vector<128x128xbf16>
    %cst_57 = arith.constant dense<0.000000e+00> : vector<512x128xf32>
    %40 = tpu.matmul %37, %39, %cst_57 {dimension_numbers = #tpu.dot_dimension_numbers<[1], [0], [0], [1], [0, 0, 1, 1], [], []>} : vector<512x128xbf16>, vector<128x128xbf16>, vector<512x128xf32> -> vector<512x128xf32>
    %41 = arith.addf %35, %40 : vector<512x128xf32>
    %c0_58 = arith.constant 0 : index
    %c1_59 = arith.constant 1 : index
    %c1_60 = arith.constant 1 : index
    %c0_61 = arith.constant 0 : index
    %42 = vector.load %arg9[%c0_58, %c1_59, %c1_60, %c0_61] : memref<2x18x18x128xbf16, #tpu.memory_space<vmem>>, vector<2x16x16x128xbf16>
    %43 = vector.shape_cast %42 : vector<2x16x16x128xbf16> to vector<512x128xbf16>
    %c4 = arith.constant 4 : index
    %c0_62 = arith.constant 0 : index
    %c0_63 = arith.constant 0 : index
    %44 = vector.load %arg3[%c4, %c0_62, %c0_63] : memref<9x128x128xbf16, #tpu.memory_space<vmem>>, vector<1x128x128xbf16>
    %45 = vector.shape_cast %44 : vector<1x128x128xbf16> to vector<128x128xbf16>
    %cst_64 = arith.constant dense<0.000000e+00> : vector<512x128xf32>
    %46 = tpu.matmul %43, %45, %cst_64 {dimension_numbers = #tpu.dot_dimension_numbers<[1], [0], [0], [1], [0, 0, 1, 1], [], []>} : vector<512x128xbf16>, vector<128x128xbf16>, vector<512x128xf32> -> vector<512x128xf32>
    %47 = arith.addf %41, %46 : vector<512x128xf32>
    %c0_65 = arith.constant 0 : index
    %c1_66 = arith.constant 1 : index
    %c2_67 = arith.constant 2 : index
    %c0_68 = arith.constant 0 : index
    %48 = vector.load %arg9[%c0_65, %c1_66, %c2_67, %c0_68] : memref<2x18x18x128xbf16, #tpu.memory_space<vmem>>, vector<2x16x16x128xbf16>
    %49 = vector.shape_cast %48 : vector<2x16x16x128xbf16> to vector<512x128xbf16>
    %c5 = arith.constant 5 : index
    %c0_69 = arith.constant 0 : index
    %c0_70 = arith.constant 0 : index
    %50 = vector.load %arg3[%c5, %c0_69, %c0_70] : memref<9x128x128xbf16, #tpu.memory_space<vmem>>, vector<1x128x128xbf16>
    %51 = vector.shape_cast %50 : vector<1x128x128xbf16> to vector<128x128xbf16>
    %cst_71 = arith.constant dense<0.000000e+00> : vector<512x128xf32>
    %52 = tpu.matmul %49, %51, %cst_71 {dimension_numbers = #tpu.dot_dimension_numbers<[1], [0], [0], [1], [0, 0, 1, 1], [], []>} : vector<512x128xbf16>, vector<128x128xbf16>, vector<512x128xf32> -> vector<512x128xf32>
    %53 = arith.addf %47, %52 : vector<512x128xf32>
    %c0_72 = arith.constant 0 : index
    %c2_73 = arith.constant 2 : index
    %c0_74 = arith.constant 0 : index
    %c0_75 = arith.constant 0 : index
    %54 = vector.load %arg9[%c0_72, %c2_73, %c0_74, %c0_75] : memref<2x18x18x128xbf16, #tpu.memory_space<vmem>>, vector<2x16x16x128xbf16>
    %55 = vector.shape_cast %54 : vector<2x16x16x128xbf16> to vector<512x128xbf16>
    %c6 = arith.constant 6 : index
    %c0_76 = arith.constant 0 : index
    %c0_77 = arith.constant 0 : index
    %56 = vector.load %arg3[%c6, %c0_76, %c0_77] : memref<9x128x128xbf16, #tpu.memory_space<vmem>>, vector<1x128x128xbf16>
    %57 = vector.shape_cast %56 : vector<1x128x128xbf16> to vector<128x128xbf16>
    %cst_78 = arith.constant dense<0.000000e+00> : vector<512x128xf32>
    %58 = tpu.matmul %55, %57, %cst_78 {dimension_numbers = #tpu.dot_dimension_numbers<[1], [0], [0], [1], [0, 0, 1, 1], [], []>} : vector<512x128xbf16>, vector<128x128xbf16>, vector<512x128xf32> -> vector<512x128xf32>
    %59 = arith.addf %53, %58 : vector<512x128xf32>
    %c0_79 = arith.constant 0 : index
    %c2_80 = arith.constant 2 : index
    %c1_81 = arith.constant 1 : index
    %c0_82 = arith.constant 0 : index
    %60 = vector.load %arg9[%c0_79, %c2_80, %c1_81, %c0_82] : memref<2x18x18x128xbf16, #tpu.memory_space<vmem>>, vector<2x16x16x128xbf16>
    %61 = vector.shape_cast %60 : vector<2x16x16x128xbf16> to vector<512x128xbf16>
    %c7 = arith.constant 7 : index
    %c0_83 = arith.constant 0 : index
    %c0_84 = arith.constant 0 : index
    %62 = vector.load %arg3[%c7, %c0_83, %c0_84] : memref<9x128x128xbf16, #tpu.memory_space<vmem>>, vector<1x128x128xbf16>
    %63 = vector.shape_cast %62 : vector<1x128x128xbf16> to vector<128x128xbf16>
    %cst_85 = arith.constant dense<0.000000e+00> : vector<512x128xf32>
    %64 = tpu.matmul %61, %63, %cst_85 {dimension_numbers = #tpu.dot_dimension_numbers<[1], [0], [0], [1], [0, 0, 1, 1], [], []>} : vector<512x128xbf16>, vector<128x128xbf16>, vector<512x128xf32> -> vector<512x128xf32>
    %65 = arith.addf %59, %64 : vector<512x128xf32>
    %c0_86 = arith.constant 0 : index
    %c2_87 = arith.constant 2 : index
    %c2_88 = arith.constant 2 : index
    %c0_89 = arith.constant 0 : index
    %66 = vector.load %arg9[%c0_86, %c2_87, %c2_88, %c0_89] : memref<2x18x18x128xbf16, #tpu.memory_space<vmem>>, vector<2x16x16x128xbf16>
    %67 = vector.shape_cast %66 : vector<2x16x16x128xbf16> to vector<512x128xbf16>
    %c8 = arith.constant 8 : index
    %c0_90 = arith.constant 0 : index
    %c0_91 = arith.constant 0 : index
    %68 = vector.load %arg3[%c8, %c0_90, %c0_91] : memref<9x128x128xbf16, #tpu.memory_space<vmem>>, vector<1x128x128xbf16>
    %69 = vector.shape_cast %68 : vector<1x128x128xbf16> to vector<128x128xbf16>
    %cst_92 = arith.constant dense<0.000000e+00> : vector<512x128xf32>
    %70 = tpu.matmul %67, %69, %cst_92 {dimension_numbers = #tpu.dot_dimension_numbers<[1], [0], [0], [1], [0, 0, 1, 1], [], []>} : vector<512x128xbf16>, vector<128x128xbf16>, vector<512x128xf32> -> vector<512x128xf32>
    %71 = arith.addf %65, %70 : vector<512x128xf32>
    %c0_93 = arith.constant 0 : index
    %c0_94 = arith.constant 0 : index
    %72 = vector.load %arg6[%c0_93, %c0_94] : memref<1x128xf32, #tpu.memory_space<vmem>>, vector<1x128xf32>
    %73 = vector.broadcast %72 : vector<1x128xf32> to vector<512x128xf32>
    %74 = arith.addf %71, %73 : vector<512x128xf32>
    %cst_95 = arith.constant 0.000000e+00 : f32
    %75 = vector.broadcast %cst_95 : f32 to vector<512x128xf32>
    %76 = arith.maximumf %74, %75 : vector<512x128xf32>
    %77 = arith.truncf %76 : vector<512x128xf32> to vector<512x128xbf16>
    %c0_96 = arith.constant 0 : index
    %c0_97 = arith.constant 0 : index
    %78 = vector.load %arg4[%c0_96, %c0_97] : memref<128x16xbf16, #tpu.memory_space<vmem>>, vector<128x16xbf16>
    %cst_98 = arith.constant dense<0.000000e+00> : vector<512x16xf32>
    %79 = tpu.matmul %77, %78, %cst_98 {dimension_numbers = #tpu.dot_dimension_numbers<[1], [0], [0], [1], [0, 0, 1, 1], [], []>} : vector<512x128xbf16>, vector<128x16xbf16>, vector<512x16xf32> -> vector<512x16xf32>
    %c0_99 = arith.constant 0 : index
    %c0_100 = arith.constant 0 : index
    %80 = vector.load %arg7[%c0_99, %c0_100] : memref<1x16xf32, #tpu.memory_space<vmem>>, vector<1x16xf32>
    %81 = vector.broadcast %80 : vector<1x16xf32> to vector<512x16xf32>
    %82 = arith.addf %79, %81 : vector<512x16xf32>
    %c0_101 = arith.constant 0 : index
    %c0_102 = arith.constant 0 : index
    %c0_103 = arith.constant 0 : index
    %c0_104 = arith.constant 0 : index
    %83 = vector.load %arg1[%c0_101, %c0_102, %c0_103, %c0_104] : memref<2x16x16x16xf32, #tpu.memory_space<vmem>>, vector<2x16x16x16xf32>
    %84 = vector.shape_cast %83 : vector<2x16x16x16xf32> to vector<512x16xf32>
    %85 = arith.addf %82, %84 : vector<512x16xf32>
    %cst_105 = arith.constant 0.000000e+00 : f32
    %86 = vector.broadcast %cst_105 : f32 to vector<512x16xf32>
    %87 = arith.maximumf %85, %86 : vector<512x16xf32>
    %88 = vector.shape_cast %87 : vector<512x16xf32> to vector<2x16x16x16xf32>
    %c0_106 = arith.constant 0 : index
    %c0_107 = arith.constant 0 : index
    %c0_108 = arith.constant 0 : index
    %c0_109 = arith.constant 0 : index
    %89 = vector.load %arg8[%c0_106, %c0_107, %c0_108, %c0_109] : memref<2x16x16x16xf32, #tpu.memory_space<vmem>>, vector<2x16x16x16xf32>
    tpu.vector_store %arg8[%c0_106, %c0_107, %c0_108, %c0_109], %88 {strides = array<i32>} : memref<2x16x16x16xf32, #tpu.memory_space<vmem>>, vector<2x16x16x16xf32>,
    return
  }
  func.func @transform_0(%arg0: i32) -> (i32, i32, i32, i32) {
    %c0_i32 = arith.constant 0 : i32
    %c0_i32_0 = arith.constant 0 : i32
    %c0_i32_1 = arith.constant 0 : i32
    %c0_i32_2 = arith.constant 0 : i32
    return %arg0, %c0_i32, %c0_i32_0, %c0_i32_1 : i32, i32, i32, i32
  }
  func.func @transform_1(%arg0: i32) -> (i32, i32) {
    %c0_i32 = arith.constant 0 : i32
    %c0_i32_0 = arith.constant 0 : i32
    %c0_i32_1 = arith.constant 0 : i32
    return %c0_i32, %c0_i32_0 : i32, i32
  }
  func.func @transform_2(%arg0: i32) -> (i32, i32, i32) {
    %c0_i32 = arith.constant 0 : i32
    %c0_i32_0 = arith.constant 0 : i32
    %c0_i32_1 = arith.constant 0 : i32
    %c0_i32_2 = arith.constant 0 : i32
    return %c0_i32, %c0_i32_0, %c0_i32_1 : i32, i32, i32
  }
  func.func @transform_3(%arg0: i32) -> (i32, i32) {
    %c0_i32 = arith.constant 0 : i32
    %c0_i32_0 = arith.constant 0 : i32
    %c0_i32_1 = arith.constant 0 : i32
    return %c0_i32, %c0_i32_0 : i32, i32
  }
  func.func @transform_4(%arg0: i32) -> (i32, i32) {
    %c0_i32 = arith.constant 0 : i32
    %c0_i32_0 = arith.constant 0 : i32
    %c0_i32_1 = arith.constant 0 : i32
    return %c0_i32, %c0_i32_0 : i32, i32
  }
  func.func @transform_5(%arg0: i32) -> (i32, i32) {
    %c0_i32 = arith.constant 0 : i32
    %c0_i32_0 = arith.constant 0 : i32
    %c0_i32_1 = arith.constant 0 : i32
    return %c0_i32, %c0_i32_0 : i32, i32
  }
  func.func @transform_6(%arg0: i32) -> (i32, i32) {
    %c0_i32 = arith.constant 0 : i32
    %c0_i32_0 = arith.constant 0 : i32
    %c0_i32_1 = arith.constant 0 : i32
    return %c0_i32, %c0_i32_0 : i32, i32
  }
  func.func @transform_7(%arg0: i32) -> (i32, i32, i32, i32) {
    %c0_i32 = arith.constant 0 : i32
    %c0_i32_0 = arith.constant 0 : i32
    %c0_i32_1 = arith.constant 0 : i32
    %c0_i32_2 = arith.constant 0 : i32
    return %arg0, %c0_i32, %c0_i32_0, %c0_i32_1 : i32, i32, i32, i32
  }
}

</mosaic_0001>

<bundles_post_ra>
// kernel: bottleneck_pallas.1
= control target key start
LH: loop header
LB: loop body
LE: loop exit
PB: predicated region body
PF: predicated region fallthrough
CT: control target
= control target key end

     0   :  { %s11598_s24 = smov 0   ;;  %s15572_s0 = inlined_call_operand.vmem [shape: f32[8,16,16,16], index: 0, kind: input, shape index: {}]   ;;  %s15573_s1 = inlined_call_operand.vmem [shape: bf16[16,128], index: 1, kind: input, shape index: {}]   ;;  %s15574_s2 = inlined_call_operand.vmem [shape: bf16[9,128,128], index: 2, kind: input, shape index: {}]   ;;  %s15575_s3 = inlined_call_operand.vmem [shape: bf16[128,16], index: 3, kind: input, shape index: {}]   ;;  %s15576_s4 = inlined_call_operand.vmem [shape: f32[1,128], index: 4, kind: input, shape index: {}]   ;;  %s15577_s5 = inlined_call_operand.vmem [shape: f32[1,128], index: 5, kind: input, shape index: {}]   ;;  %s15578_s6 = inlined_call_operand.vmem [shape: f32[1,16], index: 6, kind: input, shape index: {}]   ;;  %s15579_s7 = inlined_call_operand.vmem [shape: f32[8,16,16,16], index: 7, kind: output, shape index: {}]  }
   0x1 LB: > { %s10232_s25 = sadd.s32 4294967295, %s11555_s24   ;;  %p10236_p0 = scmp.ge.s32.totalorder %s11555_s24, 1  ;;  %s11555_s24 = sphi %s11598_s24, %s17_s24  }
   0x2   : > { %p239_p1 = scmp.lt.s32.totalorder %s11555_s24, 5 }
   0x4   : > { %p240_p2 = pnand %p10236_p0, %p239_p1 }
   0x6   : > { %243 = sbr.rel (%p240_p2) target bundleno = 2121 (0x849), region = 48 }
   0xb   : > { %v11211_v0 = vld [vmem:[%s15573_s1] sm:$0xff]  ;;  %s10237_s28 = sshll.u32 %s10232_s25, 1  ;;  %vm396_vm0 = vcmask 130048   ;;  %v11251_v16 = vld [vmem:[%s15574_s2 + $0x38] sm:$0xff]  ;;  %v11250_v20 = vld [vmem:[%s15574_s2 + $0x30] sm:$0xff]  ;;  %vm740_vm1 = vcmask 1040384  }
   0xc   : > { %p274_p3 = scmp.lt.s32.totalorder %s10237_s28, 7  ;;  %500 = vmatpush.bf16.msra.mxu0 %v11211_v0  ;;  %11388 = vmatpush.bf16.msra.mxu3 %v11211_v0  ;;  %v11259_v21 = vld [vmem:[%s15574_s2 + $0x78] sm:$0xff]  ;;  %v11249_v22 = vld [vmem:[%s15574_s2 + $0x28] sm:$0xff]  ;;  %v11248_v23 = vld [vmem:[%s15574_s2 + $0x20] sm:$0xff]  ;;  %vm741_vm2 = vsmask.f32 256 }
   0xd   : > { %3354 = vmatpush.bf16.msra.mxu2 %v11251_v16  ;;  %2945 = vmatpush.bf16.msra.mxu1 %v11259_v21  ;;  %v11258_v26 = vld [vmem:[%s15574_s2 + $0x70] sm:$0xff]  ;;  %v11247_v27 = vld [vmem:[%s15574_s2 + $0x18] sm:$0xff]  ;;  %v11257_v29 = vld [vmem:[%s15574_s2 + $0x68] sm:$0xff]  ;;  %v11557_v36 = vmov 0   ;;  %vm839_vm4 = vsmask.f32 7938 }
   0xe   : > { %s16318_s28 = smov (!%p274_p3, %s10237_s28), 7  ;;  %v11246_v30 = vld [vmem:[%s15574_s2 + $0x10] sm:$0xff]  ;;  %vm11669_vm3 = vmand %vm740_vm1, %vm741_vm2  ;;  %v743_v32 = vld [vmem:[#allocation2 + $0xc] sm:$0x1]  ;;  %726 = vst [vmem:[#allocation2] sm:$0xf] %v11557_v36 }
   0xf   : > { %s11209_s29 = sshll.u32 %s16318_s28, 8  ;;  %v744_v33 = vsel %vm11669_vm3, 0, %v743_v32  ;;  %v11256_v34 = vld [vmem:[%s15574_s2 + $0x60] sm:$0xff]  ;;  %v11245_v35 = vld [vmem:[%s15574_s2 + $0x8] sm:$0xff]  ;;  %727 = vst [vmem:[#allocation2 + $0x4] sm:$0xf] %v11557_v36  ;;  %vm11683_vm5 = vmand %vm740_vm1, %vm839_vm4 }
  0x10   : > { %s11617_s9 = scalar_lea.vmem %s15572_s0, %s11209_s29  ;;  %11389 = vmatpush.bf16.msrb.mxu3 %v11259_v21  ;;  %745 = vst [vmem:[#allocation2 + $0xc] sm:$0x1] %v744_v33  ;;  %v841_v38 = vld [vmem:[#allocation2 + $0x14] sm:$0x1]  ;;  %v11255_v39 = vld [vmem:[%s15574_s2 + $0x58] sm:$0xff]  ;;  %v11244_v43 = vld [vmem:[%s15574_s2] sm:$0xff]  ;;  %s14966_s12 = scalar_lea.vmem %s15579_s7, %s11209_s29 }
  0x11   : > { %v288_v1 = vld [vmem:[%s11617_s9] sm:$0xff]  ;;  %v289_v2 = vld [vmem:[%s11617_s9 + $0x8] sm:$0xff]  ;;  %v290_v4 = vld [vmem:[%s11617_s9 + $0x10] sm:$0xff]  ;;  %3355 = vmatpush.bf16.msra.mxu2 %v11250_v20  ;;  %2946 = vmatpush.bf16.msra.mxu1 %v11258_v26  ;;  %728 = vst [vmem:[#allocation2 + $0x8] sm:$0x1] %v11557_v36  ;;  %v842_v42 = vsel %vm11683_vm5, 0, %v841_v38 }
  0x12   : > { %v352_v3 = vpack.c.bf16 %v289_v2, %v288_v1  ;;  %v291_v5 = vld [vmem:[%s11617_s9 + $0x18] sm:$0xff]  ;;  %v292_v7 = vld [vmem:[%s11617_s9 + $0x20] sm:$0xff]  ;;  %v293_v8 = vld [vmem:[%s11617_s9 + $0x28] sm:$0xff]  ;;  %729 = vst [vmem:[#allocation2 + $0xd8] sm:$0xf] %v11557_v36  ;;  %v15590_v0 = vmov 0 }
  0x13   : > { %v353_v6 = vpack.c.bf16 %v291_v5, %v290_v4  ;;  %v354_v9 = vpack.c.bf16 %v293_v8, %v292_v7  ;;  %v294_v10 = vld [vmem:[%s11617_s9 + $0x30] sm:$0xff]  ;;  %v295_v11 = vld [vmem:[%s11617_s9 + $0x38] sm:$0xff]  ;;  %v296_v13 = vld [vmem:[%s11617_s9 + $0x40] sm:$0xff]  ;;  %730 = vst [vmem:[#allocation2 + $0xdc] sm:$0xf] %v11557_v36  ;;  %vm1643_vm9 = vcmask 1043456  }
  0x14   : > { %10247 = vmatmul.msk.bf16.vlgmr.msra.gmra.mxu0 %vm396_vm0, %v352_v3  ;;  %v355_v12 = vpack.c.bf16 %v295_v11, %v294_v10  ;;  %v297_v14 = vld [vmem:[%s11617_s9 + $0x48] sm:$0xff]  ;;  %v298_v17 = vld [vmem:[%s11617_s9 + $0x50] sm:$0xff]  ;;  %v299_v18 = vld [vmem:[%s11617_s9 + $0x58] sm:$0xff]  ;;  %11390 = vmatpush.bf16.msrb.mxu3 %v11258_v26  ;;  %731 = vst [vmem:[#allocation2 + $0xe0] sm:$0x1] %v11557_v36  ;;  %vm3619_vm13 = vcmask 1042432  }
  0x15   : > { %v356_v15 = vpack.c.bf16 %v297_v14, %v296_v13  ;;  %v357_v19 = vpack.c.bf16 %v299_v18, %v298_v17  ;;  %3356 = vmatpush.bf16.msra.mxu2 %v11249_v22  ;;  %v300_v24 = vld [vmem:[%s11617_s9 + $0x60] sm:$0xff]  ;;  %v301_v25 = vld [vmem:[%s11617_s9 + $0x68] sm:$0xff]  ;;  %2947 = vmatpush.bf16.msra.mxu1 %v11257_v29  ;;  %v302_v40 = vld [vmem:[%s11617_s9 + $0x70] sm:$0xff]  ;;  %843 = vst [vmem:[#allocation2 + $0x14] sm:$0x1] %v842_v42  ;;  %vm3620_vm14 = vcmask 1046532  }
  0x16   : > { %v358_v28 = vpack.c.bf16 %v301_v25, %v300_v24  ;;  %v303_v41 = vld [vmem:[%s11617_s9 + $0x78] sm:$0xff]  ;;  %733 = vst [vmem:[#allocation2 + $0xcc] sm:$0xf] %v11557_v36  ;;  %v1869_v44 = vld [vmem:[#allocation2] sm:$0xf]  ;;  %v11254_v46 = vld [vmem:[%s15574_s2 + $0x50] sm:$0xff] }
  0x17   : > { %v359_v45 = vpack.c.bf16 %v303_v41, %v302_v40  ;;  %v11212_v47 = vld [vmem:[#allocation2] sm:$0xff]  ;;  %734 = vst [vmem:[#allocation2 + $0xd0] sm:$0xf] %v11557_v36  ;;  %v1985_v48 = vshrl.u32 %v1869_v44, 16  ;;  %v1988_v49 = vshll.u32 %v1869_v44, 16  ;;  %v11253_v56 = vld [vmem:[%s15574_s2 + $0x48] sm:$0xff]  ;;  %vm11732_vm10 = vmand %vm1643_vm9, %vm839_vm4 }
  0x18   : > { %11391 = vmatpush.bf16.msrb.mxu3 %v11257_v29  ;;  %735 = vst [vmem:[#allocation2 + $0xd4] sm:$0x1] %v11557_v36  ;;  %v1870_v50 = vld [vmem:[#allocation2 + $0x4] sm:$0xf]  ;;  %v1949_v53 = vld [vmem:[#allocation2 + $0x8] sm:$0x1]  ;;  %vm12268_vm15 = vmor %vm3619_vm13, %vm3620_vm14 }
  0x19   : > { %3357 = vmatpush.bf16.msra.mxu2 %v11248_v23  ;;  %2948 = vmatpush.bf16.msra.mxu1 %v11256_v34  ;;  %736 = vst [vmem:[#allocation2 + $0x1a4] sm:$0xf] %v11557_v36  ;;  %v1987_v51 = vrot.slane %v1985_v48, 4  ;;  %v1990_v52 = vrot.slane %v1988_v49, 5  ;;  %v1994_v54 = vshll.u32 %v1870_v50, 16  ;;  %v1998_v55 = vshrl.u32 %v1870_v50, 16 }
  0x1a   : > { %737 = vst [vmem:[#allocation2 + $0x1a8] sm:$0xf] %v11557_v36  ;;  %v2004_v58 = vshll.u32 %v1949_v53, 16  ;;  %v746_v59 = vld [vmem:[#allocation2 + $0x18] sm:$0x1]  ;;  %v11252_v3 = vld [vmem:[%s15574_s2 + $0x40] sm:$0xff] }
  0x1b   : > { %738 = vst [vmem:[#allocation2 + $0x1ac] sm:$0x1] %v11557_v36  ;;  %v1991_v57 = vor.u32 %v1990_v52, %v1987_v51  ;;  %v1996_v60 = vrot.slane %v1994_v54, 5  ;;  %v2000_v61 = vrot.slane %v1998_v55, 4  ;;  %v747_v62 = vsel %vm11669_vm3, 0, %v746_v59  ;;  %v305_v10 = vld [vmem:[%s11617_s9 + $0x88] sm:$0xff] }
  0x1c   : > { %11392 = vmatpush.bf16.msrb.mxu3 %v11256_v34  ;;  %vm1981_vm6 = vsmask.f32 3328  ;;  %vm1982_vm7 = vsmask.f32 7440  ;;  %748 = vst [vmem:[#allocation2 + $0x18] sm:$0x1] %v747_v62 }
  0x1d   : > { %3358 = vmatpush.bf16.msra.mxu2 %v11247_v27  ;;  %2949 = vmatpush.bf16.msra.mxu1 %v11255_v39  ;;  %v1992_v63 = vrot.slane %v1991_v57, 4  ;;  %vm11706_vm8 = vmor %vm1981_vm6, %vm1982_vm7  ;;  %v2001_v1 = vor.u32 %v2000_v61, %v1996_v60  ;;  %v2006_v2 = vrot.slane %v2004_v58, 5  ;;  %v844_v11 = vld [vmem:[#allocation2 + $0x20] sm:$0x1]  ;;  %v306_v32 = vld [vmem:[%s11617_s9 + $0x90] sm:$0xff] }
  0x1e   : > { %v15591_v0 = vsel %vm11706_vm8, 4294967295, %v15590_v0  ;;  %v845_v13 = vsel %vm11683_vm5, 0, %v844_v11  ;;  %v307_v33 = vld [vmem:[%s11617_s9 + $0x98] sm:$0xff]  ;;  %v847_v34 = vld [vmem:[#allocation2 + $0x2c] sm:$0x1] }
  0x1f   : > { %15592 = vst [vmem:[#allocation3_spill] sm:$0xff] %v15591_v0  ;;  %v1997_v4 = vsel %vm11706_vm8, %v1992_v63, %v1996_v60  ;;  %v2002_v5 = vrot.slane %v2001_v1, 4  ;;  %v848_v38 = vsel %vm11683_vm5, 0, %v847_v34  ;;  %vm1001_vm11 = vsmask.f32 4368 }
  0x20   : > { %11393 = vmatpush.bf16.msrb.mxu3 %v11255_v39  ;;  %846 = vst [vmem:[#allocation2 + $0x20] sm:$0x1] %v845_v13  ;;  %v361_v40 = vpack.c.bf16 %v307_v33, %v306_v32  ;;  %vm11744_vm12 = vmor %vm741_vm2, %vm1001_vm11  ;;  %v752_v51 = vld [vmem:[#allocation2 + $0x30] sm:$0x1] }
  0x21   : > { %3359 = vmatpush.bf16.msra.mxu2 %v11246_v30  ;;  %2950 = vmatpush.bf16.msra.mxu1 %v11254_v46  ;;  %v2007_v7 = vsel %vm11706_vm8, %v2002_v5, %v2006_v2  ;;  %849 = vst [vmem:[#allocation2 + $0x2c] sm:$0x1] %v848_v38 }
  0x22   : > { %v2770_v8 = vunpack.c.l.b16 %v2007_v7  ;;  %v309_v7 = vld [vmem:[%s11617_s9 + $0xa8] sm:$0xff] }
  0x23   : > { %v1652_v1 = vld [vmem:[#allocation2 + $0x18] sm:$0xf] }
  0x24   : > { %10248 = vmatmul.msk.bf16.gmra.mxu0 %vm396_vm0, %v353_v6  ;;  %11394 = vmatpush.bf16.msrb.mxu3 %v11254_v46  ;;  %v2769_v6 = vunpack.c.l.b16 %v1997_v4  ;;  %v1649_v46 = vld [vmem:[#allocation2 + $0x14] sm:$0x1] }
  0x25   : > { %3360 = vmatpush.bf16.msra.mxu2 %v11245_v35  ;;  %2951 = vmatpush.bf16.msra.mxu1 %v11253_v56 }
  0x26   : > { %v2833_v14 = vpack.c.b16 %v2770_v8, %v2769_v6  ;;  %v308_v6 = vld [vmem:[%s11617_s9 + $0xa0] sm:$0xff]  ;;  %v850_v8 = vld [vmem:[#allocation2 + $0x38] sm:$0x1] }
  0x28   : > { %11395 = vmatpush.bf16.msrb.mxu3 %v11253_v56  ;;  %v753_v56 = vsel %vm11669_vm3, 0, %v752_v51 }
  0x29   : > { %3361 = vmatpush.bf16.msra.mxu2 %v11244_v43  ;;  %2952 = vmatpush.bf16.msra.mxu1 %v11252_v3  ;;  %754 = vst [vmem:[#allocation2 + $0x30] sm:$0x1] %v753_v56 }
  0x2c   : > { %3362 = vmatmul.bf16.vlgmr.msra.gmra.mxu2 %v11212_v47  ;;  %11396 = vmatpush.bf16.msrb.mxu3 %v11252_v3 }
  0x2d   : > { %2953 = vmatmul.bf16.vlgmr.msra.gmra.mxu1 %v2833_v14  ;;  %v851_v14 = vsel %vm11683_vm5, 0, %v850_v8 }
  0x2e   : > { %852 = vst [vmem:[#allocation2 + $0x38] sm:$0x1] %v851_v14 }
  0x34   : > { %10249 = vmatmul.msk.bf16.gmra.mxu0 %vm396_vm0, %v354_v9  ;;  %v304_v9 = vld [vmem:[%s11617_s9 + $0x80] sm:$0xff] }
  0x44   : > { %10250 = vmatmul.msk.bf16.gmra.mxu0 %vm396_vm0, %v355_v12  ;;  %v11722_v12 = vld [vmem:[%s15576_s4] ss:$0 sm:$0xff] }
  0x54   : > { %10251 = vmatmul.msk.bf16.gmra.mxu0 %vm396_vm0, %v356_v15  ;;  %v360_v15 = vpack.c.bf16 %v305_v10, %v304_v9 }
  0x64   : > { %10252 = vmatmul.msk.bf16.gmra.mxu0 %vm396_vm0, %v357_v19  ;;  %v749_v19 = vld [vmem:[#allocation2 + $0x24] sm:$0x1] }
  0x65   : > { %v750_v21 = vsel %vm11669_vm3, 0, %v749_v19 }
  0x66   : > { %751 = vst [vmem:[#allocation2 + $0x24] sm:$0x1] %v750_v21 }
  0x74   : > { %10253 = vmatmul.msk.bf16.gmra.mxu0 %vm396_vm0, %v358_v28  ;;  %v1645_v28 = vld [vmem:[#allocation2 + $0xc] sm:$0xf] }
  0x84   : > { %10254 = vmatmul.msk.bf16.gmra.mxu0 %vm396_vm0, %v359_v45 }
  0x91   : > { %v502_v16 = vpop.f32.mrf.mxu0 }
  0x92   : > { %v503_v17 = vadd.f32 %v11722_v12, %v502_v16 }
  0x94   : > { %v662_v18 = vmax.f32 %v503_v17, 0.0  ;;  %10255 = vmatmul.msk.bf16.gmra.mxu0 %vm396_vm0, %v360_v15 }
  0x96   : > { %v937_v20 = vpack.c.bf16 %v662_v18, %v662_v18 }
  0x98   : > { %v1004_v22 = vshrl.u32 %v937_v20, 16  ;;  %v1007_v25 = vshll.u32 %v937_v20, 16  ;;  %v362_v20 = vpack.c.bf16 %v309_v7, %v308_v6 }
  0x99   : > { %v504_v23 = vpop.f32.mrf.mxu0 }
  0x9a   : > { %v1006_v24 = vrot.slane %v1004_v22, 7  ;;  %v505_v26 = vadd.f32 %v11722_v12, %v504_v23 }
  0x9c   : > { %v1009_v29 = vor.u32 %v1007_v25, %v1006_v24  ;;  %v663_v30 = vmax.f32 %v505_v26, 0.0  ;;  %v1010_v47 = vrot.slane %v1006_v24, 4 }
  0x9e   : > { %v1646_v35 = vsel %vm11732_vm10, %v1009_v29, %v1645_v28  ;;  %v938_v36 = vpack.c.bf16 %v663_v30, %v663_v30  ;;  %v1656_v29 = vld [vmem:[#allocation2 + $0x20] sm:$0x1] }
  0x9f   : > { %1647 = vst [vmem:[#allocation2 + $0xc] sm:$0xf] %v1646_v35 }
  0xa0   : > { %v1012_v39 = vshrl.u32 %v938_v36, 16  ;;  %v1015_v43 = vshll.u32 %v938_v36, 16 }
  0xa1   : > { %v507_v41 = vpop.f32.mrf.mxu0 }
  0xa2   : > { %v1014_v42 = vrot.slane %v1012_v39, 7  ;;  %v508_v44 = vadd.f32 %v11722_v12, %v507_v41  ;;  %v755_v41 = vld [vmem:[#allocation2 + $0x3c] sm:$0x1] }
  0xa4   : > { %v1017_v48 = vor.u32 %v1015_v43, %v1014_v42  ;;  %v1019_v49 = vrot.slane %v1014_v42, 4  ;;  %v664_v50 = vmax.f32 %v508_v44, 0.0  ;;  %10256 = vmatmul.msk.bf16.gmra.mxu0 %vm396_vm0, %v361_v40 }
  0xa6   : > { %v1018_v52 = vsel %vm11744_vm12, %v1010_v47, %v1017_v48  ;;  %v1650_v53 = vsel %vm11669_vm3, %v1019_v49, %v1649_v46  ;;  %v939_v54 = vpack.c.bf16 %v664_v50, %v664_v50  ;;  %v1871_v55 = vld [vmem:[#allocation2 + $0xc] sm:$0xf]  ;;  %v756_v47 = vsel %vm11669_vm3, 0, %v755_v41 }
  0xa7   : > { %1648 = vst [vmem:[#allocation2 + $0x10] sm:$0xf] %v1018_v52  ;;  %v2009_v57 = vshrl.u32 %v1871_v55, 16  ;;  %v2012_v58 = vshll.u32 %v1871_v55, 16 }
  0xa8   : > { %1651 = vst [vmem:[#allocation2 + $0x14] sm:$0x1] %v1650_v53  ;;  %v1021_v59 = vshrl.u32 %v939_v54, 16  ;;  %v1024_v62 = vshll.u32 %v939_v54, 16 }
  0xa9   : > { %v509_v60 = vpop.f32.mrf.mxu0  ;;  %v2011_v2 = vrot.slane %v2009_v57, 4  ;;  %v2014_v3 = vrot.slane %v2012_v58, 5  ;;  %757 = vst [vmem:[#allocation2 + $0x3c] sm:$0x1] %v756_v47 }
  0xaa   : > { %v1023_v61 = vrot.slane %v1021_v59, 7  ;;  %v510_v63 = vadd.f32 %v11722_v12, %v509_v60  ;;  %v1659_v59 = vld [vmem:[#allocation2 + $0x24] sm:$0xf] }
  0xab   : > { %v2015_v16 = vor.u32 %v2014_v3, %v2011_v2  ;;  %v311_v2 = vld [vmem:[%s11617_s9 + $0xb8] sm:$0xff]  ;;  %v853_v3 = vld [vmem:[#allocation2 + $0x44] sm:$0x1] }
  0xac   : > { %v1026_v4 = vor.u32 %v1024_v62, %v1023_v61  ;;  %v665_v5 = vmax.f32 %v510_v63, 0.0  ;;  %v1027_v33 = vrot.slane %v1023_v61, 4  ;;  %v854_v8 = vsel %vm11683_vm5, 0, %v853_v3 }
  0xad   : > { %v2016_v30 = vrot.slane %v2015_v16, 4  ;;  %855 = vst [vmem:[#allocation2 + $0x44] sm:$0x1] %v854_v8 }
  0xae   : > { %v1653_v9 = vsel %vm11732_vm10, %v1026_v4, %v1652_v1  ;;  %v940_v10 = vpack.c.bf16 %v665_v5, %v665_v5  ;;  %v11213_v11 = vld [vmem:[#allocation2 + $0xc] sm:$0xff] }
  0xaf   : > { %v1872_v13 = vld [vmem:[#allocation2 + $0x10] sm:$0xf]  ;;  %1654 = vst [vmem:[#allocation2 + $0x18] sm:$0xf] %v1653_v9  ;;  %v1950_v15 = vld [vmem:[#allocation2 + $0x14] sm:$0x1]  ;;  %3367 = vmatmul.bf16.gmra.mxu2 %v11213_v11 }
  0xb0   : > { %v2018_v17 = vshll.u32 %v1872_v13, 16  ;;  %v2022_v18 = vshrl.u32 %v1872_v13, 16  ;;  %v1029_v19 = vshrl.u32 %v940_v10, 16  ;;  %v2028_v24 = vshll.u32 %v1950_v15, 16  ;;  %v310_v1 = vld [vmem:[%s11617_s9 + $0xb0] sm:$0xff] }
  0xb1   : > { %v512_v21 = vpop.f32.mrf.mxu0  ;;  %v1032_v26 = vshll.u32 %v940_v10, 16  ;;  %v363_v15 = vpack.c.bf16 %v311_v2, %v310_v1 }
  0xb2   : > { %v2020_v22 = vrot.slane %v2018_v17, 5  ;;  %v2024_v23 = vrot.slane %v2022_v18, 4  ;;  %v1031_v25 = vrot.slane %v1029_v19, 7  ;;  %v513_v28 = vadd.f32 %v11722_v12, %v512_v21 }
  0xb3   : > { %v2030_v40 = vrot.slane %v2028_v24, 5 }
  0xb4   : > { %v2025_v32 = vor.u32 %v2024_v23, %v2020_v22  ;;  %v1034_v34 = vor.u32 %v1032_v26, %v1031_v25  ;;  %v1036_v35 = vrot.slane %v1031_v25, 4  ;;  %v666_v36 = vmax.f32 %v513_v28, 0.0  ;;  %10257 = vmatmul.msk.bf16.gmra.mxu0 %vm396_vm0, %v362_v20  ;;  %v1663_v23 = vld [vmem:[#allocation2 + $0x2c] sm:$0x1] }
  0xb5   : > { %v2021_v38 = vsel %vm11706_vm8, %v2016_v30, %v2020_v22 }
  0xb6   : > { %v2026_v39 = vrot.slane %v2025_v32, 4  ;;  %v1035_v42 = vsel %vm11744_vm12, %v1027_v33, %v1034_v34  ;;  %v1657_v43 = vsel %vm11669_vm3, %v1036_v35, %v1656_v29  ;;  %v941_v44 = vpack.c.bf16 %v666_v36, %v666_v36  ;;  %v1873_v46 = vld [vmem:[#allocation2 + $0x18] sm:$0xf]  ;;  %v758_v35 = vld [vmem:[#allocation2 + $0x48] sm:$0x1] }
  0xb7   : > { %1655 = vst [vmem:[#allocation2 + $0x1c] sm:$0xf] %v1035_v42  ;;  %v2033_v49 = vshrl.u32 %v1873_v46, 16  ;;  %v2036_v50 = vshll.u32 %v1873_v46, 16  ;;  %v2771_v52 = vunpack.c.l.b16 %v2021_v38  ;;  %v759_v41 = vsel %vm11669_vm3, 0, %v758_v35 }
  0xb8   : > { %v2031_v48 = vsel %vm11706_vm8, %v2026_v39, %v2030_v40  ;;  %1658 = vst [vmem:[#allocation2 + $0x20] sm:$0x1] %v1657_v43  ;;  %v1038_v51 = vshrl.u32 %v941_v44, 16  ;;  %v1041_v56 = vshll.u32 %v941_v44, 16 }
  0xb9   : > { %v2772_v53 = vunpack.c.l.b16 %v2031_v48  ;;  %v514_v54 = vpop.f32.mrf.mxu0  ;;  %v2035_v60 = vrot.slane %v2033_v49, 4  ;;  %v2038_v61 = vrot.slane %v2036_v50, 5  ;;  %760 = vst [vmem:[#allocation2 + $0x48] sm:$0x1] %v759_v41 }
  0xba   : > { %v1040_v55 = vrot.slane %v1038_v51, 7  ;;  %v515_v57 = vadd.f32 %v11722_v12, %v514_v54  ;;  %v1666_v54 = vld [vmem:[#allocation2 + $0x30] sm:$0xf] }
  0xbb   : > { %v2834_v58 = vpack.c.b16 %v2772_v53, %v2771_v52  ;;  %v2039_v10 = vor.u32 %v2038_v61, %v2035_v60  ;;  %v313_v60 = vld [vmem:[%s11617_s9 + $0xc8] sm:$0xff]  ;;  %v856_v61 = vld [vmem:[#allocation2 + $0x50] sm:$0x1] }
  0xbc   : > { %v1043_v62 = vor.u32 %v1041_v56, %v1040_v55  ;;  %v667_v63 = vmax.f32 %v515_v57, 0.0  ;;  %v1044_v26 = vrot.slane %v1040_v55, 4  ;;  %v857_v3 = vsel %vm11683_vm5, 0, %v856_v61 }
  0xbd   : > { %2958 = vmatmul.bf16.gmra.mxu1 %v2834_v58  ;;  %v2040_v24 = vrot.slane %v2039_v10, 4  ;;  %858 = vst [vmem:[#allocation2 + $0x50] sm:$0x1] %v857_v3 }
  0xbe   : > { %v1660_v4 = vsel %vm11732_vm10, %v1043_v62, %v1659_v59  ;;  %v942_v5 = vpack.c.bf16 %v667_v63, %v667_v63  ;;  %v11214_v6 = vld [vmem:[#allocation2 + $0x18] sm:$0xff]  ;;  %v312_v59 = vld [vmem:[%s11617_s9 + $0xc0] sm:$0xff] }
  0xbf   : > { %v1874_v7 = vld [vmem:[#allocation2 + $0x1c] sm:$0xf]  ;;  %1661 = vst [vmem:[#allocation2 + $0x24] sm:$0xf] %v1660_v4  ;;  %v1951_v9 = vld [vmem:[#allocation2 + $0x20] sm:$0x1]  ;;  %3372 = vmatmul.bf16.gmra.mxu2 %v11214_v6 }
  0xc0   : > { %v2042_v11 = vshll.u32 %v1874_v7, 16  ;;  %v2046_v13 = vshrl.u32 %v1874_v7, 16  ;;  %v1046_v14 = vshrl.u32 %v942_v5, 16  ;;  %v2052_v19 = vshll.u32 %v1951_v9, 16 }
  0xc1   : > { %v517_v16 = vpop.f32.mrf.mxu0  ;;  %v1049_v21 = vshll.u32 %v942_v5, 16  ;;  %v364_v9 = vpack.c.bf16 %v313_v60, %v312_v59 }
  0xc2   : > { %v2044_v17 = vrot.slane %v2042_v11, 5  ;;  %v2048_v18 = vrot.slane %v2046_v13, 4  ;;  %v1048_v20 = vrot.slane %v1046_v14, 7  ;;  %v518_v22 = vadd.f32 %v11722_v12, %v517_v16 }
  0xc3   : > { %v2054_v34 = vrot.slane %v2052_v19, 5 }
  0xc4   : > { %v2049_v25 = vor.u32 %v2048_v18, %v2044_v17  ;;  %v1051_v28 = vor.u32 %v1049_v21, %v1048_v20  ;;  %v1053_v29 = vrot.slane %v1048_v20, 4  ;;  %v668_v30 = vmax.f32 %v518_v22, 0.0  ;;  %10258 = vmatmul.msk.bf16.gmra.mxu0 %vm396_vm0, %v363_v15  ;;  %v1670_v18 = vld [vmem:[#allocation2 + $0x38] sm:$0x1] }
  0xc5   : > { %v2045_v32 = vsel %vm11706_vm8, %v2040_v24, %v2044_v17 }
  0xc6   : > { %v2050_v33 = vrot.slane %v2049_v25, 4  ;;  %v1052_v36 = vsel %vm11744_vm12, %v1044_v26, %v1051_v28  ;;  %v1664_v38 = vsel %vm11669_vm3, %v1053_v29, %v1663_v23  ;;  %v943_v39 = vpack.c.bf16 %v668_v30, %v668_v30  ;;  %v1875_v40 = vld [vmem:[#allocation2 + $0x24] sm:$0xf]  ;;  %v761_v29 = vld [vmem:[#allocation2 + $0x54] sm:$0x1] }
  0xc7   : > { %1662 = vst [vmem:[#allocation2 + $0x28] sm:$0xf] %v1052_v36  ;;  %v2057_v43 = vshrl.u32 %v1875_v40, 16  ;;  %v2060_v44 = vshll.u32 %v1875_v40, 16  ;;  %v2773_v47 = vunpack.c.l.b16 %v2045_v32  ;;  %v762_v35 = vsel %vm11669_vm3, 0, %v761_v29 }
  0xc8   : > { %v2055_v42 = vsel %vm11706_vm8, %v2050_v33, %v2054_v34  ;;  %1665 = vst [vmem:[#allocation2 + $0x2c] sm:$0x1] %v1664_v38  ;;  %v1055_v46 = vshrl.u32 %v943_v39, 16  ;;  %v1058_v51 = vshll.u32 %v943_v39, 16 }
  0xc9   : > { %v2774_v48 = vunpack.c.l.b16 %v2055_v42  ;;  %v519_v49 = vpop.f32.mrf.mxu0  ;;  %v2059_v55 = vrot.slane %v2057_v43, 4  ;;  %v2062_v56 = vrot.slane %v2060_v44, 5  ;;  %763 = vst [vmem:[#allocation2 + $0x54] sm:$0x1] %v762_v35 }
  0xca   : > { %v1057_v50 = vrot.slane %v1055_v46, 7  ;;  %v520_v52 = vadd.f32 %v11722_v12, %v519_v49  ;;  %v1673_v49 = vld [vmem:[#allocation2 + $0x3c] sm:$0xf] }
  0xcb   : > { %v2835_v53 = vpack.c.b16 %v2774_v48, %v2773_v47  ;;  %v2063_v5 = vor.u32 %v2062_v56, %v2059_v55  ;;  %v315_v55 = vld [vmem:[%s11617_s9 + $0xd8] sm:$0xff] }
  0xcc   : > { %v1060_v57 = vor.u32 %v1058_v51, %v1057_v50  ;;  %v669_v58 = vmax.f32 %v520_v52, 0.0  ;;  %v1061_v21 = vrot.slane %v1057_v50, 4  ;;  %v859_v56 = vld [vmem:[#allocation2 + $0x5c] sm:$0x1] }
  0xcd   : > { %2963 = vmatmul.bf16.gmra.mxu1 %v2835_v53  ;;  %v2064_v19 = vrot.slane %v2063_v5, 4  ;;  %v860_v61 = vsel %vm11683_vm5, 0, %v859_v56 }
  0xce   : > { %v1667_v62 = vsel %vm11732_vm10, %v1060_v57, %v1666_v54  ;;  %v944_v63 = vpack.c.bf16 %v669_v58, %v669_v58  ;;  %v11215_v1 = vld [vmem:[#allocation2 + $0x24] sm:$0xff]  ;;  %v314_v54 = vld [vmem:[%s11617_s9 + $0xd0] sm:$0xff]  ;;  %861 = vst [vmem:[#allocation2 + $0x5c] sm:$0x1] %v860_v61 }
  0xcf   : > { %v1876_v2 = vld [vmem:[#allocation2 + $0x28] sm:$0xf]  ;;  %1668 = vst [vmem:[#allocation2 + $0x30] sm:$0xf] %v1667_v62  ;;  %v1952_v4 = vld [vmem:[#allocation2 + $0x2c] sm:$0x1]  ;;  %3377 = vmatmul.bf16.gmra.mxu2 %v11215_v1 }
  0xd0   : > { %v2066_v6 = vshll.u32 %v1876_v2, 16  ;;  %v2070_v7 = vshrl.u32 %v1876_v2, 16  ;;  %v1063_v8 = vshrl.u32 %v944_v63, 16  ;;  %v2076_v14 = vshll.u32 %v1952_v4, 16 }
  0xd1   : > { %v522_v10 = vpop.f32.mrf.mxu0  ;;  %v1066_v16 = vshll.u32 %v944_v63, 16  ;;  %v365_v4 = vpack.c.bf16 %v315_v55, %v314_v54 }
  0xd2   : > { %v2068_v11 = vrot.slane %v2066_v6, 5  ;;  %v2072_v13 = vrot.slane %v2070_v7, 4  ;;  %v1065_v15 = vrot.slane %v1063_v8, 7  ;;  %v523_v17 = vadd.f32 %v11722_v12, %v522_v10 }
  0xd3   : > { %v2078_v28 = vrot.slane %v2076_v14, 5 }
  0xd4   : > { %v2073_v20 = vor.u32 %v2072_v13, %v2068_v11  ;;  %v1068_v22 = vor.u32 %v1066_v16, %v1065_v15  ;;  %v1070_v23 = vrot.slane %v1065_v15, 4  ;;  %v670_v24 = vmax.f32 %v523_v17, 0.0  ;;  %10259 = vmatmul.msk.bf16.gmra.mxu0 %vm396_vm0, %v364_v9  ;;  %v1677_v13 = vld [vmem:[#allocation2 + $0x44] sm:$0x1] }
  0xd5   : > { %v2069_v25 = vsel %vm11706_vm8, %v2064_v19, %v2068_v11 }
  0xd6   : > { %v2074_v26 = vrot.slane %v2073_v20, 4  ;;  %v1069_v30 = vsel %vm11744_vm12, %v1061_v21, %v1068_v22  ;;  %v1671_v32 = vsel %vm11669_vm3, %v1070_v23, %v1670_v18  ;;  %v945_v33 = vpack.c.bf16 %v670_v24, %v670_v24  ;;  %v1877_v34 = vld [vmem:[#allocation2 + $0x30] sm:$0xf]  ;;  %v764_v23 = vld [vmem:[#allocation2 + $0x60] sm:$0x1] }
  0xd7   : > { %1669 = vst [vmem:[#allocation2 + $0x34] sm:$0xf] %v1069_v30  ;;  %v2081_v38 = vshrl.u32 %v1877_v34, 16  ;;  %v2084_v39 = vshll.u32 %v1877_v34, 16  ;;  %v2775_v41 = vunpack.c.l.b16 %v2069_v25  ;;  %v765_v29 = vsel %vm11669_vm3, 0, %v764_v23 }
  0xd8   : > { %v2079_v36 = vsel %vm11706_vm8, %v2074_v26, %v2078_v28  ;;  %1672 = vst [vmem:[#allocation2 + $0x38] sm:$0x1] %v1671_v32  ;;  %v1072_v40 = vshrl.u32 %v945_v33, 16  ;;  %v1075_v46 = vshll.u32 %v945_v33, 16 }
  0xd9   : > { %v2776_v42 = vunpack.c.l.b16 %v2079_v36  ;;  %v524_v43 = vpop.f32.mrf.mxu0  ;;  %v2083_v50 = vrot.slane %v2081_v38, 4  ;;  %v2086_v51 = vrot.slane %v2084_v39, 5  ;;  %766 = vst [vmem:[#allocation2 + $0x60] sm:$0x1] %v765_v29 }
  0xda   : > { %v1074_v44 = vrot.slane %v1072_v40, 7  ;;  %v525_v47 = vadd.f32 %v11722_v12, %v524_v43  ;;  %v1680_v43 = vld [vmem:[#allocation2 + $0x48] sm:$0xf] }
  0xdb   : > { %v2836_v48 = vpack.c.b16 %v2776_v42, %v2775_v41  ;;  %v2087_v63 = vor.u32 %v2086_v51, %v2083_v50  ;;  %v317_v50 = vld [vmem:[%s11617_s9 + $0xe8] sm:$0xff] }
  0xdc   : > { %v1077_v52 = vor.u32 %v1075_v46, %v1074_v44  ;;  %v671_v53 = vmax.f32 %v525_v47, 0.0  ;;  %v1078_v16 = vrot.slane %v1074_v44, 4  ;;  %v862_v51 = vld [vmem:[#allocation2 + $0x68] sm:$0x1] }
  0xdd   : > { %2968 = vmatmul.bf16.gmra.mxu1 %v2836_v48  ;;  %v2088_v14 = vrot.slane %v2087_v63, 4  ;;  %v863_v56 = vsel %vm11683_vm5, 0, %v862_v51 }
  0xde   : > { %v1674_v57 = vsel %vm11732_vm10, %v1077_v52, %v1673_v49  ;;  %v946_v58 = vpack.c.bf16 %v671_v53, %v671_v53  ;;  %v11216_v59 = vld [vmem:[#allocation2 + $0x30] sm:$0xff]  ;;  %v316_v49 = vld [vmem:[%s11617_s9 + $0xe0] sm:$0xff]  ;;  %864 = vst [vmem:[#allocation2 + $0x68] sm:$0x1] %v863_v56 }
  0xdf   : > { %v1878_v60 = vld [vmem:[#allocation2 + $0x34] sm:$0xf]  ;;  %1675 = vst [vmem:[#allocation2 + $0x3c] sm:$0xf] %v1674_v57  ;;  %v1953_v62 = vld [vmem:[#allocation2 + $0x38] sm:$0x1]  ;;  %3382 = vmatmul.bf16.gmra.mxu2 %v11216_v59 }
  0xe0   : > { %v2090_v1 = vshll.u32 %v1878_v60, 16  ;;  %v2094_v2 = vshrl.u32 %v1878_v60, 16  ;;  %v1080_v3 = vshrl.u32 %v946_v58, 16  ;;  %v2100_v8 = vshll.u32 %v1953_v62, 16 }
  0xe1   : > { %v527_v5 = vpop.f32.mrf.mxu0  ;;  %v1083_v10 = vshll.u32 %v946_v58, 16  ;;  %v366_v62 = vpack.c.bf16 %v317_v50, %v316_v49 }
  0xe2   : > { %v2092_v6 = vrot.slane %v2090_v1, 5  ;;  %v2096_v7 = vrot.slane %v2094_v2, 4  ;;  %v1082_v9 = vrot.slane %v1080_v3, 7  ;;  %v528_v11 = vadd.f32 %v11722_v12, %v527_v5 }
  0xe3   : > { %v2102_v22 = vrot.slane %v2100_v8, 5 }
  0xe4   : > { %v2097_v15 = vor.u32 %v2096_v7, %v2092_v6  ;;  %v1085_v17 = vor.u32 %v1083_v10, %v1082_v9  ;;  %v1087_v18 = vrot.slane %v1082_v9, 4  ;;  %v672_v19 = vmax.f32 %v528_v11, 0.0  ;;  %10260 = vmatmul.msk.bf16.gmra.mxu0 %vm396_vm0, %v365_v4  ;;  %v1684_v7 = vld [vmem:[#allocation2 + $0x50] sm:$0x1] }
  0xe5   : > { %v2093_v20 = vsel %vm11706_vm8, %v2088_v14, %v2092_v6 }
  0xe6   : > { %v2098_v21 = vrot.slane %v2097_v15, 4  ;;  %v1086_v24 = vsel %vm11744_vm12, %v1078_v16, %v1085_v17  ;;  %v1678_v25 = vsel %vm11669_vm3, %v1087_v18, %v1677_v13  ;;  %v947_v26 = vpack.c.bf16 %v672_v19, %v672_v19  ;;  %v1879_v28 = vld [vmem:[#allocation2 + $0x3c] sm:$0xf]  ;;  %v767_v18 = vld [vmem:[#allocation2 + $0x6c] sm:$0x1] }
  0xe7   : > { %1676 = vst [vmem:[#allocation2 + $0x40] sm:$0xf] %v1086_v24  ;;  %v2105_v32 = vshrl.u32 %v1879_v28, 16  ;;  %v2108_v33 = vshll.u32 %v1879_v28, 16  ;;  %v2777_v35 = vunpack.c.l.b16 %v2093_v20  ;;  %v768_v23 = vsel %vm11669_vm3, 0, %v767_v18 }
  0xe8   : > { %v2103_v30 = vsel %vm11706_vm8, %v2098_v21, %v2102_v22  ;;  %1679 = vst [vmem:[#allocation2 + $0x44] sm:$0x1] %v1678_v25  ;;  %v1089_v34 = vshrl.u32 %v947_v26, 16  ;;  %v1092_v40 = vshll.u32 %v947_v26, 16 }
  0xe9   : > { %v2778_v36 = vunpack.c.l.b16 %v2103_v30  ;;  %v529_v38 = vpop.f32.mrf.mxu0  ;;  %v2107_v44 = vrot.slane %v2105_v32, 4  ;;  %v2110_v46 = vrot.slane %v2108_v33, 5  ;;  %769 = vst [vmem:[#allocation2 + $0x6c] sm:$0x1] %v768_v23 }
  0xea   : > { %v1091_v39 = vrot.slane %v1089_v34, 7  ;;  %v530_v41 = vadd.f32 %v11722_v12, %v529_v38  ;;  %v1687_v38 = vld [vmem:[#allocation2 + $0x54] sm:$0xf] }
  0xeb   : > { %v2837_v42 = vpack.c.b16 %v2778_v36, %v2777_v35  ;;  %v2111_v58 = vor.u32 %v2110_v46, %v2107_v44  ;;  %v319_v44 = vld [vmem:[%s11617_s9 + $0xf8] sm:$0xff]  ;;  %v865_v46 = vld [vmem:[#allocation2 + $0x74] sm:$0x1] }
  0xec   : > { %v1094_v47 = vor.u32 %v1092_v40, %v1091_v39  ;;  %v673_v48 = vmax.f32 %v530_v41, 0.0  ;;  %v1095_v10 = vrot.slane %v1091_v39, 4  ;;  %v866_v51 = vsel %vm11683_vm5, 0, %v865_v46 }
  0xed   : > { %2973 = vmatmul.bf16.gmra.mxu1 %v2837_v42  ;;  %v2112_v8 = vrot.slane %v2111_v58, 4  ;;  %867 = vst [vmem:[#allocation2 + $0x74] sm:$0x1] %v866_v51 }
  0xee   : > { %v1681_v52 = vsel %vm11732_vm10, %v1094_v47, %v1680_v43  ;;  %v948_v53 = vpack.c.bf16 %v673_v48, %v673_v48  ;;  %v11217_v54 = vld [vmem:[#allocation2 + $0x3c] sm:$0xff]  ;;  %v318_v43 = vld [vmem:[%s11617_s9 + $0xf0] sm:$0xff] }
  0xef   : > { %v1880_v55 = vld [vmem:[#allocation2 + $0x40] sm:$0xf]  ;;  %1682 = vst [vmem:[#allocation2 + $0x48] sm:$0xf] %v1681_v52  ;;  %v1954_v57 = vld [vmem:[#allocation2 + $0x44] sm:$0x1]  ;;  %3387 = vmatmul.bf16.gmra.mxu2 %v11217_v54 }
  0xf0   : > { %v2114_v59 = vshll.u32 %v1880_v55, 16  ;;  %v2118_v60 = vshrl.u32 %v1880_v55, 16  ;;  %v1097_v61 = vshrl.u32 %v948_v53, 16  ;;  %v2124_v3 = vshll.u32 %v1954_v57, 16 }
  0xf1   : > { %v532_v63 = vpop.f32.mrf.mxu0  ;;  %v1100_v5 = vshll.u32 %v948_v53, 16  ;;  %v367_v57 = vpack.c.bf16 %v319_v44, %v318_v43 }
  0xf2   : > { %v2116_v1 = vrot.slane %v2114_v59, 5  ;;  %v2120_v2 = vrot.slane %v2118_v60, 4  ;;  %v1099_v4 = vrot.slane %v1097_v61, 7  ;;  %v533_v6 = vadd.f32 %v11722_v12, %v532_v63 }
  0xf3   : > { %v2126_v17 = vrot.slane %v2124_v3, 5 }
  0xf4   : > { %v2121_v9 = vor.u32 %v2120_v2, %v2116_v1  ;;  %v1102_v11 = vor.u32 %v1100_v5, %v1099_v4  ;;  %v1104_v13 = vrot.slane %v1099_v4, 4  ;;  %v674_v14 = vmax.f32 %v533_v6, 0.0  ;;  %10261 = vmatmul.msk.bf16.gmra.mxu0 %vm396_vm0, %v366_v62  ;;  %v1691_v2 = vld [vmem:[#allocation2 + $0x5c] sm:$0x1] }
  0xf5   : > { %v2117_v15 = vsel %vm11706_vm8, %v2112_v8, %v2116_v1 }
  0xf6   : > { %v2122_v16 = vrot.slane %v2121_v9, 4  ;;  %v1103_v19 = vsel %vm11744_vm12, %v1095_v10, %v1102_v11  ;;  %v1685_v20 = vsel %vm11669_vm3, %v1104_v13, %v1684_v7  ;;  %v949_v21 = vpack.c.bf16 %v674_v14, %v674_v14  ;;  %v1881_v22 = vld [vmem:[#allocation2 + $0x48] sm:$0xf]  ;;  %v770_v13 = vld [vmem:[#allocation2 + $0x78] sm:$0x1] }
  0xf7   : > { %1683 = vst [vmem:[#allocation2 + $0x4c] sm:$0xf] %v1103_v19  ;;  %v2129_v25 = vshrl.u32 %v1881_v22, 16  ;;  %v2132_v26 = vshll.u32 %v1881_v22, 16  ;;  %v2779_v29 = vunpack.c.l.b16 %v2117_v15  ;;  %v771_v18 = vsel %vm11669_vm3, 0, %v770_v13 }
  0xf8   : > { %v2127_v24 = vsel %vm11706_vm8, %v2122_v16, %v2126_v17  ;;  %1686 = vst [vmem:[#allocation2 + $0x50] sm:$0x1] %v1685_v20  ;;  %v1106_v28 = vshrl.u32 %v949_v21, 16  ;;  %v1109_v34 = vshll.u32 %v949_v21, 16 }
  0xf9   : > { %v2780_v30 = vunpack.c.l.b16 %v2127_v24  ;;  %v534_v32 = vpop.f32.mrf.mxu0  ;;  %v2131_v39 = vrot.slane %v2129_v25, 4  ;;  %v2134_v40 = vrot.slane %v2132_v26, 5  ;;  %772 = vst [vmem:[#allocation2 + $0x78] sm:$0x1] %v771_v18 }
  0xfa   : > { %v1108_v33 = vrot.slane %v1106_v28, 7  ;;  %v535_v35 = vadd.f32 %v11722_v12, %v534_v32  ;;  %v1694_v32 = vld [vmem:[#allocation2 + $0x60] sm:$0xf] }
  0xfb   : > { %v2838_v36 = vpack.c.b16 %v2780_v30, %v2779_v29  ;;  %v2135_v53 = vor.u32 %v2134_v40, %v2131_v39  ;;  %v321_v39 = vld [vmem:[%s11617_s9 + $0x108] sm:$0xff]  ;;  %v868_v40 = vld [vmem:[#allocation2 + $0x80] sm:$0x1] }
  0xfc   : > { %v1111_v41 = vor.u32 %v1109_v34, %v1108_v33  ;;  %v675_v42 = vmax.f32 %v535_v35, 0.0  ;;  %v1112_v5 = vrot.slane %v1108_v33, 4  ;;  %v869_v46 = vsel %vm11683_vm5, 0, %v868_v40 }
  0xfd   : > { %2978 = vmatmul.bf16.gmra.mxu1 %v2838_v36  ;;  %v2136_v3 = vrot.slane %v2135_v53, 4  ;;  %870 = vst [vmem:[#allocation2 + $0x80] sm:$0x1] %v869_v46 }
  0xfe   : > { %v1688_v47 = vsel %vm11732_vm10, %v1111_v41, %v1687_v38  ;;  %v950_v48 = vpack.c.bf16 %v675_v42, %v675_v42  ;;  %v11218_v49 = vld [vmem:[#allocation2 + $0x48] sm:$0xff]  ;;  %v320_v38 = vld [vmem:[%s11617_s9 + $0x100] sm:$0xff] }
  0xff   : > { %v1882_v50 = vld [vmem:[#allocation2 + $0x4c] sm:$0xf]  ;;  %1689 = vst [vmem:[#allocation2 + $0x54] sm:$0xf] %v1688_v47  ;;  %v1955_v52 = vld [vmem:[#allocation2 + $0x50] sm:$0x1]  ;;  %3392 = vmatmul.bf16.gmra.mxu2 %v11218_v49 }
 0x100   : > { %v2138_v54 = vshll.u32 %v1882_v50, 16  ;;  %v2142_v55 = vshrl.u32 %v1882_v50, 16  ;;  %v1114_v56 = vshrl.u32 %v950_v48, 16  ;;  %v2148_v61 = vshll.u32 %v1955_v52, 16 }
 0x101   : > { %v537_v58 = vpop.f32.mrf.mxu0  ;;  %v1117_v63 = vshll.u32 %v950_v48, 16  ;;  %v368_v52 = vpack.c.bf16 %v321_v39, %v320_v38  ;;  %v871_v38 = vld [vmem:[#allocation2 + $0x8c] sm:$0x1] }
 0x102   : > { %v2140_v59 = vrot.slane %v2138_v54, 5  ;;  %v2144_v60 = vrot.slane %v2142_v55, 4  ;;  %v1116_v62 = vrot.slane %v1114_v56, 7  ;;  %v538_v1 = vadd.f32 %v11722_v12, %v537_v58 }
 0x103   : > { %v2150_v11 = vrot.slane %v2148_v61, 5 }
 0x104   : > { %v2145_v4 = vor.u32 %v2144_v60, %v2140_v59  ;;  %v1119_v6 = vor.u32 %v1117_v63, %v1116_v62  ;;  %v1121_v7 = vrot.slane %v1116_v62, 4  ;;  %v676_v8 = vmax.f32 %v538_v1, 0.0  ;;  %10262 = vmatmul.msk.bf16.gmra.mxu0 %vm396_vm0, %v367_v57  ;;  %v1698_v60 = vld [vmem:[#allocation2 + $0x68] sm:$0x1] }
 0x105   : > { %v2141_v9 = vsel %vm11706_vm8, %v2136_v3, %v2140_v59 }
 0x106   : > { %v2146_v10 = vrot.slane %v2145_v4, 4  ;;  %v1120_v14 = vsel %vm11744_vm12, %v1112_v5, %v1119_v6  ;;  %v1692_v15 = vsel %vm11669_vm3, %v1121_v7, %v1691_v2  ;;  %v951_v16 = vpack.c.bf16 %v676_v8, %v676_v8  ;;  %v1883_v17 = vld [vmem:[#allocation2 + $0x54] sm:$0xf]  ;;  %v773_v7 = vld [vmem:[#allocation2 + $0x84] sm:$0x1] }
 0x107   : > { %1690 = vst [vmem:[#allocation2 + $0x58] sm:$0xf] %v1120_v14  ;;  %v2153_v20 = vshrl.u32 %v1883_v17, 16  ;;  %v2156_v21 = vshll.u32 %v1883_v17, 16  ;;  %v2781_v23 = vunpack.c.l.b16 %v2141_v9  ;;  %v774_v13 = vsel %vm11669_vm3, 0, %v773_v7 }
 0x108   : > { %v2151_v19 = vsel %vm11706_vm8, %v2146_v10, %v2150_v11  ;;  %1693 = vst [vmem:[#allocation2 + $0x5c] sm:$0x1] %v1692_v15  ;;  %v1123_v22 = vshrl.u32 %v951_v16, 16  ;;  %v1126_v28 = vshll.u32 %v951_v16, 16  ;;  %v3363_v15 = vpop.f32.mrf.mxu2  ;;  %v2954_v16 = vpop.f32.mrf.mxu1 }
 0x109   : > { %v2782_v24 = vunpack.c.l.b16 %v2151_v19  ;;  %v539_v25 = vpop.f32.mrf.mxu0  ;;  %v2155_v33 = vrot.slane %v2153_v20, 4  ;;  %v2158_v34 = vrot.slane %v2156_v21, 5  ;;  %775 = vst [vmem:[#allocation2 + $0x84] sm:$0x1] %v774_v13 }
 0x10a   : > { %v1125_v26 = vrot.slane %v1123_v22, 7  ;;  %v540_v29 = vadd.f32 %v11722_v12, %v539_v25  ;;  %v11888_v22 = vadd.f32 %v3363_v15, %v2954_v16 }
 0x10b   : > { %v2839_v30 = vpack.c.b16 %v2782_v24, %v2781_v23  ;;  %v2159_v48 = vor.u32 %v2158_v34, %v2155_v33 }
 0x10c   : > { %v1128_v35 = vor.u32 %v1126_v28, %v1125_v26  ;;  %v677_v36 = vmax.f32 %v540_v29, 0.0  ;;  %v1129_v63 = vrot.slane %v1125_v26, 4  ;;  %v1701_v29 = vld [vmem:[#allocation2 + $0x6c] sm:$0xf] }
 0x10d   : > { %2983 = vmatmul.bf16.gmra.mxu1 %v2839_v30  ;;  %v2160_v61 = vrot.slane %v2159_v48, 4 }
 0x10e   : > { %v1695_v41 = vsel %vm11732_vm10, %v1128_v35, %v1694_v32  ;;  %v952_v42 = vpack.c.bf16 %v677_v36, %v677_v36  ;;  %v11219_v43 = vld [vmem:[#allocation2 + $0x54] sm:$0xff] }
 0x10f   : > { %v1884_v44 = vld [vmem:[#allocation2 + $0x58] sm:$0xf]  ;;  %1696 = vst [vmem:[#allocation2 + $0x60] sm:$0xf] %v1695_v41  ;;  %v1956_v47 = vld [vmem:[#allocation2 + $0x5c] sm:$0x1]  ;;  %3397 = vmatmul.bf16.gmra.mxu2 %v11219_v43 }
 0x110   : > { %v2162_v49 = vshll.u32 %v1884_v44, 16  ;;  %v2166_v50 = vshrl.u32 %v1884_v44, 16  ;;  %v1131_v51 = vshrl.u32 %v952_v42, 16  ;;  %v2172_v56 = vshll.u32 %v1956_v47, 16  ;;  %v322_v35 = vld [vmem:[%s11617_s9 + $0x110] sm:$0xff]  ;;  %v323_v36 = vld [vmem:[%s11617_s9 + $0x118] sm:$0xff] }
 0x111   : > { %v542_v53 = vpop.f32.mrf.mxu0  ;;  %v1134_v58 = vshll.u32 %v952_v42, 16  ;;  %v872_v43 = vsel %vm11683_vm5, 0, %v871_v38 }
 0x112   : > { %v2164_v54 = vrot.slane %v2162_v49, 5  ;;  %v2168_v55 = vrot.slane %v2166_v50, 4  ;;  %v1133_v57 = vrot.slane %v1131_v51, 7  ;;  %v543_v59 = vadd.f32 %v11722_v12, %v542_v53  ;;  %873 = vst [vmem:[#allocation2 + $0x8c] sm:$0x1] %v872_v43 }
 0x113   : > { %v2174_v6 = vrot.slane %v2172_v56, 5  ;;  %v369_v49 = vpack.c.bf16 %v323_v36, %v322_v35  ;;  %v11900_v56 = vld [vmem:[%s15576_s4] ss:$0 sm:$0xff] }
 0x114   : > { %v2169_v62 = vor.u32 %v2168_v55, %v2164_v54  ;;  %v1136_v1 = vor.u32 %v1134_v58, %v1133_v57  ;;  %v1138_v2 = vrot.slane %v1133_v57, 4  ;;  %v678_v3 = vmax.f32 %v543_v59, 0.0  ;;  %10263 = vmatmul.msk.bf16.gmra.mxu0 %vm396_vm0, %v368_v52  ;;  %v1705_v58 = vld [vmem:[#allocation2 + $0x74] sm:$0x1] }
 0x115   : > { %v2165_v4 = vsel %vm11706_vm8, %v2160_v61, %v2164_v54 }
 0x116   : > { %v2170_v5 = vrot.slane %v2169_v62, 4  ;;  %v1137_v8 = vsel %vm11744_vm12, %v1129_v63, %v1136_v1  ;;  %v1699_v9 = vsel %vm11669_vm3, %v1138_v2, %v1698_v60  ;;  %v953_v10 = vpack.c.bf16 %v678_v3, %v678_v3  ;;  %v1885_v11 = vld [vmem:[#allocation2 + $0x60] sm:$0xf] }
 0x117   : > { %1697 = vst [vmem:[#allocation2 + $0x64] sm:$0xf] %v1137_v8  ;;  %v2177_v17 = vshrl.u32 %v1885_v11, 16  ;;  %v2180_v18 = vshll.u32 %v1885_v11, 16  ;;  %v2783_v20 = vunpack.c.l.b16 %v2165_v4 }
 0x118   : > { %v2175_v14 = vsel %vm11706_vm8, %v2170_v5, %v2174_v6  ;;  %1700 = vst [vmem:[#allocation2 + $0x68] sm:$0x1] %v1699_v9  ;;  %v1140_v19 = vshrl.u32 %v953_v10, 16  ;;  %v1143_v25 = vshll.u32 %v953_v10, 16  ;;  %v776_v5 = vld [vmem:[#allocation2 + $0x90] sm:$0x1] }
 0x119   : > { %v2784_v21 = vunpack.c.l.b16 %v2175_v14  ;;  %v544_v23 = vpop.f32.mrf.mxu0  ;;  %v2179_v30 = vrot.slane %v2177_v17, 4  ;;  %v2182_v32 = vrot.slane %v2180_v18, 5  ;;  %v777_v10 = vsel %vm11669_vm3, 0, %v776_v5 }
 0x11a   : > { %v1142_v24 = vrot.slane %v1140_v19, 7  ;;  %v545_v26 = vadd.f32 %v11722_v12, %v544_v23  ;;  %v11914_v19 = vpop.f32.mrf.mxu2  ;;  %778 = vst [vmem:[#allocation2 + $0x90] sm:$0x1] %v777_v10 }
 0x11b   : > { %v2840_v28 = vpack.c.b16 %v2784_v21, %v2783_v20  ;;  %v2183_v44 = vor.u32 %v2182_v32, %v2179_v30  ;;  %15597 = vst [vmem:[#allocation4_spill] sm:$0xff] %v11914_v19  ;;  %v324_v32 = vld [vmem:[%s11617_s9 + $0x120] sm:$0xff] }
 0x11c   : > { %v1145_v33 = vor.u32 %v1143_v25, %v1142_v24  ;;  %v679_v34 = vmax.f32 %v545_v26, 0.0  ;;  %v1146_v61 = vrot.slane %v1142_v24, 4  ;;  %v1708_v25 = vld [vmem:[#allocation2 + $0x78] sm:$0xf] }
 0x11d   : > { %2988 = vmatmul.bf16.gmra.mxu1 %v2840_v28  ;;  %v2184_v59 = vrot.slane %v2183_v44, 4 }
 0x11e   : > { %v1702_v39 = vsel %vm11732_vm10, %v1145_v33, %v1701_v29  ;;  %v954_v40 = vpack.c.bf16 %v679_v34, %v679_v34  ;;  %v11220_v41 = vld [vmem:[#allocation2 + $0x60] sm:$0xff]  ;;  %v325_v33 = vld [vmem:[%s11617_s9 + $0x128] sm:$0xff]  ;;  %v874_v34 = vld [vmem:[#allocation2 + $0x98] sm:$0x1] }
 0x11f   : > { %v1886_v42 = vld [vmem:[#allocation2 + $0x64] sm:$0xf]  ;;  %1703 = vst [vmem:[#allocation2 + $0x6c] sm:$0xf] %v1702_v39  ;;  %v1957_v12 = vld [vmem:[#allocation2 + $0x68] sm:$0x1]  ;;  %3402 = vmatmul.bf16.gmra.mxu2 %v11220_v41  ;;  %v11923_v41 = vpop.f32.mrf.mxu1 }
 0x120   : > { %v2186_v46 = vshll.u32 %v1886_v42, 16  ;;  %v2190_v47 = vshrl.u32 %v1886_v42, 16  ;;  %v1148_v48 = vshrl.u32 %v954_v40, 16  ;;  %v2196_v53 = vshll.u32 %v1957_v12, 16  ;;  %15598 = vst [vmem:[#allocation5_spill] sm:$0xff] %v11923_v41 }
 0x121   : > { %v547_v50 = vpop.f32.mrf.mxu0  ;;  %v1151_v55 = vshll.u32 %v954_v40, 16  ;;  %v875_v40 = vsel %vm11683_vm5, 0, %v874_v34  ;;  %v326_v34 = vld [vmem:[%s11617_s9 + $0x130] sm:$0xff] }
 0x122   : > { %v2188_v51 = vrot.slane %v2186_v46, 5  ;;  %v2192_v52 = vrot.slane %v2190_v47, 4  ;;  %v1150_v54 = vrot.slane %v1148_v48, 7  ;;  %v548_v57 = vadd.f32 %v11900_v56, %v547_v50  ;;  %876 = vst [vmem:[#allocation2 + $0x98] sm:$0x1] %v875_v40 }
 0x123   : > { %v2198_v4 = vrot.slane %v2196_v53, 5  ;;  %v370_v47 = vpack.c.bf16 %v325_v33, %v324_v32 }
 0x124   : > { %v2193_v60 = vor.u32 %v2192_v52, %v2188_v51  ;;  %v1153_v62 = vor.u32 %v1151_v55, %v1150_v54  ;;  %v1155_v63 = vrot.slane %v1150_v54, 4  ;;  %v680_v1 = vmax.f32 %v548_v57, 0.0  ;;  %10264 = vmatmul.msk.bf16.gmra.mxu0 %vm396_vm0, %v369_v49  ;;  %v1712_v55 = vld [vmem:[#allocation2 + $0x80] sm:$0x1] }
 0x125   : > { %v2189_v2 = vsel %vm11706_vm8, %v2184_v59, %v2188_v51 }
 0x126   : > { %v2194_v3 = vrot.slane %v2193_v60, 4  ;;  %v1154_v6 = vsel %vm11744_vm12, %v1146_v61, %v1153_v62  ;;  %v1706_v7 = vsel %vm11669_vm3, %v1155_v63, %v1705_v58  ;;  %v955_v8 = vpack.c.bf16 %v680_v1, %v680_v1  ;;  %v1887_v9 = vld [vmem:[#allocation2 + $0x6c] sm:$0xf] }
 0x127   : > { %1704 = vst [vmem:[#allocation2 + $0x70] sm:$0xf] %v1154_v6  ;;  %v2201_v13 = vshrl.u32 %v1887_v9, 16  ;;  %v2204_v14 = vshll.u32 %v1887_v9, 16  ;;  %v2785_v16 = vunpack.c.l.b16 %v2189_v2 }
 0x128   : > { %v2199_v11 = vsel %vm11706_vm8, %v2194_v3, %v2198_v4  ;;  %1707 = vst [vmem:[#allocation2 + $0x74] sm:$0x1] %v1706_v7  ;;  %v1157_v15 = vshrl.u32 %v955_v8, 16  ;;  %v1160_v21 = vshll.u32 %v955_v8, 16  ;;  %v779_v4 = vld [vmem:[#allocation2 + $0x9c] sm:$0x1] }
 0x129   : > { %v2786_v17 = vunpack.c.l.b16 %v2199_v11  ;;  %v549_v18 = vpop.f32.mrf.mxu0  ;;  %v2203_v26 = vrot.slane %v2201_v13, 4  ;;  %v2206_v28 = vrot.slane %v2204_v14, 5  ;;  %v780_v9 = vsel %vm11669_vm3, 0, %v779_v4 }
 0x12a   : > { %v1159_v20 = vrot.slane %v1157_v15, 7  ;;  %v550_v23 = vadd.f32 %v11900_v56, %v549_v18  ;;  %781 = vst [vmem:[#allocation2 + $0x9c] sm:$0x1] %v780_v9 }
 0x12b   : > { %v2841_v24 = vpack.c.b16 %v2786_v17, %v2785_v16  ;;  %v2207_v43 = vor.u32 %v2206_v28, %v2203_v26  ;;  %v1715_v26 = vld [vmem:[#allocation2 + $0x84] sm:$0xf] }
 0x12c   : > { %v1162_v29 = vor.u32 %v1160_v21, %v1159_v20  ;;  %v681_v30 = vmax.f32 %v550_v23, 0.0  ;;  %v1163_v60 = vrot.slane %v1159_v20, 4 }
 0x12d   : > { %2993 = vmatmul.bf16.gmra.mxu1 %v2841_v24  ;;  %v2208_v58 = vrot.slane %v2207_v43, 4 }
 0x12e   : > { %v1709_v35 = vsel %vm11732_vm10, %v1162_v29, %v1708_v25  ;;  %v956_v36 = vpack.c.bf16 %v681_v30, %v681_v30  ;;  %v11221_v38 = vld [vmem:[#allocation2 + $0x6c] sm:$0xff] }
 0x12f   : > { %v1888_v39 = vld [vmem:[#allocation2 + $0x70] sm:$0xf]  ;;  %1710 = vst [vmem:[#allocation2 + $0x78] sm:$0xf] %v1709_v35  ;;  %v1958_v42 = vld [vmem:[#allocation2 + $0x74] sm:$0x1]  ;;  %3407 = vmatmul.bf16.gmra.mxu2 %v11221_v38 }
 0x130   : > { %v2210_v12 = vshll.u32 %v1888_v39, 16  ;;  %v2214_v44 = vshrl.u32 %v1888_v39, 16  ;;  %v1165_v46 = vshrl.u32 %v956_v36, 16  ;;  %v2220_v51 = vshll.u32 %v1958_v42, 16  ;;  %v327_v35 = vld [vmem:[%s11617_s9 + $0x138] sm:$0xff] }
 0x131   : > { %v552_v48 = vpop.f32.mrf.mxu0  ;;  %v1168_v53 = vshll.u32 %v956_v36, 16  ;;  %v877_v36 = vld [vmem:[#allocation2 + $0xa4] sm:$0x1] }
 0x132   : > { %v2212_v49 = vrot.slane %v2210_v12, 5  ;;  %v2216_v50 = vrot.slane %v2214_v44, 4  ;;  %v1167_v52 = vrot.slane %v1165_v46, 7  ;;  %v553_v54 = vadd.f32 %v11900_v56, %v552_v48  ;;  %v3368_v57 = vpop.f32.mrf.mxu2 }
 0x133   : > { %v2222_v3 = vrot.slane %v2220_v51, 5  ;;  %v878_v43 = vsel %vm11683_vm5, 0, %v877_v36 }
 0x134   : > { %v2217_v59 = vor.u32 %v2216_v50, %v2212_v49  ;;  %v1170_v61 = vor.u32 %v1168_v53, %v1167_v52  ;;  %v1172_v62 = vrot.slane %v1167_v52, 4  ;;  %v682_v63 = vmax.f32 %v553_v54, 0.0  ;;  %10265 = vmatmul.msk.bf16.gmra.mxu0 %vm396_vm0, %v370_v47  ;;  %879 = vst [vmem:[#allocation2 + $0xa4] sm:$0x1] %v878_v43  ;;  %v880_v43 = vld [vmem:[#allocation2 + $0xb0] sm:$0x1] }
 0x135   : > { %v2213_v1 = vsel %vm11706_vm8, %v2208_v58, %v2212_v49  ;;  %v371_v49 = vpack.c.bf16 %v327_v35, %v326_v34 }
 0x136   : > { %v2218_v2 = vrot.slane %v2217_v59, 4  ;;  %v1171_v5 = vsel %vm11744_vm12, %v1163_v60, %v1170_v61  ;;  %v1713_v6 = vsel %vm11669_vm3, %v1172_v62, %v1712_v55  ;;  %v957_v7 = vpack.c.bf16 %v682_v63, %v682_v63  ;;  %v1889_v8 = vld [vmem:[#allocation2 + $0x78] sm:$0xf]  ;;  %v1719_v60 = vld [vmem:[#allocation2 + $0x8c] sm:$0x1] }
 0x137   : > { %1711 = vst [vmem:[#allocation2 + $0x7c] sm:$0xf] %v1171_v5  ;;  %v2225_v11 = vshrl.u32 %v1889_v8, 16  ;;  %v2228_v13 = vshll.u32 %v1889_v8, 16  ;;  %v2787_v15 = vunpack.c.l.b16 %v2213_v1  ;;  %v782_v8 = vld [vmem:[#allocation2 + $0xa8] sm:$0x1] }
 0x138   : > { %v2223_v10 = vsel %vm11706_vm8, %v2218_v2, %v2222_v3  ;;  %1714 = vst [vmem:[#allocation2 + $0x80] sm:$0x1] %v1713_v6  ;;  %v1174_v14 = vshrl.u32 %v957_v7, 16  ;;  %v1177_v17 = vshll.u32 %v957_v7, 16 }
 0x139   : > { %v2788_v16 = vunpack.c.l.b16 %v2223_v10  ;;  %v554_v18 = vpop.f32.mrf.mxu0  ;;  %v2227_v29 = vrot.slane %v2225_v11, 4  ;;  %v2230_v30 = vrot.slane %v2228_v13, 5 }
 0x13a   : > { %v2959_v20 = vpop.f32.mrf.mxu1  ;;  %v1176_v21 = vrot.slane %v1174_v14, 7  ;;  %v555_v23 = vadd.f32 %v11900_v56, %v554_v18  ;;  %v3370_v28 = vpop.f32.mrf.mxu2  ;;  %v783_v14 = vsel %vm11669_vm3, 0, %v782_v8 }
 0x13b   : > { %v11938_v24 = vadd.f32 %v3368_v57, %v2959_v20  ;;  %v2842_v25 = vpack.c.b16 %v2788_v16, %v2787_v15  ;;  %v2231_v44 = vor.u32 %v2230_v30, %v2227_v29  ;;  %784 = vst [vmem:[#allocation2 + $0xa8] sm:$0x1] %v783_v14 }
 0x13c   : > { %v1179_v32 = vor.u32 %v1177_v17, %v1176_v21  ;;  %v683_v33 = vmax.f32 %v555_v23, 0.0  ;;  %v1180_v1 = vrot.slane %v1176_v21, 4 }
 0x13d   : > { %2998 = vmatmul.bf16.gmra.mxu1 %v2842_v25  ;;  %v2232_v62 = vrot.slane %v2231_v44, 4 }
 0x13e   : > { %v1716_v38 = vsel %vm11732_vm10, %v1179_v32, %v1715_v26  ;;  %v958_v39 = vpack.c.bf16 %v683_v33, %v683_v33  ;;  %v11222_v40 = vld [vmem:[#allocation2 + $0x78] sm:$0xff]  ;;  %v1722_v33 = vld [vmem:[#allocation2 + $0x90] sm:$0xf] }
 0x13f   : > { %v1890_v42 = vld [vmem:[#allocation2 + $0x7c] sm:$0xf]  ;;  %1717 = vst [vmem:[#allocation2 + $0x84] sm:$0xf] %v1716_v38  ;;  %v1959_v12 = vld [vmem:[#allocation2 + $0x80] sm:$0x1]  ;;  %3412 = vmatmul.bf16.gmra.mxu2 %v11222_v40 }
 0x140   : > { %v2234_v46 = vshll.u32 %v1890_v42, 16  ;;  %v2238_v47 = vshrl.u32 %v1890_v42, 16  ;;  %v1182_v48 = vshrl.u32 %v958_v39, 16  ;;  %v2244_v54 = vshll.u32 %v1959_v12, 16  ;;  %v328_v40 = vld [vmem:[%s11617_s9 + $0x140] sm:$0xff]  ;;  %v329_v42 = vld [vmem:[%s11617_s9 + $0x148] sm:$0xff] }
 0x141   : > { %v557_v50 = vpop.f32.mrf.mxu0  ;;  %v1185_v57 = vshll.u32 %v958_v39, 16 }
 0x142   : > { %v2961_v51 = vpop.f32.mrf.mxu1  ;;  %v2236_v52 = vrot.slane %v2234_v46, 5  ;;  %v2240_v53 = vrot.slane %v2238_v47, 4  ;;  %v1184_v55 = vrot.slane %v1182_v48, 7  ;;  %v558_v58 = vadd.f32 %v11900_v56, %v557_v50  ;;  %v3373_v61 = vpop.f32.mrf.mxu2 }
 0x143   : > { %v11947_v59 = vadd.f32 %v3370_v28, %v2961_v51  ;;  %v2246_v7 = vrot.slane %v2244_v54, 5  ;;  %v881_v48 = vsel %vm11683_vm5, 0, %v880_v43  ;;  %v372_v54 = vpack.c.bf16 %v329_v42, %v328_v40  ;;  %v1729_v42 = vld [vmem:[#allocation2 + $0x9c] sm:$0xf] }
 0x144   : > { %v2241_v63 = vor.u32 %v2240_v53, %v2236_v52  ;;  %v1187_v2 = vor.u32 %v1185_v57, %v1184_v55  ;;  %v1189_v3 = vrot.slane %v1184_v55, 4  ;;  %v684_v4 = vmax.f32 %v558_v58, 0.0  ;;  %10266 = vmatmul.msk.bf16.gmra.mxu0 %vm396_vm0, %v371_v49  ;;  %882 = vst [vmem:[#allocation2 + $0xb0] sm:$0x1] %v881_v48  ;;  %v330_v48 = vld [vmem:[%s11617_s9 + $0x150] sm:$0xff] }
 0x145   : > { %v2237_v5 = vsel %vm11706_vm8, %v2232_v62, %v2236_v52 }
 0x146   : > { %v2242_v6 = vrot.slane %v2241_v63, 4  ;;  %v1188_v9 = vsel %vm11744_vm12, %v1180_v1, %v1187_v2  ;;  %v1720_v10 = vsel %vm11669_vm3, %v1189_v3, %v1719_v60  ;;  %v959_v11 = vpack.c.bf16 %v684_v4, %v684_v4  ;;  %v1891_v13 = vld [vmem:[#allocation2 + $0x84] sm:$0xf]  ;;  %v1726_v3 = vld [vmem:[#allocation2 + $0x98] sm:$0x1] }
 0x147   : > { %1718 = vst [vmem:[#allocation2 + $0x88] sm:$0xf] %v1188_v9  ;;  %v2249_v16 = vshrl.u32 %v1891_v13, 16  ;;  %v2252_v17 = vshll.u32 %v1891_v13, 16  ;;  %v2789_v20 = vunpack.c.l.b16 %v2237_v5 }
 0x148   : > { %v2247_v15 = vsel %vm11706_vm8, %v2242_v6, %v2246_v7  ;;  %1721 = vst [vmem:[#allocation2 + $0x8c] sm:$0x1] %v1720_v10  ;;  %v1191_v18 = vshrl.u32 %v959_v11, 16  ;;  %v1194_v23 = vshll.u32 %v959_v11, 16 }
 0x149   : > { %v2790_v21 = vunpack.c.l.b16 %v2247_v15  ;;  %v559_v25 = vpop.f32.mrf.mxu0  ;;  %v2251_v35 = vrot.slane %v2249_v16, 4  ;;  %v2254_v36 = vrot.slane %v2252_v17, 5  ;;  %v785_v15 = vld [vmem:[#allocation2 + $0xb4] sm:$0x1] }
 0x14a   : > { %v2964_v26 = vpop.f32.mrf.mxu1  ;;  %v1193_v28 = vrot.slane %v1191_v18, 7  ;;  %v560_v29 = vadd.f32 %v11900_v56, %v559_v25  ;;  %v3375_v34 = vpop.f32.mrf.mxu2 }
 0x14b   : > { %v11961_v30 = vadd.f32 %v3373_v61, %v2964_v26  ;;  %v2843_v32 = vpack.c.b16 %v2790_v21, %v2789_v20  ;;  %v2255_v50 = vor.u32 %v2254_v36, %v2251_v35  ;;  %v786_v21 = vsel %vm11669_vm3, 0, %v785_v15 }
 0x14c   : > { %v1196_v38 = vor.u32 %v1194_v23, %v1193_v28  ;;  %v685_v39 = vmax.f32 %v560_v29, 0.0  ;;  %v1197_v7 = vrot.slane %v1193_v28, 4  ;;  %787 = vst [vmem:[#allocation2 + $0xb4] sm:$0x1] %v786_v21  ;;  %v11307_v21 = vld [vmem:[%s15574_s2 + $0xf8] sm:$0xff] }
 0x14d   : > { %3003 = vmatmul.bf16.gmra.mxu1 %v2843_v32  ;;  %v2256_v5 = vrot.slane %v2255_v50, 4  ;;  %v883_v50 = vld [vmem:[#allocation2 + $0xbc] sm:$0x1]  ;;  %4593 = vmatpush.bf16.msrb.mxu0 %v11307_v21 }
 0x14e   : > { %v1723_v12 = vsel %vm11732_vm10, %v1196_v38, %v1722_v33  ;;  %v960_v44 = vpack.c.bf16 %v685_v39, %v685_v39  ;;  %v11223_v46 = vld [vmem:[#allocation2 + $0x84] sm:$0xff] }
 0x14f   : > { %v1892_v47 = vld [vmem:[#allocation2 + $0x88] sm:$0xf]  ;;  %1724 = vst [vmem:[#allocation2 + $0x90] sm:$0xf] %v1723_v12  ;;  %v1960_v49 = vld [vmem:[#allocation2 + $0x8c] sm:$0x1]  ;;  %3417 = vmatmul.bf16.gmra.mxu2 %v11223_v46 }
 0x150   : > { %v2258_v51 = vshll.u32 %v1892_v47, 16  ;;  %v2262_v52 = vshrl.u32 %v1892_v47, 16  ;;  %v1199_v53 = vshrl.u32 %v960_v44, 16  ;;  %v2268_v61 = vshll.u32 %v1960_v49, 16  ;;  %v331_v49 = vld [vmem:[%s11617_s9 + $0x158] sm:$0xff] }
 0x151   : > { %v562_v55 = vpop.f32.mrf.mxu0  ;;  %v1202_v63 = vshll.u32 %v960_v44, 16 }
 0x152   : > { %v2966_v57 = vpop.f32.mrf.mxu1  ;;  %v2260_v58 = vrot.slane %v2258_v51, 5  ;;  %v2264_v60 = vrot.slane %v2262_v52, 4  ;;  %v1201_v62 = vrot.slane %v1199_v53, 7  ;;  %v563_v1 = vadd.f32 %v11900_v56, %v562_v55  ;;  %v3378_v4 = vpop.f32.mrf.mxu2 }
 0x153   : > { %v11970_v2 = vadd.f32 %v3375_v34, %v2966_v57  ;;  %v2270_v14 = vrot.slane %v2268_v61, 5  ;;  %v884_v55 = vsel %vm11683_vm5, 0, %v883_v50 }
 0x154   : > { %v2265_v6 = vor.u32 %v2264_v60, %v2260_v58  ;;  %v1204_v8 = vor.u32 %v1202_v63, %v1201_v62  ;;  %v1206_v9 = vrot.slane %v1201_v62, 4  ;;  %v686_v10 = vmax.f32 %v563_v1, 0.0  ;;  %10267 = vmatmul.msk.bf16.gmra.mxu0 %vm396_vm0, %v372_v54  ;;  %885 = vst [vmem:[#allocation2 + $0xbc] sm:$0x1] %v884_v55 }
 0x155   : > { %v2261_v11 = vsel %vm11706_vm8, %v2256_v5, %v2260_v58  ;;  %v373_v63 = vpack.c.bf16 %v331_v49, %v330_v48  ;;  %v11306_v48 = vld [vmem:[%s15574_s2 + $0xf0] sm:$0xff] }
 0x156   : > { %v2266_v13 = vrot.slane %v2265_v6, 4  ;;  %v1205_v16 = vsel %vm11744_vm12, %v1197_v7, %v1204_v8  ;;  %v1727_v17 = vsel %vm11669_vm3, %v1206_v9, %v1726_v3  ;;  %v961_v18 = vpack.c.bf16 %v686_v10, %v686_v10  ;;  %v1893_v20 = vld [vmem:[#allocation2 + $0x90] sm:$0xf]  ;;  %4594 = vmatpush.bf16.msrb.mxu0 %v11306_v48 }
 0x157   : > { %1725 = vst [vmem:[#allocation2 + $0x94] sm:$0xf] %v1205_v16  ;;  %v2273_v25 = vshrl.u32 %v1893_v20, 16  ;;  %v2276_v26 = vshll.u32 %v1893_v20, 16  ;;  %v2791_v29 = vunpack.c.l.b16 %v2261_v11  ;;  %v1733_v11 = vld [vmem:[#allocation2 + $0xa4] sm:$0x1] }
 0x158   : > { %v2271_v23 = vsel %vm11706_vm8, %v2266_v13, %v2270_v14  ;;  %1728 = vst [vmem:[#allocation2 + $0x98] sm:$0x1] %v1727_v17  ;;  %v1208_v28 = vshrl.u32 %v961_v18, 16  ;;  %v1211_v33 = vshll.u32 %v961_v18, 16 }
 0x159   : > { %v2792_v32 = vunpack.c.l.b16 %v2271_v23  ;;  %v564_v34 = vpop.f32.mrf.mxu0  ;;  %v2275_v12 = vrot.slane %v2273_v25, 4  ;;  %v2278_v44 = vrot.slane %v2276_v26, 5 }
 0x15a   : > { %v2969_v35 = vpop.f32.mrf.mxu1  ;;  %v1210_v36 = vrot.slane %v1208_v28, 7  ;;  %v565_v38 = vadd.f32 %v11900_v56, %v564_v34  ;;  %v3380_v43 = vpop.f32.mrf.mxu2  ;;  %v788_v28 = vld [vmem:[#allocation2 + $0xc0] sm:$0x1] }
 0x15b   : > { %v11984_v39 = vadd.f32 %v3378_v4, %v2969_v35  ;;  %v2844_v40 = vpack.c.b16 %v2792_v32, %v2791_v29  ;;  %v2279_v58 = vor.u32 %v2278_v44, %v2275_v12  ;;  %v789_v35 = vsel %vm11669_vm3, 0, %v788_v28  ;;  %v11304_v28 = vld [vmem:[%s15574_s2 + $0xe0] sm:$0xff] }
 0x15c   : > { %v1213_v46 = vor.u32 %v1211_v33, %v1210_v36  ;;  %v687_v47 = vmax.f32 %v565_v38, 0.0  ;;  %v1214_v16 = vrot.slane %v1210_v36, 4  ;;  %790 = vst [vmem:[#allocation2 + $0xc0] sm:$0x1] %v789_v35  ;;  %v1740_v35 = vld [vmem:[#allocation2 + $0xb0] sm:$0x1] }
 0x15d   : > { %3008 = vmatmul.bf16.gmra.mxu1 %v2844_v40  ;;  %v2280_v14 = vrot.slane %v2279_v58, 4 }
 0x15e   : > { %v1730_v51 = vsel %vm11732_vm10, %v1213_v46, %v1729_v42  ;;  %v962_v52 = vpack.c.bf16 %v687_v47, %v687_v47  ;;  %v11224_v53 = vld [vmem:[#allocation2 + $0x90] sm:$0xff] }
 0x15f   : > { %v1894_v54 = vld [vmem:[#allocation2 + $0x94] sm:$0xf]  ;;  %1731 = vst [vmem:[#allocation2 + $0x9c] sm:$0xf] %v1730_v51  ;;  %v1961_v57 = vld [vmem:[#allocation2 + $0x98] sm:$0x1]  ;;  %3422 = vmatmul.bf16.gmra.mxu2 %v11224_v53 }
 0x160   : > { %v2282_v60 = vshll.u32 %v1894_v54, 16  ;;  %v2286_v61 = vshrl.u32 %v1894_v54, 16  ;;  %v1216_v62 = vshrl.u32 %v962_v52, 16  ;;  %v2292_v6 = vshll.u32 %v1961_v57, 16  ;;  %v1736_v53 = vld [vmem:[#allocation2 + $0xa8] sm:$0xf] }
 0x161   : > { %v567_v1 = vpop.f32.mrf.mxu0  ;;  %v1219_v8 = vshll.u32 %v962_v52, 16 }
 0x162   : > { %v2971_v3 = vpop.f32.mrf.mxu1  ;;  %v2284_v4 = vrot.slane %v2282_v60, 5  ;;  %v2288_v5 = vrot.slane %v2286_v61, 4  ;;  %v1218_v7 = vrot.slane %v1216_v62, 7  ;;  %v568_v9 = vadd.f32 %v11900_v56, %v567_v1  ;;  %v3383_v13 = vpop.f32.mrf.mxu2  ;;  %v11305_v61 = vld [vmem:[%s15574_s2 + $0xe8] sm:$0xff]  ;;  %v332_v62 = vld [vmem:[%s11617_s9 + $0x160] sm:$0xff] }
 0x163   : > { %v11993_v10 = vadd.f32 %v3380_v43, %v2971_v3  ;;  %v2294_v26 = vrot.slane %v2292_v6, 5  ;;  %v886_v1 = vld [vmem:[#allocation2 + $0xc8] sm:$0x1]  ;;  %4595 = vmatpush.bf16.msrb.mxu0 %v11305_v61 }
 0x164   : > { %v2289_v15 = vor.u32 %v2288_v5, %v2284_v4  ;;  %v1221_v17 = vor.u32 %v1219_v8, %v1218_v7  ;;  %v1223_v18 = vrot.slane %v1218_v7, 4  ;;  %v688_v20 = vmax.f32 %v568_v9, 0.0  ;;  %10268 = vmatmul.msk.bf16.gmra.mxu0 %vm396_vm0, %v373_v63  ;;  %v333_v63 = vld [vmem:[%s11617_s9 + $0x168] sm:$0xff]  ;;  %v338_v8 = vld [vmem:[%s11617_s9 + $0x190] sm:$0xff] }
 0x165   : > { %v2285_v23 = vsel %vm11706_vm8, %v2280_v14, %v2284_v4  ;;  %v887_v7 = vsel %vm11683_vm5, 0, %v886_v1 }
 0x166   : > { %v2290_v25 = vrot.slane %v2289_v15, 4  ;;  %v1222_v29 = vsel %vm11744_vm12, %v1214_v16, %v1221_v17  ;;  %v1734_v32 = vsel %vm11669_vm3, %v1223_v18, %v1733_v11  ;;  %v963_v33 = vpack.c.bf16 %v688_v20, %v688_v20  ;;  %v1895_v34 = vld [vmem:[#allocation2 + $0x9c] sm:$0xf]  ;;  %888 = vst [vmem:[#allocation2 + $0xc8] sm:$0x1] %v887_v7 }
 0x167   : > { %1732 = vst [vmem:[#allocation2 + $0xa0] sm:$0xf] %v1222_v29  ;;  %v2297_v38 = vshrl.u32 %v1895_v34, 16  ;;  %v2300_v40 = vshll.u32 %v1895_v34, 16  ;;  %v2793_v43 = vunpack.c.l.b16 %v2285_v23  ;;  %v374_v16 = vpack.c.bf16 %v333_v63, %v332_v62  ;;  %v339_v17 = vld [vmem:[%s11617_s9 + $0x198] sm:$0xff]  ;;  %4596 = vmatpush.bf16.msrb.mxu0 %v11304_v28 }
 0x168   : > { %v2295_v36 = vsel %vm11706_vm8, %v2290_v25, %v2294_v26  ;;  %1735 = vst [vmem:[#allocation2 + $0xa4] sm:$0x1] %v1734_v32  ;;  %v1225_v42 = vshrl.u32 %v963_v33, 16  ;;  %v1228_v44 = vshll.u32 %v963_v33, 16  ;;  %v377_v26 = vpack.c.bf16 %v339_v17, %v338_v8  ;;  %v11302_v8 = vld [vmem:[%s15574_s2 + $0xd0] sm:$0xff]  ;;  %v335_v28 = vld [vmem:[%s11617_s9 + $0x178] sm:$0xff] }
 0x169   : > { %v2794_v12 = vunpack.c.l.b16 %v2295_v36  ;;  %v569_v46 = vpop.f32.mrf.mxu0  ;;  %v2299_v55 = vrot.slane %v2297_v38, 4  ;;  %v2302_v57 = vrot.slane %v2300_v40, 5 }
 0x16a   : > { %v2974_v47 = vpop.f32.mrf.mxu1  ;;  %v12012_v49 = vrot.slane %v1225_v42, 7  ;;  %v570_v50 = vadd.f32 %v11900_v56, %v569_v46  ;;  %v3385_v54 = vpop.f32.mrf.mxu2  ;;  %10272 = vmatmul.msk.bf16.vlgmr.msra.gmra.mxu3 %vm396_vm0, %v377_v26  ;;  %v11303_v46 = vld [vmem:[%s15574_s2 + $0xd8] sm:$0xff]  ;;  %v334_v26 = vld [vmem:[%s11617_s9 + $0x170] sm:$0xff] }
 0x16b   : > { %v12015_v51 = vadd.f32 %v3383_v13, %v2974_v47  ;;  %v2845_v52 = vpack.c.b16 %v2794_v12, %v2793_v43  ;;  %v2303_v11 = vor.u32 %v2302_v57, %v2299_v55  ;;  %v11418_v47 = vld [vmem:[%s15574_s2 + $0x38] sm:$0xff]  ;;  %4597 = vmatpush.bf16.msrb.mxu0 %v11303_v46 }
 0x16c   : > { %v1230_v58 = vor.u32 %v1228_v44, %v12012_v49  ;;  %v689_v60 = vmax.f32 %v570_v50, 0.0  ;;  %v1231_v42 = vrot.slane %v12012_v49, 4  ;;  %11397 = vmatpush.bf16.msra.mxu3 %v11418_v47  ;;  %v791_v49 = vld [vmem:[#allocation2 + $0xe4] sm:$0x1]  ;;  %v375_v47 = vpack.c.bf16 %v335_v28, %v334_v26 }
 0x16d   : > { %3013 = vmatmul.bf16.gmra.mxu1 %v2845_v52  ;;  %v2304_v38 = vrot.slane %v2303_v11, 4 }
 0x16e   : > { %v1737_v3 = vsel %vm11732_vm10, %v1230_v58, %v1736_v53  ;;  %v964_v4 = vpack.c.bf16 %v689_v60, %v689_v60  ;;  %v11225_v5 = vld [vmem:[#allocation2 + $0x9c] sm:$0xff]  ;;  %v792_v58 = vsel %vm11669_vm3, 0, %v791_v49 }
 0x16f   : > { %v1896_v6 = vld [vmem:[#allocation2 + $0xa0] sm:$0xf]  ;;  %1738 = vst [vmem:[#allocation2 + $0xa8] sm:$0xf] %v1737_v3  ;;  %v1962_v9 = vld [vmem:[#allocation2 + $0xa4] sm:$0x1]  ;;  %3427 = vmatmul.bf16.gmra.mxu2 %v11225_v5  ;;  %4598 = vmatpush.bf16.msrb.mxu0 %v11302_v8 }
 0x170   : > { %v2306_v13 = vshll.u32 %v1896_v6, 16  ;;  %v2310_v14 = vshrl.u32 %v1896_v6, 16  ;;  %v1233_v15 = vshrl.u32 %v964_v4, 16  ;;  %v2316_v25 = vshll.u32 %v1962_v9, 16  ;;  %793 = vst [vmem:[#allocation2 + $0xe4] sm:$0x1] %v792_v58 }
 0x171   : > { %v572_v18 = vpop.f32.mrf.mxu0  ;;  %v1236_v32 = vshll.u32 %v964_v4, 16  ;;  %v11419_v4 = vld [vmem:[%s15574_s2 + $0x30] sm:$0xff]  ;;  %v11300_v58 = vld [vmem:[%s15574_s2 + $0xc0] sm:$0xff] }
 0x172   : > { %v2976_v20 = vpop.f32.mrf.mxu1  ;;  %v2308_v21 = vrot.slane %v2306_v13, 5  ;;  %v2312_v23 = vrot.slane %v2310_v14, 4  ;;  %v1235_v29 = vrot.slane %v1233_v15, 7  ;;  %v573_v33 = vadd.f32 %v11900_v56, %v572_v18  ;;  %v3388_v36 = vpop.f32.mrf.mxu2  ;;  %11398 = vmatpush.bf16.msra.mxu3 %v11419_v4  ;;  %v1743_v15 = vld [vmem:[#allocation2 + $0xb4] sm:$0xf] }
 0x173   : > { %v12033_v34 = vadd.f32 %v3385_v54, %v2976_v20  ;;  %v2318_v52 = vrot.slane %v2316_v25, 5  ;;  %v11420_v25 = vld [vmem:[%s15574_s2 + $0x28] sm:$0xff] }
 0x174   : > { %v2313_v40 = vor.u32 %v2312_v23, %v2308_v21  ;;  %v1238_v43 = vor.u32 %v1236_v32, %v1235_v29  ;;  %v1240_v12 = vrot.slane %v1235_v29, 4  ;;  %v690_v44 = vmax.f32 %v573_v33, 0.0  ;;  %10269 = vmatmul.msk.bf16.gmra.mxu0 %vm396_vm0, %v374_v16  ;;  %v11301_v23 = vld [vmem:[%s15574_s2 + $0xc8] sm:$0xff] }
 0x175   : > { %v2309_v48 = vsel %vm11706_vm8, %v2304_v38, %v2308_v21  ;;  %v889_v29 = vld [vmem:[#allocation2 + $0xec] sm:$0x1]  ;;  %4599 = vmatpush.bf16.msrb.mxu0 %v11301_v23 }
 0x176   : > { %v2314_v50 = vrot.slane %v2313_v40, 4  ;;  %v1239_v53 = vsel %vm11744_vm12, %v1231_v42, %v1238_v43  ;;  %v1741_v54 = vsel %vm11669_vm3, %v1240_v12, %v1740_v35  ;;  %v965_v55 = vpack.c.bf16 %v690_v44, %v690_v44  ;;  %v1897_v57 = vld [vmem:[#allocation2 + $0xa8] sm:$0xf]  ;;  %11399 = vmatpush.bf16.msra.mxu3 %v11420_v25  ;;  %v340_v40 = vld [vmem:[%s11617_s9 + $0x1a0] sm:$0xff] }
 0x177   : > { %1739 = vst [vmem:[#allocation2 + $0xac] sm:$0xf] %v1239_v53  ;;  %v2321_v61 = vshrl.u32 %v1897_v57, 16  ;;  %v2324_v62 = vshll.u32 %v1897_v57, 16  ;;  %v2795_v1 = vunpack.c.l.b16 %v2309_v48  ;;  %v890_v38 = vsel %vm11683_vm5, 0, %v889_v29  ;;  %v341_v48 = vld [vmem:[%s11617_s9 + $0x1a8] sm:$0xff] }
 0x178   : > { %v2319_v60 = vsel %vm11706_vm8, %v2314_v50, %v2318_v52  ;;  %1742 = vst [vmem:[#allocation2 + $0xb0] sm:$0x1] %v1741_v54  ;;  %v1242_v63 = vshrl.u32 %v965_v55, 16  ;;  %v1245_v5 = vshll.u32 %v965_v55, 16  ;;  %v11421_v50 = vld [vmem:[%s15574_s2 + $0x20] sm:$0xff]  ;;  %v378_v57 = vpack.c.bf16 %v341_v48, %v340_v40 }
 0x179   : > { %v2796_v3 = vunpack.c.l.b16 %v2319_v60  ;;  %v574_v6 = vpop.f32.mrf.mxu0  ;;  %v2323_v17 = vrot.slane %v2321_v61, 4  ;;  %v2326_v18 = vrot.slane %v2324_v62, 5  ;;  %891 = vst [vmem:[#allocation2 + $0xec] sm:$0x1] %v890_v38  ;;  %4600 = vmatpush.bf16.msrb.mxu0 %v11300_v58  ;;  %v1750_v48 = vld [vmem:[#allocation2 + $0xc0] sm:$0xf] }
 0x17a   : > { %v2979_v7 = vpop.f32.mrf.mxu1  ;;  %v12060_v9 = vrot.slane %v1242_v63, 7  ;;  %v575_v11 = vadd.f32 %v11900_v56, %v574_v6  ;;  %v3390_v16 = vpop.f32.mrf.mxu2  ;;  %11400 = vmatpush.bf16.msra.mxu3 %v11421_v50  ;;  %v337_v58 = vld [vmem:[%s11617_s9 + $0x188] sm:$0xff] }
 0x17b   : > { %v12063_v13 = vadd.f32 %v3388_v36, %v2979_v7  ;;  %v2846_v14 = vpack.c.b16 %v2796_v3, %v2795_v1  ;;  %v2327_v43 = vor.u32 %v2326_v18, %v2323_v17  ;;  %v1747_v1 = vld [vmem:[#allocation2 + $0xbc] sm:$0x1]  ;;  %10273 = vmatmul.msk.bf16.gmra.mxu3 %vm396_vm0, %v378_v57  ;;  %v794_v18 = vld [vmem:[#allocation2 + $0xf0] sm:$0x1]  ;;  %v336_v57 = vld [vmem:[%s11617_s9 + $0x180] sm:$0xff] }
 0x17c   : > { %v1247_v20 = vor.u32 %v1245_v5, %v12060_v9  ;;  %v691_v21 = vmax.f32 %v575_v11, 0.0  ;;  %v1248_v6 = vrot.slane %v12060_v9, 4  ;;  %v795_v25 = vsel %vm11669_vm3, 0, %v794_v18 }
 0x17d   : > { %3018 = vmatmul.bf16.gmra.mxu1 %v2846_v14  ;;  %v2328_v4 = vrot.slane %v2327_v43, 4  ;;  %v11422_v14 = vld [vmem:[%s15574_s2 + $0x18] sm:$0xff]  ;;  %796 = vst [vmem:[#allocation2 + $0xf0] sm:$0x1] %v795_v25 }
 0x17e   : > { %v1744_v32 = vsel %vm11732_vm10, %v1247_v20, %v1743_v15  ;;  %v966_v33 = vpack.c.bf16 %v691_v21, %v691_v21  ;;  %v11226_v35 = vld [vmem:[#allocation2 + $0xa8] sm:$0xff]  ;;  %11401 = vmatpush.bf16.msra.mxu3 %v11422_v14  ;;  %v1901_v43 = vld [vmem:[#allocation2 + $0xd8] sm:$0xf]  ;;  %v376_v14 = vpack.c.bf16 %v337_v58, %v336_v57  ;;  %v1965_v58 = vld [vmem:[#allocation2 + $0xe0] sm:$0x1] }
 0x17f   : > { %v1898_v36 = vld [vmem:[#allocation2 + $0xac] sm:$0xf]  ;;  %1745 = vst [vmem:[#allocation2 + $0xb4] sm:$0xf] %v1744_v32  ;;  %v1963_v42 = vld [vmem:[#allocation2 + $0xb0] sm:$0x1]  ;;  %3432 = vmatmul.bf16.gmra.mxu2 %v11226_v35 }
 0x180   : > { %v2330_v12 = vshll.u32 %v1898_v36, 16  ;;  %v2334_v44 = vshrl.u32 %v1898_v36, 16  ;;  %v1250_v46 = vshrl.u32 %v966_v33, 16  ;;  %v2340_v55 = vshll.u32 %v1963_v42, 16  ;;  %v11423_v36 = vld [vmem:[%s15574_s2 + $0x10] sm:$0xff]  ;;  %v343_v25 = vld [vmem:[%s11617_s9 + $0x1b8] sm:$0xff] }
 0x181   : > { %v577_v52 = vpop.f32.mrf.mxu0  ;;  %v1253_v61 = vshll.u32 %v966_v33, 16 }
 0x182   : > { %v2981_v49 = vpop.f32.mrf.mxu1  ;;  %v2332_v53 = vrot.slane %v2330_v12, 5  ;;  %v2336_v54 = vrot.slane %v2334_v44, 4  ;;  %v1252_v60 = vrot.slane %v1250_v46, 7  ;;  %v578_v62 = vadd.f32 %v11900_v56, %v577_v52  ;;  %v3393_v3 = vpop.f32.mrf.mxu2  ;;  %11402 = vmatpush.bf16.msra.mxu3 %v11423_v36 }
 0x183   : > { %v12087_v63 = vadd.f32 %v3390_v16, %v2981_v49  ;;  %v2342_v17 = vrot.slane %v2340_v55, 5 }
 0x184   : > { %v2337_v5 = vor.u32 %v2336_v54, %v2332_v53  ;;  %v1255_v7 = vor.u32 %v1253_v61, %v1252_v60  ;;  %v1257_v8 = vrot.slane %v1252_v60, 4  ;;  %v692_v11 = vmax.f32 %v578_v62, 0.0  ;;  %10270 = vmatmul.msk.bf16.gmra.mxu0 %vm396_vm0, %v375_v47  ;;  %v11424_v62 = vld [vmem:[%s15574_s2 + $0x8] sm:$0xff] }
 0x185   : > { %v2333_v15 = vsel %vm11706_vm8, %v2328_v4, %v2332_v53  ;;  %v1902_v53 = vld [vmem:[#allocation2 + $0xdc] sm:$0xf]  ;;  %v2369_v60 = vshrl.u32 %v1901_v43, 16  ;;  %v2372_v61 = vshll.u32 %v1901_v43, 16 }
 0x186   : > { %v2338_v16 = vrot.slane %v2337_v5, 4  ;;  %v1256_v20 = vsel %vm11744_vm12, %v1248_v6, %v1255_v7  ;;  %v1748_v9 = vsel %vm11669_vm3, %v1257_v8, %v1747_v1  ;;  %v967_v21 = vpack.c.bf16 %v692_v11, %v692_v11  ;;  %v1899_v23 = vld [vmem:[#allocation2 + $0xb4] sm:$0xf]  ;;  %11403 = vmatpush.bf16.msra.mxu3 %v11424_v62  ;;  %v892_v1 = vld [vmem:[#allocation2 + $0xf8] sm:$0x1] }
 0x187   : > { %1746 = vst [vmem:[#allocation2 + $0xb8] sm:$0xf] %v1256_v20  ;;  %v2345_v28 = vshrl.u32 %v1899_v23, 16  ;;  %v2348_v29 = vshll.u32 %v1899_v23, 16  ;;  %v2797_v33 = vunpack.c.l.b16 %v2333_v15  ;;  %v893_v7 = vsel %vm11683_vm5, 0, %v892_v1  ;;  %v342_v11 = vld [vmem:[%s11617_s9 + $0x1b0] sm:$0xff] }
 0x188   : > { %v2343_v26 = vsel %vm11706_vm8, %v2338_v16, %v2342_v17  ;;  %1749 = vst [vmem:[#allocation2 + $0xbc] sm:$0x1] %v1748_v9  ;;  %v1259_v32 = vshrl.u32 %v967_v21, 16  ;;  %v1262_v38 = vshll.u32 %v967_v21, 16  ;;  %v2378_v8 = vshll.u32 %v1902_v53, 16 }
 0x189   : > { %v2798_v35 = vunpack.c.l.b16 %v2343_v26  ;;  %v579_v40 = vpop.f32.mrf.mxu0  ;;  %v2347_v52 = vrot.slane %v2345_v28, 4  ;;  %v2350_v49 = vrot.slane %v2348_v29, 5  ;;  %v2371_v9 = vrot.slane %v2369_v60, 4  ;;  %v11425_v26 = vld [vmem:[%s15574_s2] sm:$0xff]  ;;  %894 = vst [vmem:[#allocation2 + $0xf8] sm:$0x1] %v893_v7 }
 0x18a   : > { %v2984_v42 = vpop.f32.mrf.mxu1  ;;  %v12108_v12 = vrot.slane %v1259_v32, 7  ;;  %v580_v44 = vadd.f32 %v11900_v56, %v579_v40  ;;  %v3395_v50 = vpop.f32.mrf.mxu2  ;;  %v2374_v21 = vrot.slane %v2372_v61, 5  ;;  %v2382_v23 = vshrl.u32 %v1902_v53, 16  ;;  %11404 = vmatpush.bf16.msra.mxu3 %v11425_v26  ;;  %v797_v61 = vld [vmem:[#allocation2 + $0xfc] sm:$0x1] }
 0x18b   : > { %v12111_v46 = vadd.f32 %v3393_v3, %v2984_v42  ;;  %v2847_v47 = vpack.c.b16 %v2798_v35, %v2797_v33  ;;  %v2351_v16 = vor.u32 %v2350_v49, %v2347_v52  ;;  %v379_v36 = vpack.c.bf16 %v343_v25, %v342_v11  ;;  %v1757_v26 = vld [vmem:[#allocation2 + $0xe4] sm:$0xf] }
 0x18c   : > { %v1264_v54 = vor.u32 %v1262_v38, %v12108_v12  ;;  %v693_v55 = vmax.f32 %v580_v44, 0.0  ;;  %v1265_v44 = vrot.slane %v12108_v12, 4  ;;  %v12132_v53 = vrot.slane %v2378_v8, 5 }
 0x18d   : > { %3023 = vmatmul.bf16.gmra.mxu1 %v2847_v47  ;;  %v1754_v47 = vld [vmem:[#allocation2 + $0xc8] sm:$0x1]  ;;  %v2352_v52 = vrot.slane %v2351_v16, 4  ;;  %10274 = vmatmul.msk.bf16.gmra.mxu3 %vm396_vm0, %v379_v36  ;;  %v2384_v60 = vrot.slane %v2382_v23, 4  ;;  %v2388_v7 = vshll.u32 %v1965_v58, 16 }
 0x18e   : > { %v1751_v3 = vsel %vm11732_vm10, %v1264_v54, %v1750_v48  ;;  %v968_v4 = vpack.c.bf16 %v693_v55, %v693_v55  ;;  %v11227_v5 = vld [vmem:[#allocation2 + $0xb4] sm:$0xff]  ;;  %v12150_v23 = vld [vmem:[%s15576_s4] ss:$0 sm:$0xff] }
 0x18f   : > { %v1900_v6 = vld [vmem:[#allocation2 + $0xb8] sm:$0xf]  ;;  %1752 = vst [vmem:[#allocation2 + $0xc0] sm:$0xf] %v1751_v3  ;;  %v1964_v15 = vld [vmem:[#allocation2 + $0xbc] sm:$0x1]  ;;  %3437 = vmatmul.bf16.gmra.mxu2 %v11227_v5 }
 0x190   : > { %v2354_v17 = vshll.u32 %v1900_v6, 16  ;;  %v2358_v18 = vshrl.u32 %v1900_v6, 16  ;;  %v1267_v20 = vshrl.u32 %v968_v4, 16  ;;  %v2364_v35 = vshll.u32 %v1964_v15, 16 }
 0x191   : > { %v582_v28 = vpop.f32.mrf.mxu0  ;;  %v1270_v40 = vshll.u32 %v968_v4, 16  ;;  %v798_v4 = vsel %vm11669_vm3, 0, %v797_v61  ;;  %v2375_v6 = vor.u32 %v2374_v21, %v2371_v9  ;;  %v2385_v15 = vor.u32 %v2384_v60, %v12132_v53 }
 0x192   : > { %v2986_v29 = vpop.f32.mrf.mxu1  ;;  %v2356_v32 = vrot.slane %v2354_v17, 5  ;;  %v2360_v33 = vrot.slane %v2358_v18, 4  ;;  %v1269_v38 = vrot.slane %v1267_v20, 7  ;;  %v583_v42 = vadd.f32 %v11900_v56, %v582_v28  ;;  %v3398_v48 = vpop.f32.mrf.mxu2  ;;  %799 = vst [vmem:[#allocation2 + $0xfc] sm:$0x1] %v798_v4 }
 0x193   : > { %v12129_v43 = vadd.f32 %v3395_v50, %v2986_v29  ;;  %v2366_v12 = vrot.slane %v2364_v35, 5  ;;  %v2376_v29 = vrot.slane %v2375_v6, 4  ;;  %v11228_v35 = vld [vmem:[#allocation2 + $0xd8] sm:$0xff]  ;;  %v2386_v36 = vrot.slane %v2385_v15, 4 }
 0x194   : > { %v2361_v49 = vor.u32 %v2360_v33, %v2356_v32  ;;  %v1272_v54 = vor.u32 %v1270_v40, %v1269_v38  ;;  %v1274_v55 = vrot.slane %v1269_v38, 4  ;;  %v694_v57 = vmax.f32 %v583_v42, 0.0  ;;  %10271 = vmatmul.msk.bf16.gmra.mxu0 %vm396_vm0, %v376_v14  ;;  %v895_v40 = vld [vmem:[#allocation2 + $0x104] sm:$0x1] }
 0x195   : > { %v2357_v56 = vsel %vm11706_vm8, %v2352_v52, %v2356_v32  ;;  %v2390_v38 = vrot.slane %v2388_v7, 5  ;;  %v345_v52 = vld [vmem:[%s11617_s9 + $0x1c8] sm:$0xff] }
 0x196   : > { %v2362_v50 = vrot.slane %v2361_v49, 4  ;;  %v1273_v62 = vsel %vm11744_vm12, %v1265_v44, %v1272_v54  ;;  %v1755_v1 = vsel %vm11669_vm3, %v1274_v55, %v1754_v47  ;;  %v969_v3 = vpack.c.bf16 %v694_v57, %v694_v57  ;;  %v11315_v49 = vld [vmem:[%s15574_s2 + $0x138] sm:$0xff] }
 0x197   : > { %1753 = vst [vmem:[#allocation2 + $0xc4] sm:$0xf] %v1273_v62  ;;  %v2799_v11 = vunpack.c.l.b16 %v2357_v56  ;;  %v896_v47 = vsel %vm11683_vm5, 0, %v895_v40  ;;  %v2381_v57 = vsel %vm11706_vm8, %v2376_v29, %v12132_v53  ;;  %v2391_v58 = vsel %vm11706_vm8, %v2386_v36, %v2390_v38  ;;  %5883 = vmatpush.bf16.msrb.mxu1 %v11315_v49  ;;  %v1764_v40 = vld [vmem:[#allocation2 + $0xf0] sm:$0xf] }
 0x198   : > { %v2367_v5 = vsel %vm11706_vm8, %v2362_v50, %v2366_v12  ;;  %1756 = vst [vmem:[#allocation2 + $0xc8] sm:$0x1] %v1755_v1  ;;  %v1276_v8 = vshrl.u32 %v969_v3, 16  ;;  %v1279_v16 = vshll.u32 %v969_v3, 16  ;;  %v11268_v1 = vld [vmem:[#allocation2 + $0xc] sm:$0xff]  ;;  %v2802_v6 = vunpack.c.l.b16 %v2391_v58 }
 0x199   : > { %v2800_v14 = vunpack.c.l.b16 %v2367_v5  ;;  %v584_v17 = vpop.f32.mrf.mxu0  ;;  %897 = vst [vmem:[#allocation2 + $0x104] sm:$0x1] %v896_v47  ;;  %v1761_v3 = vld [vmem:[#allocation2 + $0xec] sm:$0x1]  ;;  %v2801_v5 = vunpack.c.l.b16 %v2381_v57  ;;  %v898_v49 = vld [vmem:[#allocation2 + $0x110] sm:$0x1] }
 0x19a   : > { %v2989_v18 = vpop.f32.mrf.mxu1  ;;  %v1278_v20 = vrot.slane %v1276_v8, 7  ;;  %v585_v25 = vadd.f32 %v12150_v23, %v584_v17  ;;  %v3400_v28 = vpop.f32.mrf.mxu2 }
 0x19b   : > { %v12153_v9 = vadd.f32 %v3398_v48, %v2989_v18  ;;  %v2848_v21 = vpack.c.b16 %v2800_v14, %v2799_v11  ;;  %v344_v48 = vld [vmem:[%s11617_s9 + $0x1c0] sm:$0xff]  ;;  %v800_v14 = vld [vmem:[#allocation2 + $0x108] sm:$0x1] }
 0x19c   : > { %v1281_v32 = vor.u32 %v1279_v16, %v1278_v20  ;;  %v695_v33 = vmax.f32 %v585_v25, 0.0  ;;  %v380_v54 = vpack.c.bf16 %v345_v52, %v344_v48  ;;  %v1282_v53 = vrot.slane %v1278_v20, 4 }
 0x19d   : > { %15599 = vst [vmem:[#allocation6_spill] sm:$0xff] %v12153_v9  ;;  %3028 = vmatmul.bf16.gmra.mxu1 %v2848_v21  ;;  %v801_v25 = vsel %vm11669_vm3, 0, %v800_v14  ;;  %v824_v9 = vld [vmem:[#allocation2 + $0x168] sm:$0x1] }
 0x19e   : > { %v1758_v42 = vsel %vm11732_vm10, %v1281_v32, %v1757_v26  ;;  %v970_v44 = vpack.c.bf16 %v695_v33, %v695_v33  ;;  %10275 = vmatmul.msk.bf16.gmra.mxu3 %vm396_vm0, %v380_v54  ;;  %802 = vst [vmem:[#allocation2 + $0x108] sm:$0x1] %v801_v25  ;;  %v1768_v25 = vld [vmem:[#allocation2 + $0xf8] sm:$0x1] }
 0x19f   : > { %1759 = vst [vmem:[#allocation2 + $0xe4] sm:$0xf] %v1758_v42  ;;  %3442 = vmatmul.bf16.gmra.mxu2 %v11228_v35 }
 0x1a0   : > { %v1284_v55 = vshrl.u32 %v970_v44, 16  ;;  %v1287_v12 = vshll.u32 %v970_v44, 16 }
 0x1a1   : > { %v587_v60 = vpop.f32.mrf.mxu0 }
 0x1a2   : > { %v2991_v56 = vpop.f32.mrf.mxu1  ;;  %v1286_v50 = vrot.slane %v1284_v55, 7  ;;  %v588_v61 = vadd.f32 %v12150_v23, %v587_v60  ;;  %v3403_v4 = vpop.f32.mrf.mxu2  ;;  %v899_v60 = vsel %vm11683_vm5, 0, %v898_v49 }
 0x1a3   : > { %v12170_v62 = vadd.f32 %v3400_v28, %v2991_v56  ;;  %v2849_v28 = vpack.c.b16 %v2802_v6, %v2801_v5  ;;  %v346_v56 = vld [vmem:[%s11617_s9 + $0x1d0] sm:$0xff]  ;;  %900 = vst [vmem:[#allocation2 + $0x110] sm:$0x1] %v899_v60 }
 0x1a4   : > { %v1289_v7 = vor.u32 %v1287_v12, %v1286_v50  ;;  %v1291_v8 = vrot.slane %v1286_v50, 4  ;;  %v696_v11 = vmax.f32 %v588_v61, 0.0  ;;  %4601 = vmatmul.bf16.vlgmr.msrb.gmra.mxu0 %v11268_v1 }
 0x1a5   : > { %15600 = vst [vmem:[#allocation7_spill] sm:$0xff] %v12170_v62 }
 0x1a6   : > { %v1290_v15 = vsel %vm11744_vm12, %v1282_v53, %v1289_v7  ;;  %v1762_v16 = vsel %vm11669_vm3, %v1291_v8, %v1761_v3  ;;  %v971_v17 = vpack.c.bf16 %v696_v11, %v696_v11  ;;  %v1903_v18 = vld [vmem:[#allocation2 + $0xe4] sm:$0xf] }
 0x1a7   : > { %1760 = vst [vmem:[#allocation2 + $0xe8] sm:$0xf] %v1290_v15  ;;  %v2393_v21 = vshrl.u32 %v1903_v18, 16  ;;  %v2396_v26 = vshll.u32 %v1903_v18, 16  ;;  %v11269_v18 = vld [vmem:[#allocation2 + $0x18] sm:$0xff] }
 0x1a8   : > { %1763 = vst [vmem:[#allocation2 + $0xec] sm:$0x1] %v1762_v16  ;;  %v1293_v20 = vshrl.u32 %v971_v17, 16  ;;  %v1296_v35 = vshll.u32 %v971_v17, 16 }
 0x1a9   : > { %v589_v29 = vpop.f32.mrf.mxu0  ;;  %v2395_v44 = vrot.slane %v2393_v21, 4  ;;  %v2398_v47 = vrot.slane %v2396_v26, 5 }
 0x1aa   : > { %v2994_v32 = vpop.f32.mrf.mxu1  ;;  %v1295_v33 = vrot.slane %v1293_v20, 7  ;;  %v590_v36 = vadd.f32 %v12150_v23, %v589_v29  ;;  %v3405_v42 = vpop.f32.mrf.mxu2 }
 0x1ab   : > { %v12180_v38 = vadd.f32 %v3403_v4, %v2994_v32  ;;  %v2399_v12 = vor.u32 %v2398_v47, %v2395_v44  ;;  %v347_v4 = vld [vmem:[%s11617_s9 + $0x1d8] sm:$0xff]  ;;  %v803_v47 = vld [vmem:[#allocation2 + $0x114] sm:$0x1] }
 0x1ac   : > { %v1298_v48 = vor.u32 %v1296_v35, %v1295_v33  ;;  %v697_v52 = vmax.f32 %v590_v36, 0.0  ;;  %v381_v11 = vpack.c.bf16 %v347_v4, %v346_v56 }
 0x1ad   : > { %15601 = vst [vmem:[#allocation8_spill] sm:$0xff] %v12180_v38  ;;  %3033 = vmatmul.bf16.gmra.mxu1 %v2849_v28  ;;  %v2400_v26 = vrot.slane %v2399_v12, 4  ;;  %v1299_v28 = vrot.slane %v1295_v33, 4  ;;  %v804_v33 = vsel %vm11669_vm3, 0, %v803_v47 }
 0x1ae   : > { %v1765_v54 = vsel %vm11732_vm10, %v1298_v48, %v1764_v40  ;;  %v972_v55 = vpack.c.bf16 %v697_v52, %v697_v52  ;;  %v11229_v57 = vld [vmem:[#allocation2 + $0xe4] sm:$0xff]  ;;  %10276 = vmatmul.msk.bf16.gmra.mxu3 %vm396_vm0, %v381_v11  ;;  %805 = vst [vmem:[#allocation2 + $0x114] sm:$0x1] %v804_v33 }
 0x1af   : > { %v1904_v58 = vld [vmem:[#allocation2 + $0xe8] sm:$0xf]  ;;  %1766 = vst [vmem:[#allocation2 + $0xf0] sm:$0xf] %v1765_v54  ;;  %v1966_v50 = vld [vmem:[#allocation2 + $0xec] sm:$0x1]  ;;  %3447 = vmatmul.bf16.gmra.mxu2 %v11229_v57 }
 0x1b0   : > { %v2402_v61 = vshll.u32 %v1904_v58, 16  ;;  %v2406_v1 = vshrl.u32 %v1904_v58, 16  ;;  %v1301_v3 = vshrl.u32 %v972_v55, 16  ;;  %v2412_v8 = vshll.u32 %v1966_v50, 16 }
 0x1b1   : > { %v592_v5 = vpop.f32.mrf.mxu0  ;;  %v1304_v15 = vshll.u32 %v972_v55, 16 }
 0x1b2   : > { %v2996_v6 = vpop.f32.mrf.mxu1  ;;  %v2404_v53 = vrot.slane %v2402_v61, 5  ;;  %v2408_v7 = vrot.slane %v2406_v1, 4  ;;  %v1303_v14 = vrot.slane %v1301_v3, 7  ;;  %v593_v16 = vadd.f32 %v12150_v23, %v592_v5  ;;  %v3408_v21 = vpop.f32.mrf.mxu2 }
 0x1b3   : > { %v12189_v17 = vadd.f32 %v3405_v42, %v2996_v6  ;;  %v2414_v44 = vrot.slane %v2412_v8, 5  ;;  %v1771_v6 = vld [vmem:[#allocation2 + $0xfc] sm:$0xf] }
 0x1b4   : > { %v2409_v20 = vor.u32 %v2408_v7, %v2404_v53  ;;  %v1306_v29 = vor.u32 %v1304_v15, %v1303_v14  ;;  %v1308_v32 = vrot.slane %v1303_v14, 4  ;;  %v698_v35 = vmax.f32 %v593_v16, 0.0  ;;  %4606 = vmatmul.bf16.gmra.mxu0 %v11269_v18  ;;  %v901_v15 = vld [vmem:[#allocation2 + $0x11c] sm:$0x1] }
 0x1b5   : > { %15602 = vst [vmem:[#allocation9_spill] sm:$0xff] %v12189_v17  ;;  %v2405_v36 = vsel %vm11706_vm8, %v2400_v26, %v2404_v53 }
 0x1b6   : > { %v2410_v40 = vrot.slane %v2409_v20, 4  ;;  %v1307_v42 = vsel %vm11744_vm12, %v1299_v28, %v1306_v29  ;;  %v1769_v48 = vsel %vm11669_vm3, %v1308_v32, %v1768_v25  ;;  %v973_v52 = vpack.c.bf16 %v698_v35, %v698_v35  ;;  %v1905_v49 = vld [vmem:[#allocation2 + $0xf0] sm:$0xf]  ;;  %v348_v20 = vld [vmem:[%s11617_s9 + $0x1e0] sm:$0xff] }
 0x1b7   : > { %1767 = vst [vmem:[#allocation2 + $0xf4] sm:$0xf] %v1307_v42  ;;  %v2417_v55 = vshrl.u32 %v1905_v49, 16  ;;  %v2420_v57 = vshll.u32 %v1905_v49, 16  ;;  %v2803_v60 = vunpack.c.l.b16 %v2405_v36 }
 0x1b8   : > { %v2415_v54 = vsel %vm11706_vm8, %v2410_v40, %v2414_v44  ;;  %1770 = vst [vmem:[#allocation2 + $0xf8] sm:$0x1] %v1769_v48  ;;  %v1310_v58 = vshrl.u32 %v973_v52, 16  ;;  %v1313_v50 = vshll.u32 %v973_v52, 16  ;;  %v349_v40 = vld [vmem:[%s11617_s9 + $0x1e8] sm:$0xff] }
 0x1b9   : > { %v2804_v56 = vunpack.c.l.b16 %v2415_v54  ;;  %v594_v12 = vpop.f32.mrf.mxu0  ;;  %v2419_v7 = vrot.slane %v2417_v55, 4  ;;  %v2422_v8 = vrot.slane %v2420_v57, 5  ;;  %v382_v49 = vpack.c.bf16 %v349_v40, %v348_v20 }
 0x1ba   : > { %v2999_v61 = vpop.f32.mrf.mxu1  ;;  %v1312_v1 = vrot.slane %v1310_v58, 7  ;;  %v595_v3 = vadd.f32 %v12150_v23, %v594_v12  ;;  %v3410_v53 = vpop.f32.mrf.mxu2  ;;  %v11270_v58 = vld [vmem:[#allocation2 + $0x24] sm:$0xff] }
 0x1bb   : > { %v12203_v4 = vadd.f32 %v3408_v21, %v2999_v61  ;;  %v2850_v5 = vpack.c.b16 %v2804_v56, %v2803_v60  ;;  %v902_v21 = vsel %vm11683_vm5, 0, %v901_v15  ;;  %v2423_v29 = vor.u32 %v2422_v8, %v2419_v7  ;;  %v1775_v60 = vld [vmem:[#allocation2 + $0x104] sm:$0x1]  ;;  %v4826_v7 = vld [vmem:[#allocation2 + $0xc] sm:$0xf] }
 0x1bc   : > { %v1315_v11 = vor.u32 %v1313_v50, %v1312_v1  ;;  %v699_v14 = vmax.f32 %v595_v3, 0.0  ;;  %903 = vst [vmem:[#allocation2 + $0x11c] sm:$0x1] %v902_v21  ;;  %v1316_v61 = vrot.slane %v1312_v1, 4 }
 0x1bd   : > { %15603 = vst [vmem:[#allocation10_spill] sm:$0xff] %v12203_v4  ;;  %3038 = vmatmul.bf16.gmra.mxu1 %v2850_v5  ;;  %v2424_v50 = vrot.slane %v2423_v29, 4 }
 0x1be   : > { %v1772_v16 = vsel %vm11732_vm10, %v1315_v11, %v1771_v6  ;;  %v974_v18 = vpack.c.bf16 %v699_v14, %v699_v14  ;;  %v11230_v25 = vld [vmem:[#allocation2 + $0xf0] sm:$0xff]  ;;  %10277 = vmatmul.msk.bf16.gmra.mxu3 %vm396_vm0, %v382_v49 }
 0x1bf   : > { %v1906_v26 = vld [vmem:[#allocation2 + $0xf4] sm:$0xf]  ;;  %1773 = vst [vmem:[#allocation2 + $0xfc] sm:$0xf] %v1772_v16  ;;  %v1967_v28 = vld [vmem:[#allocation2 + $0xf8] sm:$0x1]  ;;  %3452 = vmatmul.bf16.gmra.mxu2 %v11230_v25 }
 0x1c0   : > { %v2426_v32 = vshll.u32 %v1906_v26, 16  ;;  %v2430_v35 = vshrl.u32 %v1906_v26, 16  ;;  %v1318_v36 = vshrl.u32 %v974_v18, 16  ;;  %v2436_v52 = vshll.u32 %v1967_v28, 16 }
 0x1c1   : > { %v597_v44 = vpop.f32.mrf.mxu0  ;;  %v1321_v54 = vshll.u32 %v974_v18, 16  ;;  %v4923_v28 = vshrl.u32 %v4826_v7, 16 }
 0x1c2   : > { %v3001_v47 = vpop.f32.mrf.mxu1  ;;  %v2428_v42 = vrot.slane %v2426_v32, 5  ;;  %v2432_v48 = vrot.slane %v2430_v35, 4  ;;  %v1320_v33 = vrot.slane %v1318_v36, 7  ;;  %v598_v55 = vadd.f32 %v12150_v23, %v597_v44  ;;  %v3413_v56 = vpop.f32.mrf.mxu2 }
 0x1c3   : > { %v12212_v57 = vadd.f32 %v3410_v53, %v3001_v47  ;;  %v2438_v14 = vrot.slane %v2436_v52, 5  ;;  %v806_v53 = vld [vmem:[#allocation2 + $0x120] sm:$0x1]  ;;  %v4926_v36 = vshll.u32 %v4826_v7, 16 }
 0x1c4   : > { %v2433_v12 = vor.u32 %v2432_v48, %v2428_v42  ;;  %v1323_v3 = vor.u32 %v1321_v54, %v1320_v33  ;;  %v1325_v5 = vrot.slane %v1320_v33, 4  ;;  %v700_v6 = vmax.f32 %v598_v55, 0.0  ;;  %4611 = vmatmul.bf16.gmra.mxu0 %v11270_v58  ;;  %v12230_v33 = vld [vmem:[#allocation2 + $0x10] sm:$0xf]  ;;  %v1778_v54 = vld [vmem:[#allocation2 + $0x108] sm:$0xf] }
 0x1c5   : > { %15604 = vst [vmem:[#allocation11_spill] sm:$0xff] %v12212_v57  ;;  %v2429_v8 = vsel %vm11706_vm8, %v2424_v50, %v2428_v42  ;;  %v807_v1 = vsel %vm11669_vm3, 0, %v806_v53 }
 0x1c6   : > { %v2434_v11 = vrot.slane %v2433_v12, 4  ;;  %v1324_v15 = vsel %vm11744_vm12, %v1316_v61, %v1323_v3  ;;  %v1776_v16 = vsel %vm11669_vm3, %v1325_v5, %v1775_v60  ;;  %v975_v18 = vpack.c.bf16 %v700_v6, %v700_v6  ;;  %v1907_v25 = vld [vmem:[#allocation2 + $0xfc] sm:$0xf]  ;;  %808 = vst [vmem:[#allocation2 + $0x120] sm:$0x1] %v807_v1 }
 0x1c7   : > { %1774 = vst [vmem:[#allocation2 + $0x100] sm:$0xf] %v1324_v15  ;;  %v2441_v21 = vshrl.u32 %v1907_v25, 16  ;;  %v2444_v20 = vshll.u32 %v1907_v25, 16  ;;  %v2805_v32 = vunpack.c.l.b16 %v2429_v8  ;;  %v12233_v61 = vrot.slane %v4923_v28, 4 }
 0x1c8   : > { %v2439_v26 = vsel %vm11706_vm8, %v2434_v11, %v2438_v14  ;;  %1777 = vst [vmem:[#allocation2 + $0x104] sm:$0x1] %v1776_v16  ;;  %v1327_v29 = vshrl.u32 %v975_v18, 16  ;;  %v1330_v40 = vshll.u32 %v975_v18, 16  ;;  %v12235_v3 = vrot.slane %v4926_v36, 5 }
 0x1c9   : > { %v2806_v35 = vunpack.c.l.b16 %v2439_v26  ;;  %v599_v44 = vpop.f32.mrf.mxu0  ;;  %v2443_v58 = vrot.slane %v2441_v21, 4  ;;  %v2446_v60 = vrot.slane %v2444_v20, 5  ;;  %v904_v5 = vld [vmem:[#allocation2 + $0x128] sm:$0x1]  ;;  %v12237_v6 = vld [vmem:[#allocation2 + $0xc] sm:$0xe] }
 0x1ca   : > { %v3004_v47 = vpop.f32.mrf.mxu1  ;;  %v12225_v42 = vrot.slane %v1327_v29, 7  ;;  %v600_v48 = vadd.f32 %v12150_v23, %v599_v44  ;;  %v3415_v55 = vpop.f32.mrf.mxu2  ;;  %v905_v53 = vsel %vm11683_vm5, 0, %v904_v5  ;;  %v11314_v26 = vld [vmem:[%s15574_s2 + $0x130] sm:$0xff]  ;;  %v10791_v21 = vrot.slane %v12237_v6, 9 }
 0x1cb   : > { %v12228_v52 = vadd.f32 %v3413_v56, %v3004_v47  ;;  %v2851_v49 = vpack.c.b16 %v2806_v35, %v2805_v32  ;;  %v6246_v56 = vrot.slane %v12230_v33, 5  ;;  %v2447_v16 = vor.u32 %v2446_v60, %v2443_v58  ;;  %906 = vst [vmem:[#allocation2 + $0x128] sm:$0x1] %v905_v53  ;;  %5884 = vmatpush.bf16.msrb.mxu1 %v11314_v26  ;;  %v4828_v58 = vld [vmem:[#allocation2 + $0x14] sm:$0x1] }
 0x1cc   : > { %v1332_v50 = vor.u32 %v1330_v40, %v12225_v42  ;;  %v701_v12 = vmax.f32 %v600_v48, 0.0  ;;  %v4929_v20 = vor.u32 %v12235_v3, %v12233_v61  ;;  %v1782_v60 = vld [vmem:[#allocation2 + $0x110] sm:$0x1]  ;;  %v4932_v6 = vshll.u32 %v12230_v33, 16 }
 0x1cd   : > { %15605 = vst [vmem:[#allocation12_spill] sm:$0xff] %v12228_v52  ;;  %3043 = vmatmul.bf16.gmra.mxu1 %v2851_v49  ;;  %v6248_v40 = vrot.slane %v6246_v56, 4  ;;  %v11310_v52 = vld [vmem:[%s15574_s2 + $0x110] sm:$0xff] }
 0x1ce   : > { %v1779_v7 = vsel %vm11732_vm10, %v1332_v50, %v1778_v54  ;;  %v976_v8 = vpack.c.bf16 %v701_v12, %v701_v12  ;;  %v11231_v11 = vld [vmem:[#allocation2 + $0xfc] sm:$0xff]  ;;  %v11271_v54 = vld [vmem:[#allocation2 + $0x30] sm:$0xff]  ;;  %v2448_v12 = vrot.slane %v2447_v16, 4 }
 0x1cf   : > { %v1908_v14 = vld [vmem:[#allocation2 + $0x100] sm:$0xf]  ;;  %1780 = vst [vmem:[#allocation2 + $0x108] sm:$0xf] %v1779_v7  ;;  %v1968_v15 = vld [vmem:[#allocation2 + $0x104] sm:$0x1]  ;;  %3457 = vmatmul.bf16.gmra.mxu2 %v11231_v11 }
 0x1d0   : > { %v2450_v18 = vshll.u32 %v1908_v14, 16  ;;  %v2454_v25 = vshrl.u32 %v1908_v14, 16  ;;  %v1335_v1 = vshrl.u32 %v976_v8, 16  ;;  %v2460_v36 = vshll.u32 %v1968_v15, 16 }
 0x1d1   : > { %v602_v28 = vpop.f32.mrf.mxu0  ;;  %v1338_v47 = vshll.u32 %v976_v8, 16  ;;  %v4936_v7 = vshrl.u32 %v12230_v33, 16  ;;  %v1333_v11 = vrot.slane %v12225_v42, 4 }
 0x1d2   : > { %v3006_v29 = vpop.f32.mrf.mxu1  ;;  %v2452_v32 = vrot.slane %v2450_v18, 5  ;;  %v2456_v35 = vrot.slane %v2454_v25, 4  ;;  %v1337_v44 = vrot.slane %v1335_v1, 7  ;;  %v603_v48 = vadd.f32 %v12150_v23, %v602_v28  ;;  %v3418_v50 = vpop.f32.mrf.mxu2  ;;  %v809_v25 = vld [vmem:[#allocation2 + $0x12c] sm:$0x1] }
 0x1d3   : > { %v12253_v49 = vadd.f32 %v3415_v55, %v3006_v29  ;;  %v2462_v18 = vrot.slane %v2460_v36, 5  ;;  %v6249_v1 = vrot.slane %v4828_v58, 5  ;;  %v810_v42 = vsel %vm11669_vm3, 0, %v809_v25  ;;  %v1785_v25 = vld [vmem:[#allocation2 + $0x114] sm:$0xf] }
 0x1d4   : > { %v2457_v5 = vor.u32 %v2456_v35, %v2452_v32  ;;  %v1340_v14 = vor.u32 %v1338_v47, %v1337_v44  ;;  %v1342_v53 = vrot.slane %v1337_v44, 4  ;;  %v702_v8 = vmax.f32 %v603_v48, 0.0  ;;  %4616 = vmatmul.bf16.gmra.mxu0 %v11271_v54  ;;  %811 = vst [vmem:[#allocation2 + $0x12c] sm:$0x1] %v810_v42 }
 0x1d5   : > { %15606 = vst [vmem:[#allocation13_spill] sm:$0xff] %v12253_v49  ;;  %v2453_v55 = vsel %vm11706_vm8, %v2448_v12, %v2452_v32  ;;  %v12274_v47 = vrot.slane %v4932_v6, 5  ;;  %v4938_v12 = vrot.slane %v4936_v7, 4  ;;  %v818_v49 = vld [vmem:[#allocation2 + $0x150] sm:$0x1] }
 0x1d6   : > { %v2458_v15 = vrot.slane %v2457_v5, 4  ;;  %v1341_v16 = vsel %vm11744_vm12, %v1333_v11, %v1340_v14  ;;  %v1783_v26 = vsel %vm11669_vm3, %v1342_v53, %v1782_v60  ;;  %v977_v28 = vpack.c.bf16 %v702_v8, %v702_v8  ;;  %v1909_v29 = vld [vmem:[#allocation2 + $0x108] sm:$0xf] }
 0x1d7   : > { %1781 = vst [vmem:[#allocation2 + $0x10c] sm:$0xf] %v1341_v16  ;;  %v2465_v36 = vshrl.u32 %v1909_v29, 16  ;;  %v2468_v44 = vshll.u32 %v1909_v29, 16  ;;  %v2807_v54 = vunpack.c.l.b16 %v2453_v55  ;;  %v6247_v53 = vsel %vm12268_vm15, %v10791_v21, %v6246_v56 }
 0x1d8   : > { %v2463_v32 = vsel %vm11706_vm8, %v2458_v15, %v2462_v18  ;;  %1784 = vst [vmem:[#allocation2 + $0x110] sm:$0x1] %v1783_v26  ;;  %v1344_v48 = vshrl.u32 %v977_v28, 16  ;;  %v1347_v5 = vshll.u32 %v977_v28, 16  ;;  %v6250_v8 = vsel %vm12268_vm15, %v6248_v40, %v6249_v1  ;;  %v907_v40 = vld [vmem:[#allocation2 + $0x134] sm:$0x1] }
 0x1d9   : > { %v2808_v60 = vunpack.c.l.b16 %v2463_v32  ;;  %v604_v11 = vpop.f32.mrf.mxu0  ;;  %v4942_v15 = vshll.u32 %v4828_v58, 16  ;;  %v2467_v26 = vrot.slane %v2465_v36, 4  ;;  %v2470_v28 = vrot.slane %v2468_v44, 5 }
 0x1da   : > { %v3009_v14 = vpop.f32.mrf.mxu1  ;;  %v12282_v6 = vrot.slane %v1344_v48, 7  ;;  %v605_v18 = vadd.f32 %v12150_v23, %v604_v11  ;;  %v3420_v16 = vpop.f32.mrf.mxu2  ;;  %v6486_v56 = vunpack.c.l.b16 %v6250_v8  ;;  %v4939_v21 = vor.u32 %v4938_v12, %v12274_v47 }
 0x1db   : > { %v12285_v55 = vadd.f32 %v3418_v50, %v3009_v14  ;;  %v2852_v7 = vpack.c.b16 %v2808_v60, %v2807_v54  ;;  %v6485_v58 = vunpack.c.l.b16 %v6247_v53  ;;  %v12292_v1 = vrot.slane %v4929_v20, 4  ;;  %v12294_v50 = vld [vmem:[#allocation2 + $0x18] sm:$0xf]  ;;  %v12309_v53 = vld [vmem:[#allocation2 + $0x1c] sm:$0xf] }
 0x1dc   : > { %v1349_v33 = vor.u32 %v1347_v5, %v12282_v6  ;;  %v703_v29 = vmax.f32 %v605_v18, 0.0  ;;  %v908_v48 = vsel %vm11683_vm5, 0, %v907_v40  ;;  %v12300_v54 = vrot.slane %v4942_v15, 5  ;;  %v11323_v20 = vld [vmem:[%s15574_s2 + $0x178] sm:$0xff] }
 0x1dd   : > { %15609 = vst [vmem:[#allocation14_spill] sm:$0xff] %v12285_v55  ;;  %3048 = vmatmul.bf16.gmra.mxu1 %v2852_v7  ;;  %v2471_v12 = vor.u32 %v2470_v28, %v2467_v26  ;;  %v12305_v11 = vpack.c.b16 %v6486_v56, %v6485_v58  ;;  %v12307_v14 = vrot.slane %v4939_v21, 4  ;;  %v4947_v8 = vshrl.u32 %v12294_v50, 16  ;;  %v11272_v21 = vld [vmem:[#allocation2 + $0x3c] sm:$0xff]  ;;  %6661 = vmatpush.bf16.msrb.mxu2 %v11323_v20  ;;  %v812_v20 = vld [vmem:[#allocation2 + $0x138] sm:$0x1] }
 0x1de   : > { %v1786_v42 = vsel %vm11732_vm10, %v1349_v33, %v1785_v25  ;;  %v978_v32 = vpack.c.bf16 %v703_v29, %v703_v29  ;;  %v11232_v36 = vld [vmem:[#allocation2 + $0x108] sm:$0xff]  ;;  %909 = vst [vmem:[#allocation2 + $0x134] sm:$0x1] %v908_v48  ;;  %v4950_v28 = vshll.u32 %v12294_v50, 16  ;;  %v1789_v58 = vld [vmem:[#allocation2 + $0x11c] sm:$0x1] }
 0x1df   : > { %v1910_v44 = vld [vmem:[#allocation2 + $0x10c] sm:$0xf]  ;;  %1787 = vst [vmem:[#allocation2 + $0x114] sm:$0xf] %v1786_v42  ;;  %v1969_v60 = vld [vmem:[#allocation2 + $0x110] sm:$0x1]  ;;  %3462 = vmatmul.bf16.gmra.mxu2 %v11232_v36 }
 0x1e0   : > { %v2474_v5 = vshll.u32 %v1910_v44, 16  ;;  %v2478_v61 = vshrl.u32 %v1910_v44, 16  ;;  %v1352_v3 = vshrl.u32 %v978_v32, 16  ;;  %v2484_v26 = vshll.u32 %v1969_v60, 16 }
 0x1e1   : > { %v607_v15 = vpop.f32.mrf.mxu0  ;;  %v1355_v29 = vshll.u32 %v978_v32, 16  ;;  %v2472_v36 = vrot.slane %v2471_v12, 4  ;;  %v1350_v48 = vrot.slane %v12282_v6, 4  ;;  %v4952_v19 = vrot.slane %v4950_v28, 5 }
 0x1e2   : > { %v3011_v18 = vpop.f32.mrf.mxu1  ;;  %v2476_v7 = vrot.slane %v2474_v5, 5  ;;  %v2480_v25 = vrot.slane %v2478_v61, 4  ;;  %v1354_v33 = vrot.slane %v1352_v3, 7  ;;  %v608_v40 = vadd.f32 %v12150_v23, %v607_v15  ;;  %v3423_v42 = vpop.f32.mrf.mxu2 }
 0x1e3   : > { %v12314_v56 = vadd.f32 %v3420_v16, %v3011_v18  ;;  %v4956_v5 = vshll.u32 %v12309_v53, 16  ;;  %v11322_v16 = vld [vmem:[%s15574_s2 + $0x170] sm:$0xff]  ;;  %v2486_v12 = vrot.slane %v2484_v26, 5  ;;  %v4960_v15 = vshrl.u32 %v12309_v53, 16 }
 0x1e4   : > { %v2481_v44 = vor.u32 %v2480_v25, %v2476_v7  ;;  %v1357_v60 = vor.u32 %v1355_v29, %v1354_v33  ;;  %v1359_v50 = vrot.slane %v1354_v33, 4  ;;  %v704_v61 = vmax.f32 %v608_v40, 0.0  ;;  %4621 = vmatmul.bf16.gmra.mxu0 %v11272_v21  ;;  %6662 = vmatpush.bf16.msrb.mxu2 %v11322_v16  ;;  %v11321_v16 = vld [vmem:[%s15574_s2 + $0x168] sm:$0xff] }
 0x1e5   : > { %15610 = vst [vmem:[#allocation15_spill] sm:$0xff] %v12314_v56  ;;  %v2477_v32 = vsel %vm11706_vm8, %v2472_v36, %v2476_v7  ;;  %v813_v29 = vsel %vm11669_vm3, 0, %v812_v20  ;;  %v4949_v21 = vrot.slane %v4947_v8, 4  ;;  %v12340_v8 = vrot.slane %v4956_v5, 5 }
 0x1e6   : > { %v2482_v3 = vrot.slane %v2481_v44, 4  ;;  %v1358_v18 = vsel %vm11744_vm12, %v1350_v48, %v1357_v60  ;;  %v1790_v6 = vsel %vm11669_vm3, %v1359_v50, %v1789_v58  ;;  %v979_v25 = vpack.c.bf16 %v704_v61, %v704_v61  ;;  %v1911_v33 = vld [vmem:[#allocation2 + $0x114] sm:$0xf]  ;;  %v6117_v60 = vld [vmem:[#allocation2 + $0x18] sm:$0xe] }
 0x1e7   : > { %1788 = vst [vmem:[#allocation2 + $0x118] sm:$0xf] %v1358_v18  ;;  %v2489_v26 = vshrl.u32 %v1911_v33, 16  ;;  %v2492_v40 = vshll.u32 %v1911_v33, 16  ;;  %v2809_v44 = vunpack.c.l.b16 %v2477_v32 }
 0x1e8   : > { %v2487_v7 = vsel %vm11706_vm8, %v2482_v3, %v2486_v12  ;;  %1791 = vst [vmem:[#allocation2 + $0x11c] sm:$0x1] %v1790_v6  ;;  %v1361_v36 = vshrl.u32 %v979_v25, 16  ;;  %v1364_v58 = vshll.u32 %v979_v25, 16  ;;  %v4935_v3 = vsel %vm11706_vm8, %v12292_v1, %v12274_v47  ;;  %v4831_v6 = vld [vmem:[#allocation2 + $0x20] sm:$0x1]  ;;  %6663 = vmatpush.bf16.msrb.mxu2 %v11321_v16 }
 0x1e9   : > { %v2810_v48 = vunpack.c.l.b16 %v2487_v7  ;;  %v609_v50 = vpop.f32.mrf.mxu0  ;;  %814 = vst [vmem:[#allocation2 + $0x138] sm:$0x1] %v813_v29  ;;  %v4962_v12 = vrot.slane %v4960_v15, 4  ;;  %v1792_v25 = vld [vmem:[#allocation2 + $0x120] sm:$0xf]  ;;  %v2491_v29 = vrot.slane %v2489_v26, 4  ;;  %v4945_v47 = vsel %vm11706_vm8, %v12307_v14, %v12300_v54 }
 0x1ea   : > { %v3014_v61 = vpop.f32.mrf.mxu1  ;;  %v12342_v32 = vrot.slane %v1361_v36, 7  ;;  %v610_v28 = vadd.f32 %v12150_v23, %v609_v50  ;;  %v3425_v33 = vpop.f32.mrf.mxu2  ;;  %v2494_v7 = vrot.slane %v2492_v40, 5  ;;  %v10792_v1 = vrot.slane %v6117_v60, 9  ;;  %v350_v36 = vld [vmem:[%s11617_s9 + $0x1f0] sm:$0xff]  ;;  %v910_v50 = vld [vmem:[#allocation2 + $0x140] sm:$0x1] }
 0x1eb   : > { %v12345_v20 = vadd.f32 %v3423_v42, %v3014_v61  ;;  %v2853_v18 = vpack.c.b16 %v2810_v48, %v2809_v44  ;;  %v351_v42 = vld [vmem:[%s11617_s9 + $0x1f8] sm:$0xff]  ;;  %v11320_v44 = vld [vmem:[%s15574_s2 + $0x160] sm:$0xff]  ;;  %v15612_v26 = vrot.slane %v12309_v53, 5  ;;  %v4953_v48 = vor.u32 %v4952_v19, %v4949_v21 }
 0x1ec   : > { %v1366_v5 = vor.u32 %v1364_v58, %v12342_v32  ;;  %v705_v15 = vmax.f32 %v610_v28, 0.0  ;;  %v383_v61 = vpack.c.bf16 %v351_v42, %v350_v36  ;;  %v12359_v16 = vunpack.c.l.b16 %v4935_v3  ;;  %6664 = vmatpush.bf16.msrb.mxu2 %v11320_v44 }
 0x1ed   : > { %15611 = vst [vmem:[#allocation16_spill] sm:$0xff] %v12345_v20  ;;  %3053 = vmatmul.bf16.gmra.mxu1 %v2853_v18  ;;  %v6255_v40 = vrot.slane %v15612_v26, 4  ;;  %v6256_v54 = vrot.slane %v4831_v6, 5  ;;  %v4963_v14 = vor.u32 %v4962_v12, %v12340_v8  ;;  %v911_v41 = vsel %vm11683_vm5, 0, %v910_v50 }
 0x1ee   : > { %v1793_v60 = vsel %vm11732_vm10, %v1366_v5, %v1792_v25  ;;  %v980_v58 = vpack.c.bf16 %v705_v15, %v705_v15  ;;  %v11233_v28 = vld [vmem:[#allocation2 + $0x114] sm:$0xff]  ;;  %v4966_v20 = vshll.u32 %v4831_v6, 16  ;;  %v2495_v19 = vor.u32 %v2494_v7, %v2491_v29  ;;  %10278 = vmatmul.msk.bf16.gmra.mxu3 %vm396_vm0, %v383_v61  ;;  %912 = vst [vmem:[#allocation2 + $0x140] sm:$0x1] %v911_v41 }
 0x1ef   : > { %v1912_v18 = vld [vmem:[#allocation2 + $0x118] sm:$0xf]  ;;  %1794 = vst [vmem:[#allocation2 + $0x120] sm:$0xf] %v1793_v60  ;;  %v1970_v26 = vld [vmem:[#allocation2 + $0x11c] sm:$0x1]  ;;  %v12367_v3 = vunpack.c.l.b16 %v4945_v47  ;;  %3467 = vmatmul.bf16.gmra.mxu2 %v11233_v28  ;;  %v12380_v29 = vsel %vm12268_vm15, %v6255_v40, %v6256_v54 }
 0x1f0   : > { %v2498_v21 = vshll.u32 %v1912_v18, 16  ;;  %v2502_v36 = vshrl.u32 %v1912_v18, 16  ;;  %v1369_v12 = vshrl.u32 %v980_v58, 16  ;;  %v11319_v25 = vld [vmem:[%s15574_s2 + $0x158] sm:$0xff]  ;;  %v15613_v5 = vrot.slane %v12309_v53, 5  ;;  %v11273_v40 = vld [vmem:[#allocation2 + $0x48] sm:$0xff] }
 0x1f1   : > { %v12382_v7 = vrot.slane %v4953_v48, 4  ;;  %v12384_v47 = vld [vmem:[#allocation2 + $0x28] sm:$0xf]  ;;  %v612_v15 = vpop.f32.mrf.mxu0  ;;  %v2508_v61 = vshll.u32 %v1970_v26, 16  ;;  %v12386_v60 = vrot.slane %v4963_v14, 4  ;;  %v1372_v28 = vshll.u32 %v980_v58, 16  ;;  %6665 = vmatpush.bf16.msrb.mxu2 %v11319_v25 }
 0x1f2   : > { %v12376_v6 = vsel %vm12268_vm15, %v10792_v1, %v15613_v5  ;;  %v3016_v42 = vpop.f32.mrf.mxu1  ;;  %v2500_v44 = vrot.slane %v2498_v21, 5  ;;  %v2504_v50 = vrot.slane %v2502_v36, 4  ;;  %v1371_v53 = vrot.slane %v1369_v12, 7  ;;  %v12391_v54 = vld [vmem:[#allocation2 + $0x24] sm:$0xf]  ;;  %v3428_v5 = vpop.f32.mrf.mxu2 }
 0x1f3   : > { %v613_v1 = vadd.f32 %v12150_v23, %v612_v15  ;;  %v12389_v18 = vadd.f32 %v3425_v33, %v3016_v42  ;;  %v1796_v48 = vld [vmem:[#allocation2 + $0x128] sm:$0x1]  ;;  %v2496_v56 = vrot.slane %v2495_v19, 4  ;;  %v12393_v21 = vrot.slane %v4966_v20, 5  ;;  %v11318_v19 = vld [vmem:[%s15574_s2 + $0x150] sm:$0xff] }
 0x1f4   : > { %v2505_v55 = vor.u32 %v2504_v50, %v2500_v44  ;;  %v1367_v14 = vrot.slane %v12342_v32, 4  ;;  %v1374_v26 = vor.u32 %v1372_v28, %v1371_v53  ;;  %v1376_v58 = vrot.slane %v1371_v53, 4  ;;  %4626 = vmatmul.bf16.gmra.mxu0 %v11273_v40  ;;  %v11313_v33 = vld [vmem:[%s15574_s2 + $0x128] sm:$0xff]  ;;  %v815_v15 = vld [vmem:[#allocation2 + $0x144] sm:$0x1]  ;;  %v627_v40 = vpop.f32.mrf.mxu3 }
 0x1f5   : > { %15614 = vst [vmem:[#allocation17_spill] sm:$0xff] %v12389_v18  ;;  %v706_v36 = vmax.f32 %v613_v1, 0.0  ;;  %v2501_v20 = vsel %vm11706_vm8, %v2496_v56, %v2500_v44  ;;  %v2510_v25 = vrot.slane %v2508_v61, 5  ;;  %v4971_v32 = vshrl.u32 %v12391_v54, 16  ;;  %5885 = vmatpush.bf16.msrb.mxu1 %v11313_v33  ;;  %6666 = vmatpush.bf16.msrb.mxu2 %v11318_v19 }
 0x1f6   : > { %v2506_v12 = vrot.slane %v2505_v55, 4  ;;  %v1375_v42 = vsel %vm11744_vm12, %v1367_v14, %v1374_v26  ;;  %v1797_v50 = vsel %vm11669_vm3, %v1376_v58, %v1796_v48  ;;  %v1913_v28 = vld [vmem:[#allocation2 + $0x120] sm:$0xf]  ;;  %v816_v1 = vsel %vm11669_vm3, 0, %v815_v15 }
 0x1f7   : > { %v981_v53 = vpack.c.bf16 %v706_v36, %v706_v36  ;;  %1795 = vst [vmem:[#allocation2 + $0x124] sm:$0xf] %v1375_v42  ;;  %v2513_v56 = vshrl.u32 %v1913_v28, 16  ;;  %v2516_v44 = vshll.u32 %v1913_v28, 16  ;;  %v4974_v61 = vshll.u32 %v12391_v54, 16  ;;  %v11317_v54 = vld [vmem:[%s15574_s2 + $0x148] sm:$0xff] }
 0x1f8   : > { %v2511_v55 = vsel %vm11706_vm8, %v2506_v12, %v2510_v25  ;;  %1798 = vst [vmem:[#allocation2 + $0x128] sm:$0x1] %v1797_v50  ;;  %v2811_v48 = vunpack.c.l.b16 %v2501_v20  ;;  %v12415_v36 = vld [vmem:[#allocation2 + $0x24] sm:$0xe]  ;;  %v6487_v20 = vunpack.c.l.b16 %v12376_v6  ;;  %v12431_v28 = vld [vmem:[#allocation2 + $0x2c] sm:$0x1]  ;;  %v4959_v6 = vsel %vm11706_vm8, %v12382_v7, %v12340_v8 }
 0x1f9   : > { %v1378_v14 = vshrl.u32 %v981_v53, 16  ;;  %v1381_v26 = vshll.u32 %v981_v53, 16  ;;  %v2812_v58 = vunpack.c.l.b16 %v2511_v55  ;;  %v614_v41 = vpop.f32.mrf.mxu0  ;;  %v2515_v18 = vrot.slane %v2513_v56, 4  ;;  %817 = vst [vmem:[#allocation2 + $0x144] sm:$0x1] %v816_v1  ;;  %v11312_v12 = vld [vmem:[%s15574_s2 + $0x120] sm:$0xff]  ;;  %6667 = vmatpush.bf16.msrb.mxu2 %v11317_v54 }
 0x1fa   : > { %v3019_v15 = vpop.f32.mrf.mxu1  ;;  %v2518_v33 = vrot.slane %v2516_v44, 5  ;;  %v615_v42 = vadd.f32 %v12150_v23, %v614_v41  ;;  %v1799_v1 = vld [vmem:[#allocation2 + $0x12c] sm:$0xf]  ;;  %v3430_v55 = vpop.f32.mrf.mxu2  ;;  %5886 = vmatpush.bf16.msrb.mxu1 %v11312_v12  ;;  %v6488_v56 = vunpack.c.l.b16 %v12380_v29  ;;  %v12450_v7 = vrot.slane %v4971_v32, 4 }
 0x1fb   : > { %v12426_v25 = vrot.slane %v1378_v14, 7  ;;  %v12429_v50 = vadd.f32 %v3428_v5, %v3019_v15  ;;  %v2854_v53 = vpack.c.b16 %v2812_v58, %v2811_v48  ;;  %v4969_v5 = vsel %vm11706_vm8, %v12386_v60, %v12393_v21  ;;  %v913_v12 = vld [vmem:[#allocation2 + $0x14c] sm:$0x1] }
 0x1fc   : > { %v707_v14 = vmax.f32 %v615_v42, 0.0  ;;  %v2519_v48 = vor.u32 %v2518_v33, %v2515_v18  ;;  %v15616_v58 = vrot.slane %v12384_v47, 5  ;;  %v628_v15 = vadd.f32 %v12150_v23, %v627_v40 }
 0x1fd   : > { %15615 = vst [vmem:[#allocation18_spill] sm:$0xff] %v12429_v50  ;;  %v1383_v44 = vor.u32 %v1381_v26, %v12426_v25  ;;  %3058 = vmatmul.bf16.gmra.mxu1 %v2854_v53  ;;  %v12452_v54 = vrot.slane %v4974_v61, 5  ;;  %v1384_v60 = vrot.slane %v12426_v25, 4  ;;  %v914_v42 = vsel %vm11683_vm5, 0, %v913_v12  ;;  %v629_v53 = vpop.f32.mrf.mxu3  ;;  %v12466_v12 = vld [vmem:[%s15576_s4] ss:$0 sm:$0xff] }
 0x1fe   : > { %v12446_v29 = vrot.slane %v15616_v58, 4  ;;  %v982_v26 = vpack.c.bf16 %v707_v14, %v707_v14  ;;  %v11234_v18 = vld [vmem:[#allocation2 + $0x120] sm:$0xff]  ;;  %v12459_v32 = vpack.c.b16 %v6488_v56, %v6487_v20  ;;  %v12461_v61 = vunpack.c.l.b16 %v4959_v6  ;;  %915 = vst [vmem:[#allocation2 + $0x14c] sm:$0x1] %v914_v42 }
 0x1ff   : > { %v1800_v21 = vsel %vm11732_vm10, %v1383_v44, %v1799_v1  ;;  %v1914_v33 = vld [vmem:[#allocation2 + $0x124] sm:$0xf]  ;;  %v1971_v23 = vld [vmem:[#allocation2 + $0x128] sm:$0x1]  ;;  %3472 = vmatmul.bf16.gmra.mxu2 %v11234_v18  ;;  %v2520_v25 = vrot.slane %v2519_v48, 4  ;;  %v712_v1 = vmax.f32 %v628_v15, 0.0  ;;  %v630_v20 = vadd.f32 %v12466_v12, %v629_v53 }
 0x200   : > { %1801 = vst [vmem:[#allocation2 + $0x12c] sm:$0xf] %v1800_v21  ;;  %v2522_v40 = vshll.u32 %v1914_v33, 16  ;;  %v2526_v58 = vshrl.u32 %v1914_v33, 16  ;;  %v1386_v19 = vshrl.u32 %v982_v26, 16  ;;  %v2532_v8 = vshll.u32 %v1971_v23, 16 }
 0x201   : > { %v617_v44 = vpop.f32.mrf.mxu0  ;;  %v12469_v56 = vunpack.c.l.b16 %v4969_v5  ;;  %v1389_v21 = vshll.u32 %v982_v26, 16  ;;  %v11274_v18 = vld [vmem:[#allocation2 + $0x54] sm:$0xff]  ;;  %v11316_v42 = vld [vmem:[%s15574_s2 + $0x140] sm:$0xff]  ;;  %v987_v26 = vpack.c.bf16 %v712_v1, %v712_v1  ;;  %v713_v4 = vmax.f32 %v630_v20, 0.0 }
 0x202   : > { %v3021_v14 = vpop.f32.mrf.mxu1  ;;  %v2524_v41 = vrot.slane %v2522_v40, 5  ;;  %v2528_v50 = vrot.slane %v2526_v58, 4  ;;  %v1388_v6 = vrot.slane %v1386_v19, 7  ;;  %v618_v48 = vadd.f32 %v12466_v12, %v617_v44  ;;  %v11311_v33 = vld [vmem:[%s15574_s2 + $0x118] sm:$0xff]  ;;  %v1803_v23 = vld [vmem:[#allocation2 + $0x134] sm:$0x1]  ;;  %v3433_v40 = vpop.f32.mrf.mxu2  ;;  %6668 = vmatpush.bf16.msrb.mxu2 %v11316_v42 }
 0x203   : > { %v12472_v15 = vadd.f32 %v3430_v55, %v3021_v14  ;;  %v2534_v5 = vrot.slane %v2532_v8, 5  ;;  %v819_v19 = vsel %vm11669_vm3, 0, %v818_v49  ;;  %v916_v58 = vld [vmem:[#allocation2 + $0x158] sm:$0x1]  ;;  %5887 = vmatpush.bf16.msrb.mxu1 %v11311_v33  ;;  %v1429_v8 = vshrl.u32 %v987_v26, 16 }
 0x204   : > { %v2529_v53 = vor.u32 %v2528_v50, %v2524_v41  ;;  %v1391_v55 = vor.u32 %v1389_v21, %v1388_v6  ;;  %v1393_v44 = vrot.slane %v1388_v6, 4  ;;  %v708_v14 = vmax.f32 %v618_v48, 0.0  ;;  %4631 = vmatmul.bf16.gmra.mxu0 %v11274_v18  ;;  %820 = vst [vmem:[#allocation2 + $0x150] sm:$0x1] %v819_v19 }
 0x205   : > { %15617 = vst [vmem:[#allocation19_spill] sm:$0xff] %v12472_v15  ;;  %v2525_v15 = vsel %vm11706_vm8, %v2520_v25, %v2524_v41  ;;  %v1432_v57 = vshll.u32 %v987_v26, 16  ;;  %v917_v41 = vsel %vm11683_vm5, 0, %v916_v58  ;;  %v1431_v48 = vrot.slane %v1429_v8, 7  ;;  %v632_v19 = vpop.f32.mrf.mxu3  ;;  %v821_v8 = vld [vmem:[#allocation2 + $0x15c] sm:$0x1] }
 0x206   : > { %v2530_v50 = vrot.slane %v2529_v53, 4  ;;  %v1392_v49 = vsel %vm11744_vm12, %v1384_v60, %v1391_v55  ;;  %v1804_v1 = vsel %vm11669_vm3, %v1393_v44, %v1803_v23  ;;  %v983_v6 = vpack.c.bf16 %v708_v14, %v708_v14  ;;  %v1806_v23 = vld [vmem:[#allocation2 + $0x138] sm:$0xf]  ;;  %918 = vst [vmem:[#allocation2 + $0x158] sm:$0x1] %v917_v41 }
 0x207   : > { %v1915_v25 = vld [vmem:[#allocation2 + $0x12c] sm:$0xf]  ;;  %1802 = vst [vmem:[#allocation2 + $0x130] sm:$0xf] %v1392_v49  ;;  %v988_v18 = vpack.c.bf16 %v713_v4, %v713_v4  ;;  %v2813_v53 = vunpack.c.l.b16 %v2525_v15  ;;  %5888 = vmatpush.bf16.msrb.mxu1 %v11310_v52  ;;  %v1434_v44 = vor.u32 %v1432_v57, %v1431_v48  ;;  %v1435_v58 = vrot.slane %v1431_v48, 4 }
 0x208   : > { %v2535_v21 = vsel %vm11706_vm8, %v2530_v50, %v2534_v5  ;;  %v2537_v33 = vshrl.u32 %v1915_v25, 16  ;;  %1805 = vst [vmem:[#allocation2 + $0x134] sm:$0x1] %v1804_v1  ;;  %v1395_v20 = vshrl.u32 %v983_v6, 16  ;;  %v1398_v42 = vshll.u32 %v983_v6, 16  ;;  %v11309_v4 = vld [vmem:[%s15574_s2 + $0x108] sm:$0xff] }
 0x209   : > { %v2814_v60 = vunpack.c.l.b16 %v2535_v21  ;;  %v619_v26 = vpop.f32.mrf.mxu0  ;;  %v1437_v14 = vshrl.u32 %v988_v18, 16  ;;  %v1440_v49 = vshll.u32 %v988_v18, 16  ;;  %v919_v1 = vld [vmem:[#allocation2 + $0x164] sm:$0x1]  ;;  %v2540_v41 = vshll.u32 %v1915_v25, 16 }
 0x20a   : > { %v3024_v55 = vpop.f32.mrf.mxu1  ;;  %v12498_v5 = vrot.slane %v1395_v20, 7  ;;  %v620_v50 = vadd.f32 %v12466_v12, %v619_v26  ;;  %v3435_v6 = vpop.f32.mrf.mxu2  ;;  %v2539_v48 = vrot.slane %v2537_v33, 4  ;;  %v633_v18 = vadd.f32 %v12466_v12, %v632_v19  ;;  %v11308_v25 = vld [vmem:[%s15574_s2 + $0x100] sm:$0xff] }
 0x20b   : > { %v12501_v15 = vadd.f32 %v3433_v40, %v3024_v55  ;;  %v2855_v52 = vpack.c.b16 %v2814_v60, %v2813_v53  ;;  %v1820_v21 = vld [vmem:[#allocation2 + $0x150] sm:$0xf]  ;;  %v1439_v57 = vrot.slane %v1437_v14, 7  ;;  %v2542_v26 = vrot.slane %v2540_v41, 5  ;;  %5889 = vmatpush.bf16.msrb.mxu1 %v11309_v4 }
 0x20c   : > { %v1400_v17 = vor.u32 %v1398_v42, %v12498_v5  ;;  %v709_v20 = vmax.f32 %v620_v50, 0.0  ;;  %v1821_v40 = vsel %vm11732_vm10, %v1434_v44, %v1820_v21  ;;  %v714_v55 = vmax.f32 %v633_v18, 0.0 }
 0x20d   : > { %15618 = vst [vmem:[#allocation20_spill] sm:$0xff] %v12501_v15  ;;  %3063 = vmatmul.bf16.gmra.mxu1 %v2855_v52  ;;  %v1442_v53 = vor.u32 %v1440_v49, %v1439_v57  ;;  %v1444_v60 = vrot.slane %v1439_v57, 4  ;;  %v822_v50 = vsel %vm11669_vm3, 0, %v821_v8  ;;  %v920_v44 = vsel %vm11683_vm5, 0, %v919_v1 }
 0x20e   : > { %1822 = vst [vmem:[#allocation2 + $0x150] sm:$0xf] %v1821_v40  ;;  %v1807_v33 = vsel %vm11732_vm10, %v1400_v17, %v1806_v23  ;;  %v984_v42 = vpack.c.bf16 %v709_v20, %v709_v20  ;;  %v11235_v19 = vld [vmem:[#allocation2 + $0x12c] sm:$0xff]  ;;  %v2543_v52 = vor.u32 %v2542_v26, %v2539_v48  ;;  %v1824_v17 = vld [vmem:[#allocation2 + $0x158] sm:$0x1]  ;;  %v989_v23 = vpack.c.bf16 %v714_v55, %v714_v55  ;;  %v634_v20 = vpop.f32.mrf.mxu3  ;;  %v11275_v48 = vld [vmem:[#allocation2 + $0x60] sm:$0xff] }
 0x20f   : > { %v1916_v14 = vld [vmem:[#allocation2 + $0x130] sm:$0xf]  ;;  %1808 = vst [vmem:[#allocation2 + $0x138] sm:$0xf] %v1807_v33  ;;  %v1443_v49 = vsel %vm11744_vm12, %v1435_v58, %v1442_v53  ;;  %v1972_v4 = vld [vmem:[#allocation2 + $0x134] sm:$0x1]  ;;  %3477 = vmatmul.bf16.gmra.mxu2 %v11235_v19  ;;  %v1825_v26 = vsel %vm11669_vm3, %v1444_v60, %v1824_v17  ;;  %5890 = vmatpush.bf16.msrb.mxu1 %v11308_v25 }
 0x210   : > { %v2546_v21 = vshll.u32 %v1916_v14, 16  ;;  %v2550_v57 = vshrl.u32 %v1916_v14, 16  ;;  %v1403_v41 = vshrl.u32 %v984_v42, 16  ;;  %v1406_v18 = vshll.u32 %v984_v42, 16  ;;  %1823 = vst [vmem:[#allocation2 + $0x154] sm:$0xf] %v1443_v49 }
 0x211   : > { %v15619_v8 = vrot.slane %v12384_v47, 5  ;;  %v15620_v40 = vrot.slane %v12415_v36, 9  ;;  %v622_v58 = vpop.f32.mrf.mxu0  ;;  %v2544_v33 = vrot.slane %v2543_v52, 4  ;;  %823 = vst [vmem:[#allocation2 + $0x15c] sm:$0x1] %v822_v50  ;;  %v1446_v15 = vshrl.u32 %v989_v23, 16 }
 0x212   : > { %v3026_v53 = vpop.f32.mrf.mxu1  ;;  %v2548_v42 = vrot.slane %v2546_v21, 5  ;;  %v2552_v19 = vrot.slane %v2550_v57, 4  ;;  %v1405_v55 = vrot.slane %v1403_v41, 7  ;;  %v1810_v14 = vld [vmem:[#allocation2 + $0x140] sm:$0x1]  ;;  %v623_v49 = vadd.f32 %v12466_v12, %v622_v58 }
 0x213   : > { %v12525_v1 = vsel %vm12268_vm15, %v15620_v40, %v15619_v8  ;;  %v12530_v36 = vadd.f32 %v3435_v6, %v3026_v53  ;;  %1826 = vst [vmem:[#allocation2 + $0x158] sm:$0x1] %v1825_v26  ;;  %v2556_v8 = vshll.u32 %v1972_v4, 16  ;;  %v3438_v40 = vpop.f32.mrf.mxu2  ;;  %v1449_v62 = vshll.u32 %v989_v23, 16 }
 0x214   : > { %v2553_v38 = vor.u32 %v2552_v19, %v2548_v42  ;;  %921 = vst [vmem:[#allocation2 + $0x164] sm:$0x1] %v920_v44  ;;  %v15621_v60 = vrot.slane %v12431_v28, 5  ;;  %v1408_v50 = vor.u32 %v1406_v18, %v1405_v55  ;;  %v1410_v52 = vrot.slane %v1405_v55, 4  ;;  %4636 = vmatmul.bf16.gmra.mxu0 %v11275_v48 }
 0x215   : > { %v710_v21 = vmax.f32 %v623_v49, 0.0  ;;  %v2549_v6 = vsel %vm11706_vm8, %v2544_v33, %v2548_v42  ;;  %v2558_v57 = vrot.slane %v2556_v8, 5  ;;  %v12541_v41 = vrot.slane %v1446_v15, 7 }
 0x216   : > { %v12537_v25 = vsel %vm12268_vm15, %v12446_v29, %v15621_v60  ;;  %v2554_v4 = vrot.slane %v2553_v38, 4  ;;  %v635_v44 = vadd.f32 %v12466_v12, %v634_v20  ;;  %v15622_v17 = vrot.slane %v12498_v5, 4  ;;  %v1917_v58 = vld [vmem:[#allocation2 + $0x138] sm:$0xf]  ;;  %v637_v55 = vpop.f32.mrf.mxu3 }
 0x217   : > { %v1811_v29 = vsel %vm11669_vm3, %v1410_v52, %v1810_v14  ;;  %v985_v18 = vpack.c.bf16 %v710_v21, %v710_v21  ;;  %v825_v53 = vsel %vm11669_vm3, 0, %v824_v9  ;;  %v1451_v15 = vor.u32 %v1449_v62, %v12541_v41  ;;  %v1813_v52 = vld [vmem:[#allocation2 + $0x144] sm:$0xf] }
 0x218   : > { %v1409_v23 = vsel %vm11744_vm12, %v15622_v17, %v1408_v50  ;;  %v2559_v38 = vsel %vm11706_vm8, %v2554_v4, %v2558_v57  ;;  %v715_v20 = vmax.f32 %v635_v44, 0.0  ;;  %v4977_v5 = vor.u32 %v12452_v54, %v12450_v7  ;;  %1812 = vst [vmem:[#allocation2 + $0x140] sm:$0x1] %v1811_v29  ;;  %v1827_v19 = vld [vmem:[#allocation2 + $0x15c] sm:$0xf] }
 0x219   : > { %1809 = vst [vmem:[#allocation2 + $0x13c] sm:$0xf] %v1409_v23  ;;  %v1412_v48 = vshrl.u32 %v985_v18, 16  ;;  %v1415_v26 = vshll.u32 %v985_v18, 16  ;;  %v2815_v33 = vunpack.c.l.b16 %v2549_v6  ;;  %v2816_v42 = vunpack.c.l.b16 %v2559_v38  ;;  %v624_v14 = vpop.f32.mrf.mxu0  ;;  %v922_v23 = vld [vmem:[#allocation2 + $0x170] sm:$0x1] }
 0x21a   : > { %v3029_v49 = vpop.f32.mrf.mxu1  ;;  %v1828_v9 = vsel %vm11732_vm10, %v1451_v15, %v1827_v19  ;;  %v990_v8 = vpack.c.bf16 %v715_v20, %v715_v20  ;;  %v2561_v60 = vshrl.u32 %v1917_v58, 16  ;;  %v2564_v50 = vshll.u32 %v1917_v58, 16  ;;  %826 = vst [vmem:[#allocation2 + $0x168] sm:$0x1] %v825_v53 }
 0x21b   : > { %v12559_v62 = vrot.slane %v1412_v48, 7  ;;  %v625_v7 = vadd.f32 %v12466_v12, %v624_v14  ;;  %v12562_v54 = vadd.f32 %v3438_v40, %v3029_v49  ;;  %v2856_v21 = vpack.c.b16 %v2816_v42, %v2815_v33  ;;  %1829 = vst [vmem:[#allocation2 + $0x15c] sm:$0xf] %v1828_v9  ;;  %v3440_v6 = vpop.f32.mrf.mxu2  ;;  %v1831_v15 = vld [vmem:[#allocation2 + $0x164] sm:$0x1] }
 0x21c   : > { %v1454_v4 = vshrl.u32 %v990_v8, 16  ;;  %v1457_v57 = vshll.u32 %v990_v8, 16  ;;  %v2563_v44 = vrot.slane %v2561_v60, 4  ;;  %v2566_v17 = vrot.slane %v2564_v50, 5 }
 0x21d   : > { %v1417_v29 = vor.u32 %v1415_v26, %v12559_v62  ;;  %v711_v18 = vmax.f32 %v625_v7, 0.0  ;;  %3068 = vmatmul.bf16.gmra.mxu1 %v2856_v21  ;;  %v638_v58 = vadd.f32 %v12466_v12, %v637_v55  ;;  %v6489_v53 = vunpack.c.l.b16 %v12525_v1 }
 0x21e   : > { %v1452_v38 = vrot.slane %v12541_v41, 4  ;;  %v1456_v40 = vrot.slane %v1454_v4, 7  ;;  %v923_v20 = vsel %vm11683_vm5, 0, %v922_v23  ;;  %v2567_v9 = vor.u32 %v2566_v17, %v2563_v44  ;;  %v1817_v4 = vld [vmem:[#allocation2 + $0x14c] sm:$0x1] }
 0x21f   : > { %v1814_v33 = vsel %vm11732_vm10, %v1417_v29, %v1813_v52  ;;  %v986_v42 = vpack.c.bf16 %v711_v18, %v711_v18  ;;  %v716_v19 = vmax.f32 %v638_v58, 0.0  ;;  %924 = vst [vmem:[#allocation2 + $0x170] sm:$0x1] %v923_v20  ;;  %v1973_v41 = vld [vmem:[#allocation2 + $0x140] sm:$0x1]  ;;  %v12574_v8 = vrot.slane %v4977_v5, 4  ;;  %6669 = vmatmul.bf16.vlgmr.msrb.gmra.mxu2 %v12305_v11  ;;  %v639_v52 = vpop.f32.mrf.mxu3 }
 0x220   : > { %v1918_v26 = vld [vmem:[#allocation2 + $0x13c] sm:$0xf]  ;;  %1815 = vst [vmem:[#allocation2 + $0x144] sm:$0xf] %v1814_v33  ;;  %v1459_v14 = vor.u32 %v1457_v57, %v1456_v40  ;;  %v1461_v49 = vrot.slane %v1456_v40, 4  ;;  %v2580_v44 = vshll.u32 %v1973_v41, 16  ;;  %v640_v48 = vadd.f32 %v12466_v12, %v639_v52 }
 0x221   : > { %v1420_v60 = vshrl.u32 %v986_v42, 16  ;;  %v1423_v50 = vshll.u32 %v986_v42, 16  ;;  %v2570_v7 = vshll.u32 %v1918_v26, 16  ;;  %v2574_v21 = vshrl.u32 %v1918_v26, 16  ;;  %v12577_v29 = vpop.f32.mrf.mxu0  ;;  %v11276_v40 = vld [vmem:[#allocation2 + $0x6c] sm:$0xff] }
 0x222   : > { %v3031_v23 = vpop.f32.mrf.mxu1  ;;  %15623 = vst [vmem:[#allocation21_spill] sm:$0xff] %v12577_v29  ;;  %v1460_v18 = vsel %vm11744_vm12, %v1452_v38, %v1459_v14  ;;  %v1832_v57 = vsel %vm11669_vm3, %v1461_v49, %v1831_v15  ;;  %v991_v5 = vpack.c.bf16 %v716_v19, %v716_v19  ;;  %v2568_v42 = vrot.slane %v2567_v9, 4  ;;  %v827_v49 = vld [vmem:[#allocation2 + $0x174] sm:$0x1] }
 0x223   : > { %v1422_v17 = vrot.slane %v1420_v60, 7  ;;  %v12583_v58 = vadd.f32 %v3440_v6, %v3031_v23  ;;  %1830 = vst [vmem:[#allocation2 + $0x160] sm:$0xf] %v1460_v18  ;;  %v2572_v11 = vrot.slane %v2570_v7, 5  ;;  %v2576_v20 = vrot.slane %v2574_v21, 4  ;;  %v3443_v33 = vpop.f32.mrf.mxu2 }
 0x224   : > { %1833 = vst [vmem:[#allocation2 + $0x164] sm:$0x1] %v1832_v57  ;;  %v1463_v26 = vshrl.u32 %v991_v5, 16  ;;  %v1466_v55 = vshll.u32 %v991_v5, 16  ;;  %v1418_v38 = vrot.slane %v12559_v62, 4  ;;  %4641 = vmatmul.bf16.gmra.mxu0 %v11276_v40  ;;  %v717_v7 = vmax.f32 %v640_v48, 0.0 }
 0x225   : > { %v1425_v14 = vor.u32 %v1423_v50, %v1422_v17  ;;  %v1427_v15 = vrot.slane %v1422_v17, 4  ;;  %v2577_v19 = vor.u32 %v2576_v20, %v2572_v11  ;;  %v2573_v6 = vsel %vm11706_vm8, %v2568_v42, %v2572_v11  ;;  %v1834_v60 = vld [vmem:[#allocation2 + $0x168] sm:$0xf] }
 0x226   : > { %v1465_v41 = vrot.slane %v1463_v26, 7  ;;  %v828_v9 = vsel %vm11669_vm3, 0, %v827_v49  ;;  %v2582_v52 = vrot.slane %v2580_v44, 5  ;;  %v992_v57 = vpack.c.bf16 %v717_v7, %v717_v7 }
 0x227   : > { %v1426_v21 = vsel %vm11744_vm12, %v1418_v38, %v1425_v14  ;;  %v1818_v62 = vsel %vm11669_vm3, %v1427_v15, %v1817_v4  ;;  %v2578_v50 = vrot.slane %v2577_v19, 4  ;;  %v1919_v23 = vld [vmem:[#allocation2 + $0x144] sm:$0xf]  ;;  %829 = vst [vmem:[#allocation2 + $0x174] sm:$0x1] %v828_v9  ;;  %v4984_v17 = vshrl.u32 %v12384_v47, 16  ;;  %v642_v20 = vpop.f32.mrf.mxu3 }
 0x228   : > { %1816 = vst [vmem:[#allocation2 + $0x148] sm:$0xf] %v1426_v21  ;;  %v1468_v18 = vor.u32 %v1466_v55, %v1465_v41  ;;  %v2585_v5 = vshrl.u32 %v1919_v23, 16  ;;  %v2817_v40 = vunpack.c.l.b16 %v2573_v6  ;;  %v2588_v11 = vshll.u32 %v1919_v23, 16  ;;  %v12603_v15 = vld [vmem:[#allocation2 + $0x30] sm:$0xe] }
 0x229   : > { %1819 = vst [vmem:[#allocation2 + $0x14c] sm:$0x1] %v1818_v62  ;;  %v2583_v48 = vsel %vm11706_vm8, %v2578_v50, %v2582_v52  ;;  %v4990_v42 = vshll.u32 %v12431_v28, 16  ;;  %v12599_v26 = vpop.f32.mrf.mxu0  ;;  %v1471_v38 = vshrl.u32 %v992_v57, 16  ;;  %v1474_v14 = vshll.u32 %v992_v57, 16 }
 0x22a   : > { %v3034_v4 = vpop.f32.mrf.mxu1  ;;  %15624 = vst [vmem:[#allocation22_spill] sm:$0xff] %v12599_v26  ;;  %v2818_v44 = vunpack.c.l.b16 %v2583_v48  ;;  %v1835_v55 = vsel %vm11732_vm10, %v1468_v18, %v1834_v60  ;;  %v2587_v49 = vrot.slane %v2585_v5, 4  ;;  %v2590_v6 = vrot.slane %v2588_v11, 5  ;;  %v925_v9 = vld [vmem:[#allocation2 + $0x17c] sm:$0x1] }
 0x22b   : > { %v12605_v19 = vadd.f32 %v3443_v33, %v3034_v4  ;;  %1836 = vst [vmem:[#allocation2 + $0x168] sm:$0xf] %v1835_v55  ;;  %v643_v7 = vadd.f32 %v12466_v12, %v642_v20  ;;  %v3445_v21 = vpop.f32.mrf.mxu2  ;;  %v1469_v62 = vrot.slane %v1465_v41, 4  ;;  %v1473_v50 = vrot.slane %v1471_v38, 7  ;;  %v12610_v60 = vld [vmem:[#allocation2 + $0x34] sm:$0xf] }
 0x22c   : > { %v2857_v28 = vpack.c.b16 %v2818_v44, %v2817_v40  ;;  %v926_v52 = vsel %vm11683_vm5, 0, %v925_v9  ;;  %v15626_v23 = vpack.c.b16 %v12367_v3, %v12359_v16  ;;  %v1838_v33 = vld [vmem:[#allocation2 + $0x170] sm:$0x1]  ;;  %v15627_v57 = vunpack.c.l.b16 %v12537_v25 }
 0x22d   : > { %15625 = vst [vmem:[#allocation23_spill] sm:$0xff] %v12605_v19  ;;  %v718_v41 = vmax.f32 %v643_v7, 0.0  ;;  %v15628_v48 = vshll.u32 %v12384_v47, 16  ;;  %v1476_v11 = vor.u32 %v1474_v14, %v1473_v50  ;;  %v1478_v16 = vrot.slane %v1473_v50, 4  ;;  %v1921_v3 = vld [vmem:[#allocation2 + $0x150] sm:$0xf] }
 0x22e   : > { %5891 = vmatmul.bf16.vlgmr.msrb.gmra.mxu1 %v15626_v23  ;;  %v12621_v5 = vpack.c.b16 %v15627_v57, %v6489_v53  ;;  %927 = vst [vmem:[#allocation2 + $0x17c] sm:$0x1] %v926_v52  ;;  %3073 = vmatmul.bf16.vlgmr.msrb.gmra.mxu3 %v2857_v28  ;;  %v4986_v20 = vrot.slane %v4984_v17, 4  ;;  %v2591_v55 = vor.u32 %v2590_v6, %v2587_v49  ;;  %v12628_v38 = vrot.slane %v4990_v42, 5  ;;  %v1922_v28 = vld [vmem:[#allocation2 + $0x154] sm:$0xf] }
 0x22f   : > { %v12625_v40 = vrot.slane %v15628_v48, 5  ;;  %v1920_v44 = vld [vmem:[#allocation2 + $0x148] sm:$0xf]  ;;  %v993_v1 = vpack.c.bf16 %v718_v41, %v718_v41  ;;  %v1477_v53 = vsel %vm11744_vm12, %v1469_v62, %v1476_v11  ;;  %v1839_v47 = vsel %vm11669_vm3, %v1478_v16, %v1838_v33  ;;  %v12635_v17 = vld [vmem:[#allocation2 + $0x38] sm:$0x1]  ;;  %6674 = vmatmul.bf16.gmra.mxu2 %v12459_v32  ;;  %v644_v6 = vpop.f32.mrf.mxu3 }
 0x230   : > { %v1974_v7 = vld [vmem:[#allocation2 + $0x14c] sm:$0x1]  ;;  %v2594_v14 = vshll.u32 %v1920_v44, 16  ;;  %v2598_v9 = vshrl.u32 %v1920_v44, 16  ;;  %1837 = vst [vmem:[#allocation2 + $0x16c] sm:$0xf] %v1477_v53  ;;  %v645_v48 = vadd.f32 %v12466_v12, %v644_v6 }
 0x231   : > { %v1480_v49 = vshrl.u32 %v993_v1, 16  ;;  %v1483_v42 = vshll.u32 %v993_v1, 16  ;;  %v2609_v50 = vshrl.u32 %v1921_v3, 16  ;;  %v2612_v52 = vshll.u32 %v1921_v3, 16  ;;  %v12638_v57 = vpop.f32.mrf.mxu0  ;;  %1840 = vst [vmem:[#allocation2 + $0x170] sm:$0x1] %v1839_v47 }
 0x232   : > { %v3036_v23 = vpop.f32.mrf.mxu1  ;;  %15629 = vst [vmem:[#allocation24_spill] sm:$0xff] %v12638_v57  ;;  %v2596_v62 = vrot.slane %v2594_v14, 5  ;;  %v2600_v33 = vrot.slane %v2598_v9, 4  ;;  %v2604_v41 = vshll.u32 %v1974_v7, 16  ;;  %v11277_v16 = vld [vmem:[#allocation2 + $0x78] sm:$0xff]  ;;  %v2618_v32 = vshll.u32 %v1922_v28, 16 }
 0x233   : > { %v12641_v11 = vadd.f32 %v3445_v21, %v3036_v23  ;;  %v1482_v44 = vrot.slane %v1480_v49, 7  ;;  %v2622_v53 = vshrl.u32 %v1922_v28, 16  ;;  %v3448_v4 = vpop.f32.mrf.mxu2  ;;  %v2592_v1 = vrot.slane %v2591_v55, 4  ;;  %v1841_v25 = vld [vmem:[#allocation2 + $0x174] sm:$0xf] }
 0x234   : > { %v2601_v18 = vor.u32 %v2600_v33, %v2596_v62  ;;  %v719_v3 = vmax.f32 %v645_v48, 0.0  ;;  %v4987_v26 = vor.u32 %v4986_v20, %v12625_v40  ;;  %v830_v57 = vld [vmem:[#allocation2 + $0x180] sm:$0x1]  ;;  %4646 = vmatmul.bf16.gmra.mxu0 %v11277_v16  ;;  %v2611_v14 = vrot.slane %v2609_v50, 4  ;;  %v1975_v48 = vld [vmem:[#allocation2 + $0x158] sm:$0x1] }
 0x235   : > { %15630 = vst [vmem:[#allocation25_spill] sm:$0xff] %v12641_v11  ;;  %v1485_v47 = vor.u32 %v1483_v42, %v1482_v44  ;;  %v2614_v7 = vrot.slane %v2612_v52, 5  ;;  %v6270_v9 = vrot.slane %v12635_v17, 5  ;;  %v2597_v21 = vsel %vm11706_vm8, %v2592_v1, %v2596_v62 }
 0x236   : > { %v2602_v49 = vrot.slane %v2601_v18, 4  ;;  %v2606_v6 = vrot.slane %v2604_v41, 5  ;;  %v994_v28 = vpack.c.bf16 %v719_v3, %v719_v3  ;;  %v12649_v23 = vrot.slane %v2618_v32, 5 }
 0x237   : > { %v1842_v55 = vsel %vm11732_vm10, %v1485_v47, %v1841_v25  ;;  %v2624_v33 = vrot.slane %v2622_v53, 4  ;;  %v831_v20 = vsel %vm11669_vm3, 0, %v830_v57  ;;  %v4983_v18 = vsel %vm11706_vm8, %v12574_v8, %v12625_v40  ;;  %v647_v53 = vpop.f32.mrf.mxu3  ;;  %v1845_v40 = vld [vmem:[#allocation2 + $0x17c] sm:$0x1] }
 0x238   : > { %v2607_v42 = vsel %vm11706_vm8, %v2602_v49, %v2606_v6  ;;  %1843 = vst [vmem:[#allocation2 + $0x174] sm:$0xf] %v1842_v55  ;;  %v1488_v50 = vshrl.u32 %v994_v28, 16  ;;  %v1491_v52 = vshll.u32 %v994_v28, 16  ;;  %v2819_v62 = vunpack.c.l.b16 %v2597_v21  ;;  %v4835_v28 = vld [vmem:[#allocation2 + $0x30] sm:$0xf] }
 0x239   : > { %v2820_v25 = vunpack.c.l.b16 %v2607_v42  ;;  %v4988_v41 = vrot.slane %v4987_v26, 4  ;;  %v15631_v16 = vrot.slane %v12610_v60, 5  ;;  %832 = vst [vmem:[#allocation2 + $0x180] sm:$0x1] %v831_v20  ;;  %v12661_v1 = vpop.f32.mrf.mxu0  ;;  %v1486_v3 = vrot.slane %v1482_v44, 4 }
 0x23a   : > { %v3039_v57 = vpop.f32.mrf.mxu1  ;;  %15632 = vst [vmem:[#allocation26_spill] sm:$0xff] %v12661_v1  ;;  %v1490_v47 = vrot.slane %v1488_v50, 7  ;;  %v2615_v49 = vor.u32 %v2614_v7, %v2611_v14  ;;  %v648_v6 = vadd.f32 %v12466_v12, %v647_v53  ;;  %v2625_v26 = vor.u32 %v2624_v33, %v12649_v23  ;;  %v928_v42 = vld [vmem:[#allocation2 + $0x188] sm:$0x1]  ;;  %v1923_v53 = vld [vmem:[#allocation2 + $0x15c] sm:$0xf] }
 0x23b   : > { %v6269_v32 = vrot.slane %v15631_v16, 4  ;;  %v12664_v55 = vadd.f32 %v3448_v4, %v3039_v57  ;;  %v2858_v8 = vpack.c.b16 %v2820_v25, %v2819_v62  ;;  %v2628_v21 = vshll.u32 %v1975_v48, 16  ;;  %v3450_v16 = vpop.f32.mrf.mxu2 }
 0x23c   : > { %v1493_v29 = vor.u32 %v1491_v52, %v1490_v47  ;;  %v1495_v20 = vrot.slane %v1490_v47, 4  ;;  %v720_v11 = vmax.f32 %v648_v6, 0.0  ;;  %v929_v44 = vsel %vm11683_vm5, 0, %v928_v42  ;;  %v1924_v47 = vld [vmem:[#allocation2 + $0x160] sm:$0xf] }
 0x23d   : > { %15633 = vst [vmem:[#allocation27_spill] sm:$0xff] %v12664_v55  ;;  %v15634_v14 = vpack.c.b16 %v12469_v56, %v12461_v61  ;;  %v4993_v4 = vsel %vm11706_vm8, %v4988_v41, %v12628_v38  ;;  %v12677_v7 = vsel %vm12268_vm15, %v6269_v32, %v6270_v9  ;;  %v4995_v33 = vshrl.u32 %v4835_v28, 16 }
 0x23e   : > { %930 = vst [vmem:[#allocation2 + $0x188] sm:$0x1] %v929_v44  ;;  %v4998_v50 = vshll.u32 %v4835_v28, 16  ;;  %3078 = vmatmul.bf16.gmra.mxu3 %v2858_v8  ;;  %v1494_v52 = vsel %vm11744_vm12, %v1486_v3, %v1493_v29  ;;  %v1846_v48 = vsel %vm11669_vm3, %v1495_v20, %v1845_v40  ;;  %v2616_v61 = vrot.slane %v2615_v49, 4 }
 0x23f   : > { %5896 = vmatmul.bf16.gmra.mxu1 %v15634_v14  ;;  %v995_v56 = vpack.c.bf16 %v720_v11, %v720_v11  ;;  %1844 = vst [vmem:[#allocation2 + $0x178] sm:$0xf] %v1494_v52  ;;  %v2626_v62 = vrot.slane %v2625_v26, 4  ;;  %v2630_v25 = vrot.slane %v2628_v21, 5  ;;  %v12683_v38 = vunpack.c.l.b16 %v4983_v18  ;;  %6679 = vmatmul.bf16.gmra.mxu2 %v12621_v5  ;;  %v649_v18 = vpop.f32.mrf.mxu3  ;;  %v11278_v26 = vld [vmem:[#allocation2 + $0x84] sm:$0xff] }
 0x240   : > { %v15635_v9 = vrot.slane %v12610_v60, 5  ;;  %v15636_v41 = vrot.slane %v12603_v15, 9  ;;  %1847 = vst [vmem:[#allocation2 + $0x17c] sm:$0x1] %v1846_v48  ;;  %v12691_v29 = vunpack.c.l.b16 %v4993_v4  ;;  %v6492_v57 = vunpack.c.l.b16 %v12677_v7  ;;  %v1848_v4 = vld [vmem:[#allocation2 + $0x180] sm:$0xf] }
 0x241   : > { %v1497_v3 = vshrl.u32 %v995_v56, 16  ;;  %v1500_v11 = vshll.u32 %v995_v56, 16  ;;  %v4997_v49 = vrot.slane %v4995_v33, 4  ;;  %v5000_v6 = vrot.slane %v4998_v50, 5  ;;  %v12697_v40 = vpop.f32.mrf.mxu0 }
 0x242   : > { %v6268_v32 = vsel %vm12268_vm15, %v15636_v41, %v15635_v9  ;;  %v5004_v28 = vshll.u32 %v12610_v60, 16  ;;  %v5008_v15 = vshrl.u32 %v12610_v60, 16  ;;  %v3041_v8 = vpop.f32.mrf.mxu1  ;;  %15637 = vst [vmem:[#allocation28_spill] sm:$0xff] %v12697_v40  ;;  %v650_v42 = vadd.f32 %v12466_v12, %v649_v18  ;;  %v833_v60 = vld [vmem:[#allocation2 + $0x18c] sm:$0x1] }
 0x243   : > { %v12699_v21 = vrot.slane %v1497_v3, 7  ;;  %v2633_v20 = vshrl.u32 %v1923_v53, 16  ;;  %v2636_v44 = vshll.u32 %v1923_v53, 16  ;;  %v12702_v14 = vadd.f32 %v3450_v16, %v3041_v8  ;;  %v3453_v50 = vpop.f32.mrf.mxu2  ;;  %v12714_v8 = vld [vmem:[#allocation2 + $0x40] sm:$0xf] }
 0x244   : > { %v2621_v5 = vsel %vm11706_vm8, %v2616_v61, %v12649_v23  ;;  %v2642_v7 = vshll.u32 %v1924_v47, 16  ;;  %v2646_v33 = vshrl.u32 %v1924_v47, 16  ;;  %v2631_v52 = vsel %vm11706_vm8, %v2626_v62, %v2630_v25  ;;  %4651 = vmatmul.bf16.gmra.mxu0 %v11278_v26  ;;  %v12729_v40 = vld [vmem:[#allocation2 + $0x44] sm:$0x1] }
 0x245   : > { %15638 = vst [vmem:[#allocation29_spill] sm:$0xff] %v12702_v14  ;;  %v1502_v48 = vor.u32 %v1500_v11, %v12699_v21  ;;  %v721_v56 = vmax.f32 %v650_v42, 0.0  ;;  %v834_v9 = vsel %vm11669_vm3, 0, %v833_v60  ;;  %v6491_v16 = vunpack.c.l.b16 %v6268_v32  ;;  %v13612_v14 = vld [vmem:[#allocation2 + $0x64] sm:$0xf] }
 0x246   : > { %v5001_v41 = vor.u32 %v5000_v6, %v4997_v49  ;;  %v5006_v53 = vrot.slane %v5004_v28, 5  ;;  %v5010_v3 = vrot.slane %v5008_v15, 4  ;;  %835 = vst [vmem:[#allocation2 + $0x18c] sm:$0x1] %v834_v9  ;;  %v2635_v47 = vrot.slane %v2633_v20, 4 }
 0x247   : > { %v1849_v23 = vsel %vm11732_vm10, %v1502_v48, %v1848_v4  ;;  %v996_v61 = vpack.c.bf16 %v721_v56, %v721_v56  ;;  %v2638_v18 = vrot.slane %v2636_v44, 5  ;;  %v2821_v62 = vunpack.c.l.b16 %v2621_v5  ;;  %v1976_v15 = vld [vmem:[#allocation2 + $0x164] sm:$0x1]  ;;  %v652_v60 = vpop.f32.mrf.mxu3  ;;  %v6120_v56 = vld [vmem:[#allocation2 + $0x3c] sm:$0xe] }
 0x248   : > { %v2822_v25 = vunpack.c.l.b16 %v2631_v52  ;;  %1850 = vst [vmem:[#allocation2 + $0x180] sm:$0xf] %v1849_v23  ;;  %v12716_v11 = vrot.slane %v2642_v7, 5  ;;  %v2648_v42 = vrot.slane %v2646_v33, 4  ;;  %v5773_v32 = vpack.c.b16 %v12691_v29, %v12683_v38  ;;  %v1852_v9 = vld [vmem:[#allocation2 + $0x188] sm:$0x1] }
 0x249   : > { %v6552_v49 = vpack.c.b16 %v6492_v57, %v6491_v16  ;;  %v1505_v6 = vshrl.u32 %v996_v61, 16  ;;  %v1508_v28 = vshll.u32 %v996_v61, 16  ;;  %v5002_v26 = vrot.slane %v5001_v41, 4  ;;  %v12722_v52 = vpop.f32.mrf.mxu0  ;;  %v931_v41 = vld [vmem:[#allocation2 + $0x194] sm:$0x1] }
 0x24a   : > { %v5011_v4 = vor.u32 %v5010_v3, %v5006_v53  ;;  %v5014_v20 = vshll.u32 %v12635_v17, 16  ;;  %v6274_v44 = vrot.slane %v12714_v8, 5  ;;  %v3044_v5 = vpop.f32.mrf.mxu1  ;;  %15639 = vst [vmem:[#allocation30_spill] sm:$0xff] %v12722_v52  ;;  %v1503_v7 = vrot.slane %v12699_v21, 4 }
 0x24b   : > { %v1507_v33 = vrot.slane %v1505_v6, 7  ;;  %v2639_v48 = vor.u32 %v2638_v18, %v2635_v47  ;;  %v653_v38 = vadd.f32 %v12466_v12, %v652_v60  ;;  %v12726_v29 = vadd.f32 %v3453_v50, %v3044_v5  ;;  %v3455_v3 = vpop.f32.mrf.mxu2 }
 0x24c   : > { %v2859_v57 = vpack.c.b16 %v2822_v25, %v2821_v62  ;;  %v2649_v16 = vor.u32 %v2648_v42, %v12716_v11  ;;  %v2652_v17 = vshll.u32 %v1976_v15, 16  ;;  %v932_v21 = vsel %vm11683_vm5, 0, %v931_v41  ;;  %v4838_v15 = vld [vmem:[#allocation2 + $0x3c] sm:$0xf] }
 0x24d   : > { %15640 = vst [vmem:[#allocation31_spill] sm:$0xff] %v12726_v29  ;;  %v1510_v23 = vor.u32 %v1508_v28, %v1507_v33  ;;  %v1512_v61 = vrot.slane %v1507_v33, 4  ;;  %v722_v52 = vmax.f32 %v653_v38, 0.0  ;;  %v5007_v50 = vsel %vm11706_vm8, %v5002_v26, %v5006_v53  ;;  %v1925_v33 = vld [vmem:[#allocation2 + $0x168] sm:$0xf] }
 0x24e   : > { %v5012_v47 = vrot.slane %v5011_v4, 4  ;;  %v5016_v18 = vrot.slane %v5014_v20, 5  ;;  %v10795_v62 = vrot.slane %v6120_v56, 9  ;;  %933 = vst [vmem:[#allocation2 + $0x194] sm:$0x1] %v932_v21  ;;  %3083 = vmatmul.bf16.gmra.mxu3 %v2859_v57  ;;  %v2640_v6 = vrot.slane %v2639_v48, 4 }
 0x24f   : > { %5901 = vmatmul.bf16.gmra.mxu1 %v5773_v32  ;;  %v1511_v25 = vsel %vm11744_vm12, %v1503_v7, %v1510_v23  ;;  %v1853_v42 = vsel %vm11669_vm3, %v1512_v61, %v1852_v9  ;;  %v997_v28 = vpack.c.bf16 %v722_v52, %v722_v52  ;;  %v2650_v60 = vrot.slane %v2649_v16, 4  ;;  %6684 = vmatmul.bf16.gmra.mxu2 %v6552_v49  ;;  %v654_v48 = vpop.f32.mrf.mxu3  ;;  %v1926_v56 = vld [vmem:[#allocation2 + $0x16c] sm:$0xf]  ;;  %v11279_v21 = vld [vmem:[#allocation2 + $0x90] sm:$0xff] }
 0x250   : > { %1851 = vst [vmem:[#allocation2 + $0x184] sm:$0xf] %v1511_v25  ;;  %v2654_v32 = vrot.slane %v2652_v17, 5  ;;  %v6276_v5 = vrot.slane %v6274_v44, 4  ;;  %v6277_v53 = vrot.slane %v12729_v40, 5  ;;  %v12740_v26 = vunpack.c.l.b16 %v5007_v50 }
 0x251   : > { %1854 = vst [vmem:[#allocation2 + $0x188] sm:$0x1] %v1853_v42  ;;  %v12744_v4 = vsel %vm12268_vm15, %v10795_v62, %v6274_v44  ;;  %v1514_v20 = vshrl.u32 %v997_v28, 16  ;;  %v1517_v7 = vshll.u32 %v997_v28, 16  ;;  %v5017_v52 = vsel %vm11706_vm8, %v5012_v47, %v5016_v18  ;;  %v12749_v17 = vpop.f32.mrf.mxu0  ;;  %v1855_v47 = vld [vmem:[#allocation2 + $0x18c] sm:$0xf] }
 0x252   : > { %v5019_v38 = vshrl.u32 %v4838_v15, 16  ;;  %v5022_v57 = vshll.u32 %v4838_v15, 16  ;;  %v5028_v9 = vshll.u32 %v12714_v8, 16  ;;  %v3046_v16 = vpop.f32.mrf.mxu1  ;;  %15641 = vst [vmem:[#allocation32_spill] sm:$0xff] %v12749_v17  ;;  %v2645_v44 = vsel %vm11706_vm8, %v2640_v6, %v12716_v11 }
 0x253   : > { %v1516_v41 = vrot.slane %v1514_v20, 7  ;;  %v655_v23 = vadd.f32 %v12466_v12, %v654_v48  ;;  %v5032_v49 = vshrl.u32 %v12714_v8, 16  ;;  %v12756_v61 = vadd.f32 %v3455_v3, %v3046_v16  ;;  %v3458_v25 = vpop.f32.mrf.mxu2 }
 0x254   : > { %v2655_v50 = vsel %vm11706_vm8, %v2650_v60, %v2654_v32  ;;  %v2657_v18 = vshrl.u32 %v1925_v33, 16  ;;  %v2660_v62 = vshll.u32 %v1925_v33, 16  ;;  %v2666_v15 = vshll.u32 %v1926_v56, 16  ;;  %4656 = vmatmul.bf16.gmra.mxu0 %v11279_v21 }
 0x255   : > { %15642 = vst [vmem:[#allocation33_spill] sm:$0xff] %v12756_v61  ;;  %v1519_v42 = vor.u32 %v1517_v7, %v1516_v41  ;;  %v723_v28 = vmax.f32 %v655_v23, 0.0  ;;  %v2670_v17 = vshrl.u32 %v1926_v56, 16  ;;  %v5714_v11 = vunpack.c.l.b16 %v5017_v52  ;;  %v1977_v52 = vld [vmem:[#allocation2 + $0x170] sm:$0x1] }
 0x256   : > { %v6278_v12 = vsel %vm12268_vm15, %v6276_v5, %v6277_v53  ;;  %v5021_v8 = vrot.slane %v5019_v38, 4  ;;  %v5024_v3 = vrot.slane %v5022_v57, 5  ;;  %v12764_v60 = vrot.slane %v5028_v9, 5  ;;  %v7487_v61 = vld [vmem:[#allocation2 + $0xb0] sm:$0x1] }
 0x257   : > { %v1856_v6 = vsel %vm11732_vm10, %v1519_v42, %v1855_v47  ;;  %v998_v20 = vpack.c.bf16 %v723_v28, %v723_v28  ;;  %v5034_v32 = vrot.slane %v5032_v49, 4  ;;  %v2823_v33 = vunpack.c.l.b16 %v2645_v44 }
 0x258   : > { %v2824_v48 = vunpack.c.l.b16 %v2655_v50  ;;  %1857 = vst [vmem:[#allocation2 + $0x18c] sm:$0xf] %v1856_v6  ;;  %v2659_v7 = vrot.slane %v2657_v18, 4  ;;  %v2662_v16 = vrot.slane %v2660_v62, 5  ;;  %v12766_v21 = vrot.slane %v2666_v15, 5 }
 0x259   : > { %v1522_v56 = vshrl.u32 %v998_v20, 16  ;;  %v1525_v23 = vshll.u32 %v998_v20, 16  ;;  %v2672_v5 = vrot.slane %v2670_v17, 4  ;;  %v5774_v53 = vpack.c.b16 %v5714_v11, %v12740_v26  ;;  %v12769_v42 = vpop.f32.mrf.mxu0  ;;  %v1859_v15 = vld [vmem:[#allocation2 + $0x194] sm:$0x1] }
 0x25a   : > { %v6494_v38 = vunpack.c.l.b16 %v6278_v12  ;;  %v5025_v57 = vor.u32 %v5024_v3, %v5021_v8  ;;  %v3049_v47 = vpop.f32.mrf.mxu1  ;;  %15643 = vst [vmem:[#allocation34_spill] sm:$0xff] %v12769_v42  ;;  %v1520_v9 = vrot.slane %v1516_v41, 4  ;;  %v5035_v44 = vor.u32 %v5034_v32, %v12764_v60  ;;  %v4842_v3 = vld [vmem:[#allocation2 + $0x4c] sm:$0xf]  ;;  %v4841_v41 = vld [vmem:[#allocation2 + $0x48] sm:$0xf] }
 0x25b   : > { %v1524_v49 = vrot.slane %v1522_v56, 7  ;;  %v5038_v50 = vshll.u32 %v12729_v40, 16  ;;  %v12773_v18 = vadd.f32 %v3458_v25, %v3049_v47  ;;  %v2860_v62 = vpack.c.b16 %v2824_v48, %v2823_v33  ;;  %v3460_v6 = vpop.f32.mrf.mxu2  ;;  %v6121_v48 = vld [vmem:[#allocation2 + $0x48] sm:$0xe] }
 0x25c   : > { %v6493_v28 = vunpack.c.l.b16 %v12744_v4  ;;  %v2676_v17 = vshll.u32 %v1977_v52, 16  ;;  %v2663_v12 = vor.u32 %v2662_v16, %v2659_v7  ;;  %v2673_v8 = vor.u32 %v2672_v5, %v12766_v21 }
 0x25d   : > { %15644 = vst [vmem:[#allocation35_spill] sm:$0xff] %v12773_v18  ;;  %v1527_v26 = vor.u32 %v1525_v23, %v1524_v49  ;;  %v1529_v11 = vrot.slane %v1524_v49, 4  ;;  %v5026_v32 = vrot.slane %v5025_v57, 4  ;;  %v5036_v25 = vrot.slane %v5035_v44, 4 }
 0x25e   : > { %v6553_v20 = vpack.c.b16 %v6494_v38, %v6493_v28  ;;  %3088 = vmatmul.bf16.gmra.mxu3 %v2860_v62  ;;  %v5040_v33 = vrot.slane %v5038_v50, 5  ;;  %v6281_v56 = vrot.slane %v4842_v3, 5  ;;  %v5043_v7 = vshrl.u32 %v4841_v41, 16  ;;  %v1927_v50 = vld [vmem:[#allocation2 + $0x174] sm:$0xf] }
 0x25f   : > { %5906 = vmatmul.bf16.gmra.mxu1 %v5774_v53  ;;  %v1528_v40 = vsel %vm11744_vm12, %v1520_v9, %v1527_v26  ;;  %v1860_v4 = vsel %vm11669_vm3, %v1529_v11, %v1859_v15  ;;  %v5046_v16 = vshll.u32 %v4841_v41, 16  ;;  %v5052_v23 = vshll.u32 %v4842_v3, 16  ;;  %v1928_v62 = vld [vmem:[#allocation2 + $0x178] sm:$0xf]  ;;  %v11280_v15 = vld [vmem:[#allocation2 + $0x9c] sm:$0xff] }
 0x260   : > { %1858 = vst [vmem:[#allocation2 + $0x190] sm:$0xf] %v1528_v40  ;;  %v2664_v52 = vrot.slane %v2663_v12, 4  ;;  %v2674_v5 = vrot.slane %v2673_v8, 4  ;;  %v2678_v53 = vrot.slane %v2676_v17, 5  ;;  %v5056_v38 = vshrl.u32 %v4842_v3, 16  ;;  %6689 = vmatmul.bf16.gmra.mxu2 %v6553_v20 }
 0x261   : > { %1861 = vst [vmem:[#allocation2 + $0x194] sm:$0x1] %v1860_v4  ;;  %v12781_v47 = vpop.f32.mrf.mxu0  ;;  %v5031_v9 = vsel %vm11706_vm8, %v5026_v32, %v12764_v60  ;;  %v5041_v49 = vsel %vm11706_vm8, %v5036_v25, %v5040_v33  ;;  %v10796_v44 = vrot.slane %v6121_v48, 9  ;;  %v4843_v26 = vld [vmem:[#allocation2 + $0x50] sm:$0x1]  ;;  %v6283_v17 = vrot.slane %v6281_v56, 4 }
 0x262   : > { %v3051_v57 = vpop.f32.mrf.mxu1  ;;  %15645 = vst [vmem:[#allocation36_spill] sm:$0xff] %v12781_v47  ;;  %v5045_v11 = vrot.slane %v5043_v7, 4  ;;  %v5048_v12 = vrot.slane %v5046_v16, 5  ;;  %v2669_v3 = vsel %vm11706_vm8, %v2664_v52, %v12766_v21  ;;  %v2679_v60 = vsel %vm11706_vm8, %v2674_v5, %v2678_v53 }
 0x263   : > { %v12788_v28 = vadd.f32 %v3460_v6, %v3051_v57  ;;  %v3463_v8 = vpop.f32.mrf.mxu2  ;;  %v5054_v41 = vrot.slane %v5052_v23, 5  ;;  %v5058_v20 = vrot.slane %v5056_v38, 4  ;;  %v2681_v32 = vshrl.u32 %v1927_v50, 16 }
 0x264   : > { %4661 = vmatmul.bf16.gmra.mxu0 %v11280_v15  ;;  %v2684_v40 = vshll.u32 %v1927_v50, 16  ;;  %v2690_v6 = vshll.u32 %v1928_v62, 16  ;;  %v2694_v4 = vshrl.u32 %v1928_v62, 16  ;;  %v6284_v25 = vrot.slane %v4843_v26, 5  ;;  %v4845_v50 = vld [vmem:[#allocation2 + $0x58] sm:$0xf] }
 0x265   : > { %15646 = vst [vmem:[#allocation37_spill] sm:$0xff] %v12788_v28  ;;  %v5715_v33 = vunpack.c.l.b16 %v5031_v9  ;;  %v5716_v48 = vunpack.c.l.b16 %v5041_v49  ;;  %v6282_v7 = vsel %vm12268_vm15, %v10796_v44, %v6281_v56  ;;  %v5049_v16 = vor.u32 %v5048_v12, %v5045_v11  ;;  %v1978_v9 = vld [vmem:[#allocation2 + $0x17c] sm:$0x1] }
 0x266   : > { %v2825_v57 = vunpack.c.l.b16 %v2669_v3  ;;  %v2826_v47 = vunpack.c.l.b16 %v2679_v60  ;;  %v6285_v21 = vsel %vm12268_vm15, %v6283_v17, %v6284_v25  ;;  %v5059_v52 = vor.u32 %v5058_v20, %v5054_v41  ;;  %v6122_v20 = vld [vmem:[#allocation2 + $0x54] sm:$0xe] }
 0x267   : > { %v2683_v23 = vrot.slane %v2681_v32, 4  ;;  %v2686_v5 = vrot.slane %v2684_v40, 5  ;;  %v12799_v53 = vrot.slane %v2690_v6, 5  ;;  %v2696_v38 = vrot.slane %v2694_v4, 4 }
 0x268   : > { %v5062_v49 = vshll.u32 %v4843_v26, 16  ;;  %v5775_v56 = vpack.c.b16 %v5716_v48, %v5715_v33  ;;  %v6496_v44 = vunpack.c.l.b16 %v6285_v21  ;;  %v5050_v11 = vrot.slane %v5049_v16, 4  ;;  %v836_v33 = vld [vmem:[#allocation2 + $0x198] sm:$0x1]  ;;  %v12808_v16 = vld [vmem:[#allocation2 + $0x5c] sm:$0x1] }
 0x269   : > { %v12801_v15 = vpop.f32.mrf.mxu0  ;;  %v2861_v12 = vpack.c.b16 %v2826_v47, %v2825_v57  ;;  %v6495_v17 = vunpack.c.l.b16 %v6282_v7  ;;  %v5060_v60 = vrot.slane %v5059_v52, 4  ;;  %v6288_v32 = vrot.slane %v4845_v50, 5  ;;  %v1929_v7 = vld [vmem:[#allocation2 + $0x180] sm:$0xf]  ;;  %v1980_v45 = vld [vmem:[#allocation2 + $0x194] sm:$0x1] }
 0x26a   : > { %v3054_v62 = vpop.f32.mrf.mxu1  ;;  %15647 = vst [vmem:[#allocation38_spill] sm:$0xff] %v12801_v15  ;;  %v2687_v40 = vor.u32 %v2686_v5, %v2683_v23  ;;  %v2697_v6 = vor.u32 %v2696_v38, %v12799_v53  ;;  %v2700_v4 = vshll.u32 %v1978_v9, 16  ;;  %v5055_v25 = vsel %vm11706_vm8, %v5050_v11, %v5054_v41  ;;  %v1930_v5 = vld [vmem:[#allocation2 + $0x184] sm:$0xf] }
 0x26b   : > { %v12803_v42 = vadd.f32 %v3463_v8, %v3054_v62  ;;  %v3465_v3 = vpop.f32.mrf.mxu2  ;;  %v5064_v26 = vrot.slane %v5062_v49, 5  ;;  %v4844_v8 = vld [vmem:[#allocation2 + $0x54] sm:$0xf]  ;;  %v6554_v48 = vpack.c.b16 %v6496_v44, %v6495_v17  ;;  %v10797_v47 = vrot.slane %v6122_v20, 9 }
 0x26c   : > { %v837_v57 = vsel %vm11669_vm3, 0, %v836_v33  ;;  %v12814_v52 = vunpack.c.l.b16 %v5055_v25  ;;  %v6290_v23 = vrot.slane %v6288_v32, 4  ;;  %v5076_v41 = vshll.u32 %v4845_v50, 16  ;;  %v11281_v25 = vld [vmem:[#allocation2 + $0xa8] sm:$0xff] }
 0x26d   : > { %15648 = vst [vmem:[#allocation39_spill] sm:$0xff] %v12803_v42  ;;  %v5065_v21 = vsel %vm11706_vm8, %v5060_v60, %v5064_v26  ;;  %v2688_v38 = vrot.slane %v2687_v40, 4  ;;  %v2698_v62 = vrot.slane %v2697_v6, 4  ;;  %v2702_v9 = vrot.slane %v2700_v4, 5  ;;  %v11428_v4 = vld [vmem:[%s15576_s4] ss:$0 sm:$0xff] }
 0x26e   : > { %3093 = vmatmul.bf16.gmra.mxu3 %v2861_v12  ;;  %838 = vst [vmem:[#allocation2 + $0x198] sm:$0x1] %v837_v57  ;;  %v5080_v49 = vshrl.u32 %v4845_v50, 16  ;;  %v6291_v11 = vrot.slane %v12808_v16, 5  ;;  %v2705_v12 = vshrl.u32 %v1929_v7, 16  ;;  %v5067_v17 = vshrl.u32 %v4844_v8, 16 }
 0x26f   : > { %5911 = vmatmul.bf16.gmra.mxu1 %v5775_v56  ;;  %v5070_v20 = vshll.u32 %v4844_v8, 16  ;;  %v2708_v26 = vshll.u32 %v1929_v7, 16  ;;  %v2714_v33 = vshll.u32 %v1930_v5, 16  ;;  %v2718_v15 = vshrl.u32 %v1930_v5, 16 }
 0x270   : > { %6694 = vmatmul.bf16.gmra.mxu2 %v6554_v48  ;;  %v5718_v40 = vunpack.c.l.b16 %v5065_v21  ;;  %v6289_v50 = vsel %vm12268_vm15, %v10797_v47, %v6288_v32  ;;  %v6292_v6 = vsel %vm12268_vm15, %v6290_v23, %v6291_v11  ;;  %v2703_v7 = vsel %vm11706_vm8, %v2698_v62, %v2702_v9  ;;  %v934_v32 = vld [vmem:[#allocation2 + $0x1a0] sm:$0x1] }
 0x271   : > { %v12816_v44 = vpop.f32.mrf.mxu0  ;;  %v657_v57 = vpop.f32.mrf.mxu3  ;;  %v12833_v21 = vrot.slane %v5076_v41, 5  ;;  %v5082_v5 = vrot.slane %v5080_v49, 4  ;;  %v5069_v47 = vrot.slane %v5067_v17, 4  ;;  %v935_v11 = vsel %vm11683_vm5, 0, %v934_v32 }
 0x272   : > { %v3056_v56 = vpop.f32.mrf.mxu1  ;;  %15649 = vst [vmem:[#allocation40_spill] sm:$0xff] %v12816_v44  ;;  %v658_v8 = vadd.f32 %v11428_v4, %v657_v57  ;;  %v2707_v44 = vrot.slane %v2705_v12, 4  ;;  %v2710_v57 = vrot.slane %v2708_v26, 5  ;;  %v2720_v1 = vrot.slane %v2718_v15, 4 }
 0x273   : > { %v12819_v60 = vadd.f32 %v3465_v3, %v3056_v56  ;;  %v3468_v48 = vpop.f32.mrf.mxu2  ;;  %v2693_v3 = vsel %vm11706_vm8, %v2688_v38, %v12799_v53  ;;  %v5072_v56 = vrot.slane %v5070_v20, 5  ;;  %936 = vst [vmem:[#allocation2 + $0x1a0] sm:$0x1] %v935_v11  ;;  %v2828_v38 = vunpack.c.l.b16 %v2703_v7  ;;  %v12841_v20 = vld [vmem:[#allocation2 + $0x64] sm:$0xf] }
 0x274   : > { %4666 = vmatmul.bf16.gmra.mxu0 %v11281_v25  ;;  %v724_v23 = vmax.f32 %v658_v8, 0.0  ;;  %v12837_v25 = vrot.slane %v2714_v33, 5  ;;  %v2827_v53 = vunpack.c.l.b16 %v2693_v3  ;;  %v5776_v41 = vpack.c.b16 %v5718_v40, %v12814_v52 }
 0x275   : > { %15650 = vst [vmem:[#allocation41_spill] sm:$0xff] %v12819_v60  ;;  %v1979_v60 = vld [vmem:[#allocation2 + $0x188] sm:$0x1]  ;;  %v6497_v9 = vunpack.c.l.b16 %v6289_v50  ;;  %v6498_v49 = vunpack.c.l.b16 %v6292_v6  ;;  %v5083_v17 = vor.u32 %v5082_v5, %v12833_v21  ;;  %v5073_v12 = vor.u32 %v5072_v56, %v5069_v47  ;;  %v1862_v47 = vld [vmem:[#allocation2 + $0x198] sm:$0xf] }
 0x276   : > { %v999_v62 = vpack.c.bf16 %v724_v23, %v724_v23  ;;  %v5086_v26 = vshll.u32 %v12808_v16, 16  ;;  %v2711_v7 = vor.u32 %v2710_v57, %v2707_v44  ;;  %v2721_v32 = vor.u32 %v2720_v1, %v12837_v25  ;;  %v12850_v56 = vld [vmem:[#allocation2 + $0x60] sm:$0xe]  ;;  %v12852_v44 = vld [vmem:[#allocation2 + $0x68] sm:$0x1] }
 0x277   : > { %v2724_v52 = vshll.u32 %v1979_v60, 16  ;;  %v2862_v50 = vpack.c.b16 %v2828_v38, %v2827_v53  ;;  %v15580_v23 = vrot.slane %v12841_v20, 5  ;;  %v6555_v16 = vpack.c.b16 %v6498_v49, %v6497_v9  ;;  %v4847_v60 = vld [vmem:[#allocation2 + $0x60] sm:$0xf] }
 0x278   : > { %v1531_v15 = vshrl.u32 %v999_v62, 16  ;;  %v1534_v33 = vshll.u32 %v999_v62, 16  ;;  %v2712_v57 = vrot.slane %v2711_v7, 4  ;;  %v2722_v53 = vrot.slane %v2721_v32, 4 }
 0x279   : > { %v12843_v8 = vpop.f32.mrf.mxu0  ;;  %v659_v40 = vpop.f32.mrf.mxu3  ;;  %v2726_v38 = vrot.slane %v2724_v52, 5  ;;  %v5091_v27 = vshrl.u32 %v4847_v60, 16 }
 0x27a   : > { %v3059_v37 = vpop.f32.mrf.mxu1  ;;  %15651 = vst [vmem:[#allocation42_spill] sm:$0xff] %v12843_v8  ;;  %v1533_v5 = vrot.slane %v1531_v15, 7  ;;  %v660_v11 = vadd.f32 %v11428_v4, %v659_v40  ;;  %v5084_v8 = vrot.slane %v5083_v17, 4  ;;  %v6297_v17 = vrot.slane %v15580_v23, 4  ;;  %v1932_v40 = vld [vmem:[#allocation2 + $0x190] sm:$0xf] }
 0x27b   : > { %v12846_v3 = vadd.f32 %v3468_v48, %v3059_v37  ;;  %v3470_v6 = vpop.f32.mrf.mxu2  ;;  %v5074_v48 = vrot.slane %v5073_v12, 4  ;;  %v5088_v37 = vrot.slane %v5086_v26, 5  ;;  %v6298_v12 = vrot.slane %v12852_v44, 5  ;;  %v1931_v26 = vld [vmem:[#allocation2 + $0x18c] sm:$0xf] }
 0x27c   : > { %v1536_v62 = vor.u32 %v1534_v33, %v1533_v5  ;;  %v725_v1 = vmax.f32 %v660_v11, 0.0  ;;  %v5104_v11 = vshrl.u32 %v12841_v20, 16  ;;  %v2738_v23 = vshll.u32 %v1932_v40, 16 }
 0x27d   : > { %15652 = vst [vmem:[#allocation43_spill] sm:$0xff] %v12846_v3  ;;  %v5079_v9 = vsel %vm11706_vm8, %v5074_v48, %v12833_v21  ;;  %v5089_v49 = vsel %vm11706_vm8, %v5084_v8, %v5088_v37  ;;  %v11282_v21 = vld [vmem:[#allocation2 + $0xb4] sm:$0xff]  ;;  %v2717_v8 = vsel %vm11706_vm8, %v2712_v57, %v12837_v25  ;;  %v2729_v37 = vshrl.u32 %v1931_v26, 16 }
 0x27e   : > { %3098 = vmatmul.bf16.gmra.mxu3 %v2862_v50  ;;  %v1863_v4 = vsel %vm11732_vm10, %v1536_v62, %v1862_v47  ;;  %v1000_v15 = vpack.c.bf16 %v725_v1, %v725_v1  ;;  %v5100_v50 = vshll.u32 %v12841_v20, 16  ;;  %v1537_v62 = vrot.slane %v1533_v5, 4 }
 0x27f   : > { %5916 = vmatmul.bf16.gmra.mxu1 %v5776_v41  ;;  %v10798_v41 = vrot.slane %v12850_v56, 9  ;;  %1864 = vst [vmem:[#allocation2 + $0x198] sm:$0xf] %v1863_v4  ;;  %v2727_v56 = vsel %vm11706_vm8, %v2722_v53, %v2726_v38  ;;  %v2732_v4 = vshll.u32 %v1931_v26, 16  ;;  %v5106_v57 = vrot.slane %v5104_v11, 4 }
 0x280   : > { %6699 = vmatmul.bf16.gmra.mxu2 %v6555_v16  ;;  %v1539_v32 = vshrl.u32 %v1000_v15, 16  ;;  %v1542_v52 = vshll.u32 %v1000_v15, 16  ;;  %v5094_v16 = vshll.u32 %v4847_v60, 16  ;;  %v5720_v15 = vunpack.c.l.b16 %v5089_v49 }
 0x281   : > { %v12865_v7 = vpop.f32.mrf.mxu0  ;;  %v12878_v25 = vrot.slane %v5100_v50, 5  ;;  %v2829_v53 = vunpack.c.l.b16 %v2717_v8  ;;  %v2830_v60 = vunpack.c.l.b16 %v2727_v56  ;;  %v5093_v38 = vrot.slane %v5091_v27, 4  ;;  %v4851_v8 = vld [vmem:[#allocation2 + $0x70] sm:$0xf] }
 0x282   : > { %v3061_v33 = vpop.f32.mrf.mxu1  ;;  %15653 = vst [vmem:[#allocation44_spill] sm:$0xff] %v12865_v7  ;;  %v1541_v1 = vrot.slane %v1539_v32, 7  ;;  %v2742_v7 = vshrl.u32 %v1932_v40, 16  ;;  %v5096_v5 = vrot.slane %v5094_v16, 5  ;;  %v2731_v32 = vrot.slane %v2729_v37, 4 }
 0x283   : > { %v12869_v47 = vadd.f32 %v3470_v6, %v3061_v33  ;;  %v3473_v48 = vpop.f32.mrf.mxu2  ;;  %v6299_v6 = vsel %vm12268_vm15, %v6297_v17, %v6298_v12  ;;  %v1866_v33 = vld [vmem:[#allocation2 + $0x1a0] sm:$0x1]  ;;  %v2734_v17 = vrot.slane %v2732_v4, 5  ;;  %v5719_v12 = vunpack.c.l.b16 %v5079_v9 }
 0x284   : > { %4671 = vmatmul.bf16.gmra.mxu0 %v11282_v21  ;;  %v1546_v3 = vrot.slane %v1541_v1, 4  ;;  %v12884_v40 = vrot.slane %v2738_v23, 5  ;;  %v15656_v11 = vrot.slane %v12841_v20, 5  ;;  %v5107_v31 = vor.u32 %v5106_v57, %v12878_v25 }
 0x285   : > { %15654 = vst [vmem:[#allocation45_spill] sm:$0xff] %v12869_v47  ;;  %v1544_v47 = vor.u32 %v1542_v52, %v1541_v1  ;;  %v2744_v52 = vrot.slane %v2742_v7, 4  ;;  %v6500_v9 = vunpack.c.l.b16 %v6299_v6  ;;  %v2863_v23 = vpack.c.b16 %v2830_v60, %v2829_v53  ;;  %v7450_v6 = vld [vmem:[#allocation2 + $0x1c] sm:$0xf]  ;;  %v8739_v60 = vld [vmem:[#allocation2 + $0x18] sm:$0xe] }
 0x286   : > { %v1867_v49 = vsel %vm11669_vm3, %v1546_v3, %v1866_v33  ;;  %v6296_v27 = vsel %vm12268_vm15, %v10798_v41, %v15656_v11  ;;  %v2735_v7 = vor.u32 %v2734_v17, %v2731_v32  ;;  %v5097_v16 = vor.u32 %v5096_v5, %v5093_v38  ;;  %v12900_v5 = vld [vmem:[#allocation2 + $0x74] sm:$0x1] }
 0x287   : > { %v1545_v26 = vsel %vm11744_vm12, %v1537_v62, %v1544_v47  ;;  %1868 = vst [vmem:[#allocation2 + $0x1a0] sm:$0x1] %v1867_v49  ;;  %v5777_v47 = vpack.c.b16 %v5720_v15, %v5719_v12  ;;  %v5110_v62 = vshll.u32 %v12852_v44, 16  ;;  %v6499_v20 = vunpack.c.l.b16 %v6296_v27 }
 0x288   : > { %1865 = vst [vmem:[#allocation2 + $0x19c] sm:$0xf] %v1545_v26  ;;  %v2745_v1 = vor.u32 %v2744_v52, %v12884_v40  ;;  %v2748_v41 = vshll.u32 %v1980_v45, 16  ;;  %v5108_v37 = vrot.slane %v5107_v31, 4  ;;  %v6302_v4 = vrot.slane %v4851_v8, 5  ;;  %v11283_v45 = vld [vmem:[#allocation2 + $0xc0] sm:$0xff] }
 0x289   : > { %v12886_v21 = vpop.f32.mrf.mxu0  ;;  %v6556_v15 = vpack.c.b16 %v6500_v9, %v6499_v20  ;;  %v2736_v33 = vrot.slane %v2735_v7, 4  ;;  %v5098_v57 = vrot.slane %v5097_v16, 4  ;;  %v5112_v53 = vrot.slane %v5110_v62, 5  ;;  %v6124_v26 = vld [vmem:[#allocation2 + $0x6c] sm:$0xe] }
 0x28a   : > { %v3064_v50 = vpop.f32.mrf.mxu1  ;;  %15655 = vst [vmem:[#allocation46_spill] sm:$0xff] %v12886_v21  ;;  %v2746_v44 = vrot.slane %v2745_v1, 4  ;;  %v2750_v38 = vrot.slane %v2748_v41, 5  ;;  %v6304_v52 = vrot.slane %v6302_v4, 4  ;;  %v8869_v11 = vrot.slane %v7450_v6, 5 }
 0x28b   : > { %v12893_v3 = vadd.f32 %v3473_v48, %v3064_v50  ;;  %v3475_v56 = vpop.f32.mrf.mxu2  ;;  %v11267_v48 = vld [vmem:[%s15574_s2 + $0xb8] sm:$0xff]  ;;  %v5103_v17 = vsel %vm11706_vm8, %v5098_v57, %v12878_v25  ;;  %v5113_v12 = vsel %vm11706_vm8, %v5108_v37, %v5112_v53  ;;  %v7451_v50 = vld [vmem:[#allocation2 + $0x20] sm:$0x1]  ;;  %v4850_v31 = vld [vmem:[#allocation2 + $0x6c] sm:$0xf]  ;;  %v5128_v9 = vshrl.u32 %v4851_v8, 16 }
 0x28c   : > { %4039 = vmatpush.bf16.msrb.mxu3 %v11267_v48  ;;  %v2741_v16 = vsel %vm11706_vm8, %v2736_v33, %v12884_v40  ;;  %v10799_v62 = vrot.slane %v6124_v26, 9  ;;  %v6305_v25 = vrot.slane %v12900_v5, 5  ;;  %v8871_v20 = vrot.slane %v8869_v11, 4  ;;  %v7453_v41 = vld [vmem:[#allocation2 + $0x28] sm:$0xf] }
 0x28d   : > { %15657 = vst [vmem:[#allocation47_spill] sm:$0xff] %v12893_v3  ;;  %v2751_v1 = vsel %vm11706_vm8, %v2746_v44, %v2750_v38  ;;  %v5118_v6 = vshll.u32 %v4850_v31, 16  ;;  %v2831_v33 = vunpack.c.l.b16 %v2741_v16  ;;  %v5130_v53 = vrot.slane %v5128_v9, 4  ;;  %v8740_v44 = vld [vmem:[#allocation2 + $0x24] sm:$0xe] }
 0x28e   : > { %3103 = vmatmul.bf16.gmra.mxu3 %v2863_v23  ;;  %v11095_v23 = vrot.slane %v8739_v60, 9  ;;  %v6303_v48 = vsel %vm12268_vm15, %v10799_v62, %v6302_v4  ;;  %v6306_v40 = vsel %vm12268_vm15, %v6304_v52, %v6305_v25  ;;  %v2832_v38 = vunpack.c.l.b16 %v2751_v1  ;;  %v7454_v4 = vld [vmem:[#allocation2 + $0x2c] sm:$0x1]  ;;  %v7456_v16 = vld [vmem:[#allocation2 + $0x34] sm:$0xf] }
 0x28f   : > { %5921 = vmatmul.bf16.gmra.mxu1 %v5777_v47  ;;  %v5124_v47 = vshll.u32 %v4851_v8, 16  ;;  %v8872_v8 = vrot.slane %v7451_v50, 5  ;;  %v5721_v50 = vunpack.c.l.b16 %v5103_v17  ;;  %v11096_v9 = vrot.slane %v8740_v44, 9 }
 0x290   : > { %6704 = vmatmul.bf16.gmra.mxu2 %v6556_v15  ;;  %v8870_v37 = vsel %vm12268_vm15, %v11095_v23, %v8869_v11  ;;  %v5115_v15 = vshrl.u32 %v4850_v31, 16  ;;  %v6502_v11 = vunpack.c.l.b16 %v6306_v40  ;;  %v5120_v31 = vrot.slane %v5118_v6, 5  ;;  %v7457_v6 = vld [vmem:[#allocation2 + $0x38] sm:$0x1] }
 0x291   : > { %v12902_v32 = vpop.f32.mrf.mxu0  ;;  %v12923_v57 = vrot.slane %v5124_v47, 5  ;;  %v8873_v60 = vsel %vm12268_vm15, %v8871_v20, %v8872_v8  ;;  %v9108_v26 = vunpack.c.l.b16 %v8870_v37  ;;  %v6501_v20 = vunpack.c.l.b16 %v6303_v48  ;;  %v11266_v48 = vld [vmem:[%s15574_s2 + $0xb0] sm:$0xff] }
 0x292   : > { %v3066_v49 = vpop.f32.mrf.mxu1  ;;  %15658 = vst [vmem:[#allocation48_spill] sm:$0xff] %v12902_v32  ;;  %v5117_v52 = vrot.slane %v5115_v15, 4  ;;  %v2864_v37 = vpack.c.b16 %v2832_v38, %v2831_v33  ;;  %v8879_v40 = vrot.slane %v7454_v4, 5  ;;  %v4854_v15 = vld [vmem:[#allocation2 + $0x7c] sm:$0xf]  ;;  %4040 = vmatpush.bf16.msrb.mxu3 %v11266_v48 }
 0x293   : > { %v12909_v27 = vadd.f32 %v3475_v56, %v3066_v49  ;;  %v3478_v7 = vpop.f32.mrf.mxu2  ;;  %v5722_v56 = vunpack.c.l.b16 %v5113_v12  ;;  %v9109_v49 = vunpack.c.l.b16 %v8873_v60  ;;  %v8876_v12 = vrot.slane %v7453_v41, 5  ;;  %v8741_v60 = vld [vmem:[#allocation2 + $0x30] sm:$0xe] }
 0x294   : > { %4676 = vmatmul.bf16.gmra.mxu0 %v11283_v45  ;;  %v5131_v1 = vor.u32 %v5130_v53, %v12923_v57  ;;  %v6557_v44 = vpack.c.b16 %v6502_v11, %v6501_v20  ;;  %v6309_v4 = vrot.slane %v4854_v15, 5 }
 0x295   : > { %15659 = vst [vmem:[#allocation49_spill] sm:$0xff] %v12909_v27  ;;  %v12929_v47 = vpack.c.b16 %v9109_v49, %v9108_v26  ;;  %v5778_v25 = vpack.c.b16 %v5722_v56, %v5721_v50  ;;  %v8877_v17 = vsel %vm12268_vm15, %v11096_v9, %v8876_v12  ;;  %v8878_v8 = vrot.slane %v8876_v12, 4  ;;  %v6125_v9 = vld [vmem:[#allocation2 + $0x78] sm:$0xe] }
 0x296   : > { %v8883_v26 = vrot.slane %v7456_v16, 5  ;;  %v5134_v56 = vshll.u32 %v12900_v5, 16  ;;  %v9110_v53 = vunpack.c.l.b16 %v8877_v17  ;;  %v11097_v49 = vrot.slane %v8741_v60, 9  ;;  %v4855_v17 = vld [vmem:[#allocation2 + $0x80] sm:$0x1] }
 0x297   : > { %v8880_v33 = vsel %vm12268_vm15, %v8878_v8, %v8879_v40  ;;  %v5132_v50 = vrot.slane %v5131_v1, 4  ;;  %v11284_v1 = vld [vmem:[#allocation2 + $0xe4] sm:$0xff]  ;;  %v5148_v8 = vshll.u32 %v4854_v15, 16  ;;  %v5152_v40 = vshrl.u32 %v4854_v15, 16 }
 0x298   : > { %v9111_v38 = vunpack.c.l.b16 %v8880_v33  ;;  %v8885_v12 = vrot.slane %v8883_v26, 4  ;;  %v8884_v5 = vsel %vm12268_vm15, %v11097_v49, %v8883_v26  ;;  %v5136_v16 = vrot.slane %v5134_v56, 5  ;;  %v4853_v33 = vld [vmem:[#allocation2 + $0x78] sm:$0xf] }
 0x299   : > { %v12927_v23 = vpop.f32.mrf.mxu0  ;;  %v6311_v26 = vrot.slane %v6309_v4, 4  ;;  %v9112_v48 = vunpack.c.l.b16 %v8884_v5 }
 0x29a   : > { %v3069_v45 = vpop.f32.mrf.mxu1  ;;  %15660 = vst [vmem:[#allocation50_spill] sm:$0xff] %v12927_v23  ;;  %v12942_v11 = vpack.c.b16 %v9111_v38, %v9110_v53  ;;  %v8742_v53 = vld [vmem:[#allocation2 + $0x3c] sm:$0xe]  ;;  %v6312_v38 = vrot.slane %v4855_v17, 5 }
 0x29b   : > { %v12931_v62 = vadd.f32 %v3478_v7, %v3069_v45  ;;  %v3480_v41 = vpop.f32.mrf.mxu2  ;;  %v5121_v7 = vor.u32 %v5120_v31, %v5117_v52  ;;  %v8886_v45 = vrot.slane %v7457_v6, 5  ;;  %v5137_v6 = vsel %vm11706_vm8, %v5132_v50, %v5136_v16  ;;  %v7460_v50 = vld [vmem:[#allocation2 + $0x44] sm:$0x1] }
 0x29c   : > { %v5724_v15 = vunpack.c.l.b16 %v5137_v6  ;;  %v6313_v5 = vsel %vm12268_vm15, %v6311_v26, %v6312_v38  ;;  %v5139_v16 = vshrl.u32 %v4853_v33, 16 }
 0x29d   : > { %15661 = vst [vmem:[#allocation51_spill] sm:$0xff] %v12931_v62 }
 0x29e   : > { %3108 = vmatmul.bf16.gmra.mxu3 %v2864_v37  ;;  %v5122_v37 = vrot.slane %v5121_v7, 4  ;;  %v10800_v7 = vrot.slane %v6125_v9, 9 }
 0x29f   : > { %5926 = vmatmul.bf16.gmra.mxu1 %v5778_v25  ;;  %v8887_v25 = vsel %vm12268_vm15, %v8885_v12, %v8886_v45  ;;  %v12961_v12 = vrot.slane %v5148_v8, 5  ;;  %v5154_v45 = vrot.slane %v5152_v40, 4  ;;  %v8893_v40 = vrot.slane %v7460_v50, 5 }
 0x2a0   : > { %6709 = vmatmul.bf16.gmra.mxu2 %v6557_v44  ;;  %v7459_v44 = vld [vmem:[#allocation2 + $0x40] sm:$0xf]  ;;  %v9113_v56 = vunpack.c.l.b16 %v8887_v25  ;;  %v5142_v25 = vshll.u32 %v4853_v33, 16  ;;  %v6310_v9 = vsel %vm12268_vm15, %v10800_v7, %v6309_v4  ;;  %v5141_v33 = vrot.slane %v5139_v16, 4 }
 0x2a1   : > { %v12946_v31 = vpop.f32.mrf.mxu0  ;;  %v5155_v26 = vor.u32 %v5154_v45, %v12961_v12  ;;  %v6503_v4 = vunpack.c.l.b16 %v6310_v9  ;;  %v5158_v7 = vshll.u32 %v4855_v17, 16 }
 0x2a2   : > { %v3071_v52 = vpop.f32.mrf.mxu1  ;;  %15662 = vst [vmem:[#allocation52_spill] sm:$0xff] %v12946_v31  ;;  %v12959_v49 = vpack.c.b16 %v9113_v56, %v9112_v48  ;;  %v11236_v48 = vld [vmem:[#allocation2 + $0x138] sm:$0xff] }
 0x2a3   : > { %v12950_v20 = vadd.f32 %v3480_v41, %v3071_v52  ;;  %v12952_v60 = vpop.f32.mrf.mxu2  ;;  %v5127_v41 = vsel %vm11706_vm8, %v5122_v37, %v12923_v57  ;;  %v8890_v52 = vrot.slane %v7459_v44, 5  ;;  %v6504_v44 = vunpack.c.l.b16 %v6313_v5 }
 0x2a4   : > { %15664 = vst [vmem:[#allocation54_spill] sm:$0xff] %v12952_v60  ;;  %4681 = vmatmul.bf16.gmra.mxu0 %v11284_v1  ;;  %v11098_v1 = vrot.slane %v8742_v53, 9  ;;  %v5723_v31 = vunpack.c.l.b16 %v5127_v41  ;;  %v5144_v53 = vrot.slane %v5142_v25, 5  ;;  %v4857_v41 = vld [vmem:[#allocation2 + $0x88] sm:$0xf]  ;;  %v5156_v45 = vrot.slane %v5155_v26, 4 }
 0x2a5   : > { %15663 = vst [vmem:[#allocation53_spill] sm:$0xff] %v12950_v20  ;;  %v8892_v8 = vrot.slane %v8890_v52, 4  ;;  %v6316_v50 = vrot.slane %v4857_v41, 5  ;;  %v5160_v25 = vrot.slane %v5158_v7, 5  ;;  %v4856_v26 = vld [vmem:[#allocation2 + $0x84] sm:$0xf] }
 0x2a6   : > { %v8891_v37 = vsel %vm12268_vm15, %v11098_v1, %v8890_v52  ;;  %v5779_v6 = vpack.c.b16 %v5724_v15, %v5723_v31  ;;  %v11265_v31 = vld [vmem:[%s15574_s2 + $0xa8] sm:$0xff]  ;;  %v6558_v15 = vpack.c.b16 %v6504_v44, %v6503_v4  ;;  %v5145_v5 = vor.u32 %v5144_v53, %v5141_v33 }
 0x2a7   : > { %v8894_v38 = vsel %vm12268_vm15, %v8892_v8, %v8893_v40  ;;  %4041 = vmatpush.bf16.msrb.mxu3 %v11265_v31  ;;  %v11285_v8 = vld [vmem:[#allocation2 + $0xf0] sm:$0xff]  ;;  %v5161_v40 = vsel %vm11706_vm8, %v5156_v45, %v5160_v25  ;;  %v6318_v44 = vrot.slane %v6316_v50, 4  ;;  %v5172_v33 = vshll.u32 %v4857_v41, 16  ;;  %v8743_v7 = vld [vmem:[#allocation2 + $0x48] sm:$0xe] }
 0x2a8   : > { %v9115_v1 = vunpack.c.l.b16 %v8894_v38  ;;  %v5176_v53 = vshrl.u32 %v4857_v41, 16  ;;  %v7462_v38 = vld [vmem:[#allocation2 + $0x4c] sm:$0xf]  ;;  %v5726_v31 = vunpack.c.l.b16 %v5161_v40  ;;  %v5163_v25 = vshrl.u32 %v4856_v26, 16 }
 0x2a9   : > { %v12965_v23 = vpop.f32.mrf.mxu0  ;;  %v8897_v32 = vrot.slane %v7462_v38, 5  ;;  %v5166_v21 = vshll.u32 %v4856_v26, 16 }
 0x2aa   : > { %15665 = vst [vmem:[#allocation55_spill] sm:$0xff] %v12965_v23  ;;  %v9114_v23 = vunpack.c.l.b16 %v8891_v37  ;;  %v4858_v37 = vld [vmem:[#allocation2 + $0x8c] sm:$0x1]  ;;  %v5178_v41 = vrot.slane %v5176_v53, 4  ;;  %v5165_v38 = vrot.slane %v5163_v25, 4 }
 0x2ab   : > { %v12967_v57 = vpop.f32.mrf.mxu1  ;;  %v12974_v56 = vpop.f32.mrf.mxu2  ;;  %v6319_v4 = vrot.slane %v4858_v37, 5 }
 0x2ac   : > { %15666 = vst [vmem:[#allocation56_spill] sm:$0xff] %v12967_v57  ;;  %v12981_v52 = vpack.c.b16 %v9115_v1, %v9114_v23 }
 0x2ad   : > { %15667 = vst [vmem:[#allocation57_spill] sm:$0xff] %v12974_v56  ;;  %v6320_v45 = vsel %vm12268_vm15, %v6318_v44, %v6319_v4  ;;  %v5168_v4 = vrot.slane %v5166_v21, 5 }
 0x2ae   : > { %3482 = vmatmul.bf16.vlgmr.msra.gmra.mxu3 %v11236_v48  ;;  %v5146_v48 = vrot.slane %v5145_v5, 4  ;;  %v12998_v5 = vrot.slane %v5172_v33, 5  ;;  %v11237_v33 = vld [vmem:[#allocation2 + $0x144] sm:$0xff] }
 0x2af   : > { %5931 = vmatmul.bf16.gmra.mxu1 %v5779_v6  ;;  %v6126_v6 = vld [vmem:[#allocation2 + $0x84] sm:$0xe]  ;;  %v5169_v21 = vor.u32 %v5168_v4, %v5165_v38 }
 0x2b0   : > { %6714 = vmatmul.bf16.gmra.mxu2 %v6558_v15  ;;  %v5151_v1 = vsel %vm11706_vm8, %v5146_v48, %v12961_v12  ;;  %v10801_v15 = vrot.slane %v6126_v6, 9  ;;  %v8899_v6 = vrot.slane %v8897_v32, 4  ;;  %v6506_v48 = vunpack.c.l.b16 %v6320_v45 }
 0x2b1   : > { %v12983_v16 = vpop.f32.mrf.mxu3  ;;  %v12985_v9 = vpop.f32.mrf.mxu0  ;;  %v5725_v56 = vunpack.c.l.b16 %v5151_v1  ;;  %v4860_v1 = vld [vmem:[#allocation2 + $0x94] sm:$0xf] }
 0x2b2   : > { %15668 = vst [vmem:[#allocation58_spill] sm:$0xff] %v12983_v16  ;;  %v6317_v12 = vsel %vm12268_vm15, %v10801_v15, %v6316_v50  ;;  %v5196_v38 = vshll.u32 %v4860_v1, 16  ;;  %v5200_v4 = vshrl.u32 %v4860_v1, 16 }
 0x2b3   : > { %15669 = vst [vmem:[#allocation59_spill] sm:$0xff] %v12985_v9  ;;  %v12987_v17 = vpop.f32.mrf.mxu1  ;;  %v12991_v23 = vpop.f32.mrf.mxu2  ;;  %v7463_v9 = vld [vmem:[#allocation2 + $0x50] sm:$0x1]  ;;  %v5780_v26 = vpack.c.b16 %v5726_v31, %v5725_v56  ;;  %v6505_v50 = vunpack.c.l.b16 %v6317_v12  ;;  %v11264_v56 = vld [vmem:[%s15574_s2 + $0xa0] sm:$0xff] }
 0x2b4   : > { %15670 = vst [vmem:[#allocation60_spill] sm:$0xff] %v12987_v17  ;;  %4686 = vmatmul.bf16.gmra.mxu0 %v11285_v8  ;;  %v8900_v44 = vrot.slane %v7463_v9, 5  ;;  %4042 = vmatpush.bf16.msrb.mxu3 %v11264_v56 }
 0x2b5   : > { %15671 = vst [vmem:[#allocation61_spill] sm:$0xff] %v12991_v23  ;;  %v11099_v23 = vrot.slane %v8743_v7, 9  ;;  %v5179_v7 = vor.u32 %v5178_v41, %v12998_v5  ;;  %v6559_v9 = vpack.c.b16 %v6506_v48, %v6505_v50 }
 0x2b7   : > { %v8898_v40 = vsel %vm12268_vm15, %v11099_v23, %v8897_v32  ;;  %v5182_v32 = vshll.u32 %v4858_v37, 16  ;;  %v6323_v23 = vrot.slane %v4860_v1, 5  ;;  %v5180_v45 = vrot.slane %v5179_v7, 4  ;;  %v4861_v37 = vld [vmem:[#allocation2 + $0x98] sm:$0x1] }
 0x2b8   : > { %v9116_v15 = vunpack.c.l.b16 %v8898_v40  ;;  %v11286_v40 = vld [vmem:[#allocation2 + $0xfc] sm:$0xff]  ;;  %v7465_v7 = vld [vmem:[#allocation2 + $0x58] sm:$0xf]  ;;  %v6326_v50 = vrot.slane %v4861_v37, 5  ;;  %v5202_v1 = vrot.slane %v5200_v4, 4 }
 0x2b9   : > { %v13000_v8 = vpop.f32.mrf.mxu3  ;;  %v13002_v17 = vpop.f32.mrf.mxu0 }
 0x2ba   : > { %15672 = vst [vmem:[#allocation62_spill] sm:$0xff] %v13000_v8 }
 0x2bb   : > { %15673 = vst [vmem:[#allocation63_spill] sm:$0xff] %v13002_v17  ;;  %v13010_v53 = vpop.f32.mrf.mxu2  ;;  %v8901_v17 = vsel %vm12268_vm15, %v8899_v6, %v8900_v44  ;;  %v6127_v6 = vld [vmem:[#allocation2 + $0x90] sm:$0xe]  ;;  %v6325_v44 = vrot.slane %v6323_v23, 4 }
 0x2bc   : > { %v13004_v60 = vpop.f32.mrf.mxu1  ;;  %15675 = vst [vmem:[#allocation65_spill] sm:$0xff] %v13010_v53  ;;  %v10802_v56 = vrot.slane %v6127_v6, 9  ;;  %v8904_v53 = vrot.slane %v7465_v7, 5 }
 0x2bd   : > { %15674 = vst [vmem:[#allocation64_spill] sm:$0xff] %v13004_v60  ;;  %v9117_v60 = vunpack.c.l.b16 %v8901_v17  ;;  %v5184_v17 = vrot.slane %v5182_v32, 5 }
 0x2be   : > { %3487 = vmatmul.bf16.gmra.mxu3 %v11237_v33 }
 0x2bf   : > { %5936 = vmatmul.bf16.gmra.mxu1 %v5780_v26  ;;  %v13018_v31 = vpack.c.b16 %v9117_v60, %v9116_v15  ;;  %v4859_v26 = vld [vmem:[#allocation2 + $0x90] sm:$0xf]  ;;  %v5170_v60 = vrot.slane %v5169_v21, 4  ;;  %v5185_v33 = vsel %vm11706_vm8, %v5180_v45, %v5184_v17  ;;  %v8744_v15 = vld [vmem:[#allocation2 + $0x54] sm:$0xe]  ;;  %v13035_v45 = vrot.slane %v5196_v38, 5 }
 0x2c0   : > { %6719 = vmatmul.bf16.gmra.mxu2 %v6559_v9  ;;  %v5728_v9 = vunpack.c.l.b16 %v5185_v33  ;;  %v7466_v21 = vld [vmem:[#allocation2 + $0x5c] sm:$0x1]  ;;  %v11100_v17 = vrot.slane %v8744_v15, 9  ;;  %v11238_v38 = vld [vmem:[#allocation2 + $0x150] sm:$0xff] }
 0x2c1   : > { %v13020_v25 = vpop.f32.mrf.mxu3  ;;  %v13022_v41 = vpop.f32.mrf.mxu0  ;;  %v5175_v32 = vsel %vm11706_vm8, %v5170_v60, %v12998_v5  ;;  %v6324_v5 = vsel %vm12268_vm15, %v10802_v56, %v6323_v23  ;;  %v8907_v60 = vrot.slane %v7466_v21, 5  ;;  %v5203_v15 = vor.u32 %v5202_v1, %v13035_v45  ;;  %v4863_v23 = vld [vmem:[#allocation2 + $0xa0] sm:$0xf] }
 0x2c2   : > { %15676 = vst [vmem:[#allocation66_spill] sm:$0xff] %v13020_v25  ;;  %v5727_v57 = vunpack.c.l.b16 %v5175_v32  ;;  %v8905_v6 = vsel %vm12268_vm15, %v11100_v17, %v8904_v53  ;;  %v6330_v21 = vrot.slane %v4863_v23, 5 }
 0x2c3   : > { %15677 = vst [vmem:[#allocation67_spill] sm:$0xff] %v13022_v41  ;;  %v13026_v48 = vpop.f32.mrf.mxu2  ;;  %v6327_v41 = vsel %vm12268_vm15, %v6325_v44, %v6326_v50  ;;  %v8906_v44 = vrot.slane %v8904_v53, 4  ;;  %v9118_v56 = vunpack.c.l.b16 %v8905_v6  ;;  %v5206_v53 = vshll.u32 %v4861_v37, 16  ;;  %v6128_v37 = vld [vmem:[#allocation2 + $0x9c] sm:$0xe] }
 0x2c4   : > { %v13024_v12 = vpop.f32.mrf.mxu1  ;;  %15679 = vst [vmem:[#allocation69_spill] sm:$0xff] %v13026_v48  ;;  %4691 = vmatmul.bf16.gmra.mxu0 %v11286_v40  ;;  %v5187_v48 = vshrl.u32 %v4859_v26, 16  ;;  %v6508_v33 = vunpack.c.l.b16 %v6327_v41 }
 0x2c5   : > { %15678 = vst [vmem:[#allocation68_spill] sm:$0xff] %v13024_v12  ;;  %v5190_v12 = vshll.u32 %v4859_v26, 16  ;;  %v5781_v26 = vpack.c.b16 %v5728_v9, %v5727_v57  ;;  %v8908_v32 = vsel %vm12268_vm15, %v8906_v44, %v8907_v60  ;;  %v11263_v57 = vld [vmem:[%s15574_s2 + $0x98] sm:$0xff]  ;;  %v5208_v6 = vrot.slane %v5206_v53, 5  ;;  %v11287_v60 = vld [vmem:[#allocation2 + $0x108] sm:$0xff] }
 0x2c6   : > { %v5189_v7 = vrot.slane %v5187_v48, 4  ;;  %v5204_v48 = vrot.slane %v5203_v15, 4  ;;  %4043 = vmatpush.bf16.msrb.mxu3 %v11263_v57  ;;  %v4862_v44 = vld [vmem:[#allocation2 + $0x9c] sm:$0xf]  ;;  %v7468_v15 = vld [vmem:[#allocation2 + $0x64] sm:$0xf] }
 0x2c7   : > { %v5192_v50 = vrot.slane %v5190_v12, 5  ;;  %v8745_v57 = vld [vmem:[#allocation2 + $0x60] sm:$0xe] }
 0x2c9   : > { %v13037_v40 = vpop.f32.mrf.mxu3  ;;  %v13039_v25 = vpop.f32.mrf.mxu0  ;;  %v5193_v12 = vor.u32 %v5192_v50, %v5189_v7  ;;  %v5209_v7 = vsel %vm11706_vm8, %v5204_v48, %v5208_v6  ;;  %v6332_v50 = vrot.slane %v6330_v21, 4  ;;  %v11101_v6 = vrot.slane %v8745_v57, 9 }
 0x2ca   : > { %15680 = vst [vmem:[#allocation70_spill] sm:$0xff] %v13037_v40 }
 0x2cb   : > { %15681 = vst [vmem:[#allocation71_spill] sm:$0xff] %v13039_v25  ;;  %v13047_v4 = vpop.f32.mrf.mxu2  ;;  %v6507_v25 = vunpack.c.l.b16 %v6324_v5 }
 0x2cc   : > { %v13041_v8 = vpop.f32.mrf.mxu1  ;;  %15683 = vst [vmem:[#allocation73_spill] sm:$0xff] %v13047_v4  ;;  %v5730_v4 = vunpack.c.l.b16 %v5209_v7 }
 0x2cd   : > { %15682 = vst [vmem:[#allocation72_spill] sm:$0xff] %v13041_v8  ;;  %v9119_v8 = vunpack.c.l.b16 %v8908_v32  ;;  %v6560_v41 = vpack.c.b16 %v6508_v33, %v6507_v25  ;;  %v5224_v25 = vshrl.u32 %v4863_v23, 16  ;;  %v5194_v33 = vrot.slane %v5193_v12, 4 }
 0x2ce   : > { %3492 = vmatmul.bf16.gmra.mxu3 %v11238_v38  ;;  %v5220_v38 = vshll.u32 %v4863_v23, 16  ;;  %v5211_v32 = vshrl.u32 %v4862_v44, 16  ;;  %v8911_v12 = vrot.slane %v7468_v15, 5  ;;  %v11239_v15 = vld [vmem:[#allocation2 + $0x15c] sm:$0xff] }
 0x2cf   : > { %5941 = vmatmul.bf16.gmra.mxu1 %v5781_v26  ;;  %v13055_v9 = vpack.c.b16 %v9119_v8, %v9118_v56  ;;  %v4864_v26 = vld [vmem:[#allocation2 + $0xa4] sm:$0x1]  ;;  %v5214_v56 = vshll.u32 %v4862_v44, 16  ;;  %v5199_v53 = vsel %vm11706_vm8, %v5194_v33, %v13035_v45 }
 0x2d0   : > { %6724 = vmatmul.bf16.gmra.mxu2 %v6560_v41  ;;  %v10803_v41 = vrot.slane %v6128_v37, 9  ;;  %v5222_v23 = vrot.slane %v5220_v38, 5  ;;  %v5213_v40 = vrot.slane %v5211_v32, 4  ;;  %v8912_v38 = vsel %vm12268_vm15, %v11101_v6, %v8911_v12 }
 0x2d1   : > { %v13057_v1 = vpop.f32.mrf.mxu3  ;;  %v13059_v17 = vpop.f32.mrf.mxu0  ;;  %v5216_v16 = vrot.slane %v5214_v56, 5  ;;  %v5230_v56 = vshll.u32 %v4864_v26, 16 }
 0x2d2   : > { %15684 = vst [vmem:[#allocation74_spill] sm:$0xff] %v13057_v1  ;;  %v6331_v44 = vsel %vm12268_vm15, %v10803_v41, %v6330_v21  ;;  %v9120_v41 = vunpack.c.l.b16 %v8912_v38 }
 0x2d3   : > { %15685 = vst [vmem:[#allocation75_spill] sm:$0xff] %v13059_v17  ;;  %v13063_v8 = vpop.f32.mrf.mxu2  ;;  %v6333_v17 = vrot.slane %v4864_v26, 5  ;;  %v5217_v32 = vor.u32 %v5216_v16, %v5213_v40  ;;  %v11288_v26 = vld [vmem:[#allocation2 + $0x114] sm:$0xff] }
 0x2d4   : > { %v13061_v5 = vpop.f32.mrf.mxu1  ;;  %15687 = vst [vmem:[#allocation77_spill] sm:$0xff] %v13063_v8  ;;  %4696 = vmatmul.bf16.gmra.mxu0 %v11287_v60  ;;  %v7469_v8 = vld [vmem:[#allocation2 + $0x68] sm:$0x1]  ;;  %v5729_v60 = vunpack.c.l.b16 %v5199_v53  ;;  %v6509_v53 = vunpack.c.l.b16 %v6331_v44  ;;  %v5232_v44 = vrot.slane %v5230_v56, 5 }
 0x2d5   : > { %15686 = vst [vmem:[#allocation76_spill] sm:$0xff] %v13061_v5  ;;  %v5226_v5 = vrot.slane %v5224_v25, 4  ;;  %v6334_v48 = vsel %vm12268_vm15, %v6332_v50, %v6333_v17  ;;  %v8913_v25 = vrot.slane %v8911_v12, 4  ;;  %v8914_v33 = vrot.slane %v7469_v8, 5 }
 0x2d6   : > { %v5782_v7 = vpack.c.b16 %v5730_v4, %v5729_v60  ;;  %v6510_v17 = vunpack.c.l.b16 %v6334_v48  ;;  %v11262_v4 = vld [vmem:[%s15574_s2 + $0x90] sm:$0xff]  ;;  %v5218_v60 = vrot.slane %v5217_v32, 4  ;;  %v6129_v32 = vld [vmem:[#allocation2 + $0xa8] sm:$0xe] }
 0x2d7   : > { %v5227_v50 = vor.u32 %v5226_v5, %v5222_v23  ;;  %v8915_v21 = vsel %vm12268_vm15, %v8913_v25, %v8914_v33  ;;  %4044 = vmatpush.bf16.msrb.mxu3 %v11262_v4  ;;  %v4867_v33 = vld [vmem:[#allocation2 + $0xb0] sm:$0x1] }
 0x2d8   : > { %v6561_v8 = vpack.c.b16 %v6510_v17, %v6509_v53  ;;  %v5223_v38 = vsel %vm11706_vm8, %v5218_v60, %v5222_v23  ;;  %v7471_v53 = vld [vmem:[#allocation2 + $0x70] sm:$0xf]  ;;  %v6340_v4 = vrot.slane %v4867_v33, 5 }
 0x2d9   : > { %v13072_v1 = vpop.f32.mrf.mxu3  ;;  %v13076_v45 = vpop.f32.mrf.mxu0  ;;  %v5228_v5 = vrot.slane %v5227_v50, 4  ;;  %v5731_v56 = vunpack.c.l.b16 %v5223_v38 }
 0x2da   : > { %15688 = vst [vmem:[#allocation78_spill] sm:$0xff] %v13072_v1  ;;  %v4866_v1 = vld [vmem:[#allocation2 + $0xac] sm:$0xf] }
 0x2db   : > { %15689 = vst [vmem:[#allocation79_spill] sm:$0xff] %v13076_v45  ;;  %v13082_v57 = vpop.f32.mrf.mxu2  ;;  %v9121_v45 = vunpack.c.l.b16 %v8915_v21  ;;  %v6337_v12 = vrot.slane %v4866_v1, 5  ;;  %v5233_v25 = vsel %vm11706_vm8, %v5228_v5, %v5232_v44  ;;  %v5244_v50 = vshll.u32 %v4866_v1, 16  ;;  %v8746_v21 = vld [vmem:[#allocation2 + $0x6c] sm:$0xe] }
 0x2dc   : > { %v13078_v37 = vpop.f32.mrf.mxu1  ;;  %15691 = vst [vmem:[#allocation81_spill] sm:$0xff] %v13082_v57  ;;  %v11102_v60 = vrot.slane %v8746_v21, 9  ;;  %v8918_v57 = vrot.slane %v7471_v53, 5  ;;  %v10804_v5 = vrot.slane %v6129_v32, 9 }
 0x2dd   : > { %15690 = vst [vmem:[#allocation80_spill] sm:$0xff] %v13078_v37  ;;  %v13089_v48 = vpack.c.b16 %v9121_v45, %v9120_v41  ;;  %v6339_v45 = vrot.slane %v6337_v12, 4  ;;  %v5732_v41 = vunpack.c.l.b16 %v5233_v25 }
 0x2de   : > { %3497 = vmatmul.bf16.gmra.mxu3 %v11239_v15  ;;  %v5248_v15 = vshrl.u32 %v4866_v1, 16  ;;  %v8919_v1 = vsel %vm12268_vm15, %v11102_v60, %v8918_v57  ;;  %v6338_v53 = vsel %vm12268_vm15, %v10804_v5, %v6337_v12  ;;  %v11261_v12 = vld [vmem:[%s15574_s2 + $0x88] sm:$0xff] }
 0x2df   : > { %5946 = vmatmul.bf16.gmra.mxu1 %v5782_v7  ;;  %v4865_v7 = vld [vmem:[#allocation2 + $0xa8] sm:$0xf]  ;;  %v6341_v44 = vsel %vm12268_vm15, %v6339_v45, %v6340_v4  ;;  %4045 = vmatpush.bf16.msrb.mxu3 %v11261_v12 }
 0x2e0   : > { %6729 = vmatmul.bf16.gmra.mxu2 %v6561_v8  ;;  %v7472_v8 = vld [vmem:[#allocation2 + $0x74] sm:$0x1]  ;;  %v5238_v23 = vshll.u32 %v4865_v7, 16  ;;  %v6512_v21 = vunpack.c.l.b16 %v6341_v44 }
 0x2e1   : > { %v13091_v6 = vpop.f32.mrf.mxu3  ;;  %v13093_v16 = vpop.f32.mrf.mxu0  ;;  %v8921_v38 = vrot.slane %v7472_v8, 5 }
 0x2e2   : > { %15692 = vst [vmem:[#allocation82_spill] sm:$0xff] %v13091_v6  ;;  %v5240_v45 = vrot.slane %v5238_v23, 5 }
 0x2e3   : > { %15693 = vst [vmem:[#allocation83_spill] sm:$0xff] %v13093_v16  ;;  %v13101_v17 = vpop.f32.mrf.mxu2  ;;  %v5235_v16 = vshrl.u32 %v4865_v7, 16  ;;  %v5783_v7 = vpack.c.b16 %v5732_v41, %v5731_v56  ;;  %v5254_v56 = vshll.u32 %v4867_v33, 16 }
 0x2e4   : > { %v13095_v40 = vpop.f32.mrf.mxu1  ;;  %15695 = vst [vmem:[#allocation85_spill] sm:$0xff] %v13101_v17  ;;  %4701 = vmatmul.bf16.gmra.mxu0 %v11288_v26  ;;  %v5250_v17 = vrot.slane %v5248_v15, 4  ;;  %v8920_v26 = vrot.slane %v8918_v57, 4  ;;  %v11240_v15 = vld [vmem:[#allocation2 + $0x168] sm:$0xff]  ;;  %v9122_v57 = vunpack.c.l.b16 %v8919_v1 }
 0x2e5   : > { %15694 = vst [vmem:[#allocation84_spill] sm:$0xff] %v13095_v40  ;;  %v5246_v40 = vrot.slane %v5244_v50, 5  ;;  %v5237_v32 = vrot.slane %v5235_v16, 4  ;;  %v5256_v33 = vrot.slane %v5254_v56, 5 }
 0x2e6   : > { %v8922_v50 = vsel %vm12268_vm15, %v8920_v26, %v8921_v38 }
 0x2e7   : > { %v5251_v60 = vor.u32 %v5250_v17, %v5246_v40  ;;  %v9123_v8 = vunpack.c.l.b16 %v8922_v50  ;;  %v5241_v23 = vor.u32 %v5240_v45, %v5237_v32  ;;  %v4868_v17 = vld [vmem:[#allocation2 + $0xb4] sm:$0xf]  ;;  %v11289_v50 = vld [vmem:[#allocation2 + $0x120] sm:$0xff]  ;;  %v7474_v45 = vld [vmem:[#allocation2 + $0x7c] sm:$0xf] }
 0x2e8   : > { %v5259_v32 = vshrl.u32 %v4868_v17, 16  ;;  %v5262_v56 = vshll.u32 %v4868_v17, 16 }
 0x2e9   : > { %v13105_v37 = vpop.f32.mrf.mxu3  ;;  %v13109_v25 = vpop.f32.mrf.mxu0  ;;  %v13122_v16 = vpack.c.b16 %v9123_v8, %v9122_v57  ;;  %v5252_v5 = vrot.slane %v5251_v60, 4  ;;  %v4870_v57 = vld [vmem:[#allocation2 + $0xbc] sm:$0x1]  ;;  %v8747_v60 = vld [vmem:[#allocation2 + $0x78] sm:$0xe] }
 0x2ea   : > { %15696 = vst [vmem:[#allocation86_spill] sm:$0xff] %v13105_v37  ;;  %v4869_v37 = vld [vmem:[#allocation2 + $0xb8] sm:$0xf] }
 0x2eb   : > { %15697 = vst [vmem:[#allocation87_spill] sm:$0xff] %v13109_v25  ;;  %v13117_v4 = vpop.f32.mrf.mxu2  ;;  %v6511_v25 = vunpack.c.l.b16 %v6338_v53  ;;  %v6344_v44 = vrot.slane %v4869_v37, 5  ;;  %v5272_v53 = vshrl.u32 %v4869_v37, 16 }
 0x2ec   : > { %v13111_v6 = vpop.f32.mrf.mxu1  ;;  %15699 = vst [vmem:[#allocation89_spill] sm:$0xff] %v13117_v4 }
 0x2ed   : > { %15698 = vst [vmem:[#allocation88_spill] sm:$0xff] %v13111_v6  ;;  %v6562_v41 = vpack.c.b16 %v6512_v21, %v6511_v25  ;;  %v5257_v25 = vsel %vm11706_vm8, %v5252_v5, %v5256_v33  ;;  %v6346_v21 = vrot.slane %v6344_v44, 4  ;;  %v5274_v4 = vrot.slane %v5272_v53, 4 }
 0x2ee   : > { %3502 = vmatmul.bf16.gmra.mxu3 %v11240_v15  ;;  %v5242_v15 = vrot.slane %v5241_v23, 4  ;;  %v7475_v23 = vld [vmem:[#allocation2 + $0x80] sm:$0x1]  ;;  %v11103_v6 = vrot.slane %v8747_v60, 9  ;;  %v5261_v33 = vrot.slane %v5259_v32, 4 }
 0x2ef   : > { %5951 = vmatmul.bf16.gmra.mxu1 %v5783_v7  ;;  %v5268_v7 = vshll.u32 %v4869_v37, 16 }
 0x2f0   : > { %6734 = vmatmul.bf16.gmra.mxu2 %v6562_v41  ;;  %v5247_v12 = vsel %vm11706_vm8, %v5242_v15, %v5246_v40  ;;  %v6130_v41 = vld [vmem:[#allocation2 + $0xb4] sm:$0xe]  ;;  %v8928_v15 = vrot.slane %v7475_v23, 5 }
 0x2f1   : > { %v13124_v26 = vpop.f32.mrf.mxu3  ;;  %v13126_v1 = vpop.f32.mrf.mxu0  ;;  %v5270_v37 = vrot.slane %v5268_v7, 5  ;;  %v10805_v20 = vrot.slane %v6130_v41, 9  ;;  %v5278_v41 = vshll.u32 %v4870_v57, 16 }
 0x2f2   : > { %15700 = vst [vmem:[#allocation90_spill] sm:$0xff] %v13124_v26  ;;  %v5733_v26 = vunpack.c.l.b16 %v5247_v12 }
 0x2f3   : > { %15701 = vst [vmem:[#allocation91_spill] sm:$0xff] %v13126_v1  ;;  %v13130_v8 = vpop.f32.mrf.mxu2  ;;  %v6347_v1 = vrot.slane %v4870_v57, 5 }
 0x2f4   : > { %v13128_v38 = vpop.f32.mrf.mxu1  ;;  %15703 = vst [vmem:[#allocation93_spill] sm:$0xff] %v13130_v8  ;;  %4706 = vmatmul.bf16.gmra.mxu0 %v11289_v50  ;;  %v8925_v8 = vrot.slane %v7474_v45, 5  ;;  %v5264_v50 = vrot.slane %v5262_v56, 5  ;;  %v5275_v45 = vor.u32 %v5274_v4, %v5270_v37 }
 0x2f5   : > { %15702 = vst [vmem:[#allocation92_spill] sm:$0xff] %v13128_v38  ;;  %v5734_v38 = vunpack.c.l.b16 %v5257_v25  ;;  %v6348_v5 = vsel %vm12268_vm15, %v6346_v21, %v6347_v1  ;;  %v6345_v25 = vsel %vm12268_vm15, %v10805_v20, %v6344_v44  ;;  %v11241_v21 = vld [vmem:[#allocation2 + $0x174] sm:$0xff]  ;;  %v11260_v20 = vld [vmem:[%s15574_s2 + $0x80] sm:$0xff] }
 0x2f6   : > { %v8926_v40 = vsel %vm12268_vm15, %v11103_v6, %v8925_v8  ;;  %v8927_v17 = vrot.slane %v8925_v8, 4  ;;  %v6514_v12 = vunpack.c.l.b16 %v6348_v5  ;;  %v4872_v6 = vld [vmem:[#allocation2 + $0xc4] sm:$0xf]  ;;  %v6513_v23 = vunpack.c.l.b16 %v6345_v25  ;;  %4046 = vmatpush.bf16.msrb.mxu3 %v11260_v20  ;;  %v13165_v25 = vld [vmem:[#allocation2 + $0xc8] sm:$0x1] }
 0x2f7   : > { %v5784_v60 = vpack.c.b16 %v5734_v38, %v5733_v26  ;;  %v9124_v8 = vunpack.c.l.b16 %v8926_v40  ;;  %v6351_v26 = vrot.slane %v4872_v6, 5  ;;  %v5280_v38 = vrot.slane %v5278_v41, 5  ;;  %v11429_v40 = vld [vmem:[#allocation2 + $0x4] sm:$0xf] }
 0x2f8   : > { %v8929_v1 = vsel %vm12268_vm15, %v8927_v17, %v8928_v15  ;;  %v6563_v44 = vpack.c.b16 %v6514_v12, %v6513_v23  ;;  %v3624_v17 = vrot.slane %v11429_v40, 5  ;;  %v6131_v12 = vld [vmem:[#allocation2 + $0xc0] sm:$0xe]  ;;  %v5292_v41 = vshll.u32 %v4872_v6, 16 }
 0x2f9   : > { %v13138_v62 = vpop.f32.mrf.mxu3  ;;  %v13142_v7 = vpop.f32.mrf.mxu0  ;;  %v9125_v56 = vunpack.c.l.b16 %v8929_v1  ;;  %v6353_v1 = vrot.slane %v6351_v26, 4  ;;  %v10806_v40 = vrot.slane %v6131_v12, 9 }
 0x2fa   : > { %15704 = vst [vmem:[#allocation94_spill] sm:$0xff] %v13138_v62  ;;  %v13174_v62 = vrot.slane %v5292_v41, 5 }
 0x2fb   : > { %15705 = vst [vmem:[#allocation95_spill] sm:$0xff] %v13142_v7  ;;  %v13150_v32 = vpop.f32.mrf.mxu2  ;;  %v5265_v7 = vor.u32 %v5264_v50, %v5261_v33  ;;  %v13155_v4 = vpack.c.b16 %v9125_v56, %v9124_v8  ;;  %v5296_v8 = vshrl.u32 %v4872_v6, 16  ;;  %v11430_v56 = vld [vmem:[#allocation2 + $0x8] sm:$0x1] }
 0x2fc   : > { %v13144_v53 = vpop.f32.mrf.mxu1  ;;  %15707 = vst [vmem:[#allocation97_spill] sm:$0xff] %v13150_v32  ;;  %v3627_v23 = vrot.slane %v11430_v56, 5  ;;  %v8748_v32 = vld [vmem:[#allocation2 + $0x84] sm:$0xe] }
 0x2fd   : > { %15706 = vst [vmem:[#allocation96_spill] sm:$0xff] %v13144_v53  ;;  %v5276_v53 = vrot.slane %v5275_v45, 4  ;;  %v5266_v57 = vrot.slane %v5265_v7, 4  ;;  %v11290_v45 = vld [vmem:[#allocation2 + $0x12c] sm:$0xff]  ;;  %v4871_v7 = vld [vmem:[#allocation2 + $0xc0] sm:$0xf] }
 0x2fe   : > { %3507 = vmatmul.bf16.gmra.mxu3 %v11241_v21  ;;  %v5298_v6 = vrot.slane %v5296_v8, 4 }
 0x2ff   : > { %5956 = vmatmul.bf16.gmra.mxu1 %v5784_v60  ;;  %v5281_v50 = vsel %vm11706_vm8, %v5276_v53, %v5280_v38  ;;  %v5271_v60 = vsel %vm11706_vm8, %v5266_v57, %v5270_v37  ;;  %v3626_v53 = vrot.slane %v3624_v17, 4  ;;  %v5283_v57 = vshrl.u32 %v4871_v7, 16 }
 0x300   : > { %6739 = vmatmul.bf16.gmra.mxu2 %v6563_v44  ;;  %v5736_v20 = vunpack.c.l.b16 %v5281_v50  ;;  %v6354_v44 = vrot.slane %v13165_v25, 5  ;;  %v5735_v38 = vunpack.c.l.b16 %v5271_v60  ;;  %v11104_v60 = vrot.slane %v8748_v32, 9 }
 0x301   : > { %v13157_v5 = vpop.f32.mrf.mxu3  ;;  %v13159_v15 = vpop.f32.mrf.mxu0  ;;  %v5299_v32 = vor.u32 %v5298_v6, %v13174_v62 }
 0x302   : > { %15708 = vst [vmem:[#allocation98_spill] sm:$0xff] %v13157_v5  ;;  %v6355_v37 = vsel %vm12268_vm15, %v6353_v1, %v6354_v44  ;;  %v5785_v50 = vpack.c.b16 %v5736_v20, %v5735_v38  ;;  %v3523_v1 = vld [vmem:[#allocation2] sm:$0xe]  ;;  %v5285_v44 = vrot.slane %v5283_v57, 4 }
 0x303   : > { %15709 = vst [vmem:[#allocation99_spill] sm:$0xff] %v13159_v15  ;;  %v13169_v21 = vpop.f32.mrf.mxu2  ;;  %v7477_v15 = vld [vmem:[#allocation2 + $0x88] sm:$0xf]  ;;  %v6516_v3 = vunpack.c.l.b16 %v6355_v37  ;;  %v10487_v42 = vrot.slane %v3523_v1, 9  ;;  %v11242_v38 = vld [vmem:[#allocation2 + $0x180] sm:$0xff] }
 0x304   : > { %v13161_v33 = vpop.f32.mrf.mxu1  ;;  %15711 = vst [vmem:[#allocation101_spill] sm:$0xff] %v13169_v21  ;;  %4711 = vmatmul.bf16.gmra.mxu0 %v11290_v45  ;;  %v7478_v21 = vld [vmem:[#allocation2 + $0x8c] sm:$0x1]  ;;  %v8932_v5 = vrot.slane %v7477_v15, 5  ;;  %v6352_v45 = vsel %vm12268_vm15, %v10806_v40, %v6351_v26 }
 0x305   : > { %15710 = vst [vmem:[#allocation100_spill] sm:$0xff] %v13161_v33  ;;  %v5286_v33 = vshll.u32 %v4871_v7, 16  ;;  %v3628_v7 = vsel %vm12268_vm15, %v3626_v53, %v3627_v23  ;;  %v8935_v41 = vrot.slane %v7478_v21, 5  ;;  %v4875_v23 = vld [vmem:[#allocation2 + $0xe8] sm:$0xf]  ;;  %v3625_v21 = vsel %vm12268_vm15, %v10487_v42, %v3624_v17 }
 0x306   : > { %v8934_v15 = vrot.slane %v8932_v5, 4  ;;  %v8933_v20 = vsel %vm12268_vm15, %v11104_v60, %v8932_v5  ;;  %v3864_v26 = vunpack.c.l.b16 %v3628_v7  ;;  %v3863_v53 = vunpack.c.l.b16 %v3625_v21  ;;  %v11363_v5 = vld [vmem:[%s15574_s2 + $0x1b8] sm:$0xff] }
 0x307   : > { %v5288_v8 = vrot.slane %v5286_v33, 5  ;;  %v5302_v33 = vshll.u32 %v13165_v25, 16  ;;  %v9126_v57 = vunpack.c.l.b16 %v8933_v20  ;;  %v6358_v7 = vrot.slane %v4875_v23, 5  ;;  %7216 = vmatpush.bf16.msra.mxu3 %v11363_v5  ;;  %v11371_v21 = vld [vmem:[%s15574_s2 + $0x1f8] sm:$0xff] }
 0x308   : > { %v8936_v40 = vsel %vm12268_vm15, %v8934_v15, %v8935_v41  ;;  %v13199_v15 = vpack.c.b16 %v3864_v26, %v3863_v53  ;;  %v5320_v26 = vshrl.u32 %v4875_v23, 16  ;;  %v8749_v53 = vld [vmem:[#allocation2 + $0x90] sm:$0xe]  ;;  %8506 = vmatpush.bf16.msra.mxu0 %v11371_v21 }
 0x309   : > { %v13176_v56 = vpop.f32.mrf.mxu3  ;;  %v13180_v12 = vpop.f32.mrf.mxu0  ;;  %v9127_v6 = vunpack.c.l.b16 %v8936_v40  ;;  %v5289_v1 = vor.u32 %v5288_v8, %v5285_v44  ;;  %v5304_v41 = vrot.slane %v5302_v33, 5  ;;  %v4876_v40 = vld [vmem:[#allocation2 + $0xec] sm:$0x1]  ;;  %v6360_v44 = vrot.slane %v6358_v7, 4  ;;  %v4874_v8 = vld [vmem:[#allocation2 + $0xe4] sm:$0xf] }
 0x30a   : > { %15712 = vst [vmem:[#allocation102_spill] sm:$0xff] %v13176_v56  ;;  %v11379_v33 = vld [vmem:[%s15574_s2 + $0x238] sm:$0xff] }
 0x30b   : > { %15713 = vst [vmem:[#allocation103_spill] sm:$0xff] %v13180_v12  ;;  %v13191_v37 = vpop.f32.mrf.mxu2  ;;  %v6515_v12 = vunpack.c.l.b16 %v6352_v45  ;;  %v13201_v45 = vpack.c.b16 %v9127_v6, %v9126_v57  ;;  %v5290_v20 = vrot.slane %v5289_v1, 4  ;;  %v6361_v6 = vrot.slane %v4876_v40, 5  ;;  %9284 = vmatpush.bf16.msra.mxu1 %v11379_v33 }
 0x30c   : > { %v13182_v27 = vpop.f32.mrf.mxu1  ;;  %15715 = vst [vmem:[#allocation105_spill] sm:$0xff] %v13191_v37 }
 0x30d   : > { %15714 = vst [vmem:[#allocation104_spill] sm:$0xff] %v13182_v27  ;;  %v6564_v60 = vpack.c.b16 %v6516_v3, %v6515_v12  ;;  %v6132_v3 = vld [vmem:[#allocation2 + $0xe4] sm:$0xe]  ;;  %v5295_v5 = vsel %vm11706_vm8, %v5290_v20, %v13174_v62  ;;  %v6362_v37 = vsel %vm12268_vm15, %v6360_v44, %v6361_v6  ;;  %v5322_v27 = vrot.slane %v5320_v26, 4 }
 0x30e   : > { %3512 = vmatmul.bf16.gmra.mxu3 %v11242_v38  ;;  %15716 = vst [vmem:[#allocation106_spill] sm:$0xff] %v13201_v45  ;;  %v11291_v38 = vld [vmem:[#allocation2 + $0x138] sm:$0xff]  ;;  %v10807_v57 = vrot.slane %v6132_v3, 9  ;;  %v5737_v62 = vunpack.c.l.b16 %v5295_v5  ;;  %v6518_v44 = vunpack.c.l.b16 %v6362_v37 }
 0x30f   : > { %5961 = vmatmul.bf16.gmra.mxu1 %v5785_v50  ;;  %v5300_v50 = vrot.slane %v5299_v32, 4  ;;  %v5316_v32 = vshll.u32 %v4875_v23, 16 }
 0x310   : > { %6744 = vmatmul.bf16.gmra.mxu2 %v6564_v60  ;;  %v7480_v60 = vld [vmem:[#allocation2 + $0x94] sm:$0xf] }
 0x311   : > { %v13203_v42 = vpop.f32.mrf.mxu3  ;;  %v13205_v17 = vpop.f32.mrf.mxu0  ;;  %v5305_v12 = vsel %vm11706_vm8, %v5300_v50, %v5304_v41  ;;  %v5307_v50 = vshrl.u32 %v4874_v8, 16  ;;  %v5310_v41 = vshll.u32 %v4874_v8, 16 }
 0x312   : > { %15717 = vst [vmem:[#allocation107_spill] sm:$0xff] %v13203_v42  ;;  %v5738_v23 = vunpack.c.l.b16 %v5305_v12  ;;  %v11105_v42 = vrot.slane %v8749_v53, 9  ;;  %v6359_v12 = vsel %vm12268_vm15, %v10807_v57, %v6358_v7  ;;  %v5326_v7 = vshll.u32 %v4876_v40, 16 }
 0x313   : > { %15718 = vst [vmem:[#allocation108_spill] sm:$0xff] %v13205_v17  ;;  %v13220_v1 = vpop.f32.mrf.mxu2  ;;  %v8939_v17 = vrot.slane %v7480_v60, 5  ;;  %v5309_v26 = vrot.slane %v5307_v50, 4  ;;  %v5312_v53 = vrot.slane %v5310_v41, 5 }
 0x314   : > { %v13207_v25 = vpop.f32.mrf.mxu1  ;;  %4716 = vmatmul.bf16.gmra.mxu0 %v11291_v38  ;;  %15720 = vst [vmem:[#allocation110_spill] sm:$0xff] %v13220_v1  ;;  %v7481_v38 = vld [vmem:[#allocation2 + $0x98] sm:$0x1]  ;;  %v5786_v60 = vpack.c.b16 %v5738_v23, %v5737_v62  ;;  %v4878_v1 = vld [vmem:[#allocation2 + $0xf4] sm:$0xf]  ;;  %v5328_v62 = vrot.slane %v5326_v7, 5 }
 0x315   : > { %15719 = vst [vmem:[#allocation109_spill] sm:$0xff] %v13207_v25  ;;  %v5318_v25 = vrot.slane %v5316_v32, 5  ;;  %v8940_v8 = vsel %vm12268_vm15, %v11105_v42, %v8939_v17  ;;  %v8941_v21 = vrot.slane %v8939_v17, 4  ;;  %v8942_v33 = vrot.slane %v7481_v38, 5  ;;  %v11243_v32 = vld [vmem:[#allocation2 + $0x18c] sm:$0xff] }
 0x316   : > { %v5313_v17 = vor.u32 %v5312_v53, %v5309_v26  ;;  %v6365_v37 = vrot.slane %v4878_v1, 5  ;;  %v5344_v40 = vshrl.u32 %v4878_v1, 16 }
 0x317   : > { %v5323_v6 = vor.u32 %v5322_v27, %v5318_v25  ;;  %v8943_v5 = vsel %vm12268_vm15, %v8941_v21, %v8942_v33  ;;  %v5340_v21 = vshll.u32 %v4878_v1, 16 }
 0x318   : > { %v6367_v33 = vrot.slane %v6365_v37, 4 }
 0x319   : > { %v13224_v56 = vpop.f32.mrf.mxu3  ;;  %v13226_v20 = vpop.f32.mrf.mxu0  ;;  %v5324_v23 = vrot.slane %v5323_v6, 4  ;;  %v13250_v6 = vrot.slane %v5340_v21, 5 }
 0x31a   : > { %15721 = vst [vmem:[#allocation111_spill] sm:$0xff] %v13224_v56  ;;  %v9129_v56 = vunpack.c.l.b16 %v8943_v5  ;;  %v5346_v5 = vrot.slane %v5344_v40, 4 }
 0x31b   : > { %15722 = vst [vmem:[#allocation112_spill] sm:$0xff] %v13226_v20  ;;  %v6517_v20 = vunpack.c.l.b16 %v6359_v12  ;;  %v13238_v38 = vpop.f32.mrf.mxu2  ;;  %v11292_v12 = vld [vmem:[#allocation2 + $0x144] sm:$0xff] }
 0x31c   : > { %v13228_v3 = vpop.f32.mrf.mxu1  ;;  %15725 = vst [vmem:[#allocation115_spill] sm:$0xff] %v13238_v38 }
 0x31d   : > { %15723 = vst [vmem:[#allocation113_spill] sm:$0xff] %v13228_v3  ;;  %v9128_v3 = vunpack.c.l.b16 %v8940_v8  ;;  %v6565_v57 = vpack.c.b16 %v6518_v44, %v6517_v20  ;;  %v4879_v8 = vld [vmem:[#allocation2 + $0xf8] sm:$0x1]  ;;  %v5314_v20 = vrot.slane %v5313_v17, 4  ;;  %v7483_v17 = vld [vmem:[#allocation2 + $0xa0] sm:$0xf] }
 0x31e   : > { %3517 = vmatmul.bf16.gmra.mxu3 %v11243_v32  ;;  %v6368_v32 = vrot.slane %v4879_v8, 5 }
 0x31f   : > { %5966 = vmatmul.bf16.gmra.mxu1 %v5786_v60  ;;  %v13236_v42 = vpack.c.b16 %v9129_v56, %v9128_v3  ;;  %v5329_v56 = vsel %vm11706_vm8, %v5324_v23, %v5328_v62  ;;  %v6133_v3 = vld [vmem:[#allocation2 + $0xf0] sm:$0xe]  ;;  %v5319_v44 = vsel %vm11706_vm8, %v5314_v20, %v5318_v25  ;;  %v7484_v20 = vld [vmem:[#allocation2 + $0xa4] sm:$0x1] }
 0x320   : > { %6749 = vmatmul.bf16.gmra.mxu2 %v6565_v57  ;;  %v4877_v60 = vld [vmem:[#allocation2 + $0xf0] sm:$0xf]  ;;  %v5740_v26 = vunpack.c.l.b16 %v5329_v56  ;;  %v10808_v53 = vrot.slane %v6133_v3, 9  ;;  %v6369_v1 = vsel %vm12268_vm15, %v6367_v33, %v6368_v32  ;;  %v5739_v62 = vunpack.c.l.b16 %v5319_v44 }
 0x321   : > { %15724 = vst [vmem:[#allocation114_spill] sm:$0xff] %v13236_v42  ;;  %v13240_v50 = vpop.f32.mrf.mxu3  ;;  %v13242_v27 = vpop.f32.mrf.mxu0  ;;  %v5331_v7 = vshrl.u32 %v4877_v60, 16  ;;  %v5334_v57 = vshll.u32 %v4877_v60, 16  ;;  %v6520_v56 = vunpack.c.l.b16 %v6369_v1  ;;  %v5347_v3 = vor.u32 %v5346_v5, %v13250_v6  ;;  %v11431_v44 = vld [vmem:[#allocation2 + $0x10] sm:$0xf] }
 0x322   : > { %15726 = vst [vmem:[#allocation116_spill] sm:$0xff] %v13240_v50  ;;  %v5787_v40 = vpack.c.b16 %v5740_v26, %v5739_v62  ;;  %v8946_v33 = vrot.slane %v7483_v17, 5  ;;  %v8750_v5 = vld [vmem:[#allocation2 + $0x9c] sm:$0xe] }
 0x323   : > { %15727 = vst [vmem:[#allocation117_spill] sm:$0xff] %v13242_v27  ;;  %v13262_v21 = vpop.f32.mrf.mxu2  ;;  %v5333_v32 = vrot.slane %v5331_v7, 4  ;;  %v5336_v38 = vrot.slane %v5334_v57, 5  ;;  %v5348_v26 = vrot.slane %v5347_v3, 4  ;;  %v13277_v3 = vld [vmem:[#allocation2 + $0x104] sm:$0x1] }
 0x324   : > { %v13244_v41 = vpop.f32.mrf.mxu1  ;;  %4721 = vmatmul.bf16.gmra.mxu0 %v11292_v12  ;;  %v6366_v12 = vsel %vm12268_vm15, %v10808_v53, %v6365_v37  ;;  %15732 = vst [vmem:[#allocation122_spill] sm:$0xff] %v13262_v21  ;;  %v3631_v37 = vrot.slane %v11431_v44, 5  ;;  %v5350_v53 = vshll.u32 %v4879_v8, 16  ;;  %v3524_v21 = vld [vmem:[#allocation2 + $0xc] sm:$0xe]  ;;  %v11293_v44 = vld [vmem:[#allocation2 + $0x150] sm:$0xff] }
 0x325   : > { %15728 = vst [vmem:[#allocation118_spill] sm:$0xff] %v13244_v41  ;;  %v6519_v60 = vunpack.c.l.b16 %v6366_v12  ;;  %v13265_v41 = vld [vmem:[#allocation2 + $0x100] sm:$0xf]  ;;  %v5337_v57 = vor.u32 %v5336_v38, %v5333_v32 }
 0x326   : > { %v6372_v1 = vrot.slane %v13265_v41, 5  ;;  %v3633_v62 = vrot.slane %v3631_v37, 4  ;;  %v5352_v12 = vrot.slane %v5350_v53, 5  ;;  %v5368_v32 = vshrl.u32 %v13265_v41, 16 }
 0x327   : > { %v5338_v53 = vrot.slane %v5337_v57, 4 }
 0x328   : > { %v6374_v38 = vrot.slane %v6372_v1, 4 }
 0x329   : > { %v13254_v23 = vpop.f32.mrf.mxu3  ;;  %v13258_v27 = vpop.f32.mrf.mxu0 }
 0x32a   : > { %15729 = vst [vmem:[#allocation119_spill] sm:$0xff] %v13254_v23  ;;  %v8949_v23 = vrot.slane %v7484_v20, 5 }
 0x32b   : > { %15730 = vst [vmem:[#allocation120_spill] sm:$0xff] %v13258_v27  ;;  %v8948_v27 = vrot.slane %v8946_v33, 4 }
 0x32c   : > { %v13260_v25 = vpop.f32.mrf.mxu1 }
 0x32d   : > { %15731 = vst [vmem:[#allocation121_spill] sm:$0xff] %v13260_v25  ;;  %v6566_v25 = vpack.c.b16 %v6520_v56, %v6519_v60  ;;  %v8950_v7 = vsel %vm12268_vm15, %v8948_v27, %v8949_v23  ;;  %v11106_v60 = vrot.slane %v8750_v5, 9  ;;  %v5353_v27 = vsel %vm11706_vm8, %v5348_v26, %v5352_v12  ;;  %v4880_v23 = vld [vmem:[#allocation2 + $0xfc] sm:$0xf] }
 0x32e   : > { %4047 = vmatmul.bf16.vlgmr.msrb.gmra.mxu3 %v13199_v15  ;;  %v10488_v15 = vrot.slane %v3524_v21, 9  ;;  %v13285_v21 = vpop.f32.mrf.mxu2  ;;  %v6134_v26 = vld [vmem:[#allocation2 + $0xfc] sm:$0xe]  ;;  %v6375_v12 = vrot.slane %v13277_v3, 5  ;;  %v5742_v57 = vunpack.c.l.b16 %v5353_v27  ;;  %v5355_v50 = vshrl.u32 %v4880_v23, 16 }
 0x32f   : > { %5971 = vmatmul.bf16.gmra.mxu1 %v5787_v40  ;;  %v11432_v40 = vld [vmem:[#allocation2 + $0x14] sm:$0x1]  ;;  %15736 = vst [vmem:[#allocation126_spill] sm:$0xff] %v13285_v21 }
 0x330   : > { %6754 = vmatmul.bf16.gmra.mxu2 %v6566_v25  ;;  %v3634_v56 = vrot.slane %v11432_v40, 5  ;;  %v5364_v25 = vshll.u32 %v13265_v41, 16  ;;  %v3632_v5 = vsel %vm12268_vm15, %v10488_v15, %v3631_v37  ;;  %v5343_v41 = vsel %vm11706_vm8, %v5338_v53, %v13250_v6 }
 0x331   : > { %v13271_v17 = vpop.f32.mrf.mxu3  ;;  %v13273_v8 = vpop.f32.mrf.mxu0  ;;  %v5370_v37 = vrot.slane %v5368_v32, 4  ;;  %v5741_v18 = vunpack.c.l.b16 %v5343_v41 }
 0x332   : > { %15733 = vst [vmem:[#allocation123_spill] sm:$0xff] %v13271_v17  ;;  %v3635_v40 = vsel %vm12268_vm15, %v3633_v62, %v3634_v56  ;;  %v13297_v21 = vrot.slane %v5364_v25, 5  ;;  %v10809_v56 = vrot.slane %v6134_v26, 9  ;;  %v8751_v17 = vld [vmem:[#allocation2 + $0xa8] sm:$0xe] }
 0x333   : > { %15734 = vst [vmem:[#allocation124_spill] sm:$0xff] %v13273_v8  ;;  %v8947_v8 = vsel %vm12268_vm15, %v11106_v60, %v8946_v33  ;;  %v5358_v33 = vshll.u32 %v4880_v23, 16  ;;  %v7486_v60 = vld [vmem:[#allocation2 + $0xac] sm:$0xf]  ;;  %v3866_v62 = vunpack.c.l.b16 %v3635_v40  ;;  %v5788_v40 = vpack.c.b16 %v5742_v57, %v5741_v18 }
 0x334   : > { %v13275_v20 = vpop.f32.mrf.mxu1  ;;  %4726 = vmatmul.bf16.gmra.mxu0 %v11293_v44  ;;  %v6376_v44 = vsel %vm12268_vm15, %v6374_v38, %v6375_v12  ;;  %v9130_v15 = vunpack.c.l.b16 %v8947_v8  ;;  %v8953_v27 = vrot.slane %v7486_v60, 5  ;;  %v6373_v38 = vsel %vm12268_vm15, %v10809_v56, %v6372_v1  ;;  %v3525_v56 = vld [vmem:[#allocation2 + $0x18] sm:$0xe] }
 0x335   : > { %15735 = vst [vmem:[#allocation125_spill] sm:$0xff] %v13275_v20  ;;  %v9131_v20 = vunpack.c.l.b16 %v8950_v7  ;;  %v3865_v7 = vunpack.c.l.b16 %v3632_v5  ;;  %v6522_v25 = vunpack.c.l.b16 %v6376_v44  ;;  %v5357_v8 = vrot.slane %v5355_v50, 4 }
 0x336   : > { %v5360_v32 = vrot.slane %v5358_v33, 5  ;;  %v5371_v26 = vor.u32 %v5370_v37, %v13297_v21  ;;  %v11107_v12 = vrot.slane %v8751_v17, 9  ;;  %v8955_v5 = vrot.slane %v8953_v27, 4  ;;  %v13315_v57 = vpop.f32.mrf.mxu2 }
 0x337   : > { %v13301_v6 = vpack.c.b16 %v9131_v20, %v9130_v15  ;;  %v3928_v41 = vpack.c.b16 %v3866_v62, %v3865_v7  ;;  %v8956_v20 = vrot.slane %v7487_v61, 5  ;;  %v6521_v60 = vunpack.c.l.b16 %v6373_v38  ;;  %v11433_v15 = vld [vmem:[#allocation2 + $0x1c] sm:$0xf]  ;;  %15741 = vst [vmem:[#allocation131_spill] sm:$0xff] %v13315_v57 }
 0x338   : > { %v8954_v1 = vsel %vm12268_vm15, %v11107_v12, %v8953_v27  ;;  %v5361_v50 = vor.u32 %v5360_v32, %v5357_v8  ;;  %v5372_v33 = vrot.slane %v5371_v26, 4  ;;  %v11434_v8 = vld [vmem:[#allocation2 + $0x20] sm:$0x1]  ;;  %v13323_v12 = vld [vmem:[#allocation2 + $0x110] sm:$0x1] }
 0x339   : > { %v13299_v28 = vpop.f32.mrf.mxu3  ;;  %15738 = vst [vmem:[#allocation128_spill] sm:$0xff] %v13301_v6  ;;  %v13303_v23 = vpop.f32.mrf.mxu0  ;;  %v8957_v18 = vsel %vm12268_vm15, %v8955_v5, %v8956_v20  ;;  %v6567_v17 = vpack.c.b16 %v6522_v25, %v6521_v60  ;;  %v9132_v37 = vunpack.c.l.b16 %v8954_v1  ;;  %v3641_v32 = vrot.slane %v11434_v8, 5  ;;  %v11294_v26 = vld [vmem:[#allocation2 + $0x15c] sm:$0xff]  ;;  %v4883_v20 = vld [vmem:[#allocation2 + $0x108] sm:$0xf] }
 0x33a   : > { %15737 = vst [vmem:[#allocation127_spill] sm:$0xff] %v13299_v28  ;;  %v4884_v28 = vld [vmem:[#allocation2 + $0x10c] sm:$0xf]  ;;  %v9133_v61 = vunpack.c.l.b16 %v8957_v18  ;;  %v6135_v1 = vld [vmem:[#allocation2 + $0x108] sm:$0xe] }
 0x33b   : > { %15739 = vst [vmem:[#allocation129_spill] sm:$0xff] %v13303_v23  ;;  %v3638_v23 = vrot.slane %v11433_v15, 5  ;;  %v6379_v44 = vrot.slane %v4884_v28, 5  ;;  %v5388_v60 = vshll.u32 %v4884_v28, 16  ;;  %v5392_v15 = vshrl.u32 %v4884_v28, 16 }
 0x33c   : > { %v13305_v53 = vpop.f32.mrf.mxu1  ;;  %v13325_v25 = vpack.c.b16 %v9133_v61, %v9132_v37  ;;  %v5379_v37 = vshrl.u32 %v4883_v20, 16  ;;  %v7489_v8 = vld [vmem:[#allocation2 + $0xb8] sm:$0xf]  ;;  %v10810_v28 = vrot.slane %v6135_v1, 9 }
 0x33d   : > { %15740 = vst [vmem:[#allocation130_spill] sm:$0xff] %v13305_v53  ;;  %v5374_v53 = vshll.u32 %v13277_v3, 16  ;;  %v3640_v3 = vrot.slane %v3638_v23, 4  ;;  %v13352_v6 = vld [vmem:[#allocation2 + $0x118] sm:$0xf] }
 0x33e   : > { %4052 = vmatmul.bf16.gmra.mxu3 %v3928_v41  ;;  %15745 = vst [vmem:[#allocation135_spill] sm:$0xff] %v13325_v25  ;;  %v6381_v41 = vrot.slane %v6379_v44, 4 }
 0x33f   : > { %5976 = vmatmul.bf16.gmra.mxu1 %v5788_v40  ;;  %v5376_v7 = vrot.slane %v5374_v53, 5  ;;  %v5362_v40 = vrot.slane %v5361_v50, 4  ;;  %v10489_v53 = vrot.slane %v3525_v56, 9  ;;  %v3642_v18 = vsel %vm12268_vm15, %v3640_v3, %v3641_v32 }
 0x340   : > { %6759 = vmatmul.bf16.gmra.mxu2 %v6567_v17  ;;  %v6382_v17 = vrot.slane %v13323_v12, 5  ;;  %v5394_v3 = vrot.slane %v5392_v15, 4  ;;  %v3868_v32 = vunpack.c.l.b16 %v3642_v18  ;;  %v5381_v15 = vrot.slane %v5379_v37, 4 }
 0x341   : > { %v13317_v62 = vpop.f32.mrf.mxu3  ;;  %v13319_v38 = vpop.f32.mrf.mxu0  ;;  %v5377_v5 = vsel %vm11706_vm8, %v5372_v33, %v5376_v7  ;;  %v5367_v50 = vsel %vm11706_vm8, %v5362_v40, %v13297_v21  ;;  %v3639_v61 = vsel %vm12268_vm15, %v10489_v53, %v3638_v23  ;;  %v5382_v7 = vshll.u32 %v4883_v20, 16  ;;  %v8752_v21 = vld [vmem:[#allocation2 + $0xb4] sm:$0xe] }
 0x342   : > { %15742 = vst [vmem:[#allocation132_spill] sm:$0xff] %v13317_v62  ;;  %v5744_v33 = vunpack.c.l.b16 %v5377_v5  ;;  %v6383_v56 = vsel %vm12268_vm15, %v6381_v41, %v6382_v17  ;;  %v13341_v40 = vpop.f32.mrf.mxu2  ;;  %v3867_v23 = vunpack.c.l.b16 %v3639_v61  ;;  %v6380_v5 = vsel %vm12268_vm15, %v10810_v28, %v6379_v44 }
 0x343   : > { %15743 = vst [vmem:[#allocation133_spill] sm:$0xff] %v13319_v38  ;;  %v5743_v38 = vunpack.c.l.b16 %v5367_v50  ;;  %v8960_v20 = vrot.slane %v7489_v8, 5  ;;  %v5384_v18 = vrot.slane %v5382_v7, 5  ;;  %v11108_v17 = vrot.slane %v8752_v21, 9  ;;  %v3526_v21 = vld [vmem:[#allocation2 + $0x24] sm:$0xe] }
 0x344   : > { %v13321_v27 = vpop.f32.mrf.mxu1  ;;  %4731 = vmatmul.bf16.gmra.mxu0 %v11294_v26  ;;  %v13339_v26 = vrot.slane %v5388_v60, 5  ;;  %15746 = vst [vmem:[#allocation136_spill] sm:$0xff] %v13341_v40  ;;  %v6524_v60 = vunpack.c.l.b16 %v6383_v56  ;;  %v3929_v25 = vpack.c.b16 %v3868_v32, %v3867_v23  ;;  %v6523_v44 = vunpack.c.l.b16 %v6380_v5 }
 0x345   : > { %15744 = vst [vmem:[#allocation134_spill] sm:$0xff] %v13321_v27  ;;  %v7490_v27 = vld [vmem:[#allocation2 + $0xbc] sm:$0x1]  ;;  %v5789_v41 = vpack.c.b16 %v5744_v33, %v5743_v38  ;;  %v8962_v62 = vrot.slane %v8960_v20, 4  ;;  %v5398_v8 = vshll.u32 %v13323_v12, 16  ;;  %v8961_v38 = vsel %vm12268_vm15, %v11108_v17, %v8960_v20 }
 0x346   : > { %v5395_v50 = vor.u32 %v5394_v3, %v13339_v26  ;;  %v8963_v40 = vrot.slane %v7490_v27, 5  ;;  %v11362_v27 = vld [vmem:[%s15574_s2 + $0x1b0] sm:$0xff]  ;;  %v6568_v7 = vpack.c.b16 %v6524_v60, %v6523_v44  ;;  %v6386_v56 = vrot.slane %v13352_v6, 5  ;;  %v13369_v20 = vld [vmem:[#allocation2 + $0x11c] sm:$0x1] }
 0x347   : > { %7217 = vmatpush.bf16.msra.mxu3 %v11362_v27  ;;  %v9134_v12 = vunpack.c.l.b16 %v8961_v38  ;;  %v5400_v23 = vrot.slane %v5398_v8, 5  ;;  %v10490_v44 = vrot.slane %v3526_v21, 9  ;;  %v4886_v38 = vld [vmem:[#allocation2 + $0x114] sm:$0xf]  ;;  %v5416_v27 = vshrl.u32 %v13352_v6, 16 }
 0x348   : > { %v8964_v33 = vsel %vm12268_vm15, %v8962_v62, %v8963_v40  ;;  %v5396_v28 = vrot.slane %v5395_v50, 4  ;;  %v11436_v40 = vld [vmem:[#allocation2 + $0x2c] sm:$0x1]  ;;  %v6388_v17 = vrot.slane %v6386_v56, 4  ;;  %v7492_v21 = vld [vmem:[#allocation2 + $0xc4] sm:$0xf] }
 0x349   : > { %v13343_v57 = vpop.f32.mrf.mxu3  ;;  %v13347_v53 = vpop.f32.mrf.mxu0  ;;  %v9135_v37 = vunpack.c.l.b16 %v8964_v33  ;;  %v3648_v5 = vrot.slane %v11436_v40, 5  ;;  %v5412_v33 = vshll.u32 %v13352_v6, 16  ;;  %v5403_v40 = vshrl.u32 %v4886_v38, 16 }
 0x34a   : > { %15747 = vst [vmem:[#allocation137_spill] sm:$0xff] %v13343_v57  ;;  %v11435_v57 = vld [vmem:[#allocation2 + $0x28] sm:$0xf]  ;;  %v13373_v60 = vpop.f32.mrf.mxu2  ;;  %v5401_v50 = vsel %vm11706_vm8, %v5396_v28, %v5400_v23  ;;  %v11370_v28 = vld [vmem:[%s15574_s2 + $0x1f0] sm:$0xff] }
 0x34b   : > { %15748 = vst [vmem:[#allocation138_spill] sm:$0xff] %v13347_v53  ;;  %v3645_v61 = vrot.slane %v11435_v57, 5  ;;  %v5385_v57 = vor.u32 %v5384_v18, %v5381_v15  ;;  %v11295_v15 = vld [vmem:[#allocation2 + $0x168] sm:$0xff]  ;;  %v5746_v6 = vunpack.c.l.b16 %v5401_v50  ;;  %8507 = vmatpush.bf16.msra.mxu0 %v11370_v28  ;;  %v13395_v53 = vrot.slane %v5412_v33, 5  ;;  %v11437_v50 = vld [vmem:[#allocation2 + $0x34] sm:$0xf] }
 0x34c   : > { %v13349_v1 = vpop.f32.mrf.mxu1  ;;  %15754 = vst [vmem:[#allocation144_spill] sm:$0xff] %v13373_v60  ;;  %v7493_v60 = vld [vmem:[#allocation2 + $0xc8] sm:$0x1]  ;;  %v5405_v33 = vrot.slane %v5403_v40, 4 }
 0x34d   : > { %15749 = vst [vmem:[#allocation139_spill] sm:$0xff] %v13349_v1  ;;  %v3647_v3 = vrot.slane %v3645_v61, 4  ;;  %v5386_v18 = vrot.slane %v5385_v57, 4  ;;  %v6389_v57 = vrot.slane %v13369_v20, 5 }
 0x34e   : > { %4057 = vmatmul.bf16.gmra.mxu3 %v3929_v25 }
 0x34f   : > { %5981 = vmatmul.bf16.gmra.mxu1 %v5789_v41  ;;  %v13371_v41 = vpack.c.b16 %v9135_v37, %v9134_v12  ;;  %v3649_v8 = vsel %vm12268_vm15, %v3647_v3, %v3648_v5  ;;  %v5391_v37 = vsel %vm11706_vm8, %v5386_v18, %v13339_v26  ;;  %v11378_v3 = vld [vmem:[%s15574_s2 + $0x230] sm:$0xff]  ;;  %v3646_v12 = vsel %vm12268_vm15, %v10490_v44, %v3645_v61 }
 0x350   : > { %6764 = vmatmul.bf16.gmra.mxu2 %v6568_v7  ;;  %v6136_v7 = vld [vmem:[#allocation2 + $0x114] sm:$0xe]  ;;  %v3870_v23 = vunpack.c.l.b16 %v3649_v8  ;;  %v6390_v26 = vsel %vm12268_vm15, %v6388_v17, %v6389_v57  ;;  %v5406_v5 = vshll.u32 %v4886_v38, 16  ;;  %9285 = vmatpush.bf16.msra.mxu1 %v11378_v3  ;;  %v5745_v18 = vunpack.c.l.b16 %v5391_v37 }
 0x351   : > { %v13363_v32 = vpop.f32.mrf.mxu3  ;;  %v13365_v62 = vpop.f32.mrf.mxu0  ;;  %15753 = vst [vmem:[#allocation143_spill] sm:$0xff] %v13371_v41  ;;  %v3869_v61 = vunpack.c.l.b16 %v3646_v12  ;;  %v3652_v44 = vrot.slane %v11437_v50, 5  ;;  %v8967_v8 = vrot.slane %v7492_v21, 5  ;;  %v6526_v37 = vunpack.c.l.b16 %v6390_v26 }
 0x352   : > { %15750 = vst [vmem:[#allocation140_spill] sm:$0xff] %v13363_v32  ;;  %v5790_v38 = vpack.c.b16 %v5746_v6, %v5745_v18  ;;  %v5408_v28 = vrot.slane %v5406_v5, 5  ;;  %v8970_v3 = vrot.slane %v7493_v60, 5  ;;  %v13408_v50 = vpop.f32.mrf.mxu2  ;;  %v4890_v6 = vld [vmem:[#allocation2 + $0x124] sm:$0xf]  ;;  %v5422_v26 = vshll.u32 %v13369_v20, 16 }
 0x353   : > { %15751 = vst [vmem:[#allocation141_spill] sm:$0xff] %v13365_v62  ;;  %v10811_v62 = vrot.slane %v6136_v7, 9  ;;  %v3930_v41 = vpack.c.b16 %v3870_v23, %v3869_v61  ;;  %v6393_v18 = vrot.slane %v4890_v6, 5  ;;  %v11296_v20 = vld [vmem:[#allocation2 + $0x174] sm:$0xff] }
 0x354   : > { %v13367_v25 = vpop.f32.mrf.mxu1  ;;  %4736 = vmatmul.bf16.gmra.mxu0 %v11295_v15  ;;  %v8753_v15 = vld [vmem:[#allocation2 + $0xc0] sm:$0xe]  ;;  %15758 = vst [vmem:[#allocation148_spill] sm:$0xff] %v13408_v50  ;;  %v5409_v60 = vor.u32 %v5408_v28, %v5405_v33  ;;  %v4891_v28 = vld [vmem:[#allocation2 + $0x128] sm:$0x1] }
 0x355   : > { %15752 = vst [vmem:[#allocation142_spill] sm:$0xff] %v13367_v25  ;;  %v5418_v25 = vrot.slane %v5416_v27, 4  ;;  %v6387_v57 = vsel %vm12268_vm15, %v10811_v62, %v6386_v56  ;;  %v11109_v7 = vrot.slane %v8753_v15, 9  ;;  %v8969_v27 = vrot.slane %v8967_v8, 4 }
 0x356   : > { %v3654_v62 = vrot.slane %v3652_v44, 4  ;;  %v5410_v33 = vrot.slane %v5409_v60, 4 }
 0x357   : > { %v5419_v12 = vor.u32 %v5418_v25, %v13395_v53  ;;  %v8968_v21 = vsel %vm12268_vm15, %v11109_v7, %v8967_v8  ;;  %v8971_v56 = vsel %vm12268_vm15, %v8969_v27, %v8970_v3  ;;  %v3527_v25 = vld [vmem:[#allocation2 + $0x30] sm:$0xe]  ;;  %v11438_v8 = vld [vmem:[#allocation2 + $0x38] sm:$0x1]  ;;  %v5424_v27 = vrot.slane %v5422_v26, 5 }
 0x358   : > { %v9136_v23 = vunpack.c.l.b16 %v8968_v21  ;;  %v9137_v5 = vunpack.c.l.b16 %v8971_v56  ;;  %v4889_v21 = vld [vmem:[#allocation2 + $0x120] sm:$0xf]  ;;  %v5436_v56 = vshll.u32 %v4890_v6, 16  ;;  %v5415_v26 = vsel %vm11706_vm8, %v5410_v33, %v13395_v53 }
 0x359   : > { %v13397_v1 = vpop.f32.mrf.mxu3  ;;  %v13399_v32 = vpop.f32.mrf.mxu0  ;;  %v5420_v15 = vrot.slane %v5419_v12, 4  ;;  %v6395_v12 = vrot.slane %v6393_v18, 4 }
 0x35a   : > { %15755 = vst [vmem:[#allocation145_spill] sm:$0xff] %v13397_v1 }
 0x35b   : > { %15756 = vst [vmem:[#allocation146_spill] sm:$0xff] %v13399_v32  ;;  %v6525_v32 = vunpack.c.l.b16 %v6387_v57  ;;  %v13415_v57 = vpack.c.b16 %v9137_v5, %v9136_v23  ;;  %v5425_v3 = vsel %vm11706_vm8, %v5420_v15, %v5424_v27  ;;  %v6137_v23 = vld [vmem:[#allocation2 + $0x120] sm:$0xe]  ;;  %v5430_v15 = vshll.u32 %v4889_v21, 16 }
 0x35c   : > { %v13401_v17 = vpop.f32.mrf.mxu1  ;;  %v10812_v27 = vrot.slane %v6137_v23, 9 }
 0x35d   : > { %15757 = vst [vmem:[#allocation147_spill] sm:$0xff] %v13401_v17  ;;  %v6569_v40 = vpack.c.b16 %v6526_v37, %v6525_v32  ;;  %v10491_v32 = vrot.slane %v3527_v25, 9  ;;  %v6396_v25 = vrot.slane %v4891_v28, 5 }
 0x35e   : > { %4062 = vmatmul.bf16.gmra.mxu3 %v3930_v41  ;;  %15760 = vst [vmem:[#allocation150_spill] sm:$0xff] %v13415_v57 }
 0x35f   : > { %5986 = vmatmul.bf16.gmra.mxu1 %v5790_v38  ;;  %v3655_v38 = vrot.slane %v11438_v8, 5  ;;  %v3653_v5 = vsel %vm12268_vm15, %v10491_v32, %v3652_v44  ;;  %v5748_v8 = vunpack.c.l.b16 %v5425_v3  ;;  %v5747_v44 = vunpack.c.l.b16 %v5415_v26  ;;  %v11439_v3 = vld [vmem:[#allocation2 + $0x40] sm:$0xf]  ;;  %v4893_v26 = vld [vmem:[#allocation2 + $0x130] sm:$0xf] }
 0x360   : > { %6769 = vmatmul.bf16.gmra.mxu2 %v6569_v40  ;;  %v5440_v40 = vshrl.u32 %v4890_v6, 16  ;;  %v6397_v6 = vsel %vm12268_vm15, %v6395_v12, %v6396_v25  ;;  %v3871_v33 = vunpack.c.l.b16 %v3653_v5  ;;  %v5432_v12 = vrot.slane %v5430_v15, 5  ;;  %v11369_v5 = vld [vmem:[%s15574_s2 + $0x1e8] sm:$0xff] }
 0x361   : > { %v13413_v61 = vpop.f32.mrf.mxu3  ;;  %v13417_v7 = vpop.f32.mrf.mxu0  ;;  %v3656_v37 = vsel %vm12268_vm15, %v3654_v62, %v3655_v38  ;;  %v5427_v38 = vshrl.u32 %v4889_v21, 16  ;;  %v3659_v21 = vrot.slane %v11439_v3, 5  ;;  %v5791_v23 = vpack.c.b16 %v5748_v8, %v5747_v44  ;;  %v3528_v3 = vld [vmem:[#allocation2 + $0x3c] sm:$0xe]  ;;  %8508 = vmatpush.bf16.msra.mxu0 %v11369_v5 }
 0x362   : > { %15759 = vst [vmem:[#allocation149_spill] sm:$0xff] %v13413_v61  ;;  %v13430_v62 = vpop.f32.mrf.mxu2  ;;  %v3872_v60 = vunpack.c.l.b16 %v3656_v37  ;;  %v6394_v37 = vsel %vm12268_vm15, %v10812_v27, %v6393_v18  ;;  %v5460_v5 = vshll.u32 %v4893_v26, 16 }
 0x363   : > { %15761 = vst [vmem:[#allocation151_spill] sm:$0xff] %v13417_v7  ;;  %v5442_v7 = vrot.slane %v5440_v40, 4  ;;  %v5429_v17 = vrot.slane %v5427_v38, 4  ;;  %v6527_v25 = vunpack.c.l.b16 %v6394_v37  ;;  %v3661_v18 = vrot.slane %v3659_v21, 4  ;;  %v11297_v37 = vld [vmem:[#allocation2 + $0x180] sm:$0xff] }
 0x364   : > { %v13419_v41 = vpop.f32.mrf.mxu1  ;;  %4741 = vmatmul.bf16.gmra.mxu0 %v11296_v20  ;;  %15763 = vst [vmem:[#allocation153_spill] sm:$0xff] %v13430_v62  ;;  %v13434_v20 = vrot.slane %v5436_v56, 5  ;;  %v6528_v62 = vunpack.c.l.b16 %v6397_v6  ;;  %v3931_v56 = vpack.c.b16 %v3872_v60, %v3871_v33  ;;  %v6400_v6 = vrot.slane %v4893_v26, 5 }
 0x365   : > { %15762 = vst [vmem:[#allocation152_spill] sm:$0xff] %v13419_v41  ;;  %v5433_v27 = vor.u32 %v5432_v12, %v5429_v17  ;;  %v13458_v12 = vld [vmem:[#allocation2 + $0x134] sm:$0x1] }
 0x366   : > { %v5443_v40 = vor.u32 %v5442_v7, %v13434_v20  ;;  %v11440_v7 = vld [vmem:[#allocation2 + $0x44] sm:$0x1] }
 0x367   : > { %v3662_v15 = vrot.slane %v11440_v7, 5  ;;  %v5464_v7 = vshrl.u32 %v4893_v26, 16 }
 0x368   : > { %v5444_v8 = vrot.slane %v5443_v40, 4  ;;  %v6402_v40 = vrot.slane %v6400_v6, 4 }
 0x369   : > { %v13436_v41 = vpop.f32.mrf.mxu3  ;;  %v13438_v32 = vpop.f32.mrf.mxu0  ;;  %v3663_v17 = vsel %vm12268_vm15, %v3661_v18, %v3662_v15 }
 0x36a   : > { %15764 = vst [vmem:[#allocation154_spill] sm:$0xff] %v13436_v41  ;;  %v13448_v38 = vpop.f32.mrf.mxu2  ;;  %v3874_v15 = vunpack.c.l.b16 %v3663_v17 }
 0x36b   : > { %15765 = vst [vmem:[#allocation155_spill] sm:$0xff] %v13438_v32  ;;  %v5446_v32 = vshll.u32 %v4891_v28, 16 }
 0x36c   : > { %v13440_v53 = vpop.f32.mrf.mxu1  ;;  %15767 = vst [vmem:[#allocation157_spill] sm:$0xff] %v13448_v38 }
 0x36d   : > { %15766 = vst [vmem:[#allocation156_spill] sm:$0xff] %v13440_v53  ;;  %v6570_v53 = vpack.c.b16 %v6528_v62, %v6527_v25  ;;  %v5448_v33 = vrot.slane %v5446_v32, 5  ;;  %v10492_v62 = vrot.slane %v3528_v3, 9  ;;  %v4892_v25 = vld [vmem:[#allocation2 + $0x12c] sm:$0xf] }
 0x36e   : > { %4067 = vmatmul.bf16.gmra.mxu3 %v3931_v56  ;;  %v11368_v56 = vld [vmem:[%s15574_s2 + $0x1e0] sm:$0xff]  ;;  %v6138_v32 = vld [vmem:[#allocation2 + $0x12c] sm:$0xe]  ;;  %v5454_v26 = vshll.u32 %v4892_v25, 16 }
 0x36f   : > { %5991 = vmatmul.bf16.gmra.mxu1 %v5791_v23  ;;  %v5434_v23 = vrot.slane %v5433_v27, 4  ;;  %v3660_v3 = vsel %vm12268_vm15, %v10492_v62, %v3659_v21  ;;  %v6403_v27 = vrot.slane %v13458_v12, 5  ;;  %8509 = vmatpush.bf16.msra.mxu0 %v11368_v56  ;;  %v13476_v21 = vrot.slane %v5460_v5, 5 }
 0x370   : > { %6774 = vmatmul.bf16.gmra.mxu2 %v6570_v53  ;;  %v5449_v53 = vsel %vm11706_vm8, %v5444_v8, %v5448_v33  ;;  %v11367_v8 = vld [vmem:[%s15574_s2 + $0x1d8] sm:$0xff]  ;;  %v5466_v62 = vrot.slane %v5464_v7, 4  ;;  %v3873_v50 = vunpack.c.l.b16 %v3660_v3 }
 0x371   : > { %v13450_v60 = vpop.f32.mrf.mxu3  ;;  %v13452_v44 = vpop.f32.mrf.mxu0  ;;  %v5439_v18 = vsel %vm11706_vm8, %v5434_v23, %v13434_v20  ;;  %v5750_v33 = vunpack.c.l.b16 %v5449_v53  ;;  %v11441_v53 = vld [vmem:[#allocation2 + $0x4c] sm:$0xf]  ;;  %v13492_v3 = vld [vmem:[#allocation2 + $0x13c] sm:$0xf] }
 0x372   : > { %15768 = vst [vmem:[#allocation158_spill] sm:$0xff] %v13450_v60  ;;  %v5749_v20 = vunpack.c.l.b16 %v5439_v18  ;;  %v13489_v5 = vpop.f32.mrf.mxu2 }
 0x373   : > { %15769 = vst [vmem:[#allocation159_spill] sm:$0xff] %v13452_v44  ;;  %v5451_v44 = vshrl.u32 %v4892_v25, 16  ;;  %v3666_v25 = vrot.slane %v11441_v53, 5  ;;  %8510 = vmatpush.bf16.msra.mxu0 %v11367_v8  ;;  %v5470_v8 = vshll.u32 %v13458_v12, 16  ;;  %v7449_v53 = vld [vmem:[#allocation2 + $0x18] sm:$0xf] }
 0x374   : > { %v13454_v28 = vpop.f32.mrf.mxu1  ;;  %4746 = vmatmul.bf16.gmra.mxu0 %v11297_v37  ;;  %v10813_v37 = vrot.slane %v6138_v32, 9  ;;  %15774 = vst [vmem:[#allocation164_spill] sm:$0xff] %v13489_v5  ;;  %v5792_v7 = vpack.c.b16 %v5750_v33, %v5749_v20  ;;  %v11442_v20 = vld [vmem:[#allocation2 + $0x50] sm:$0x1]  ;;  %v7549_v12 = vshll.u32 %v7449_v53, 16 }
 0x375   : > { %15770 = vst [vmem:[#allocation160_spill] sm:$0xff] %v13454_v28  ;;  %v6404_v28 = vsel %vm12268_vm15, %v6402_v40, %v6403_v27  ;;  %v11366_v40 = vld [vmem:[%s15574_s2 + $0x1d0] sm:$0xff]  ;;  %v5453_v18 = vrot.slane %v5451_v44, 4  ;;  %v5456_v27 = vrot.slane %v5454_v26, 5  ;;  %v3668_v44 = vrot.slane %v3666_v25, 4 }
 0x376   : > { %v6401_v17 = vsel %vm12268_vm15, %v10813_v37, %v6400_v6  ;;  %v6530_v32 = vunpack.c.l.b16 %v6404_v28  ;;  %v11365_v37 = vld [vmem:[%s15574_s2 + $0x1c8] sm:$0xff] }
 0x377   : > { %v6529_v6 = vunpack.c.l.b16 %v6401_v17  ;;  %8511 = vmatpush.bf16.msra.mxu0 %v11366_v40  ;;  %v3529_v28 = vld [vmem:[#allocation2 + $0x48] sm:$0xe]  ;;  %v5457_v26 = vor.u32 %v5456_v27, %v5453_v18  ;;  %v7546_v17 = vshrl.u32 %v7449_v53, 16  ;;  %v13501_v40 = vld [vmem:[#allocation2 + $0xf4] sm:$0xf]  ;;  %v11298_v18 = vld [vmem:[#allocation2 + $0x18c] sm:$0xff] }
 0x378   : > { %v11364_v53 = vld [vmem:[%s15574_s2 + $0x1c0] sm:$0xff] }
 0x379   : > { %v13478_v38 = vpop.f32.mrf.mxu3  ;;  %v13480_v23 = vpop.f32.mrf.mxu0  ;;  %v6571_v33 = vpack.c.b16 %v6530_v32, %v6529_v6  ;;  %v10493_v32 = vrot.slane %v3529_v28, 9  ;;  %v5472_v6 = vrot.slane %v5470_v8, 5  ;;  %v5458_v27 = vrot.slane %v5457_v26, 4 }
 0x37a   : > { %15771 = vst [vmem:[#allocation161_spill] sm:$0xff] %v13478_v38  ;;  %v13507_v38 = vld [vmem:[#allocation2 + $0x140] sm:$0x1]  ;;  %v5484_v8 = vshll.u32 %v13492_v3, 16  ;;  %v5488_v28 = vshrl.u32 %v13492_v3, 16  ;;  %v7551_v26 = vrot.slane %v7549_v12, 5 }
 0x37b   : > { %15772 = vst [vmem:[#allocation162_spill] sm:$0xff] %v13480_v23  ;;  %v3932_v23 = vpack.c.b16 %v3874_v15, %v3873_v50  ;;  %v6407_v50 = vrot.slane %v13492_v3, 5  ;;  %8512 = vmatpush.bf16.msra.mxu0 %v11365_v37  ;;  %v8981_v37 = vrot.slane %v13501_v40, 5  ;;  %v3667_v61 = vsel %vm12268_vm15, %v10493_v32, %v3666_v25 }
 0x37c   : > { %v13482_v56 = vpop.f32.mrf.mxu1  ;;  %v6410_v3 = vrot.slane %v13507_v38, 5  ;;  %v5490_v57 = vrot.slane %v5488_v28, 4 }
 0x37d   : > { %15773 = vst [vmem:[#allocation163_spill] sm:$0xff] %v13482_v56  ;;  %v5467_v56 = vor.u32 %v5466_v62, %v13476_v21  ;;  %v8983_v25 = vrot.slane %v8981_v37, 4 }
 0x37e   : > { %4072 = vmatmul.bf16.gmra.mxu3 %v3932_v23  ;;  %v3669_v23 = vrot.slane %v11442_v20, 5  ;;  %v6409_v20 = vrot.slane %v6407_v50, 4 }
 0x37f   : > { %5996 = vmatmul.bf16.gmra.mxu1 %v5792_v7  ;;  %v5468_v15 = vrot.slane %v5467_v56, 4  ;;  %8513 = vmatpush.bf16.msra.mxu0 %v11364_v53  ;;  %v8755_v53 = vld [vmem:[#allocation2 + $0xf0] sm:$0xe] }
 0x380   : > { %6779 = vmatmul.bf16.gmra.mxu2 %v6571_v33  ;;  %v3670_v56 = vsel %vm12268_vm15, %v3668_v44, %v3669_v23  ;;  %v6139_v33 = vld [vmem:[#allocation2 + $0x138] sm:$0xe]  ;;  %v7548_v44 = vrot.slane %v7546_v17, 4  ;;  %v11443_v23 = vld [vmem:[#allocation2 + $0x1c] sm:$0xf]  ;;  %v6411_v12 = vsel %vm12268_vm15, %v6409_v20, %v6410_v3 }
 0x381   : > { %v13499_v62 = vpop.f32.mrf.mxu3  ;;  %v13503_v7 = vpop.f32.mrf.mxu0  ;;  %v7555_v60 = vshll.u32 %v11443_v23, 16  ;;  %v7559_v41 = vshrl.u32 %v11443_v23, 16  ;;  %v3876_v1 = vunpack.c.l.b16 %v3670_v56  ;;  %v7499_v17 = vld [vmem:[#allocation2 + $0xf8] sm:$0x1]  ;;  %v13529_v23 = vrot.slane %v5484_v8, 5 }
 0x382   : > { %15775 = vst [vmem:[#allocation165_spill] sm:$0xff] %v13499_v62  ;;  %v13519_v62 = vpop.f32.mrf.mxu2  ;;  %v7552_v29 = vor.u32 %v7551_v26, %v7548_v44  ;;  %v13541_v8 = vld [vmem:[#allocation2 + $0x58] sm:$0xf]  ;;  %v8984_v3 = vrot.slane %v7499_v17, 5  ;;  %v7452_v26 = vld [vmem:[#allocation2 + $0x24] sm:$0xf] }
 0x383   : > { %15776 = vst [vmem:[#allocation166_spill] sm:$0xff] %v13503_v7  ;;  %v5473_v7 = vsel %vm11706_vm8, %v5468_v15, %v5472_v6  ;;  %v5463_v15 = vsel %vm11706_vm8, %v5458_v27, %v13476_v21  ;;  %v10814_v6 = vrot.slane %v6139_v33, 9  ;;  %v13533_v21 = vrot.slane %v7555_v60, 5  ;;  %v11445_v17 = vld [vmem:[#allocation2 + $0x20] sm:$0x1] }
 0x384   : > { %v13505_v5 = vpop.f32.mrf.mxu1  ;;  %15778 = vst [vmem:[#allocation168_spill] sm:$0xff] %v13519_v62  ;;  %4751 = vmatmul.bf16.gmra.mxu0 %v11298_v18  ;;  %v5752_v40 = vunpack.c.l.b16 %v5473_v7  ;;  %v5751_v56 = vunpack.c.l.b16 %v5463_v15  ;;  %v7561_v27 = vrot.slane %v7559_v41, 4  ;;  %v15581_v28 = vrot.slane %v13541_v8, 5 }
 0x385   : > { %15777 = vst [vmem:[#allocation167_spill] sm:$0xff] %v13505_v5  ;;  %v4895_v5 = vld [vmem:[#allocation2 + $0x138] sm:$0xf]  ;;  %v6408_v20 = vsel %vm12268_vm15, %v10814_v6, %v6407_v50  ;;  %v6532_v15 = vunpack.c.l.b16 %v6411_v12  ;;  %v5491_v42 = vor.u32 %v5490_v57, %v13529_v23  ;;  %v13547_v50 = vld [vmem:[#allocation2 + $0x148] sm:$0xf]  ;;  %v7570_v57 = vshrl.u32 %v7452_v26, 16 }
 0x386   : > { %v5475_v62 = vshrl.u32 %v4895_v5, 16  ;;  %v5478_v18 = vshll.u32 %v4895_v5, 16  ;;  %v3875_v5 = vunpack.c.l.b16 %v3667_v61  ;;  %v8985_v61 = vsel %vm12268_vm15, %v8983_v25, %v8984_v3 }
 0x387   : > { %v7562_v6 = vor.u32 %v7561_v27, %v13533_v21  ;;  %v9141_v27 = vunpack.c.l.b16 %v8985_v61 }
 0x388   : > { %v5477_v44 = vrot.slane %v5475_v62, 4  ;;  %v5480_v60 = vrot.slane %v5478_v18, 5  ;;  %v3933_v41 = vpack.c.b16 %v3876_v1, %v3875_v5  ;;  %v7565_v62 = vshll.u32 %v11445_v17, 16  ;;  %v11361_v1 = vld [vmem:[%s15574_s2 + $0x1a8] sm:$0xff] }
 0x389   : > { %v13531_v32 = vpop.f32.mrf.mxu3  ;;  %v13535_v7 = vpop.f32.mrf.mxu0  ;;  %v13561_v5 = vrot.slane %v7552_v29, 4  ;;  %7218 = vmatpush.bf16.msra.mxu3 %v11361_v1  ;;  %v11447_v17 = vld [vmem:[#allocation2 + $0x28] sm:$0xf]  ;;  %v13569_v29 = vrot.slane %v7570_v57, 4 }
 0x38a   : > { %15779 = vst [vmem:[#allocation169_spill] sm:$0xff] %v13531_v32  ;;  %v5793_v32 = vpack.c.b16 %v5752_v40, %v5751_v56  ;;  %v5494_v40 = vshll.u32 %v13507_v38, 16  ;;  %v13556_v12 = vpop.f32.mrf.mxu2  ;;  %v5481_v56 = vor.u32 %v5480_v60, %v5477_v44  ;;  %v7567_v61 = vrot.slane %v7565_v62, 5 }
 0x38b   : > { %15780 = vst [vmem:[#allocation170_spill] sm:$0xff] %v13535_v7  ;;  %v11111_v7 = vrot.slane %v8755_v53, 9  ;;  %v5492_v53 = vrot.slane %v5491_v42, 4  ;;  %v3530_v42 = vld [vmem:[#allocation2 + $0x54] sm:$0xe]  ;;  %v7583_v1 = vshrl.u32 %v11447_v17, 16 }
 0x38c   : > { %v13537_v33 = vpop.f32.mrf.mxu1  ;;  %15782 = vst [vmem:[#allocation172_spill] sm:$0xff] %v13556_v12  ;;  %v5496_v60 = vrot.slane %v5494_v40, 5  ;;  %v15787_v62 = vrot.slane %v13547_v50, 5 }
 0x38d   : > { %15781 = vst [vmem:[#allocation171_spill] sm:$0xff] %v13537_v33  ;;  %v6531_v33 = vunpack.c.l.b16 %v6408_v20  ;;  %v8982_v18 = vsel %vm12268_vm15, %v11111_v7, %v8981_v37  ;;  %v7573_v20 = vshll.u32 %v7452_v26, 16  ;;  %v7563_v7 = vrot.slane %v7562_v6, 4  ;;  %v11299_v26 = vld [vmem:[#allocation2 + $0x198] sm:$0xff] }
 0x38e   : > { %4077 = vmatmul.bf16.gmra.mxu3 %v3933_v41  ;;  %v11446_v41 = vld [vmem:[#allocation2 + $0x5c] sm:$0x1]  ;;  %v7558_v6 = vsel %vm11706_vm8, %v13561_v5, %v13533_v21  ;;  %v5497_v40 = vsel %vm11706_vm8, %v5492_v53, %v5496_v60  ;;  %v6416_v57 = vrot.slane %v15787_v62, 4 }
 0x38f   : > { %6001 = vmatmul.bf16.gmra.mxu1 %v5793_v32  ;;  %v6572_v25 = vpack.c.b16 %v6532_v15, %v6531_v33  ;;  %v3675_v32 = vrot.slane %v15581_v28, 4  ;;  %v3676_v37 = vrot.slane %v11446_v41, 5  ;;  %v7579_v33 = vshll.u32 %v11447_v17, 16  ;;  %v13573_v41 = vld [vmem:[#allocation2 + $0x14c] sm:$0x1] }
 0x390   : > { %v9140_v15 = vunpack.c.l.b16 %v8982_v18  ;;  %v5482_v28 = vrot.slane %v5481_v56, 4  ;;  %v4898_v18 = vld [vmem:[#allocation2 + $0x144] sm:$0xf]  ;;  %v5508_v17 = vshll.u32 %v13547_v50, 16  ;;  %v10494_v56 = vrot.slane %v3530_v42, 9 }
 0x391   : > { %v13563_v3 = vpop.f32.mrf.mxu3  ;;  %6784 = vmatmul.bf16.gmra.mxu2 %v6572_v25  ;;  %v13565_v12 = vpop.f32.mrf.mxu0  ;;  %v3677_v25 = vsel %vm12268_vm15, %v3675_v32, %v3676_v37  ;;  %v5512_v32 = vshrl.u32 %v13547_v50, 16  ;;  %v6140_v37 = vld [vmem:[#allocation2 + $0x144] sm:$0xe]  ;;  %v7575_v21 = vrot.slane %v7573_v20, 5  ;;  %v13589_v5 = vrot.slane %v7579_v33, 5 }
 0x392   : > { %15783 = vst [vmem:[#allocation173_spill] sm:$0xff] %v13563_v3  ;;  %v13579_v38 = vpack.c.b16 %v9141_v27, %v9140_v15  ;;  %v11377_v27 = vld [vmem:[%s15574_s2 + $0x228] sm:$0xff]  ;;  %v5487_v53 = vsel %vm11706_vm8, %v5482_v28, %v13529_v23  ;;  %v6417_v15 = vrot.slane %v13573_v41, 5  ;;  %v5499_v60 = vshrl.u32 %v4898_v18, 16  ;;  %v13606_v28 = vld [vmem:[#allocation2 + $0x100] sm:$0xf] }
 0x393   : > { %15784 = vst [vmem:[#allocation174_spill] sm:$0xff] %v13565_v12  ;;  %v7568_v12 = vsel %vm11706_vm8, %v7563_v7, %v7567_v61  ;;  %v15788_v42 = vrot.slane %v13541_v8, 5  ;;  %v3878_v20 = vunpack.c.l.b16 %v3677_v25  ;;  %v5754_v33 = vunpack.c.l.b16 %v5497_v40  ;;  %9286 = vmatpush.bf16.msra.mxu1 %v11377_v27  ;;  %v11449_v40 = vld [vmem:[#allocation2 + $0x2c] sm:$0x1] }
 0x394   : > { %v13567_v44 = vpop.f32.mrf.mxu1  ;;  %15786 = vst [vmem:[#allocation176_spill] sm:$0xff] %v13579_v38  ;;  %4756 = vmatmul.bf16.gmra.mxu0 %v11299_v26  ;;  %v5502_v26 = vshll.u32 %v4898_v18, 16  ;;  %v7585_v61 = vrot.slane %v7583_v1, 4  ;;  %v10815_v62 = vrot.slane %v6140_v37, 9  ;;  %v13604_v3 = vrot.slane %v5508_v17, 5  ;;  %v13608_v38 = vpop.f32.mrf.mxu2 }
 0x395   : > { %15785 = vst [vmem:[#allocation175_spill] sm:$0xff] %v13567_v44  ;;  %v3674_v7 = vsel %vm12268_vm15, %v10494_v56, %v15788_v42  ;;  %v6418_v44 = vsel %vm12268_vm15, %v6416_v57, %v6417_v15  ;;  %v5514_v23 = vrot.slane %v5512_v32, 4  ;;  %v5753_v8 = vunpack.c.l.b16 %v5487_v53 }
 0x396   : > { %15789 = vst [vmem:[#allocation177_spill] sm:$0xff] %v13608_v38  ;;  %v7576_v1 = vor.u32 %v7575_v21, %v13569_v29  ;;  %v7589_v56 = vshll.u32 %v11449_v40, 16  ;;  %v3877_v17 = vunpack.c.l.b16 %v3674_v7  ;;  %v15793_v32 = vrot.slane %v13547_v50, 5 }
 0x397   : > { %v5501_v15 = vrot.slane %v5499_v60, 4  ;;  %v5504_v53 = vrot.slane %v5502_v26, 5  ;;  %v5794_v42 = vpack.c.b16 %v5754_v33, %v5753_v8  ;;  %v6534_v38 = vunpack.c.l.b16 %v6418_v44  ;;  %v7455_v60 = vld [vmem:[#allocation2 + $0x30] sm:$0xf]  ;;  %v8756_v33 = vld [vmem:[#allocation2 + $0xfc] sm:$0xe] }
 0x398   : > { %v6415_v27 = vsel %vm12268_vm15, %v10815_v62, %v15793_v32  ;;  %v8988_v25 = vrot.slane %v13606_v28, 5  ;;  %v3934_v29 = vpack.c.b16 %v3878_v20, %v3877_v17  ;;  %v5515_v21 = vor.u32 %v5514_v23, %v13604_v3  ;;  %v7502_v20 = vld [vmem:[#allocation2 + $0x104] sm:$0x1]  ;;  %v11450_v28 = vld [vmem:[#allocation2 + $0x68] sm:$0x1] }
 0x399   : > { %v13610_v18 = vpop.f32.mrf.mxu3  ;;  %v13616_v37 = vpop.f32.mrf.mxu0  ;;  %v7586_v40 = vor.u32 %v7585_v61, %v13589_v5  ;;  %v8330_v7 = vunpack.c.l.b16 %v7558_v6  ;;  %v15794_v50 = vrot.slane %v13612_v14, 5  ;;  %v13629_v62 = vrot.slane %v7589_v56, 5  ;;  %v4902_v6 = vld [vmem:[#allocation2 + $0x154] sm:$0xf]  ;;  %v13634_v17 = vld [vmem:[#allocation2 + $0x158] sm:$0x1] }
 0x39a   : > { %15790 = vst [vmem:[#allocation178_spill] sm:$0xff] %v13610_v18  ;;  %v8331_v18 = vunpack.c.l.b16 %v7568_v12  ;;  %v5505_v44 = vor.u32 %v5504_v53, %v5501_v15  ;;  %v5518_v12 = vshll.u32 %v13573_v41, 16  ;;  %v13632_v26 = vrot.slane %v7576_v1, 4  ;;  %v6141_v56 = vld [vmem:[#allocation2 + $0x150] sm:$0xe] }
 0x39b   : > { %15791 = vst [vmem:[#allocation179_spill] sm:$0xff] %v13616_v37  ;;  %v6533_v37 = vunpack.c.l.b16 %v6415_v27  ;;  %v3682_v55 = vrot.slane %v15794_v50, 4  ;;  %v3683_v8 = vrot.slane %v11450_v28, 5  ;;  %v8990_v32 = vrot.slane %v8988_v25, 4 }
 0x39c   : > { %v13618_v57 = vpop.f32.mrf.mxu1  ;;  %v8394_v61 = vpack.c.b16 %v8331_v18, %v8330_v7  ;;  %v5516_v27 = vrot.slane %v5515_v21, 4  ;;  %v7587_v50 = vrot.slane %v7586_v40, 4  ;;  %v7597_v18 = vshll.u32 %v7455_v60, 16  ;;  %v13645_v19 = vpop.f32.mrf.mxu2 }
 0x39d   : > { %15792 = vst [vmem:[#allocation180_spill] sm:$0xff] %v13618_v57  ;;  %v3531_v57 = vld [vmem:[#allocation2 + $0x60] sm:$0xe]  ;;  %v6573_v23 = vpack.c.b16 %v6534_v38, %v6533_v37  ;;  %v3684_v1 = vsel %vm12268_vm15, %v3682_v55, %v3683_v8  ;;  %v4901_v38 = vld [vmem:[#allocation2 + $0x150] sm:$0xf]  ;;  %v8991_v37 = vrot.slane %v7502_v20, 5 }
 0x39e   : > { %4082 = vmatmul.bf16.gmra.mxu3 %v3934_v29  ;;  %v7594_v29 = vshrl.u32 %v7455_v60, 16  ;;  %v10495_v41 = vrot.slane %v3531_v57, 9  ;;  %v5506_v28 = vrot.slane %v5505_v44, 4  ;;  %v5520_v21 = vrot.slane %v5518_v12, 5  ;;  %15798 = vst [vmem:[#allocation184_spill] sm:$0xff] %v13645_v19 }
 0x39f   : > { %6006 = vmatmul.bf16.gmra.mxu1 %v5794_v42  ;;  %v6421_v42 = vrot.slane %v4902_v6, 5  ;;  %v6424_v45 = vrot.slane %v13634_v17, 5  ;;  %v11112_v40 = vrot.slane %v8756_v33, 9  ;;  %v5536_v57 = vshrl.u32 %v4902_v6, 16 }
 0x3a0   : > { %v8992_v55 = vsel %vm12268_vm15, %v8990_v32, %v8991_v37  ;;  %v5521_v60 = vsel %vm11706_vm8, %v5516_v27, %v5520_v21  ;;  %v5523_v8 = vshrl.u32 %v4901_v38, 16  ;;  %v7582_v44 = vsel %vm11706_vm8, %v13632_v26, %v13589_v5  ;;  %v11387_v32 = vld [vmem:[%s15575_s3 + $0x38] sm:$0xff]  ;;  %v11451_v21 = vld [vmem:[#allocation2 + $0x34] sm:$0xf] }
 0x3a1   : > { %v13636_v15 = vpop.f32.mrf.mxu3  ;;  %6789 = vmatmul.bf16.gmra.mxu2 %v6573_v23  ;;  %v13640_v53 = vpop.f32.mrf.mxu0  ;;  %v5532_v23 = vshll.u32 %v4902_v6, 16  ;;  %v6423_v20 = vrot.slane %v6421_v42, 4  ;;  %v7592_v12 = vsel %vm11706_vm8, %v7587_v50, %v13629_v62  ;;  %v7596_v33 = vrot.slane %v7594_v29, 4 }
 0x3a2   : > { %15795 = vst [vmem:[#allocation181_spill] sm:$0xff] %v13636_v15  ;;  %v10816_v15 = vrot.slane %v6141_v56, 9  ;;  %v7599_v6 = vrot.slane %v7597_v18, 5  ;;  %v15799_v27 = vrot.slane %v13612_v14, 5  ;;  %v3880_v56 = vunpack.c.l.b16 %v3684_v1  ;;  %9749 = vmatpush.bf16.msra.mxu2 %v11387_v32 }
 0x3a3   : > { %15796 = vst [vmem:[#allocation182_spill] sm:$0xff] %v13640_v53  ;;  %v5526_v53 = vshll.u32 %v4901_v38, 16  ;;  %v5511_v5 = vsel %vm11706_vm8, %v5506_v28, %v13604_v3  ;;  %v8989_v26 = vsel %vm12268_vm15, %v11112_v40, %v8988_v25  ;;  %v5756_v62 = vunpack.c.l.b16 %v5521_v60 }
 0x3a4   : > { %v13642_v7 = vpop.f32.mrf.mxu1  ;;  %8514 = vmatmul.bf16.vlgmr.msra.gmra.mxu0 %v8394_v61  ;;  %v3681_v61 = vsel %vm12268_vm15, %v10495_v41, %v15799_v27  ;;  %v6422_v50 = vsel %vm12268_vm15, %v10816_v15, %v6421_v42  ;;  %v13672_v29 = vrot.slane %v5532_v23, 5  ;;  %v5538_v38 = vrot.slane %v5536_v57, 4  ;;  %v11452_v57 = vld [vmem:[#allocation2 + $0x38] sm:$0x1]  ;;  %v13682_v27 = vld [vmem:[#allocation2 + $0x3c] sm:$0xf] }
 0x3a5   : > { %15797 = vst [vmem:[#allocation183_spill] sm:$0xff] %v13642_v7  ;;  %v6425_v14 = vsel %vm12268_vm15, %v6423_v20, %v6424_v45  ;;  %v5525_v41 = vrot.slane %v5523_v8, 4  ;;  %v5528_v1 = vrot.slane %v5526_v53, 5  ;;  %v9143_v18 = vunpack.c.l.b16 %v8992_v55 }
 0x3a6   : > { %v5755_v3 = vunpack.c.l.b16 %v5511_v5  ;;  %v7600_v28 = vor.u32 %v7599_v6, %v7596_v33  ;;  %v7603_v25 = vshll.u32 %v11451_v21, 16  ;;  %v7607_v40 = vshrl.u32 %v11451_v21, 16 }
 0x3a7   : > { %v3879_v15 = vunpack.c.l.b16 %v3681_v61  ;;  %v6535_v23 = vunpack.c.l.b16 %v6422_v50  ;;  %v7613_v32 = vshll.u32 %v11452_v57, 16  ;;  %v9142_v45 = vunpack.c.l.b16 %v8989_v26  ;;  %v11453_v61 = vld [vmem:[#allocation2 + $0x70] sm:$0xf] }
 0x3a8   : > { %v5795_v53 = vpack.c.b16 %v5756_v62, %v5755_v3  ;;  %v6536_v55 = vunpack.c.l.b16 %v6425_v14  ;;  %v5539_v20 = vor.u32 %v5538_v38, %v13672_v29  ;;  %v5542_v8 = vshll.u32 %v13634_v17, 16  ;;  %v4905_v14 = vld [vmem:[#allocation2 + $0x160] sm:$0xf]  ;;  %v6142_v3 = vld [vmem:[#allocation2 + $0x15c] sm:$0xe] }
 0x3a9   : > { %v13676_v37 = vpop.f32.mrf.mxu3  ;;  %v13678_v60 = vpop.f32.mrf.mxu0  ;;  %v3935_v33 = vpack.c.b16 %v3880_v56, %v3879_v15  ;;  %v8333_v6 = vunpack.c.l.b16 %v7592_v12  ;;  %v5529_v5 = vor.u32 %v5528_v1, %v5525_v41  ;;  %v13686_v21 = vpack.c.b16 %v9143_v18, %v9142_v45  ;;  %v4904_v45 = vld [vmem:[#allocation2 + $0x15c] sm:$0xf] }
 0x3aa   : > { %15800 = vst [vmem:[#allocation185_spill] sm:$0xff] %v13676_v37  ;;  %v3687_v50 = vrot.slane %v11453_v61, 5  ;;  %v13690_v57 = vrot.slane %v7603_v25, 5  ;;  %v7618_v26 = vshrl.u32 %v13682_v27, 16  ;;  %v8332_v62 = vunpack.c.l.b16 %v7582_v44  ;;  %v13697_v61 = vld [vmem:[#allocation2 + $0x164] sm:$0x1] }
 0x3ab   : > { %15801 = vst [vmem:[#allocation186_spill] sm:$0xff] %v13678_v60  ;;  %v13688_v60 = vpop.f32.mrf.mxu2  ;;  %v13693_v38 = vrot.slane %v7600_v28, 4  ;;  %v6574_v17 = vpack.c.b16 %v6536_v55, %v6535_v23  ;;  %v5540_v56 = vrot.slane %v5539_v20, 4  ;;  %v5544_v12 = vrot.slane %v5542_v8, 5  ;;  %v11454_v8 = vld [vmem:[#allocation2 + $0x74] sm:$0x1] }
 0x3ac   : > { %v13680_v42 = vpop.f32.mrf.mxu1  ;;  %15803 = vst [vmem:[#allocation188_spill] sm:$0xff] %v13686_v21  ;;  %v13695_v41 = vrot.slane %v7613_v32, 5  ;;  %v8395_v1 = vpack.c.b16 %v8333_v6, %v8332_v62  ;;  %v5530_v18 = vrot.slane %v5529_v5, 4  ;;  %v6428_v15 = vrot.slane %v4905_v14, 5  ;;  %v13713_v62 = vld [vmem:[#allocation2 + $0x10c] sm:$0xf] }
 0x3ad   : > { %15802 = vst [vmem:[#allocation187_spill] sm:$0xff] %v13680_v42  ;;  %v7609_v42 = vrot.slane %v7607_v40, 4  ;;  %v3532_v40 = vld [vmem:[#allocation2 + $0x6c] sm:$0xe]  ;;  %v13704_v23 = vrot.slane %v7618_v26, 4  ;;  %v5556_v6 = vshll.u32 %v4905_v14, 16 }
 0x3ae   : > { %15804 = vst [vmem:[#allocation189_spill] sm:$0xff] %v13688_v60  ;;  %4087 = vmatmul.bf16.gmra.mxu3 %v3935_v33  ;;  %v3690_v33 = vrot.slane %v11454_v8, 5  ;;  %v5560_v5 = vshrl.u32 %v4905_v14, 16  ;;  %v10817_v44 = vrot.slane %v6142_v3, 9  ;;  %v5550_v26 = vshll.u32 %v4904_v45, 16 }
 0x3af   : > { %6011 = vmatmul.bf16.gmra.mxu1 %v5795_v53  ;;  %v3689_v53 = vrot.slane %v3687_v50, 4  ;;  %v7610_v28 = vor.u32 %v7609_v42, %v13690_v57  ;;  %v5547_v42 = vshrl.u32 %v4904_v45, 16  ;;  %v10496_v7 = vrot.slane %v3532_v40, 9 }
 0x3b0   : > { %v13727_v45 = vrot.slane %v5556_v6, 5  ;;  %v5562_v40 = vrot.slane %v5560_v5, 4 }
 0x3b1   : > { %v4048_v25 = vpop.f32.mrf.mxu3  ;;  %6794 = vmatmul.bf16.gmra.mxu2 %v6574_v17  ;;  %v13709_v55 = vpop.f32.mrf.mxu0  ;;  %v5545_v17 = vsel %vm11706_vm8, %v5540_v56, %v5544_v12  ;;  %v3691_v14 = vsel %vm12268_vm15, %v3689_v53, %v3690_v33  ;;  %v7611_v8 = vrot.slane %v7610_v28, 4  ;;  %v3688_v12 = vsel %vm12268_vm15, %v10496_v7, %v3687_v50  ;;  %v11455_v33 = vld [vmem:[#allocation2 + $0x40] sm:$0xf]  ;;  %v7505_v7 = vld [vmem:[#allocation2 + $0x110] sm:$0x1] }
 0x3b2   : > { %v13707_v32 = vadd.f32 %v4048_v25, %v11888_v22  ;;  %15806 = vst [vmem:[#allocation191_spill] sm:$0xff] %v13709_v55  ;;  %v5535_v22 = vsel %vm11706_vm8, %v5530_v18, %v13672_v29  ;;  %v6430_v25 = vrot.slane %v6428_v15, 4  ;;  %v6431_v55 = vrot.slane %v13697_v61, 5 }
 0x3b3   : > { %v5758_v3 = vunpack.c.l.b16 %v5545_v17  ;;  %v13729_v29 = vpop.f32.mrf.mxu2  ;;  %v5757_v18 = vunpack.c.l.b16 %v5535_v22  ;;  %v5549_v60 = vrot.slane %v5547_v42, 4  ;;  %v5552_v53 = vrot.slane %v5550_v26, 5  ;;  %v11456_v17 = vld [vmem:[#allocation2 + $0x44] sm:$0x1] }
 0x3b4   : > { %15805 = vst [vmem:[#allocation190_spill] sm:$0xff] %v13707_v32  ;;  %v13711_v20 = vpop.f32.mrf.mxu1  ;;  %8519 = vmatmul.bf16.gmra.mxu0 %v8395_v1  ;;  %v6429_v1 = vsel %vm12268_vm15, %v10817_v44, %v6428_v15  ;;  %v3882_v28 = vunpack.c.l.b16 %v3691_v14  ;;  %v7627_v56 = vshll.u32 %v11455_v33, 16  ;;  %v7631_v19 = vshrl.u32 %v11455_v33, 16 }
 0x3b5   : > { %15807 = vst [vmem:[#allocation192_spill] sm:$0xff] %v13711_v20  ;;  %v7621_v20 = vshll.u32 %v13682_v27, 16  ;;  %v6432_v27 = vsel %vm12268_vm15, %v6430_v25, %v6431_v55  ;;  %v7616_v6 = vsel %vm11706_vm8, %v7611_v8, %v13695_v41  ;;  %v7637_v15 = vshll.u32 %v11456_v17, 16 }
 0x3b6   : > { %15808 = vst [vmem:[#allocation193_spill] sm:$0xff] %v13729_v29  ;;  %v15810_v44 = vrot.slane %v13713_v62, 5  ;;  %v3881_v22 = vunpack.c.l.b16 %v3688_v12  ;;  %v6537_v25 = vunpack.c.l.b16 %v6429_v1  ;;  %v5563_v14 = vor.u32 %v5562_v40, %v13727_v45  ;;  %v13754_v12 = vld [vmem:[#allocation2 + $0x48] sm:$0xf] }
 0x3b7   : > { %v13740_v5 = vrot.slane %v7621_v20, 5  ;;  %v5566_v33 = vshll.u32 %v13697_v61, 16  ;;  %v5796_v29 = vpack.c.b16 %v5758_v3, %v5757_v18  ;;  %v5553_v41 = vor.u32 %v5552_v53, %v5549_v60  ;;  %v3533_v3 = vld [vmem:[#allocation2 + $0x78] sm:$0xe]  ;;  %v13763_v53 = vld [vmem:[#allocation2 + $0x170] sm:$0x1] }
 0x3b8   : > { %v8997_v42 = vrot.slane %v15810_v44, 4  ;;  %v8998_v20 = vrot.slane %v7505_v7, 5  ;;  %v3936_v8 = vpack.c.b16 %v3882_v28, %v3881_v22  ;;  %v8335_v32 = vunpack.c.l.b16 %v7616_v6  ;;  %v8757_v44 = vld [vmem:[#allocation2 + $0x108] sm:$0xe] }
 0x3b9   : > { %v13735_v50 = vpop.f32.mrf.mxu3  ;;  %v13744_v26 = vpop.f32.mrf.mxu0  ;;  %v13750_v17 = vrot.slane %v7627_v56, 5  ;;  %v7633_v37 = vrot.slane %v7631_v19, 4  ;;  %v15813_v60 = vsel %vm11706_vm8, %v13693_v38, %v13690_v57  ;;  %v5564_v19 = vrot.slane %v5563_v14, 4  ;;  %v6143_v28 = vld [vmem:[#allocation2 + $0x168] sm:$0xe] }
 0x3ba   : > { %15809 = vst [vmem:[#allocation194_spill] sm:$0xff] %v13735_v50  ;;  %v6538_v50 = vunpack.c.l.b16 %v6432_v27  ;;  %v8999_v61 = vsel %vm12268_vm15, %v8997_v42, %v8998_v20  ;;  %v8334_v56 = vunpack.c.l.b16 %v15813_v60  ;;  %v5568_v40 = vrot.slane %v5566_v33, 5  ;;  %v4907_v33 = vld [vmem:[#allocation2 + $0x168] sm:$0xf] }
 0x3bb   : > { %15811 = vst [vmem:[#allocation195_spill] sm:$0xff] %v13744_v26  ;;  %v11457_v26 = vld [vmem:[#allocation2 + $0x7c] sm:$0xf]  ;;  %v5554_v1 = vrot.slane %v5553_v41, 4  ;;  %v7624_v27 = vor.u32 %v13740_v5, %v13704_v23  ;;  %v11113_v7 = vrot.slane %v8757_v44, 9  ;;  %v7634_v42 = vor.u32 %v7633_v37, %v13750_v17  ;;  %v13769_v38 = vpop.f32.mrf.mxu2 }
 0x3bc   : > { %v13746_v55 = vpop.f32.mrf.mxu1  ;;  %v3694_v21 = vrot.slane %v11457_v26, 5  ;;  %v6575_v18 = vpack.c.b16 %v6538_v50, %v6537_v25  ;;  %v8396_v6 = vpack.c.b16 %v8335_v32, %v8334_v56  ;;  %v7642_v57 = vshrl.u32 %v13754_v12, 16  ;;  %15814 = vst [vmem:[#allocation197_spill] sm:$0xff] %v13769_v38  ;;  %v11458_v25 = vld [vmem:[#allocation2 + $0x80] sm:$0x1] }
 0x3bd   : > { %15812 = vst [vmem:[#allocation196_spill] sm:$0xff] %v13746_v55  ;;  %v13752_v55 = vrot.slane %v7637_v15, 5  ;;  %v10497_v22 = vrot.slane %v3533_v3, 9  ;;  %v3697_v14 = vrot.slane %v11458_v25, 5  ;;  %v15815_v41 = vrot.slane %v13713_v62, 5 }
 0x3be   : > { %4092 = vmatmul.bf16.gmra.mxu3 %v3936_v8  ;;  %v3696_v50 = vrot.slane %v3694_v21, 4  ;;  %v5569_v20 = vsel %vm11706_vm8, %v5564_v19, %v5568_v40  ;;  %v10818_v8 = vrot.slane %v6143_v28, 9  ;;  %v6438_v44 = vrot.slane %v13763_v53, 5  ;;  %v11459_v19 = vld [vmem:[#allocation2 + $0x4c] sm:$0xf] }
 0x3bf   : > { %6016 = vmatmul.bf16.gmra.mxu1 %v5796_v29  ;;  %v4908_v29 = vld [vmem:[#allocation2 + $0x16c] sm:$0xf]  ;;  %v8996_v23 = vsel %vm12268_vm15, %v11113_v7, %v15815_v41  ;;  %v5559_v62 = vsel %vm11706_vm8, %v5554_v1, %v13727_v45  ;;  %v9145_v3 = vunpack.c.l.b16 %v8999_v61  ;;  %v5574_v7 = vshll.u32 %v4907_v33, 16 }
 0x3c0   : > { %v6435_v15 = vrot.slane %v4908_v29, 5  ;;  %v5580_v60 = vshll.u32 %v4908_v29, 16  ;;  %v5584_v56 = vshrl.u32 %v4908_v29, 16  ;;  %v3698_v25 = vsel %vm12268_vm15, %v3696_v50, %v3697_v14 }
 0x3c1   : > { %v4053_v26 = vpop.f32.mrf.mxu3  ;;  %6799 = vmatmul.bf16.gmra.mxu2 %v6575_v18  ;;  %v13778_v37 = vpop.f32.mrf.mxu0  ;;  %v7635_v41 = vrot.slane %v7634_v42, 4  ;;  %v7651_v40 = vshll.u32 %v11459_v19, 16  ;;  %v7655_v28 = vshrl.u32 %v11459_v19, 16  ;;  %v7645_v45 = vshll.u32 %v13754_v12, 16 }
 0x3c2   : > { %v13776_v32 = vadd.f32 %v4053_v26, %v11938_v24  ;;  %15816 = vst [vmem:[#allocation198_spill] sm:$0xff] %v13778_v37  ;;  %v6437_v18 = vrot.slane %v6435_v15, 4  ;;  %v5571_v24 = vshrl.u32 %v4907_v33, 16  ;;  %v9144_v26 = vunpack.c.l.b16 %v8996_v23 }
 0x3c3   : > { %v3695_v37 = vsel %vm12268_vm15, %v10497_v22, %v3694_v21  ;;  %v5759_v61 = vunpack.c.l.b16 %v5559_v62  ;;  %v6436_v1 = vsel %vm12268_vm15, %v10818_v8, %v6435_v15  ;;  %v5586_v33 = vrot.slane %v5584_v56, 4  ;;  %v13813_v56 = vld [vmem:[#allocation2 + $0x88] sm:$0xf] }
 0x3c4   : > { %v13780_v5 = vpop.f32.mrf.mxu1  ;;  %8524 = vmatmul.bf16.gmra.mxu0 %v8396_v6  ;;  %v13793_v29 = vpack.c.b16 %v9145_v3, %v9144_v26  ;;  %v13797_v6 = vrot.slane %v5580_v60, 5  ;;  %v3884_v50 = vunpack.c.l.b16 %v3698_v25  ;;  %v6439_v42 = vsel %vm12268_vm15, %v6437_v18, %v6438_v44  ;;  %v13816_v3 = vpop.f32.mrf.mxu2 }
 0x3c5   : > { %15817 = vst [vmem:[#allocation199_spill] sm:$0xff] %v13780_v5  ;;  %v5760_v5 = vunpack.c.l.b16 %v5569_v20  ;;  %v5573_v14 = vrot.slane %v5571_v24, 4  ;;  %v5576_v23 = vrot.slane %v5574_v7, 5  ;;  %v7625_v21 = vrot.slane %v7624_v27, 4 }
 0x3c6   : > { %v7640_v12 = vsel %vm11706_vm8, %v7635_v41, %v13752_v55  ;;  %v13804_v22 = vrot.slane %v7651_v40, 5  ;;  %v7657_v20 = vrot.slane %v7655_v28, 4  ;;  %v3883_v60 = vunpack.c.l.b16 %v3695_v37  ;;  %15820 = vst [vmem:[#allocation202_spill] sm:$0xff] %v13816_v3  ;;  %v11461_v28 = vld [vmem:[#allocation2 + $0x50] sm:$0x1] }
 0x3c7   : > { %v6539_v44 = vunpack.c.l.b16 %v6436_v1  ;;  %v15582_v27 = vrot.slane %v13813_v56, 5  ;;  %v5797_v18 = vpack.c.b16 %v5760_v5, %v5759_v61  ;;  %v6540_v55 = vunpack.c.l.b16 %v6439_v42  ;;  %v11360_v61 = vld [vmem:[%s15574_s2 + $0x1a0] sm:$0xff]  ;;  %v4911_v42 = vld [vmem:[#allocation2 + $0x178] sm:$0xf]  ;;  %v3541_v3 = vld [vmem:[#allocation2 + $0xf0] sm:$0xe] }
 0x3c8   : > { %v5587_v24 = vor.u32 %v5586_v33, %v13797_v6  ;;  %v5590_v7 = vshll.u32 %v13763_v53, 16  ;;  %v5577_v26 = vor.u32 %v5576_v23, %v5573_v14  ;;  %v7644_v25 = vrot.slane %v7642_v57, 4  ;;  %v6144_v23 = vld [vmem:[#allocation2 + $0x174] sm:$0xe]  ;;  %7219 = vmatpush.bf16.msra.mxu3 %v11360_v61 }
 0x3c9   : > { %v4055_v19 = vpop.f32.mrf.mxu3  ;;  %v13809_v8 = vpop.f32.mrf.mxu0  ;;  %v7630_v37 = vsel %vm11706_vm8, %v7625_v21, %v13750_v17  ;;  %v7647_v41 = vrot.slane %v7645_v45, 5  ;;  %v7658_v40 = vor.u32 %v7657_v20, %v13804_v22  ;;  %v7661_v1 = vshll.u32 %v11461_v28, 16  ;;  %v13829_v45 = vld [vmem:[#allocation2 + $0x17c] sm:$0x1]  ;;  %v7464_v61 = vld [vmem:[#allocation2 + $0x54] sm:$0xf] }
 0x3ca   : > { %v13807_v15 = vadd.f32 %v4055_v19, %v11947_v59  ;;  %15818 = vst [vmem:[#allocation200_spill] sm:$0xff] %v13809_v8  ;;  %v3937_v59 = vpack.c.b16 %v3884_v50, %v3883_v60  ;;  %v8337_v5 = vunpack.c.l.b16 %v7640_v12  ;;  %v6576_v53 = vpack.c.b16 %v6540_v55, %v6539_v44  ;;  %v11462_v12 = vld [vmem:[#allocation2 + $0x8c] sm:$0x1]  ;;  %v4910_v55 = vld [vmem:[#allocation2 + $0x174] sm:$0xf] }
 0x3cb   : > { %v3703_v57 = vrot.slane %v15582_v27, 4  ;;  %v5588_v33 = vrot.slane %v5587_v24, 4  ;;  %v5592_v50 = vrot.slane %v5590_v7, 5  ;;  %v8336_v14 = vunpack.c.l.b16 %v7630_v37  ;;  %v3534_v37 = vld [vmem:[#allocation2 + $0x84] sm:$0xe] }
 0x3cc   : > { %v13811_v62 = vpop.f32.mrf.mxu1  ;;  %v5578_v17 = vrot.slane %v5577_v26, 4  ;;  %v6442_v19 = vrot.slane %v4911_v42, 5  ;;  %v3704_v20 = vrot.slane %v11462_v12, 5  ;;  %v7648_v60 = vor.u32 %v7647_v41, %v7644_v25 }
 0x3cd   : > { %15819 = vst [vmem:[#allocation201_spill] sm:$0xff] %v13811_v62  ;;  %v7663_v44 = vrot.slane %v7661_v1, 5  ;;  %v8397_v26 = vpack.c.b16 %v8337_v5, %v8336_v14  ;;  %v5604_v28 = vshll.u32 %v4911_v42, 16  ;;  %v5608_v27 = vshrl.u32 %v4911_v42, 16  ;;  %v13846_v14 = vpop.f32.mrf.mxu2 }
 0x3ce   : > { %4097 = vmatmul.bf16.gmra.mxu3 %v3937_v59  ;;  %v5593_v25 = vsel %vm11706_vm8, %v5588_v33, %v5592_v50  ;;  %v10819_v41 = vrot.slane %v6144_v23, 9  ;;  %v6444_v1 = vrot.slane %v6442_v19, 4  ;;  %v5598_v5 = vshll.u32 %v4910_v55, 16  ;;  %15823 = vst [vmem:[#allocation205_spill] sm:$0xff] %v13846_v14 }
 0x3cf   : > { %6021 = vmatmul.bf16.gmra.mxu1 %v5797_v18  ;;  %v7659_v18 = vrot.slane %v7658_v40, 4  ;;  %v6445_v40 = vrot.slane %v13829_v45, 5  ;;  %v10498_v42 = vrot.slane %v3534_v37, 9  ;;  %v7649_v12 = vrot.slane %v7648_v60, 4 }
 0x3d0   : > { %v13853_v50 = vrot.slane %v5604_v28, 5  ;;  %v5610_v23 = vrot.slane %v5608_v27, 4  ;;  %v5762_v60 = vunpack.c.l.b16 %v5593_v25  ;;  %v6443_v37 = vsel %vm12268_vm15, %v10819_v41, %v6442_v19  ;;  %v13863_v28 = vld [vmem:[#allocation2 + $0x118] sm:$0xf] }
 0x3d1   : > { %v4058_v21 = vpop.f32.mrf.mxu3  ;;  %6804 = vmatmul.bf16.gmra.mxu2 %v6576_v53  ;;  %v13834_v24 = vpop.f32.mrf.mxu0  ;;  %v3705_v53 = vsel %vm12268_vm15, %v3703_v57, %v3704_v20  ;;  %v11376_v57 = vld [vmem:[%s15574_s2 + $0x220] sm:$0xff]  ;;  %v7664_v33 = vsel %vm11706_vm8, %v7659_v18, %v7663_v44  ;;  %v6446_v8 = vsel %vm12268_vm15, %v6444_v1, %v6445_v40  ;;  %v5600_v44 = vrot.slane %v5598_v5, 5 }
 0x3d2   : > { %v13832_v59 = vadd.f32 %v4058_v21, %v11961_v30  ;;  %15821 = vst [vmem:[#allocation203_spill] sm:$0xff] %v13834_v24  ;;  %v5583_v30 = vsel %vm11706_vm8, %v5578_v17, %v13797_v6  ;;  %v5595_v21 = vshrl.u32 %v4910_v55, 16  ;;  %v7666_v24 = vshrl.u32 %v7464_v61, 16  ;;  %9287 = vmatpush.bf16.msra.mxu1 %v11376_v57 }
 0x3d3   : > { %v7669_v6 = vshll.u32 %v7464_v61, 16  ;;  %v15824_v17 = vrot.slane %v13813_v56, 5  ;;  %v3886_v55 = vunpack.c.l.b16 %v3705_v53  ;;  %v7654_v56 = vsel %vm11706_vm8, %v7649_v12, %v13804_v22  ;;  %v11463_v53 = vld [vmem:[#allocation2 + $0x58] sm:$0xf] }
 0x3d4   : > { %v13836_v7 = vpop.f32.mrf.mxu1  ;;  %8529 = vmatmul.bf16.gmra.mxu0 %v8397_v26  ;;  %v5761_v26 = vunpack.c.l.b16 %v5583_v30  ;;  %v5597_v18 = vrot.slane %v5595_v21, 4  ;;  %v13868_v61 = vunpack.c.l.b16 %v7664_v33  ;;  %v7675_v25 = vshll.u32 %v11463_v53, 16 }
 0x3d5   : > { %15822 = vst [vmem:[#allocation204_spill] sm:$0xff] %v13836_v7  ;;  %v3702_v20 = vsel %vm12268_vm15, %v10498_v42, %v15824_v17  ;;  %v7679_v30 = vshrl.u32 %v11463_v53, 16  ;;  %v5611_v1 = vor.u32 %v5610_v23, %v13853_v50  ;;  %v5614_v21 = vshll.u32 %v13829_v45, 16  ;;  %v3535_v23 = vld [vmem:[#allocation2 + $0x90] sm:$0xe] }
 0x3d6   : > { %v3885_v40 = vunpack.c.l.b16 %v3702_v20  ;;  %v5798_v5 = vpack.c.b16 %v5762_v60, %v5761_v26  ;;  %v6541_v57 = vunpack.c.l.b16 %v6443_v37  ;;  %v6542_v22 = vunpack.c.l.b16 %v6446_v8  ;;  %v7508_v26 = vld [vmem:[#allocation2 + $0x11c] sm:$0x1]  ;;  %v13882_v60 = vpop.f32.mrf.mxu2  ;;  %v4914_v37 = vld [vmem:[#allocation2 + $0x184] sm:$0xf] }
 0x3d7   : > { %v15583_v12 = vrot.slane %v13863_v28, 5  ;;  %v5601_v17 = vor.u32 %v5600_v44, %v5597_v18  ;;  %v7668_v53 = vrot.slane %v7666_v24, 4  ;;  %v7671_v7 = vrot.slane %v7669_v6, 5  ;;  %15827 = vst [vmem:[#allocation208_spill] sm:$0xff] %v13882_v60  ;;  %v13885_v24 = vld [vmem:[#allocation2 + $0x188] sm:$0x1] }
 0x3d8   : > { %v3938_v33 = vpack.c.b16 %v3886_v55, %v3885_v40  ;;  %v13880_v62 = vrot.slane %v7675_v25, 5  ;;  %v7681_v20 = vrot.slane %v7679_v30, 4  ;;  %v5616_v45 = vrot.slane %v5614_v21, 5  ;;  %v6145_v44 = vld [vmem:[#allocation2 + $0x180] sm:$0xe] }
 0x3d9   : > { %v4060_v27 = vpop.f32.mrf.mxu3  ;;  %v13873_v19 = vpop.f32.mrf.mxu0  ;;  %v6577_v8 = vpack.c.b16 %v6542_v22, %v6541_v57  ;;  %v9004_v6 = vrot.slane %v15583_v12, 4  ;;  %v5602_v18 = vrot.slane %v5601_v17, 4  ;;  %v7672_v25 = vor.u32 %v7671_v7, %v7668_v53  ;;  %v11465_v30 = vld [vmem:[#allocation2 + $0x5c] sm:$0x1]  ;;  %v4913_v22 = vld [vmem:[#allocation2 + $0x180] sm:$0xf] }
 0x3da   : > { %v13871_v42 = vadd.f32 %v4060_v27, %v11970_v2  ;;  %15825 = vst [vmem:[#allocation206_spill] sm:$0xff] %v13873_v19  ;;  %v8338_v2 = vunpack.c.l.b16 %v7654_v56  ;;  %v11464_v27 = vld [vmem:[#allocation2 + $0x94] sm:$0xf]  ;;  %v6449_v56 = vrot.slane %v4914_v37, 5  ;;  %v7685_v40 = vshll.u32 %v11465_v30, 16 }
 0x3db   : > { %v3708_v19 = vrot.slane %v11464_v27, 5  ;;  %v10499_v21 = vrot.slane %v3535_v23, 9  ;;  %v7682_v57 = vor.u32 %v7681_v20, %v13880_v62  ;;  %v11466_v17 = vld [vmem:[#allocation2 + $0x98] sm:$0x1]  ;;  %v6452_v53 = vrot.slane %v13885_v24, 5 }
 0x3dc   : > { %v13875_v41 = vpop.f32.mrf.mxu1  ;;  %v8398_v55 = vpack.c.b16 %v13868_v61, %v8338_v2  ;;  %v9005_v61 = vrot.slane %v7508_v26, 5  ;;  %v3711_v12 = vrot.slane %v11466_v17, 5  ;;  %v10820_v23 = vrot.slane %v6145_v44, 9  ;;  %v7467_v20 = vld [vmem:[#allocation2 + $0x60] sm:$0xf] }
 0x3dd   : > { %15826 = vst [vmem:[#allocation207_spill] sm:$0xff] %v13875_v41  ;;  %v5612_v41 = vrot.slane %v5611_v1, 4  ;;  %v5632_v30 = vshrl.u32 %v4914_v37, 16  ;;  %v5622_v17 = vshll.u32 %v4913_v22, 16  ;;  %v7683_v44 = vrot.slane %v7682_v57, 4 }
 0x3de   : > { %4102 = vmatmul.bf16.gmra.mxu3 %v3938_v33  ;;  %v13902_v26 = vsel %vm12268_vm15, %v9004_v6, %v9005_v61  ;;  %v3709_v6 = vsel %vm12268_vm15, %v10499_v21, %v3708_v19  ;;  %v7690_v60 = vshrl.u32 %v7467_v20, 16  ;;  %v13920_v14 = vpop.f32.mrf.mxu2  ;;  %v7693_v21 = vshll.u32 %v7467_v20, 16 }
 0x3df   : > { %6026 = vmatmul.bf16.gmra.mxu1 %v5798_v5  ;;  %v3710_v5 = vrot.slane %v3708_v19, 4  ;;  %v5617_v7 = vsel %vm11706_vm8, %v5612_v41, %v5616_v45  ;;  %v7673_v45 = vrot.slane %v7672_v25, 4  ;;  %v5624_v57 = vrot.slane %v5622_v17, 5  ;;  %15830 = vst [vmem:[#allocation211_spill] sm:$0xff] %v13920_v14 }
 0x3e0   : > { %v5764_v61 = vunpack.c.l.b16 %v5617_v7  ;;  %v11467_v7 = vld [vmem:[#allocation2 + $0x64] sm:$0xf]  ;;  %v5638_v20 = vshll.u32 %v13885_v24, 16 }
 0x3e1   : > { %v4063_v1 = vpop.f32.mrf.mxu3  ;;  %6809 = vmatmul.bf16.gmra.mxu2 %v6577_v8  ;;  %v13893_v2 = vpop.f32.mrf.mxu0  ;;  %v5628_v8 = vshll.u32 %v4914_v37, 16  ;;  %v3712_v41 = vsel %vm12268_vm15, %v3710_v5, %v3711_v12  ;;  %v11386_v37 = vld [vmem:[%s15575_s3 + $0x30] sm:$0xff] }
 0x3e2   : > { %v13891_v33 = vadd.f32 %v4063_v1, %v11984_v39  ;;  %15828 = vst [vmem:[#allocation209_spill] sm:$0xff] %v13893_v2  ;;  %v5607_v39 = vsel %vm11706_vm8, %v5602_v18, %v13853_v50  ;;  %v6451_v1 = vrot.slane %v6449_v56, 4  ;;  %v5619_v2 = vshrl.u32 %v4913_v22, 16  ;;  %9750 = vmatpush.bf16.msra.mxu2 %v11386_v37 }
 0x3e3   : > { %v5763_v50 = vunpack.c.l.b16 %v5607_v39  ;;  %v6450_v18 = vsel %vm12268_vm15, %v10820_v23, %v6449_v56  ;;  %v5634_v22 = vrot.slane %v5632_v30, 4  ;;  %v3888_v12 = vunpack.c.l.b16 %v3712_v41 }
 0x3e4   : > { %v13895_v27 = vpop.f32.mrf.mxu1  ;;  %8534 = vmatmul.bf16.gmra.mxu0 %v8398_v55  ;;  %v13916_v55 = vrot.slane %v5628_v8, 5  ;;  %v6453_v25 = vsel %vm12268_vm15, %v6451_v1, %v6452_v53  ;;  %v5621_v5 = vrot.slane %v5619_v2, 4  ;;  %v7699_v39 = vshll.u32 %v11467_v7, 16 }
 0x3e5   : > { %15829 = vst [vmem:[#allocation210_spill] sm:$0xff] %v13895_v27  ;;  %v7687_v27 = vrot.slane %v7685_v40, 5  ;;  %v7703_v56 = vshrl.u32 %v11467_v7, 16  ;;  %v3887_v53 = vunpack.c.l.b16 %v3709_v6  ;;  %v6543_v2 = vunpack.c.l.b16 %v6450_v18  ;;  %v11468_v7 = vld [vmem:[#allocation2 + $0xa0] sm:$0xf] }
 0x3e6   : > { %v7678_v1 = vsel %vm11706_vm8, %v7673_v45, %v13880_v62  ;;  %v5799_v17 = vpack.c.b16 %v5764_v61, %v5763_v50  ;;  %v6544_v41 = vunpack.c.l.b16 %v6453_v25  ;;  %v13936_v6 = vrot.slane %v7699_v39, 5  ;;  %v3536_v62 = vld [vmem:[#allocation2 + $0x9c] sm:$0xe]  ;;  %v13938_v25 = vld [vmem:[#allocation2 + $0x194] sm:$0x1] }
 0x3e7   : > { %v7688_v40 = vsel %vm11706_vm8, %v7683_v44, %v7687_v27  ;;  %v5635_v27 = vor.u32 %v5634_v22, %v13916_v55  ;;  %v3939_v44 = vpack.c.b16 %v3888_v12, %v3887_v53  ;;  %v7705_v18 = vrot.slane %v7703_v56, 4  ;;  %v4917_v22 = vld [vmem:[#allocation2 + $0x190] sm:$0xf]  ;;  %v11469_v56 = vld [vmem:[#allocation2 + $0x68] sm:$0x1] }
 0x3e8   : > { %v8341_v37 = vunpack.c.l.b16 %v7688_v40  ;;  %v8340_v14 = vunpack.c.l.b16 %v7678_v1  ;;  %v6578_v45 = vpack.c.b16 %v6544_v41, %v6543_v2  ;;  %v5640_v50 = vrot.slane %v5638_v20, 5  ;;  %v4916_v1 = vld [vmem:[#allocation2 + $0x18c] sm:$0xf] }
 0x3e9   : > { %v4065_v19 = vpop.f32.mrf.mxu3  ;;  %v13927_v8 = vpop.f32.mrf.mxu0  ;;  %v5636_v61 = vrot.slane %v5635_v27, 4  ;;  %v7706_v39 = vor.u32 %v7705_v18, %v13936_v6  ;;  %v7709_v53 = vshll.u32 %v11469_v56, 16  ;;  %v11470_v27 = vld [vmem:[#allocation2 + $0xa4] sm:$0x1] }
 0x3ea   : > { %v13925_v23 = vadd.f32 %v4065_v19, %v11993_v10  ;;  %15831 = vst [vmem:[#allocation212_spill] sm:$0xff] %v13927_v8  ;;  %v5625_v10 = vor.u32 %v5624_v57, %v5621_v5  ;;  %v7692_v19 = vrot.slane %v7690_v60, 4  ;;  %v3715_v8 = vrot.slane %v11468_v7, 5  ;;  %v6146_v5 = vld [vmem:[#allocation2 + $0x18c] sm:$0xe] }
 0x3eb   : > { %v8399_v24 = vpack.c.b16 %v8341_v37, %v8340_v14  ;;  %v6456_v60 = vrot.slane %v4917_v22, 5  ;;  %v10500_v14 = vrot.slane %v3536_v62, 9  ;;  %v3718_v20 = vrot.slane %v11470_v27, 5  ;;  %v13949_v37 = vpop.f32.mrf.mxu2 }
 0x3ec   : > { %v13929_v30 = vpop.f32.mrf.mxu1  ;;  %v5626_v12 = vrot.slane %v5625_v10, 4  ;;  %v3717_v40 = vrot.slane %v3715_v8, 4  ;;  %15835 = vst [vmem:[#allocation216_spill] sm:$0xff] %v13949_v37  ;;  %v10821_v10 = vrot.slane %v6146_v5, 9  ;;  %v5656_v7 = vshrl.u32 %v4917_v22, 16 }
 0x3ed   : > { %15832 = vst [vmem:[#allocation213_spill] sm:$0xff] %v13929_v30  ;;  %v7695_v30 = vrot.slane %v7693_v21, 5  ;;  %v6458_v18 = vrot.slane %v6456_v60, 4  ;;  %v3716_v27 = vsel %vm12268_vm15, %v10500_v14, %v3715_v8  ;;  %v7470_v14 = vld [vmem:[#allocation2 + $0x6c] sm:$0xf] }
 0x3ee   : > { %4107 = vmatmul.bf16.gmra.mxu3 %v3939_v44  ;;  %v6459_v44 = vrot.slane %v13938_v25, 5  ;;  %v3719_v62 = vsel %vm12268_vm15, %v3717_v40, %v3718_v20 }
 0x3ef   : > { %6031 = vmatmul.bf16.gmra.mxu1 %v5799_v17  ;;  %v7696_v21 = vor.u32 %v7695_v30, %v7692_v19  ;;  %v5641_v30 = vsel %vm11706_vm8, %v5636_v61, %v5640_v50  ;;  %v5652_v19 = vshll.u32 %v4917_v22, 16  ;;  %v7707_v61 = vrot.slane %v7706_v39, 4  ;;  %v13969_v39 = vld [vmem:[#allocation2 + $0xac] sm:$0xf] }
 0x3f0   : > { %v7711_v50 = vrot.slane %v7709_v53, 5  ;;  %v6457_v22 = vsel %vm12268_vm15, %v10821_v10, %v6456_v60  ;;  %v11472_v60 = vld [vmem:[#allocation2 + $0x70] sm:$0xf]  ;;  %v7714_v53 = vshrl.u32 %v7470_v14, 16 }
 0x3f1   : > { %v4068_v57 = vpop.f32.mrf.mxu3  ;;  %6814 = vmatmul.bf16.gmra.mxu2 %v6578_v45  ;;  %v13944_v17 = vpop.f32.mrf.mxu0  ;;  %v5643_v45 = vshrl.u32 %v4916_v1, 16  ;;  %v7697_v56 = vrot.slane %v7696_v21, 4  ;;  %v7723_v20 = vshll.u32 %v11472_v60, 16 }
 0x3f2   : > { %v13942_v2 = vadd.f32 %v4068_v57, %v12015_v51  ;;  %15833 = vst [vmem:[#allocation214_spill] sm:$0xff] %v13944_v17  ;;  %v5631_v51 = vsel %vm11706_vm8, %v5626_v12, %v13916_v55  ;;  %v5646_v57 = vshll.u32 %v4916_v1, 16  ;;  %v5766_v17 = vunpack.c.l.b16 %v5641_v30 }
 0x3f3   : > { %v5765_v5 = vunpack.c.l.b16 %v5631_v51  ;;  %v5658_v55 = vrot.slane %v5656_v7, 4  ;;  %v3890_v12 = vunpack.c.l.b16 %v3719_v62  ;;  %v5645_v1 = vrot.slane %v5643_v45, 4 }
 0x3f4   : > { %v13946_v41 = vpop.f32.mrf.mxu1  ;;  %8539 = vmatmul.bf16.gmra.mxu0 %v8399_v24  ;;  %v6460_v24 = vsel %vm12268_vm15, %v6458_v18, %v6459_v44  ;;  %v5648_v40 = vrot.slane %v5646_v57, 5  ;;  %v7702_v8 = vsel %vm11706_vm8, %v7697_v56, %v13936_v6  ;;  %v7727_v30 = vshrl.u32 %v11472_v60, 16 }
 0x3f5   : > { %15834 = vst [vmem:[#allocation215_spill] sm:$0xff] %v13946_v41  ;;  %v13962_v41 = vrot.slane %v5652_v19, 5  ;;  %v3889_v7 = vunpack.c.l.b16 %v3716_v27  ;;  %v6545_v51 = vunpack.c.l.b16 %v6457_v22  ;;  %v7712_v6 = vsel %vm11706_vm8, %v7707_v61, %v7711_v50 }
 0x3f6   : > { %v5800_v18 = vpack.c.b16 %v5766_v17, %v5765_v5  ;;  %v6546_v45 = vunpack.c.l.b16 %v6460_v24  ;;  %v5662_v62 = vshll.u32 %v13938_v25, 16  ;;  %v5649_v60 = vor.u32 %v5648_v40, %v5645_v1  ;;  %v8758_v17 = vld [vmem:[#allocation2 + $0x114] sm:$0xe]  ;;  %v3537_v5 = vld [vmem:[#allocation2 + $0xa8] sm:$0xe]  ;;  %v11375_v24 = vld [vmem:[%s15574_s2 + $0x218] sm:$0xff] }
 0x3f7   : > { %v5659_v57 = vor.u32 %v5658_v55, %v13962_v41  ;;  %v3940_v56 = vpack.c.b16 %v3890_v12, %v3889_v7  ;;  %v15840_v27 = vrot.slane %v13969_v39, 5  ;;  %v7729_v61 = vrot.slane %v7727_v30, 4  ;;  %v11473_v55 = vld [vmem:[#allocation2 + $0xb0] sm:$0x1]  ;;  %v4920_v12 = vld [vmem:[#allocation2 + $0x19c] sm:$0xf]  ;;  %9288 = vmatpush.bf16.msra.mxu1 %v11375_v24 }
 0x3f8   : > { %v8342_v50 = vunpack.c.l.b16 %v7702_v8  ;;  %v3725_v25 = vrot.slane %v11473_v55, 5  ;;  %v6579_v1 = vpack.c.b16 %v6546_v45, %v6545_v51  ;;  %v13992_v7 = vld [vmem:[#allocation2 + $0x1a0] sm:$0x1]  ;;  %v7716_v30 = vrot.slane %v7714_v53, 4  ;;  %v4919_v45 = vld [vmem:[#allocation2 + $0x198] sm:$0xf] }
 0x3f9   : > { %v4070_v21 = vpop.f32.mrf.mxu3  ;;  %v13975_v19 = vpop.f32.mrf.mxu0  ;;  %v3724_v22 = vrot.slane %v15840_v27, 4  ;;  %v5660_v40 = vrot.slane %v5659_v57, 4  ;;  %v11114_v8 = vrot.slane %v8758_v17, 9  ;;  %v6466_v53 = vrot.slane %v13992_v7, 5 }
 0x3fa   : > { %v13973_v10 = vadd.f32 %v4070_v21, %v12033_v34  ;;  %15837 = vst [vmem:[#allocation218_spill] sm:$0xff] %v13975_v19  ;;  %v7717_v34 = vshll.u32 %v7470_v14, 16  ;;  %v13983_v21 = vpop.f32.mrf.mxu2  ;;  %v8343_v19 = vunpack.c.l.b16 %v7712_v6  ;;  %v5664_v14 = vrot.slane %v5662_v62, 5 }
 0x3fb   : > { %15839 = vst [vmem:[#allocation220_spill] sm:$0xff] %v13983_v21  ;;  %v6463_v6 = vrot.slane %v4920_v12, 5  ;;  %v10501_v21 = vrot.slane %v3537_v5, 9  ;;  %v3726_v37 = vsel %vm12268_vm15, %v3724_v22, %v3725_v25  ;;  %v9147_v17 = vunpack.c.l.b16 %v13902_v26 }
 0x3fc   : > { %15836 = vst [vmem:[#allocation217_spill] sm:$0xff] %v13973_v10  ;;  %v13977_v44 = vpop.f32.mrf.mxu1  ;;  %v7719_v27 = vrot.slane %v7717_v34, 5  ;;  %v8400_v55 = vpack.c.b16 %v8343_v19, %v8342_v50  ;;  %v15844_v34 = vrot.slane %v13863_v28, 5  ;;  %v5665_v22 = vsel %vm11706_vm8, %v5660_v40, %v5664_v14  ;;  %v11374_v28 = vld [vmem:[%s15574_s2 + $0x210] sm:$0xff] }
 0x3fd   : > { %15838 = vst [vmem:[#allocation219_spill] sm:$0xff] %v13977_v44  ;;  %v13987_v44 = vrot.slane %v7723_v20, 5  ;;  %v5650_v20 = vrot.slane %v5649_v60, 4  ;;  %v6465_v50 = vrot.slane %v6463_v6, 4  ;;  %v5667_v25 = vshrl.u32 %v4919_v45, 16  ;;  %9289 = vmatpush.bf16.msra.mxu1 %v11374_v28  ;;  %v15948_v10 = vld [vmem:[#allocation39_spill] sm:$0xff] }
 0x3fe   : > { %4112 = vmatmul.bf16.gmra.mxu3 %v3940_v56  ;;  %v9003_v19 = vsel %vm12268_vm15, %v11114_v8, %v15844_v34  ;;  %v5670_v24 = vshll.u32 %v4919_v45, 16  ;;  %v7720_v8 = vor.u32 %v7719_v27, %v7716_v30  ;;  %v15845_v40 = vrot.slane %v13969_v39, 5 }
 0x3ff   : > { %6036 = vmatmul.bf16.gmra.mxu1 %v5800_v18  ;;  %v6147_v18 = vld [vmem:[#allocation2 + $0x198] sm:$0xe]  ;;  %v7730_v51 = vor.u32 %v7729_v61, %v13987_v44  ;;  %v5655_v5 = vsel %vm11706_vm8, %v5650_v20, %v13962_v41  ;;  %v11373_v41 = vld [vmem:[%s15574_s2 + $0x208] sm:$0xff]  ;;  %v6467_v39 = vsel %vm12268_vm15, %v6465_v50, %v6466_v53 }
 0x400   : > { %v10822_v61 = vrot.slane %v6147_v18, 9  ;;  %v3723_v14 = vsel %vm12268_vm15, %v10501_v21, %v15845_v40  ;;  %v3892_v18 = vunpack.c.l.b16 %v3726_v37  ;;  %v5669_v21 = vrot.slane %v5667_v25, 4 }
 0x401   : > { %v4073_v56 = vpop.f32.mrf.mxu3  ;;  %6819 = vmatmul.bf16.gmra.mxu2 %v6579_v1  ;;  %v14000_v62 = vpop.f32.mrf.mxu0  ;;  %v5680_v1 = vshrl.u32 %v4920_v12, 16  ;;  %v7731_v26 = vrot.slane %v7730_v51, 4  ;;  %v5672_v37 = vrot.slane %v5670_v24, 5  ;;  %v3891_v53 = vunpack.c.l.b16 %v3723_v14  ;;  %9290 = vmatpush.bf16.msra.mxu1 %v11373_v41  ;;  %v7473_v24 = vld [vmem:[#allocation2 + $0x78] sm:$0xf] }
 0x402   : > { %v13998_v57 = vadd.f32 %v4073_v56, %v12063_v13  ;;  %15842 = vst [vmem:[#allocation222_spill] sm:$0xff] %v14000_v62  ;;  %v5676_v13 = vshll.u32 %v4920_v12, 16  ;;  %v11474_v56 = vld [vmem:[#allocation2 + $0x74] sm:$0x1]  ;;  %v5768_v62 = vunpack.c.l.b16 %v5665_v22  ;;  %v9146_v12 = vunpack.c.l.b16 %v9003_v19  ;;  %v14025_v20 = vpop.f32.mrf.mxu2 }
 0x403   : > { %v7733_v34 = vshll.u32 %v11474_v56, 16  ;;  %15846 = vst [vmem:[#allocation224_spill] sm:$0xff] %v14025_v20  ;;  %v6464_v30 = vsel %vm12268_vm15, %v10822_v61, %v6463_v6  ;;  %v5682_v51 = vrot.slane %v5680_v1, 4  ;;  %v11475_v56 = vld [vmem:[#allocation2 + $0x7c] sm:$0xf]  ;;  %v7721_v61 = vrot.slane %v7720_v8, 4 }
 0x404   : > { %15841 = vst [vmem:[#allocation221_spill] sm:$0xff] %v13998_v57  ;;  %v14002_v60 = vpop.f32.mrf.mxu1  ;;  %8544 = vmatmul.bf16.gmra.mxu0 %v8400_v55  ;;  %v5767_v55 = vunpack.c.l.b16 %v5655_v5  ;;  %v14031_v27 = vrot.slane %v5676_v13, 5  ;;  %v14033_v45 = vpack.c.b16 %v9147_v17, %v9146_v12  ;;  %v7747_v19 = vshll.u32 %v11475_v56, 16  ;;  %v11476_v8 = vld [vmem:[#allocation2 + $0xb8] sm:$0xf]  ;;  %v15939_v57 = vld [vmem:[#allocation35_spill] sm:$0xff] }
 0x405   : > { %15843 = vst [vmem:[#allocation223_spill] sm:$0xff] %v14002_v60  ;;  %v7735_v28 = vrot.slane %v7733_v34, 5  ;;  %v7751_v40 = vshrl.u32 %v11475_v56, 16  ;;  %v6547_v13 = vunpack.c.l.b16 %v6464_v30  ;;  %v6548_v25 = vunpack.c.l.b16 %v6467_v39 }
 0x406   : > { %v5801_v50 = vpack.c.b16 %v5768_v62, %v5767_v55  ;;  %v3941_v1 = vpack.c.b16 %v3892_v18, %v3891_v53  ;;  %v5673_v34 = vor.u32 %v5672_v37, %v5669_v21  ;;  %v5683_v12 = vor.u32 %v5682_v51, %v14031_v27 }
 0x407   : > { %v7736_v17 = vsel %vm11706_vm8, %v7731_v26, %v7735_v28  ;;  %v3729_v14 = vrot.slane %v11476_v8, 5  ;;  %v14049_v62 = vrot.slane %v7747_v19, 5  ;;  %v7753_v41 = vrot.slane %v7751_v40, 4 }
 0x408   : > { %v7726_v26 = vsel %vm11706_vm8, %v7721_v61, %v13987_v44  ;;  %v7738_v18 = vshrl.u32 %v7473_v24, 16  ;;  %v7741_v55 = vshll.u32 %v7473_v24, 16  ;;  %v6580_v30 = vpack.c.b16 %v6548_v25, %v6547_v13  ;;  %v3538_v13 = vld [vmem:[#allocation2 + $0xb4] sm:$0xe] }
 0x409   : > { %v4075_v22 = vpop.f32.mrf.mxu3  ;;  %v14038_v60 = vpop.f32.mrf.mxu0  ;;  %v8345_v39 = vunpack.c.l.b16 %v7736_v17  ;;  %v5674_v21 = vrot.slane %v5673_v34, 4  ;;  %v5684_v37 = vrot.slane %v5683_v12, 4  ;;  %v8344_v19 = vunpack.c.l.b16 %v7726_v26  ;;  %v11478_v12 = vld [vmem:[#allocation2 + $0x80] sm:$0x1] }
 0x40a   : > { %v14036_v5 = vadd.f32 %v4075_v22, %v12087_v63  ;;  %15848 = vst [vmem:[#allocation226_spill] sm:$0xff] %v14038_v60  ;;  %v5686_v63 = vshll.u32 %v13992_v7, 16  ;;  %v11372_v22 = vld [vmem:[%s15574_s2 + $0x200] sm:$0xff]  ;;  %v11359_v7 = vld [vmem:[%s15574_s2 + $0x198] sm:$0xff]  ;;  %v14057_v28 = vpop.f32.mrf.mxu2  ;;  %v3731_v40 = vrot.slane %v3729_v14, 4  ;;  %v7754_v44 = vor.u32 %v7753_v41, %v14049_v62 }
 0x40b   : > { %9291 = vmatpush.bf16.msra.mxu1 %v11372_v22  ;;  %7220 = vmatpush.bf16.msra.mxu3 %v11359_v7  ;;  %15850 = vst [vmem:[#allocation228_spill] sm:$0xff] %v14057_v28  ;;  %v7740_v25 = vrot.slane %v7738_v18, 4  ;;  %v7743_v17 = vrot.slane %v7741_v55, 5  ;;  %v8401_v24 = vpack.c.b16 %v8345_v39, %v8344_v19  ;;  %v5679_v22 = vsel %vm11706_vm8, %v5674_v21, %v14031_v27  ;;  %v7523_v60 = vld [vmem:[#allocation2 + $0x158] sm:$0x1] }
 0x40c   : > { %15847 = vst [vmem:[#allocation225_spill] sm:$0xff] %v14036_v5  ;;  %v14040_v6 = vpop.f32.mrf.mxu1  ;;  %v5688_v51 = vrot.slane %v5686_v63, 5  ;;  %v7757_v63 = vshll.u32 %v11478_v12, 16  ;;  %v10502_v8 = vrot.slane %v3538_v13, 9  ;;  %v7755_v26 = vrot.slane %v7754_v44, 4 }
 0x40d   : > { %15849 = vst [vmem:[#allocation227_spill] sm:$0xff] %v14040_v6  ;;  %v7744_v18 = vor.u32 %v7743_v17, %v7740_v25  ;;  %v5769_v7 = vunpack.c.l.b16 %v5679_v22  ;;  %v7517_v13 = vld [vmem:[#allocation2 + $0x140] sm:$0x1]  ;;  %v7476_v17 = vld [vmem:[#allocation2 + $0x84] sm:$0xf] }
 0x40e   : > { %4117 = vmatmul.bf16.gmra.mxu3 %v3941_v1  ;;  %v11477_v1 = vld [vmem:[#allocation2 + $0xbc] sm:$0x1]  ;;  %v3730_v55 = vsel %vm12268_vm15, %v10502_v8, %v3729_v14  ;;  %v7759_v39 = vrot.slane %v7757_v63, 5 }
 0x40f   : > { %6041 = vmatmul.bf16.gmra.mxu1 %v5801_v50  ;;  %v3732_v34 = vrot.slane %v11477_v1, 5  ;;  %v8761_v1 = vld [vmem:[#allocation2 + $0x138] sm:$0xe]  ;;  %v3893_v14 = vunpack.c.l.b16 %v3730_v55  ;;  %v7745_v63 = vrot.slane %v7744_v18, 4  ;;  %v11480_v22 = vld [vmem:[#allocation2 + $0xdc] sm:$0xf] }
 0x410   : > { %v7760_v21 = vsel %vm11706_vm8, %v7755_v26, %v7759_v39  ;;  %v11117_v8 = vrot.slane %v8761_v1, 9  ;;  %v3539_v26 = vld [vmem:[#allocation2 + $0xd8] sm:$0xe] }
 0x411   : > { %v4078_v56 = vpop.f32.mrf.mxu3  ;;  %6824 = vmatmul.bf16.gmra.mxu2 %v6580_v30  ;;  %v14063_v61 = vpop.f32.mrf.mxu0  ;;  %v3733_v41 = vsel %vm12268_vm15, %v3731_v40, %v3732_v34 }
 0x412   : > { %v14061_v53 = vadd.f32 %v4078_v56, %v12111_v46  ;;  %15852 = vst [vmem:[#allocation230_spill] sm:$0xff] %v14063_v61  ;;  %v5689_v46 = vsel %vm11706_vm8, %v5684_v37, %v5688_v51  ;;  %v7516_v56 = vld [vmem:[#allocation2 + $0x13c] sm:$0xf]  ;;  %v3894_v19 = vunpack.c.l.b16 %v3733_v41  ;;  %v11479_v37 = vld [vmem:[#allocation2 + $0x88] sm:$0xf]  ;;  %v9026_v61 = vrot.slane %v7517_v13, 5 }
 0x413   : > { %v5770_v30 = vunpack.c.l.b16 %v5689_v46  ;;  %v7771_v51 = vshll.u32 %v11479_v37, 16  ;;  %v9023_v34 = vrot.slane %v7516_v56, 5  ;;  %v3736_v46 = vrot.slane %v11480_v22, 5 }
 0x414   : > { %15851 = vst [vmem:[#allocation229_spill] sm:$0xff] %v14061_v53  ;;  %v14065_v50 = vpop.f32.mrf.mxu1  ;;  %8549 = vmatmul.bf16.gmra.mxu0 %v8401_v24  ;;  %v7775_v24 = vshrl.u32 %v11479_v37, 16  ;;  %v3942_v41 = vpack.c.b16 %v3894_v19, %v3893_v14  ;;  %v10503_v19 = vrot.slane %v3539_v26, 9  ;;  %v11481_v37 = vld [vmem:[#allocation2 + $0xe0] sm:$0x1] }
 0x415   : > { %15853 = vst [vmem:[#allocation231_spill] sm:$0xff] %v14065_v50  ;;  %v5802_v12 = vpack.c.b16 %v5770_v30, %v5769_v7  ;;  %v9025_v39 = vrot.slane %v9023_v34, 4  ;;  %v9024_v55 = vsel %vm12268_vm15, %v11117_v8, %v9023_v34  ;;  %v7765_v7 = vshll.u32 %v7476_v17, 16 }
 0x416   : > { %v14090_v18 = vrot.slane %v7771_v51, 5  ;;  %v7777_v30 = vrot.slane %v7775_v24, 4  ;;  %v3738_v1 = vrot.slane %v3736_v46, 4  ;;  %v3739_v13 = vrot.slane %v11481_v37, 5 }
 0x417   : > { %v9027_v56 = vsel %vm12268_vm15, %v9025_v39, %v9026_v61  ;;  %v3737_v61 = vsel %vm12268_vm15, %v10503_v19, %v3736_v46  ;;  %v7767_v26 = vrot.slane %v7765_v7, 5  ;;  %v8762_v46 = vld [vmem:[#allocation2 + $0x144] sm:$0xe]  ;;  %v15860_v7 = vld [vmem:[#allocation7_spill] sm:$0xff] }
 0x418   : > { %v9153_v14 = vunpack.c.l.b16 %v9027_v56  ;;  %v7778_v39 = vor.u32 %v7777_v30, %v14090_v18  ;;  %v11385_v56 = vld [vmem:[%s15575_s3 + $0x28] sm:$0xff] }
 0x419   : > { %v4080_v27 = vpop.f32.mrf.mxu3  ;;  %v14081_v44 = vpop.f32.mrf.mxu0  ;;  %9751 = vmatpush.bf16.msra.mxu2 %v11385_v56 }
 0x41a   : > { %v14079_v40 = vadd.f32 %v4080_v27, %v12129_v43  ;;  %15855 = vst [vmem:[#allocation233_spill] sm:$0xff] %v14081_v44  ;;  %v7750_v43 = vsel %vm11706_vm8, %v7745_v63, %v14049_v62  ;;  %v8347_v27 = vunpack.c.l.b16 %v7760_v21  ;;  %v7762_v44 = vshrl.u32 %v7476_v17, 16  ;;  %v15857_v63 = vld [vmem:[#allocation6_spill] sm:$0xff] }
 0x41b   : > { %v9152_v62 = vunpack.c.l.b16 %v9024_v55 }
 0x41c   : > { %15854 = vst [vmem:[#allocation232_spill] sm:$0xff] %v14079_v40  ;;  %v14083_v25 = vpop.f32.mrf.mxu1  ;;  %v7764_v24 = vrot.slane %v7762_v44, 4 }
 0x41d   : > { %15856 = vst [vmem:[#allocation234_spill] sm:$0xff] %v14083_v25  ;;  %v14101_v8 = vpack.c.b16 %v9153_v14, %v9152_v62  ;;  %v7779_v14 = vrot.slane %v7778_v39, 4 }
 0x41e   : > { %4122 = vmatmul.bf16.gmra.mxu3 %v3942_v41  ;;  %v3740_v41 = vsel %vm12268_vm15, %v3738_v1, %v3739_v13  ;;  %v7768_v37 = vor.u32 %v7767_v26, %v7764_v24  ;;  %v7520_v1 = vld [vmem:[#allocation2 + $0x14c] sm:$0x1]  ;;  %v11483_v26 = vld [vmem:[#allocation2 + $0x94] sm:$0xf] }
 0x41f   : > { %6046 = vmatmul.bf16.gmra.mxu1 %v5802_v12  ;;  %v8346_v12 = vunpack.c.l.b16 %v7750_v43  ;;  %v11482_v43 = vld [vmem:[#allocation2 + $0x8c] sm:$0x1]  ;;  %v3896_v44 = vunpack.c.l.b16 %v3740_v41  ;;  %v7795_v39 = vshll.u32 %v11483_v26, 16  ;;  %v7799_v56 = vshrl.u32 %v11483_v26, 16 }
 0x420   : > { %v7781_v55 = vshll.u32 %v11482_v43, 16  ;;  %v11118_v43 = vrot.slane %v8762_v46, 9  ;;  %v7769_v41 = vrot.slane %v7768_v37, 4  ;;  %v7522_v46 = vld [vmem:[#allocation2 + $0x154] sm:$0xf] }
 0x421   : > { %v4083_v21 = vpop.f32.mrf.mxu3  ;;  %v14099_v17 = vpop.f32.mrf.mxu0  ;;  %v8402_v51 = vpack.c.b16 %v8347_v27, %v8346_v12  ;;  %v3895_v27 = vunpack.c.l.b16 %v3737_v61  ;;  %v7519_v12 = vld [vmem:[#allocation2 + $0x148] sm:$0xf] }
 0x422   : > { %v14095_v22 = vadd.f32 %v4083_v21, %v15857_v63  ;;  %v7783_v62 = vrot.slane %v7781_v55, 5  ;;  %v9030_v61 = vrot.slane %v7519_v12, 5 }
 0x423   : > { %v3943_v63 = vpack.c.b16 %v3896_v44, %v3895_v27  ;;  %v7774_v27 = vsel %vm11706_vm8, %v7769_v41, %v14090_v18  ;;  %v11484_v44 = vld [vmem:[#allocation2 + $0xe8] sm:$0xf] }
 0x424   : > { %15858 = vst [vmem:[#allocation6_spill] sm:$0xff] %v14095_v22  ;;  %v14097_v34 = vpop.f32.mrf.mxu1  ;;  %8554 = vmatmul.bf16.gmra.mxu0 %v8402_v51  ;;  %v7479_v51 = vld [vmem:[#allocation2 + $0x90] sm:$0xf]  ;;  %v7784_v24 = vsel %vm11706_vm8, %v7779_v14, %v7783_v62  ;;  %v9031_v55 = vsel %vm12268_vm15, %v11118_v43, %v9030_v61  ;;  %v3743_v12 = vrot.slane %v11484_v44, 5  ;;  %v9037_v43 = vrot.slane %v7522_v46, 5 }
 0x425   : > { %15859 = vst [vmem:[#allocation235_spill] sm:$0xff] %v14097_v34  ;;  %v7786_v37 = vshrl.u32 %v7479_v51, 16  ;;  %v8349_v14 = vunpack.c.l.b16 %v7784_v24  ;;  %v7789_v62 = vshll.u32 %v7479_v51, 16  ;;  %v8763_v34 = vld [vmem:[#allocation2 + $0x150] sm:$0xe]  ;;  %v8348_v25 = vunpack.c.l.b16 %v7774_v27  ;;  %v15863_v51 = vld [vmem:[#allocation8_spill] sm:$0xff] }
 0x426   : > { %v11119_v50 = vrot.slane %v8763_v34, 9  ;;  %v9039_v18 = vrot.slane %v9037_v43, 4  ;;  %v3745_v44 = vrot.slane %v3743_v12, 4  ;;  %v3543_v22 = vld [vmem:[#allocation2 + $0x108] sm:$0xe] }
 0x427   : > { %v7788_v6 = vrot.slane %v7786_v37, 4 }
 0x428   : > { %v9038_v34 = vsel %vm12268_vm15, %v11119_v50, %v9037_v43 }
 0x429   : > { %v4085_v19 = vpop.f32.mrf.mxu3  ;;  %v14116_v21 = vpop.f32.mrf.mxu0 }
 0x42a   : > { %v14112_v13 = vadd.f32 %v4085_v19, %v15860_v7  ;;  %v9032_v19 = vrot.slane %v9030_v61, 4  ;;  %v9033_v7 = vrot.slane %v7520_v1, 5  ;;  %v7797_v61 = vrot.slane %v7795_v39, 5 }
 0x42b   : > { %v7801_v1 = vrot.slane %v7799_v56, 4  ;;  %v8403_v39 = vpack.c.b16 %v8349_v14, %v8348_v25  ;;  %v3540_v56 = vld [vmem:[#allocation2 + $0xe4] sm:$0xe] }
 0x42c   : > { %15861 = vst [vmem:[#allocation7_spill] sm:$0xff] %v14112_v13  ;;  %v14114_v30 = vpop.f32.mrf.mxu1  ;;  %v9034_v26 = vsel %vm12268_vm15, %v9032_v19, %v9033_v7  ;;  %v11485_v7 = vld [vmem:[#allocation2 + $0xec] sm:$0x1] }
 0x42d   : > { %15862 = vst [vmem:[#allocation236_spill] sm:$0xff] %v14114_v30  ;;  %v9154_v30 = vunpack.c.l.b16 %v9031_v55  ;;  %v7791_v55 = vrot.slane %v7789_v62, 5  ;;  %v3746_v27 = vrot.slane %v11485_v7, 5  ;;  %v7802_v46 = vor.u32 %v7801_v1, %v7797_v61 }
 0x42e   : > { %4127 = vmatmul.bf16.gmra.mxu3 %v3943_v63  ;;  %v9040_v63 = vrot.slane %v7523_v60, 5  ;;  %v9156_v60 = vunpack.c.l.b16 %v9038_v34 }
 0x42f   : > { %9292 = vmatmul.bf16.vlgmr.msra.gmra.mxu1 %v12929_v47  ;;  %v9155_v47 = vunpack.c.l.b16 %v9034_v26  ;;  %v10504_v26 = vrot.slane %v3540_v56, 9  ;;  %v7792_v14 = vor.u32 %v7791_v55, %v7788_v6  ;;  %v7803_v43 = vrot.slane %v7802_v46, 4  ;;  %v7482_v55 = vld [vmem:[#allocation2 + $0x9c] sm:$0xf]  ;;  %v11487_v46 = vld [vmem:[#allocation2 + $0xa0] sm:$0xf] }
 0x431   : > { %v4088_v41 = vpop.f32.mrf.mxu3  ;;  %v14128_v28 = vpack.c.b16 %v9155_v47, %v9154_v30  ;;  %v14135_v19 = vpop.f32.mrf.mxu0  ;;  %v9041_v30 = vsel %vm12268_vm15, %v9039_v18, %v9040_v63  ;;  %v3747_v47 = vsel %vm12268_vm15, %v3745_v44, %v3746_v27  ;;  %v3744_v50 = vsel %vm12268_vm15, %v10504_v26, %v3743_v12  ;;  %v15866_v18 = vld [vmem:[#allocation9_spill] sm:$0xff] }
 0x432   : > { %v14131_v24 = vadd.f32 %v4088_v41, %v15863_v51  ;;  %v9157_v37 = vunpack.c.l.b16 %v9041_v30  ;;  %v11486_v41 = vld [vmem:[#allocation2 + $0x98] sm:$0x1]  ;;  %v3898_v1 = vunpack.c.l.b16 %v3747_v47  ;;  %v3897_v44 = vunpack.c.l.b16 %v3744_v50  ;;  %v7525_v47 = vld [vmem:[#allocation2 + $0x160] sm:$0xf] }
 0x433   : > { %v7805_v25 = vshll.u32 %v11486_v41, 16  ;;  %v7793_v34 = vrot.slane %v7792_v14, 4  ;;  %v7819_v30 = vshll.u32 %v11487_v46, 16  ;;  %v7526_v14 = vld [vmem:[#allocation2 + $0x164] sm:$0x1]  ;;  %v9044_v50 = vrot.slane %v7525_v47, 5 }
 0x434   : > { %15864 = vst [vmem:[#allocation8_spill] sm:$0xff] %v14131_v24  ;;  %v14133_v20 = vpop.f32.mrf.mxu1  ;;  %8559 = vmatmul.bf16.gmra.mxu0 %v8403_v39  ;;  %v14143_v62 = vpack.c.b16 %v9157_v37, %v9156_v60  ;;  %v3944_v27 = vpack.c.b16 %v3898_v1, %v3897_v44  ;;  %v7823_v60 = vshrl.u32 %v11487_v46, 16  ;;  %v11488_v37 = vld [vmem:[#allocation2 + $0xf4] sm:$0xf]  ;;  %v9047_v46 = vrot.slane %v7526_v14, 5 }
 0x435   : > { %15865 = vst [vmem:[#allocation237_spill] sm:$0xff] %v14133_v20  ;;  %v7807_v7 = vrot.slane %v7805_v25, 5  ;;  %v7798_v12 = vsel %vm11706_vm8, %v7793_v34, %v7797_v61  ;;  %v3750_v26 = vrot.slane %v11488_v37, 5  ;;  %v7810_v25 = vshrl.u32 %v7482_v55, 16  ;;  %v15869_v20 = vld [vmem:[#allocation10_spill] sm:$0xff] }
 0x436   : > { %v7821_v1 = vrot.slane %v7819_v30, 5  ;;  %v9046_v61 = vrot.slane %v9044_v50, 4 }
 0x437   : > { %v7808_v6 = vsel %vm11706_vm8, %v7803_v43, %v7807_v7  ;;  %v7813_v43 = vshll.u32 %v7482_v55, 16  ;;  %v8764_v7 = vld [vmem:[#allocation2 + $0x15c] sm:$0xe]  ;;  %v7812_v47 = vrot.slane %v7810_v25, 4 }
 0x438   : > { %v8351_v41 = vunpack.c.l.b16 %v7808_v6  ;;  %v11120_v44 = vrot.slane %v8764_v7, 9  ;;  %v9048_v7 = vsel %vm12268_vm15, %v9046_v61, %v9047_v46  ;;  %v15872_v61 = vld [vmem:[#allocation11_spill] sm:$0xff] }
 0x439   : > { %v4090_v51 = vpop.f32.mrf.mxu3  ;;  %v14152_v56 = vpop.f32.mrf.mxu0 }
 0x43a   : > { %v14148_v63 = vadd.f32 %v4090_v51, %v15866_v18  ;;  %v8350_v51 = vunpack.c.l.b16 %v7798_v12  ;;  %v7825_v18 = vrot.slane %v7823_v60, 4  ;;  %v9045_v55 = vsel %vm12268_vm15, %v11120_v44, %v9044_v50  ;;  %v11489_v12 = vld [vmem:[#allocation2 + $0xf8] sm:$0x1] }
 0x43b   : > { %v3753_v30 = vrot.slane %v11489_v12, 5  ;;  %v7815_v60 = vrot.slane %v7813_v43, 5  ;;  %v9158_v14 = vunpack.c.l.b16 %v9045_v55 }
 0x43c   : > { %15867 = vst [vmem:[#allocation9_spill] sm:$0xff] %v14148_v63  ;;  %v14150_v39 = vpop.f32.mrf.mxu1  ;;  %v8404_v6 = vpack.c.b16 %v8351_v41, %v8350_v51  ;;  %v7826_v38 = vor.u32 %v7825_v18, %v7821_v1  ;;  %v11490_v41 = vld [vmem:[#allocation2 + $0xa4] sm:$0x1] }
 0x43d   : > { %15868 = vst [vmem:[#allocation238_spill] sm:$0xff] %v14150_v39  ;;  %v3752_v39 = vrot.slane %v3750_v26, 4  ;;  %v7829_v51 = vshll.u32 %v11490_v41, 16  ;;  %v7816_v44 = vor.u32 %v7815_v60, %v7812_v47 }
 0x43e   : > { %4132 = vmatmul.bf16.gmra.mxu3 %v3944_v27  ;;  %v7827_v12 = vrot.slane %v7826_v38, 4  ;;  %v11492_v38 = vld [vmem:[#allocation2 + $0x100] sm:$0xf] }
 0x43f   : > { %9297 = vmatmul.bf16.gmra.mxu1 %v12942_v11  ;;  %v7817_v55 = vrot.slane %v7816_v44, 4 }
 0x441   : > { %v4093_v34 = vpop.f32.mrf.mxu3  ;;  %v14164_v27 = vpop.f32.mrf.mxu0  ;;  %v7822_v60 = vsel %vm11706_vm8, %v7817_v55, %v7821_v1  ;;  %v3542_v1 = vld [vmem:[#allocation2 + $0xfc] sm:$0xe] }
 0x442   : > { %v14160_v11 = vadd.f32 %v4093_v34, %v15869_v20  ;;  %v9159_v20 = vunpack.c.l.b16 %v9048_v7  ;;  %v10505_v34 = vrot.slane %v3541_v3, 9 }
 0x444   : > { %15870 = vst [vmem:[#allocation10_spill] sm:$0xff] %v14160_v11  ;;  %v14162_v37 = vpop.f32.mrf.mxu1  ;;  %8564 = vmatmul.bf16.gmra.mxu0 %v8404_v6  ;;  %v14172_v25 = vpack.c.b16 %v9159_v20, %v9158_v14  ;;  %v3751_v50 = vsel %vm12268_vm15, %v10505_v34, %v3750_v26  ;;  %v11491_v14 = vld [vmem:[#allocation2 + $0xac] sm:$0xf]  ;;  %v11358_v20 = vld [vmem:[%s15574_s2 + $0x190] sm:$0xff] }
 0x445   : > { %15871 = vst [vmem:[#allocation239_spill] sm:$0xff] %v14162_v37  ;;  %v3754_v37 = vsel %vm12268_vm15, %v3752_v39, %v3753_v30  ;;  %v3899_v6 = vunpack.c.l.b16 %v3751_v50  ;;  %v7831_v39 = vrot.slane %v7829_v51, 5  ;;  %v7843_v26 = vshll.u32 %v11491_v14, 16  ;;  %7221 = vmatpush.bf16.msra.mxu3 %v11358_v20 }
 0x446   : > { %v3900_v43 = vunpack.c.l.b16 %v3754_v37  ;;  %v7847_v47 = vshrl.u32 %v11491_v14, 16  ;;  %v3757_v37 = vrot.slane %v11492_v38, 5  ;;  %v11493_v14 = vld [vmem:[#allocation2 + $0x104] sm:$0x1] }
 0x447   : > { %v7832_v7 = vsel %vm11706_vm8, %v7827_v12, %v7831_v39  ;;  %v7845_v50 = vrot.slane %v7843_v26, 5  ;;  %v8352_v12 = vunpack.c.l.b16 %v7822_v60  ;;  %v3760_v38 = vrot.slane %v11493_v14, 5  ;;  %v11494_v60 = vld [vmem:[#allocation2 + $0xb0] sm:$0x1]  ;;  %v15878_v14 = vld [vmem:[#allocation13_spill] sm:$0xff] }
 0x448   : > { %v3945_v30 = vpack.c.b16 %v3900_v43, %v3899_v6  ;;  %v8353_v34 = vunpack.c.l.b16 %v7832_v7  ;;  %v7849_v44 = vrot.slane %v7847_v47, 4  ;;  %v10506_v26 = vrot.slane %v3542_v1, 9 }
 0x449   : > { %v4095_v11 = vpop.f32.mrf.mxu3  ;;  %v14181_v3 = vpop.f32.mrf.mxu0  ;;  %v7853_v20 = vshll.u32 %v11494_v60, 16 }
 0x44a   : > { %v14177_v46 = vadd.f32 %v4095_v11, %v15872_v61  ;;  %v7485_v11 = vld [vmem:[#allocation2 + $0xa8] sm:$0xf]  ;;  %v15875_v61 = vld [vmem:[#allocation12_spill] sm:$0xff]  ;;  %v8405_v55 = vpack.c.b16 %v8353_v34, %v8352_v12  ;;  %v7488_v12 = vld [vmem:[#allocation2 + $0xb4] sm:$0xf] }
 0x44b   : > { %v7834_v41 = vshrl.u32 %v7485_v11, 16  ;;  %v7837_v51 = vshll.u32 %v7485_v11, 16  ;;  %v7850_v11 = vor.u32 %v7849_v44, %v7845_v50  ;;  %v7855_v34 = vrot.slane %v7853_v20, 5 }
 0x44c   : > { %15873 = vst [vmem:[#allocation11_spill] sm:$0xff] %v14177_v46  ;;  %v14179_v18 = vpop.f32.mrf.mxu1 }
 0x44d   : > { %15874 = vst [vmem:[#allocation240_spill] sm:$0xff] %v14179_v18  ;;  %v7836_v7 = vrot.slane %v7834_v41, 4  ;;  %v7839_v18 = vrot.slane %v7837_v51, 5 }
 0x44e   : > { %4137 = vmatmul.bf16.gmra.mxu3 %v3945_v30 }
 0x44f   : > { %9302 = vmatmul.bf16.gmra.mxu1 %v12959_v49  ;;  %v3759_v49 = vrot.slane %v3757_v37, 4 }
 0x451   : > { %v4098_v43 = vpop.f32.mrf.mxu3  ;;  %v14196_v30 = vpop.f32.mrf.mxu0  ;;  %v3761_v47 = vsel %vm12268_vm15, %v3759_v49, %v3760_v38  ;;  %v11495_v49 = vld [vmem:[#allocation2 + $0xb8] sm:$0xf] }
 0x452   : > { %v14192_v6 = vadd.f32 %v4098_v43, %v15875_v61  ;;  %v3758_v43 = vsel %vm12268_vm15, %v10506_v26, %v3757_v37  ;;  %v3902_v61 = vunpack.c.l.b16 %v3761_v47  ;;  %v7871_v38 = vshrl.u32 %v11495_v49, 16  ;;  %v7531_v26 = vld [vmem:[#allocation2 + $0x178] sm:$0xf]  ;;  %v7532_v47 = vld [vmem:[#allocation2 + $0x17c] sm:$0x1] }
 0x453   : > { %v3901_v1 = vunpack.c.l.b16 %v3758_v43  ;;  %v7858_v37 = vshrl.u32 %v7488_v12, 16 }
 0x454   : > { %15876 = vst [vmem:[#allocation12_spill] sm:$0xff] %v14192_v6  ;;  %v14194_v39 = vpop.f32.mrf.mxu1  ;;  %8569 = vmatmul.bf16.gmra.mxu0 %v8405_v55  ;;  %v7851_v6 = vrot.slane %v7850_v11, 4  ;;  %v7867_v55 = vshll.u32 %v11495_v49, 16  ;;  %v9058_v49 = vrot.slane %v7531_v26, 5  ;;  %v11497_v26 = vld [vmem:[#allocation2 + $0x110] sm:$0x1] }
 0x455   : > { %15877 = vst [vmem:[#allocation241_spill] sm:$0xff] %v14194_v39  ;;  %v7840_v39 = vor.u32 %v7839_v18, %v7836_v7  ;;  %v3946_v60 = vpack.c.b16 %v3902_v61, %v3901_v1  ;;  %v11496_v7 = vld [vmem:[#allocation2 + $0x10c] sm:$0xf]  ;;  %v7860_v24 = vrot.slane %v7858_v37, 4  ;;  %v11498_v37 = vld [vmem:[#allocation2 + $0xbc] sm:$0x1] }
 0x456   : > { %v7856_v18 = vsel %vm11706_vm8, %v7851_v6, %v7855_v34  ;;  %v3764_v11 = vrot.slane %v11496_v7, 5  ;;  %v7869_v43 = vrot.slane %v7867_v55, 5  ;;  %v9061_v6 = vrot.slane %v7532_v47, 5 }
 0x457   : > { %v7841_v63 = vrot.slane %v7840_v39, 4  ;;  %v8355_v61 = vunpack.c.l.b16 %v7856_v18  ;;  %v8766_v39 = vld [vmem:[#allocation2 + $0x174] sm:$0xe]  ;;  %v3767_v47 = vrot.slane %v11497_v26, 5 }
 0x458   : > { %v11122_v1 = vrot.slane %v8766_v39, 9 }
 0x459   : > { %v4100_v46 = vpop.f32.mrf.mxu3  ;;  %v14207_v44 = vpop.f32.mrf.mxu0  ;;  %v7846_v20 = vsel %vm11706_vm8, %v7841_v63, %v7845_v50 }
 0x45a   : > { %v14203_v41 = vadd.f32 %v4100_v46, %v15878_v14  ;;  %15881 = vst [vmem:[#allocation243_spill] sm:$0xff] %v14207_v44  ;;  %v7861_v46 = vshll.u32 %v7488_v12, 16  ;;  %v7873_v14 = vrot.slane %v7871_v38, 4  ;;  %v15882_v12 = vld [vmem:[#allocation14_spill] sm:$0xff]  ;;  %v9059_v50 = vsel %vm12268_vm15, %v11122_v1, %v9058_v49 }
 0x45c   : > { %15879 = vst [vmem:[#allocation13_spill] sm:$0xff] %v14203_v41  ;;  %v14205_v51 = vpop.f32.mrf.mxu1  ;;  %v8354_v41 = vunpack.c.l.b16 %v7846_v20  ;;  %v7863_v7 = vrot.slane %v7861_v46, 5  ;;  %v7874_v63 = vor.u32 %v7873_v14, %v7869_v43  ;;  %v7877_v46 = vshll.u32 %v11498_v37, 16 }
 0x45d   : > { %15880 = vst [vmem:[#allocation242_spill] sm:$0xff] %v14205_v51  ;;  %v9060_v51 = vrot.slane %v9058_v49, 4  ;;  %v9162_v20 = vunpack.c.l.b16 %v9059_v50  ;;  %v11384_v49 = vld [vmem:[%s15575_s3 + $0x20] sm:$0xff] }
 0x45e   : > { %4142 = vmatmul.bf16.gmra.mxu3 %v3946_v60  ;;  %v8406_v18 = vpack.c.b16 %v8355_v61, %v8354_v41  ;;  %v7864_v1 = vor.u32 %v7863_v7, %v7860_v24  ;;  %9752 = vmatpush.bf16.msra.mxu2 %v11384_v49  ;;  %v7491_v7 = vld [vmem:[#allocation2 + $0xc0] sm:$0xf]  ;;  %v7534_v49 = vld [vmem:[#allocation2 + $0x184] sm:$0xf] }
 0x45f   : > { %9307 = vmatmul.bf16.gmra.mxu1 %v12981_v52  ;;  %v3766_v52 = vrot.slane %v3764_v11, 4  ;;  %v9062_v55 = vsel %vm12268_vm15, %v9060_v51, %v9061_v6  ;;  %v7875_v51 = vrot.slane %v7874_v63, 4  ;;  %v11499_v63 = vld [vmem:[#allocation2 + $0xc4] sm:$0xf] }
 0x460   : > { %v9163_v39 = vunpack.c.l.b16 %v9062_v55  ;;  %v15886_v55 = vld [vmem:[#allocation15_spill] sm:$0xff]  ;;  %v7865_v26 = vrot.slane %v7864_v1, 4  ;;  %v7535_v1 = vld [vmem:[#allocation2 + $0x188] sm:$0x1] }
 0x461   : > { %v4103_v34 = vpop.f32.mrf.mxu3  ;;  %v14223_v38 = vpop.f32.mrf.mxu0  ;;  %v3768_v14 = vsel %vm12268_vm15, %v3766_v52, %v3767_v47  ;;  %v7891_v47 = vshll.u32 %v11499_v63, 16 }
 0x462   : > { %v14215_v13 = vadd.f32 %v4103_v34, %v15882_v12  ;;  %15885 = vst [vmem:[#allocation245_spill] sm:$0xff] %v14223_v38  ;;  %v10507_v34 = vrot.slane %v3543_v22, 9  ;;  %v14230_v6 = vpack.c.b16 %v9163_v39, %v9162_v20  ;;  %v3904_v61 = vunpack.c.l.b16 %v3768_v14  ;;  %v14458_v38 = vld [vmem:[#allocation2 + $0x134] sm:$0x1] }
 0x463   : > { %v7879_v12 = vrot.slane %v7877_v46, 5  ;;  %v7895_v20 = vshrl.u32 %v11499_v63, 16  ;;  %v9068_v63 = vrot.slane %v7535_v1, 5 }
 0x464   : > { %15883 = vst [vmem:[#allocation14_spill] sm:$0xff] %v14215_v13  ;;  %v14217_v60 = vpop.f32.mrf.mxu1  ;;  %8574 = vmatmul.bf16.gmra.mxu0 %v8406_v18  ;;  %v3765_v41 = vsel %vm12268_vm15, %v10507_v34, %v3764_v11  ;;  %v7870_v11 = vsel %vm11706_vm8, %v7865_v26, %v7869_v43  ;;  %v11500_v34 = vld [vmem:[#allocation2 + $0x118] sm:$0xf] }
 0x465   : > { %15884 = vst [vmem:[#allocation244_spill] sm:$0xff] %v14217_v60  ;;  %v3903_v52 = vunpack.c.l.b16 %v3765_v41  ;;  %v7880_v24 = vsel %vm11706_vm8, %v7875_v51, %v7879_v12  ;;  %v3771_v14 = vrot.slane %v11500_v34, 5  ;;  %v7882_v41 = vshrl.u32 %v7491_v7, 16 }
 0x466   : > { %v8357_v39 = vunpack.c.l.b16 %v7880_v24  ;;  %v9065_v51 = vrot.slane %v7534_v49, 5  ;;  %v8356_v12 = vunpack.c.l.b16 %v7870_v11  ;;  %v11501_v11 = vld [vmem:[#allocation2 + $0x11c] sm:$0x1] }
 0x467   : > { %v3947_v37 = vpack.c.b16 %v3904_v61, %v3903_v52  ;;  %v8767_v61 = vld [vmem:[#allocation2 + $0x180] sm:$0xe]  ;;  %v7897_v52 = vrot.slane %v7895_v20, 4  ;;  %v3773_v24 = vrot.slane %v3771_v14, 4  ;;  %v3774_v20 = vrot.slane %v11501_v11, 5 }
 0x468   : > { %v11123_v43 = vrot.slane %v8767_v61, 9  ;;  %v9067_v26 = vrot.slane %v9065_v51, 4  ;;  %v8407_v60 = vpack.c.b16 %v8357_v39, %v8356_v12 }
 0x469   : > { %v4105_v50 = vpop.f32.mrf.mxu3  ;;  %v14243_v46 = vpop.f32.mrf.mxu0 }
 0x46a   : > { %v14235_v22 = vadd.f32 %v4105_v50, %v15886_v55  ;;  %15889 = vst [vmem:[#allocation247_spill] sm:$0xff] %v14243_v46  ;;  %v7885_v50 = vshll.u32 %v7491_v7, 16  ;;  %v14246_v55 = vrot.slane %v7891_v47, 5  ;;  %v9066_v7 = vsel %vm12268_vm15, %v11123_v43, %v9065_v51  ;;  %v7494_v43 = vld [vmem:[#allocation2 + $0xcc] sm:$0xf] }
 0x46b   : > { %v9069_v47 = vsel %vm12268_vm15, %v9067_v26, %v9068_v63  ;;  %v9164_v1 = vunpack.c.l.b16 %v9066_v7  ;;  %v14266_v63 = vld [vmem:[#allocation2 + $0xd0] sm:$0xf]  ;;  %v7906_v11 = vshrl.u32 %v7494_v43, 16 }
 0x46c   : > { %15887 = vst [vmem:[#allocation15_spill] sm:$0xff] %v14235_v22  ;;  %v14237_v18 = vpop.f32.mrf.mxu1  ;;  %v15890_v22 = vld [vmem:[#allocation16_spill] sm:$0xff]  ;;  %v7887_v49 = vrot.slane %v7885_v50, 5  ;;  %v9165_v61 = vunpack.c.l.b16 %v9069_v47  ;;  %v7898_v12 = vor.u32 %v7897_v52, %v14246_v55 }
 0x46d   : > { %15888 = vst [vmem:[#allocation246_spill] sm:$0xff] %v14237_v18 }
 0x46e   : > { %4147 = vmatmul.bf16.gmra.mxu3 %v3947_v37  ;;  %v7884_v37 = vrot.slane %v7882_v41, 4  ;;  %v7899_v7 = vrot.slane %v7898_v12, 4 }
 0x46f   : > { %9312 = vmatmul.bf16.gmra.mxu1 %v13018_v31  ;;  %v3544_v31 = vld [vmem:[#allocation2 + $0x114] sm:$0xe] }
 0x470   : > { %v10508_v39 = vrot.slane %v3544_v31, 9  ;;  %v7888_v50 = vor.u32 %v7887_v49, %v7884_v37 }
 0x471   : > { %v4108_v18 = vpop.f32.mrf.mxu3  ;;  %v14264_v26 = vpop.f32.mrf.mxu0 }
 0x472   : > { %v14249_v34 = vadd.f32 %v4108_v18, %v15890_v22  ;;  %v3775_v22 = vsel %vm12268_vm15, %v3773_v24, %v3774_v20  ;;  %v11502_v18 = vld [vmem:[#allocation2 + $0xc8] sm:$0x1]  ;;  %v3772_v51 = vsel %vm12268_vm15, %v10508_v39, %v3771_v14  ;;  %15894 = vst [vmem:[#allocation250_spill] sm:$0xff] %v14264_v26  ;;  %v15895_v24 = vld [vmem:[#allocation17_spill] sm:$0xff]  ;;  %v7909_v14 = vshll.u32 %v7494_v43, 16 }
 0x473   : > { %v7901_v41 = vshll.u32 %v11502_v18, 16  ;;  %v3906_v31 = vunpack.c.l.b16 %v3775_v22  ;;  %v7889_v39 = vrot.slane %v7888_v50, 4  ;;  %v11503_v22 = vld [vmem:[#allocation2 + $0x124] sm:$0xf]  ;;  %v7538_v50 = vld [vmem:[#allocation2 + $0x194] sm:$0x1] }
 0x474   : > { %15891 = vst [vmem:[#allocation16_spill] sm:$0xff] %v14249_v34  ;;  %v14251_v13 = vpop.f32.mrf.mxu1  ;;  %8579 = vmatmul.bf16.gmra.mxu0 %v8407_v60  ;;  %v3905_v60 = vunpack.c.l.b16 %v3772_v51  ;;  %v7908_v51 = vrot.slane %v7906_v11, 4  ;;  %v7911_v43 = vrot.slane %v7909_v14, 5  ;;  %v3545_v14 = vld [vmem:[#allocation2 + $0x120] sm:$0xe] }
 0x475   : > { %15892 = vst [vmem:[#allocation248_spill] sm:$0xff] %v14251_v13  ;;  %v14262_v13 = vpack.c.b16 %v9165_v61, %v9164_v1  ;;  %v7903_v47 = vrot.slane %v7901_v41, 5  ;;  %v7915_v1 = vshll.u32 %v14266_v63, 16  ;;  %v7919_v61 = vshrl.u32 %v14266_v63, 16  ;;  %v11504_v26 = vld [vmem:[#allocation2 + $0x128] sm:$0x1] }
 0x476   : > { %v3948_v37 = vpack.c.b16 %v3906_v31, %v3905_v60  ;;  %v7894_v12 = vsel %vm11706_vm8, %v7889_v39, %v14246_v55  ;;  %v3778_v41 = vrot.slane %v11503_v22, 5  ;;  %v8768_v31 = vld [vmem:[#allocation2 + $0x18c] sm:$0xe]  ;;  %v7537_v60 = vld [vmem:[#allocation2 + $0x190] sm:$0xf]  ;;  %v9075_v39 = vrot.slane %v7538_v50, 5 }
 0x477   : > { %15893 = vst [vmem:[#allocation249_spill] sm:$0xff] %v14262_v13  ;;  %v7904_v49 = vsel %vm11706_vm8, %v7899_v7, %v7903_v47  ;;  %v11124_v7 = vrot.slane %v8768_v31, 9  ;;  %v8358_v34 = vunpack.c.l.b16 %v7894_v12  ;;  %v9072_v55 = vrot.slane %v7537_v60, 5  ;;  %v15899_v22 = vld [vmem:[#allocation18_spill] sm:$0xff] }
 0x478   : > { %v3780_v40 = vrot.slane %v3778_v41, 4  ;;  %v3781_v31 = vrot.slane %v11504_v26, 5  ;;  %v10509_v50 = vrot.slane %v3545_v14, 9 }
 0x479   : > { %v4110_v52 = vpop.f32.mrf.mxu3  ;;  %v14283_v47 = vpop.f32.mrf.mxu0  ;;  %v9074_v12 = vrot.slane %v9072_v55, 4 }
 0x47a   : > { %v14269_v20 = vadd.f32 %v4110_v52, %v15895_v24  ;;  %v7917_v52 = vrot.slane %v7915_v1, 5  ;;  %v7921_v24 = vrot.slane %v7919_v61, 4  ;;  %15898 = vst [vmem:[#allocation252_spill] sm:$0xff] %v14283_v47  ;;  %v7912_v1 = vor.u32 %v7911_v43, %v7908_v51 }
 0x47b   : > { %v9073_v47 = vsel %vm12268_vm15, %v11124_v7, %v9072_v55  ;;  %v3782_v60 = vsel %vm12268_vm15, %v3780_v40, %v3781_v31 }
 0x47c   : > { %15896 = vst [vmem:[#allocation17_spill] sm:$0xff] %v14269_v20  ;;  %v14271_v18 = vpop.f32.mrf.mxu1  ;;  %v14281_v20 = vld [vmem:[#allocation2 + $0xd4] sm:$0x1]  ;;  %v7922_v61 = vor.u32 %v7921_v24, %v7917_v52  ;;  %v9166_v5 = vunpack.c.l.b16 %v9073_v47  ;;  %v7913_v51 = vrot.slane %v7912_v1, 4  ;;  %v3908_v26 = vunpack.c.l.b16 %v3782_v60  ;;  %v11506_v60 = vld [vmem:[#allocation2 + $0x130] sm:$0xf] }
 0x47d   : > { %15897 = vst [vmem:[#allocation251_spill] sm:$0xff] %v14271_v18  ;;  %v8359_v18 = vunpack.c.l.b16 %v7904_v49  ;;  %v7925_v49 = vshll.u32 %v14281_v20, 16  ;;  %v15903_v47 = vld [vmem:[#allocation19_spill] sm:$0xff] }
 0x47e   : > { %4152 = vmatmul.bf16.gmra.mxu3 %v3948_v37  ;;  %v7923_v43 = vrot.slane %v7922_v61, 4 }
 0x47f   : > { %9317 = vmatmul.bf16.gmra.mxu1 %v13055_v9  ;;  %v8408_v53 = vpack.c.b16 %v8359_v18, %v8358_v34  ;;  %v7927_v24 = vrot.slane %v7925_v49, 5  ;;  %v3779_v34 = vsel %vm12268_vm15, %v10509_v50, %v3778_v41  ;;  %v7497_v41 = vld [vmem:[#allocation2 + $0xf0] sm:$0xf]  ;;  %v11505_v49 = vld [vmem:[#allocation2 + $0xf4] sm:$0xf] }
 0x480   : > { %v3907_v40 = vunpack.c.l.b16 %v3779_v34  ;;  %v7943_v31 = vshrl.u32 %v11505_v49, 16 }
 0x481   : > { %v4113_v9 = vpop.f32.mrf.mxu3  ;;  %v7928_v14 = vsel %vm11706_vm8, %v7923_v43, %v7927_v24  ;;  %v14310_v1 = vpop.f32.mrf.mxu0  ;;  %v7933_v43 = vshll.u32 %v7497_v41, 16 }
 0x482   : > { %v14286_v37 = vadd.f32 %v4113_v9, %v15899_v22  ;;  %v9076_v9 = vsel %vm12268_vm15, %v9074_v12, %v9075_v39  ;;  %v7918_v39 = vsel %vm11706_vm8, %v7913_v51, %v7917_v52  ;;  %15906 = vst [vmem:[#allocation256_spill] sm:$0xff] %v14310_v1  ;;  %v3949_v61 = vpack.c.b16 %v3908_v26, %v3907_v40  ;;  %v11357_v52 = vld [vmem:[%s15574_s2 + $0x188] sm:$0xff] }
 0x483   : > { %v9167_v22 = vunpack.c.l.b16 %v9076_v9  ;;  %v8360_v12 = vunpack.c.l.b16 %v7918_v39  ;;  %v8361_v50 = vunpack.c.l.b16 %v7928_v14  ;;  %v3785_v9 = vrot.slane %v11506_v60, 5  ;;  %7222 = vmatpush.bf16.msra.mxu3 %v11357_v52  ;;  %v3546_v39 = vld [vmem:[#allocation2 + $0x12c] sm:$0xe]  ;;  %v11507_v14 = vld [vmem:[#allocation2 + $0x134] sm:$0x1] }
 0x484   : > { %15900 = vst [vmem:[#allocation18_spill] sm:$0xff] %v14286_v37  ;;  %v14288_v11 = vpop.f32.mrf.mxu1  ;;  %8584 = vmatmul.bf16.gmra.mxu0 %v8408_v53  ;;  %v7930_v51 = vshrl.u32 %v7497_v41, 16  ;;  %v7935_v60 = vrot.slane %v7933_v43, 5  ;;  %v10510_v41 = vrot.slane %v3546_v39, 9  ;;  %v15918_v37 = vld [vmem:[#allocation23_spill] sm:$0xff] }
 0x485   : > { %15901 = vst [vmem:[#allocation253_spill] sm:$0xff] %v14288_v11  ;;  %v14299_v18 = vpack.c.b16 %v9167_v22, %v9166_v5  ;;  %v7939_v5 = vshll.u32 %v11505_v49, 16  ;;  %v7945_v22 = vrot.slane %v7943_v31, 4  ;;  %v8409_v26 = vpack.c.b16 %v8361_v50, %v8360_v12  ;;  %v11508_v31 = vld [vmem:[#allocation2 + $0xf8] sm:$0x1] }
 0x486   : > { %v7932_v49 = vrot.slane %v7930_v51, 4  ;;  %v7949_v12 = vshll.u32 %v11508_v31, 16  ;;  %v3786_v50 = vsel %vm12268_vm15, %v10510_v41, %v3785_v9  ;;  %v11509_v31 = vld [vmem:[#allocation2 + $0x100] sm:$0xf] }
 0x487   : > { %15902 = vst [vmem:[#allocation254_spill] sm:$0xff] %v14299_v18  ;;  %v7941_v24 = vrot.slane %v7939_v5, 5  ;;  %v11524_v18 = vld [vmem:[#allocation2 + $0x170] sm:$0x1] }
 0x488   : > { %v7936_v52 = vor.u32 %v7935_v60, %v7932_v49  ;;  %v3823_v46 = vrot.slane %v11524_v18, 5 }
 0x489   : > { %v4115_v7 = vpop.f32.mrf.mxu3  ;;  %v14321_v11 = vpop.f32.mrf.mxu0 }
 0x48a   : > { %v14302_v53 = vadd.f32 %v4115_v7, %v15903_v47  ;;  %v3787_v7 = vrot.slane %v3785_v9, 4  ;;  %v15907_v47 = vld [vmem:[#allocation20_spill] sm:$0xff]  ;;  %15910 = vst [vmem:[#allocation258_spill] sm:$0xff] %v14321_v11  ;;  %v7937_v39 = vrot.slane %v7936_v52, 4  ;;  %v7967_v9 = vshrl.u32 %v11509_v31, 16 }
 0x48c   : > { %15904 = vst [vmem:[#allocation19_spill] sm:$0xff] %v14302_v53  ;;  %v14304_v55 = vpop.f32.mrf.mxu1 }
 0x48d   : > { %15905 = vst [vmem:[#allocation255_spill] sm:$0xff] %v14304_v55  ;;  %v7946_v55 = vor.u32 %v7945_v22, %v7941_v24  ;;  %v3909_v22 = vunpack.c.l.b16 %v3786_v50  ;;  %v7969_v50 = vrot.slane %v7967_v9, 4 }
 0x48e   : > { %4157 = vmatmul.bf16.gmra.mxu3 %v3949_v61  ;;  %v3788_v61 = vrot.slane %v11507_v14, 5 }
 0x48f   : > { %9322 = vmatmul.bf16.gmra.mxu1 %v13089_v48 }
 0x490   : > { %v3789_v5 = vsel %vm12268_vm15, %v3787_v7, %v3788_v61  ;;  %v7500_v61 = vld [vmem:[#allocation2 + $0xfc] sm:$0xf] }
 0x491   : > { %v4118_v34 = vpop.f32.mrf.mxu3  ;;  %v7954_v41 = vshrl.u32 %v7500_v61, 16 }
 0x492   : > { %v14317_v40 = vadd.f32 %v4118_v34, %v15907_v47  ;;  %v3910_v34 = vunpack.c.l.b16 %v3789_v5  ;;  %v7947_v47 = vrot.slane %v7946_v55, 4  ;;  %v11510_v55 = vld [vmem:[#allocation2 + $0x13c] sm:$0xf]  ;;  %v7957_v5 = vshll.u32 %v7500_v61, 16 }
 0x493   : > { %v3792_v49 = vrot.slane %v11510_v55, 5  ;;  %v11383_v61 = vld [vmem:[%s15575_s3 + $0x18] sm:$0xff] }
 0x494   : > { %15908 = vst [vmem:[#allocation20_spill] sm:$0xff] %v14317_v40  ;;  %v14319_v48 = vpop.f32.mrf.mxu1  ;;  %8589 = vmatmul.bf16.gmra.mxu0 %v8409_v26  ;;  %v7951_v26 = vrot.slane %v7949_v12, 5  ;;  %v3950_v14 = vpack.c.b16 %v3910_v34, %v3909_v22  ;;  %v7963_v40 = vshll.u32 %v11509_v31, 16  ;;  %v11511_v31 = vld [vmem:[#allocation2 + $0x140] sm:$0x1]  ;;  %9753 = vmatpush.bf16.msra.mxu2 %v11383_v61 }
 0x495   : > { %15909 = vst [vmem:[#allocation257_spill] sm:$0xff] %v14319_v48  ;;  %v3795_v55 = vrot.slane %v11511_v31, 5  ;;  %v7541_v61 = vld [vmem:[#allocation2 + $0x1a0] sm:$0x1] }
 0x496   : > { %v7952_v7 = vsel %vm11706_vm8, %v7947_v47, %v7951_v26  ;;  %v7965_v12 = vrot.slane %v7963_v40, 5  ;;  %v3794_v47 = vrot.slane %v3792_v49, 4  ;;  %v3547_v26 = vld [vmem:[#allocation2 + $0x138] sm:$0xe] }
 0x497   : > { %v8363_v60 = vunpack.c.l.b16 %v7952_v7  ;;  %v10511_v7 = vrot.slane %v3547_v26, 9 }
 0x498   : > { %v3796_v40 = vsel %vm12268_vm15, %v3794_v47, %v3795_v55 }
 0x499   : > { %v4120_v48 = vpop.f32.mrf.mxu3 }
 0x49a   : > { %v14328_v51 = vadd.f32 %v4120_v48, %v12530_v36  ;;  %v7942_v36 = vsel %vm11706_vm8, %v7937_v39, %v7941_v24  ;;  %v14337_v48 = vpop.f32.mrf.mxu0  ;;  %v7956_v24 = vrot.slane %v7954_v41, 4  ;;  %v7959_v39 = vrot.slane %v7957_v5, 5 }
 0x49b   : > { %15913 = vst [vmem:[#allocation261_spill] sm:$0xff] %v14337_v48  ;;  %v8362_v34 = vunpack.c.l.b16 %v7942_v36  ;;  %v3793_v36 = vsel %vm12268_vm15, %v10511_v7, %v3792_v49  ;;  %v7503_v49 = vld [vmem:[#allocation2 + $0x108] sm:$0xf] }
 0x49c   : > { %15911 = vst [vmem:[#allocation259_spill] sm:$0xff] %v14328_v51  ;;  %v14330_v43 = vpop.f32.mrf.mxu1  ;;  %v3911_v26 = vunpack.c.l.b16 %v3793_v36 }
 0x49d   : > { %15912 = vst [vmem:[#allocation260_spill] sm:$0xff] %v14330_v43  ;;  %v7970_v43 = vor.u32 %v7969_v50, %v7965_v12 }
 0x49e   : > { %4162 = vmatmul.bf16.gmra.mxu3 %v3950_v14  ;;  %v8410_v14 = vpack.c.b16 %v8363_v60, %v8362_v34  ;;  %v7960_v60 = vor.u32 %v7959_v39, %v7956_v24  ;;  %v11513_v24 = vld [vmem:[#allocation2 + $0x10c] sm:$0xf] }
 0x49f   : > { %9327 = vmatmul.bf16.gmra.mxu1 %v13122_v16  ;;  %v7971_v41 = vrot.slane %v7970_v43, 4  ;;  %v7987_v39 = vshll.u32 %v11513_v24, 16  ;;  %v7991_v7 = vshrl.u32 %v11513_v24, 16  ;;  %v14360_v43 = vld [vmem:[#allocation2 + $0x19c] sm:$0xf] }
 0x4a0   : > { %v7961_v31 = vrot.slane %v7960_v60, 4  ;;  %v9079_v36 = vrot.slane %v14360_v43, 5 }
 0x4a1   : > { %v4123_v52 = vpop.f32.mrf.mxu3 }
 0x4a2   : > { %v14340_v22 = vadd.f32 %v4123_v52, %v12562_v54  ;;  %v11512_v54 = vld [vmem:[#allocation2 + $0x104] sm:$0x1]  ;;  %v3912_v52 = vunpack.c.l.b16 %v3796_v40  ;;  %v14351_v5 = vpop.f32.mrf.mxu0  ;;  %v11514_v40 = vld [vmem:[#allocation2 + $0x148] sm:$0xf]  ;;  %v9081_v24 = vrot.slane %v9079_v36, 4 }
 0x4a3   : > { %v7973_v9 = vshll.u32 %v11512_v54, 16  ;;  %15916 = vst [vmem:[#allocation264_spill] sm:$0xff] %v14351_v5 }
 0x4a4   : > { %15914 = vst [vmem:[#allocation262_spill] sm:$0xff] %v14340_v22  ;;  %v14342_v16 = vpop.f32.mrf.mxu1  ;;  %8594 = vmatmul.bf16.gmra.mxu0 %v8410_v14  ;;  %v3951_v55 = vpack.c.b16 %v3912_v52, %v3911_v26  ;;  %v9082_v52 = vrot.slane %v7541_v61, 5  ;;  %v7978_v26 = vshrl.u32 %v7503_v49, 16 }
 0x4a5   : > { %15915 = vst [vmem:[#allocation263_spill] sm:$0xff] %v14342_v16  ;;  %v7975_v14 = vrot.slane %v7973_v9, 5  ;;  %v7966_v9 = vsel %vm11706_vm8, %v7961_v31, %v7965_v12  ;;  %v7989_v16 = vrot.slane %v7987_v39, 5 }
 0x4a6   : > { %v8364_v22 = vunpack.c.l.b16 %v7966_v9 }
 0x4a7   : > { %v7976_v54 = vsel %vm11706_vm8, %v7971_v41, %v7975_v14  ;;  %v7981_v14 = vshll.u32 %v7503_v49, 16 }
 0x4a8   : > { %v8365_v41 = vunpack.c.l.b16 %v7976_v54  ;;  %v3548_v54 = vld [vmem:[#allocation2 + $0x144] sm:$0xe] }
 0x4a9   : > { %v4125_v50 = vpop.f32.mrf.mxu3 }
 0x4aa   : > { %v14354_v34 = vadd.f32 %v4125_v50, %v12583_v58  ;;  %v3799_v58 = vrot.slane %v11514_v40, 5  ;;  %v8769_v50 = vld [vmem:[#allocation2 + $0x198] sm:$0xe]  ;;  %v14375_v61 = vpop.f32.mrf.mxu0  ;;  %v8411_v39 = vpack.c.b16 %v8365_v41, %v8364_v22 }
 0x4ab   : > { %v11125_v60 = vrot.slane %v8769_v50, 9  ;;  %15920 = vst [vmem:[#allocation266_spill] sm:$0xff] %v14375_v61  ;;  %v15926_v61 = vld [vmem:[#allocation27_spill] sm:$0xff] }
 0x4ac   : > { %15917 = vst [vmem:[#allocation265_spill] sm:$0xff] %v14354_v34  ;;  %v14356_v47 = vpop.f32.mrf.mxu1  ;;  %v7993_v34 = vrot.slane %v7991_v7, 4  ;;  %v3801_v51 = vrot.slane %v3799_v58, 4  ;;  %v11515_v7 = vld [vmem:[#allocation2 + $0x14c] sm:$0x1] }
 0x4ad   : > { %v3802_v50 = vrot.slane %v11515_v7, 5  ;;  %v15922_v7 = vld [vmem:[#allocation25_spill] sm:$0xff] }
 0x4ae   : > { %4167 = vmatmul.bf16.gmra.mxu3 %v3951_v55  ;;  %v9083_v55 = vsel %vm12268_vm15, %v9081_v24, %v9082_v52  ;;  %v7994_v9 = vor.u32 %v7993_v34, %v7989_v16  ;;  %v10512_v52 = vrot.slane %v3548_v54, 9  ;;  %v11516_v24 = vld [vmem:[#allocation2 + $0x110] sm:$0x1] }
 0x4af   : > { %9332 = vmatmul.bf16.gmra.mxu1 %v13155_v4  ;;  %v9080_v4 = vsel %vm12268_vm15, %v11125_v60, %v9079_v36  ;;  %v9169_v49 = vunpack.c.l.b16 %v9083_v55  ;;  %v7980_v36 = vrot.slane %v7978_v26, 4  ;;  %v7983_v60 = vrot.slane %v7981_v14, 5 }
 0x4b0   : > { %v9168_v53 = vunpack.c.l.b16 %v9080_v4  ;;  %v7997_v4 = vshll.u32 %v11516_v24, 16  ;;  %v7995_v22 = vrot.slane %v7994_v9, 4  ;;  %v11518_v9 = vld [vmem:[#allocation2 + $0x154] sm:$0xf] }
 0x4b1   : > { %v4128_v40 = vpop.f32.mrf.mxu3  ;;  %v7984_v55 = vor.u32 %v7983_v60, %v7980_v36  ;;  %v15925_v60 = vld [vmem:[#allocation106_spill] sm:$0xff] }
 0x4b2   : > { %v14371_v12 = vadd.f32 %v4128_v40, %v15918_v37  ;;  %v14377_v5 = vpack.c.b16 %v9169_v49, %v9168_v53  ;;  %v3803_v37 = vsel %vm12268_vm15, %v3801_v51, %v3802_v50  ;;  %v3800_v40 = vsel %vm12268_vm15, %v10512_v52, %v3799_v58  ;;  %v11517_v50 = vld [vmem:[#allocation2 + $0x118] sm:$0xf]  ;;  %v14390_v36 = vpop.f32.mrf.mxu0 }
 0x4b3   : > { %v3913_v53 = vunpack.c.l.b16 %v3800_v40  ;;  %v7999_v14 = vrot.slane %v7997_v4, 5  ;;  %v7985_v54 = vrot.slane %v7984_v55, 4  ;;  %v8011_v24 = vshll.u32 %v11517_v50, 16  ;;  %15924 = vst [vmem:[#allocation268_spill] sm:$0xff] %v14390_v36  ;;  %v3549_v4 = vld [vmem:[#allocation2 + $0x150] sm:$0xe] }
 0x4b4   : > { %15919 = vst [vmem:[#allocation23_spill] sm:$0xff] %v14371_v12  ;;  %v14373_v31 = vpop.f32.mrf.mxu1  ;;  %8599 = vmatmul.bf16.gmra.mxu0 %v8411_v39  ;;  %v3914_v12 = vunpack.c.l.b16 %v3803_v37  ;;  %v7506_v39 = vld [vmem:[#allocation2 + $0x114] sm:$0xf]  ;;  %v8015_v58 = vshrl.u32 %v11517_v50, 16  ;;  %v3806_v52 = vrot.slane %v11518_v9, 5 }
 0x4b5   : > { %15921 = vst [vmem:[#allocation267_spill] sm:$0xff] %v14377_v5  ;;  %v8000_v51 = vsel %vm11706_vm8, %v7995_v22, %v7999_v14  ;;  %v7990_v37 = vsel %vm11706_vm8, %v7985_v54, %v7989_v16  ;;  %v8005_v55 = vshll.u32 %v7506_v39, 16  ;;  %v10513_v14 = vrot.slane %v3549_v4, 9 }
 0x4b6   : > { %v3952_v49 = vpack.c.b16 %v3914_v12, %v3913_v53  ;;  %v8367_v40 = vunpack.c.l.b16 %v8000_v51  ;;  %v8002_v12 = vshrl.u32 %v7506_v39, 16  ;;  %v8017_v22 = vrot.slane %v8015_v58, 4 }
 0x4b7   : > { %v8366_v53 = vunpack.c.l.b16 %v7990_v37  ;;  %v3808_v50 = vrot.slane %v3806_v52, 4  ;;  %v8007_v16 = vrot.slane %v8005_v55, 5  ;;  %v3807_v51 = vsel %vm12268_vm15, %v10513_v14, %v3806_v52 }
 0x4b8   : > { %v8004_v48 = vrot.slane %v8002_v12, 4  ;;  %v15929_v12 = vld [vmem:[#allocation29_spill] sm:$0xff] }
 0x4b9   : > { %v4130_v41 = vpop.f32.mrf.mxu3 }
 0x4ba   : > { %v14384_v26 = vadd.f32 %v4130_v41, %v15922_v7  ;;  %v8013_v41 = vrot.slane %v8011_v24, 5  ;;  %v11520_v24 = vld [vmem:[#allocation2 + $0x11c] sm:$0x1]  ;;  %v14404_v37 = vpop.f32.mrf.mxu0 }
 0x4bb   : > { %v8021_v58 = vshll.u32 %v11520_v24, 16  ;;  %15928 = vst [vmem:[#allocation27_spill] sm:$0xff] %v14404_v37  ;;  %v11356_v24 = vld [vmem:[%s15574_s2 + $0x180] sm:$0xff] }
 0x4bc   : > { %15923 = vst [vmem:[#allocation25_spill] sm:$0xff] %v14384_v26  ;;  %v14386_v34 = vpop.f32.mrf.mxu1  ;;  %v11519_v26 = vld [vmem:[#allocation2 + $0x158] sm:$0x1]  ;;  %v8018_v54 = vor.u32 %v8017_v22, %v8013_v41  ;;  %7223 = vmatpush.bf16.msra.mxu3 %v11356_v24 }
 0x4bd   : > { %v3809_v36 = vrot.slane %v11519_v26, 5  ;;  %v8008_v26 = vor.u32 %v8007_v16, %v8004_v48  ;;  %v8023_v52 = vrot.slane %v8021_v58, 5  ;;  %v15931_v16 = vld [vmem:[#allocation114_spill] sm:$0xff] }
 0x4be   : > { %4172 = vmatmul.bf16.gmra.mxu3 %v3952_v49  ;;  %v8412_v49 = vpack.c.b16 %v8367_v40, %v8366_v53  ;;  %v14406_v40 = vld [vmem:[#allocation2 + $0x124] sm:$0xf] }
 0x4bf   : > { %9337 = vmatmul.bf16.gmra.mxu1 %v15925_v60  ;;  %v3810_v39 = vsel %vm12268_vm15, %v3808_v50, %v3809_v36  ;;  %v8009_v53 = vrot.slane %v8008_v26, 4  ;;  %v7509_v50 = vld [vmem:[#allocation2 + $0x120] sm:$0xf]  ;;  %v8035_v48 = vshll.u32 %v14406_v40, 16 }
 0x4c0   : > { %v3916_v4 = vunpack.c.l.b16 %v3810_v39  ;;  %v3550_v39 = vld [vmem:[#allocation2 + $0x15c] sm:$0xe]  ;;  %v8026_v26 = vshrl.u32 %v7509_v50, 16 }
 0x4c1   : > { %v4133_v7 = vpop.f32.mrf.mxu3 }
 0x4c2   : > { %v14396_v60 = vadd.f32 %v4133_v7, %v15926_v61  ;;  %v3915_v61 = vunpack.c.l.b16 %v3807_v51  ;;  %v8019_v7 = vrot.slane %v8018_v54, 4  ;;  %v11521_v54 = vld [vmem:[#allocation2 + $0x160] sm:$0xf] }
 0x4c3   : > { %v3813_v51 = vrot.slane %v11521_v54, 5  ;;  %v10514_v54 = vrot.slane %v3550_v39, 9 }
 0x4c4   : > { %15927 = vst [vmem:[#allocation106_spill] sm:$0xff] %v14396_v60  ;;  %v14398_v9 = vpop.f32.mrf.mxu1  ;;  %8604 = vmatmul.bf16.gmra.mxu0 %v8412_v49  ;;  %v3953_v14 = vpack.c.b16 %v3916_v4, %v3915_v61  ;;  %v8024_v36 = vsel %vm11706_vm8, %v8019_v7, %v8023_v52  ;;  %v8039_v49 = vshrl.u32 %v14406_v40, 16  ;;  %v8029_v61 = vshll.u32 %v7509_v50, 16 }
 0x4c5   : > { %v8369_v58 = vunpack.c.l.b16 %v8024_v36  ;;  %v8037_v4 = vrot.slane %v8035_v48, 5  ;;  %v14430_v36 = vld [vmem:[#allocation2 + $0x128] sm:$0x1]  ;;  %v8028_v50 = vrot.slane %v8026_v26, 4  ;;  %v3814_v24 = vsel %vm12268_vm15, %v10514_v54, %v3813_v51 }
 0x4c6   : > { %v8041_v7 = vrot.slane %v8039_v49, 4  ;;  %v8031_v48 = vrot.slane %v8029_v61, 5 }
 0x4c8   : > { %v8042_v49 = vor.u32 %v8041_v7, %v8037_v4  ;;  %v8032_v39 = vor.u32 %v8031_v48, %v8028_v50 }
 0x4c9   : > { %v4135_v60 = vpop.f32.mrf.mxu3 }
 0x4ca   : > { %v14409_v55 = vadd.f32 %v4135_v60, %v15929_v12  ;;  %v8014_v60 = vsel %vm11706_vm8, %v8009_v53, %v8013_v41  ;;  %v14423_v12 = vpop.f32.mrf.mxu0  ;;  %v15933_v41 = vld [vmem:[#allocation31_spill] sm:$0xff] }
 0x4cb   : > { %15932 = vst [vmem:[#allocation114_spill] sm:$0xff] %v14423_v12 }
 0x4cc   : > { %15930 = vst [vmem:[#allocation29_spill] sm:$0xff] %v14409_v55  ;;  %v14411_v22 = vpop.f32.mrf.mxu1  ;;  %v11522_v55 = vld [vmem:[#allocation2 + $0x164] sm:$0x1] }
 0x4cd   : > { %v3816_v37 = vrot.slane %v11522_v55, 5  ;;  %v8045_v55 = vshll.u32 %v14430_v36, 16 }
 0x4ce   : > { %4177 = vmatmul.bf16.gmra.mxu3 %v3953_v14  ;;  %v3815_v14 = vrot.slane %v3813_v51, 4  ;;  %v8033_v51 = vrot.slane %v8032_v39, 4 }
 0x4cf   : > { %9342 = vmatmul.bf16.gmra.mxu1 %v15931_v16  ;;  %v8368_v16 = vunpack.c.l.b16 %v8014_v60 }
 0x4d0   : > { %v3817_v60 = vsel %vm12268_vm15, %v3815_v14, %v3816_v37  ;;  %v7512_v14 = vld [vmem:[#allocation2 + $0x12c] sm:$0xf] }
 0x4d1   : > { %v4138_v52 = vpop.f32.mrf.mxu3  ;;  %v8413_v1 = vpack.c.b16 %v8369_v58, %v8368_v16  ;;  %v14437_v58 = vld [vmem:[#allocation2 + $0x130] sm:$0xf]  ;;  %v15935_v16 = vld [vmem:[#allocation33_spill] sm:$0xff]  ;;  %v8050_v39 = vshrl.u32 %v7512_v14, 16 }
 0x4d2   : > { %v14426_v53 = vadd.f32 %v4138_v52, %v15933_v41  ;;  %v3917_v52 = vunpack.c.l.b16 %v3814_v24  ;;  %v3918_v41 = vunpack.c.l.b16 %v3817_v60  ;;  %v14444_v7 = vpop.f32.mrf.mxu0  ;;  %v8059_v50 = vshll.u32 %v14437_v58, 16  ;;  %v11523_v24 = vld [vmem:[#allocation2 + $0x16c] sm:$0xf] }
 0x4d3   : > { %15937 = vst [vmem:[#allocation269_spill] sm:$0xff] %v14444_v7  ;;  %v8063_v48 = vshrl.u32 %v14437_v58, 16  ;;  %v8038_v60 = vsel %vm11706_vm8, %v8033_v51, %v8037_v4  ;;  %v8052_v4 = vrot.slane %v8050_v39, 4 }
 0x4d4   : > { %15934 = vst [vmem:[#allocation31_spill] sm:$0xff] %v14426_v53  ;;  %v14428_v11 = vpop.f32.mrf.mxu1  ;;  %8609 = vmatmul.bf16.gmra.mxu0 %v8413_v1  ;;  %v8043_v53 = vrot.slane %v8042_v49, 4  ;;  %v8047_v1 = vrot.slane %v8045_v55, 5  ;;  %v3954_v54 = vpack.c.b16 %v3918_v41, %v3917_v52  ;;  %v15938_v49 = vld [vmem:[#allocation128_spill] sm:$0xff]  ;;  %v3551_v55 = vld [vmem:[#allocation2 + $0x168] sm:$0xe] }
 0x4d5   : > { %v8053_v52 = vshll.u32 %v7512_v14, 16  ;;  %v8061_v41 = vrot.slane %v8059_v50, 5  ;;  %v10515_v7 = vrot.slane %v3551_v55, 9 }
 0x4d6   : > { %v8048_v37 = vsel %vm11706_vm8, %v8043_v53, %v8047_v1  ;;  %v8370_v1 = vunpack.c.l.b16 %v8038_v60 }
 0x4d7   : > { %v8055_v51 = vrot.slane %v8053_v52, 5  ;;  %v15943_v52 = vld [vmem:[#allocation37_spill] sm:$0xff] }
 0x4d9   : > { %v4140_v12 = vpop.f32.mrf.mxu3  ;;  %v8056_v60 = vor.u32 %v8055_v51, %v8052_v4  ;;  %v15946_v51 = vld [vmem:[#allocation135_spill] sm:$0xff] }
 0x4da   : > { %v14440_v26 = vadd.f32 %v4140_v12, %v15935_v16  ;;  %v3820_v12 = vrot.slane %v11523_v24, 5  ;;  %v8371_v16 = vunpack.c.l.b16 %v8048_v37  ;;  %v14460_v14 = vpop.f32.mrf.mxu0 }
 0x4db   : > { %15942 = vst [vmem:[#allocation270_spill] sm:$0xff] %v14460_v14 }
 0x4dc   : > { %15936 = vst [vmem:[#allocation33_spill] sm:$0xff] %v14440_v26  ;;  %v14442_v61 = vpop.f32.mrf.mxu1  ;;  %v8065_v26 = vrot.slane %v8063_v48, 4  ;;  %v3822_v5 = vrot.slane %v3820_v12, 4  ;;  %v3821_v50 = vsel %vm12268_vm15, %v10515_v7, %v3820_v12  ;;  %v8069_v48 = vshll.u32 %v14458_v38, 16 }
 0x4dd   : > { %v3919_v55 = vunpack.c.l.b16 %v3821_v50  ;;  %v8057_v12 = vrot.slane %v8056_v60, 4  ;;  %v11526_v50 = vld [vmem:[#allocation2 + $0x178] sm:$0xf] }
 0x4de   : > { %4182 = vmatmul.bf16.gmra.mxu3 %v3954_v54  ;;  %v8414_v54 = vpack.c.b16 %v8371_v16, %v8370_v1  ;;  %v8066_v37 = vor.u32 %v8065_v26, %v8061_v41  ;;  %v3824_v18 = vsel %vm12268_vm15, %v3822_v5, %v3823_v46  ;;  %v8071_v1 = vrot.slane %v8069_v48, 5 }
 0x4df   : > { %9347 = vmatmul.bf16.gmra.mxu1 %v15938_v49  ;;  %v3920_v16 = vunpack.c.l.b16 %v3824_v18  ;;  %v8062_v18 = vsel %vm11706_vm8, %v8057_v12, %v8061_v41 }
 0x4e0   : > { %v8067_v26 = vrot.slane %v8066_v37, 4  ;;  %v3827_v37 = vrot.slane %v11526_v50, 5 }
 0x4e1   : > { %v4143_v53 = vpop.f32.mrf.mxu3  ;;  %v3955_v46 = vpack.c.b16 %v3920_v16, %v3919_v55 }
 0x4e2   : > { %v14454_v49 = vadd.f32 %v4143_v53, %v15939_v57  ;;  %v11382_v57 = vld [vmem:[%s15575_s3 + $0x10] sm:$0xff]  ;;  %v8072_v5 = vsel %vm11706_vm8, %v8067_v26, %v8071_v1  ;;  %v14480_v48 = vpop.f32.mrf.mxu0  ;;  %v8372_v1 = vunpack.c.l.b16 %v8062_v18 }
 0x4e3   : > { %9754 = vmatpush.bf16.msra.mxu2 %v11382_v57  ;;  %v3552_v57 = vld [vmem:[#allocation2 + $0x174] sm:$0xe]  ;;  %15947 = vst [vmem:[#allocation135_spill] sm:$0xff] %v14480_v48  ;;  %v8373_v60 = vunpack.c.l.b16 %v8072_v5 }
 0x4e4   : > { %15940 = vst [vmem:[#allocation128_spill] sm:$0xff] %v14454_v49  ;;  %v14456_v24 = vpop.f32.mrf.mxu1  ;;  %8614 = vmatmul.bf16.gmra.mxu0 %v8414_v54  ;;  %v7515_v54 = vld [vmem:[#allocation2 + $0x138] sm:$0xf]  ;;  %v11525_v49 = vld [vmem:[#allocation2 + $0x13c] sm:$0xf] }
 0x4e5   : > { %15941 = vst [vmem:[#allocation35_spill] sm:$0xff] %v14456_v24  ;;  %v8083_v14 = vshll.u32 %v11525_v49, 16  ;;  %v8087_v4 = vshrl.u32 %v11525_v49, 16  ;;  %v8074_v55 = vshrl.u32 %v7515_v54, 16  ;;  %v8077_v16 = vshll.u32 %v7515_v54, 16 }
 0x4e6   : > { %v3829_v49 = vrot.slane %v3827_v37, 4  ;;  %v11528_v54 = vld [vmem:[#allocation2 + $0x140] sm:$0x1] }
 0x4e7   : > { %v8089_v26 = vrot.slane %v8087_v4, 4  ;;  %v8076_v24 = vrot.slane %v8074_v55, 4  ;;  %v8079_v41 = vrot.slane %v8077_v16, 5  ;;  %v8093_v4 = vshll.u32 %v11528_v54, 16  ;;  %v15952_v55 = vld [vmem:[#allocation41_spill] sm:$0xff] }
 0x4e9   : > { %v4145_v39 = vpop.f32.mrf.mxu3  ;;  %v8080_v18 = vor.u32 %v8079_v41, %v8076_v24  ;;  %v15954_v24 = vld [vmem:[#allocation143_spill] sm:$0xff]  ;;  %v11530_v41 = vld [vmem:[#allocation2 + $0x184] sm:$0xf] }
 0x4ea   : > { %v14471_v53 = vadd.f32 %v4145_v39, %v15943_v52  ;;  %v8085_v39 = vrot.slane %v8083_v14, 5 }
 0x4ec   : > { %15944 = vst [vmem:[#allocation37_spill] sm:$0xff] %v14471_v53  ;;  %v14473_v7 = vpop.f32.mrf.mxu1  ;;  %v10516_v53 = vrot.slane %v3552_v57, 9  ;;  %v8090_v12 = vor.u32 %v8089_v26, %v8085_v39  ;;  %v8095_v26 = vrot.slane %v8093_v4, 5 }
 0x4ed   : > { %15945 = vst [vmem:[#allocation271_spill] sm:$0xff] %v14473_v7  ;;  %v11527_v7 = vld [vmem:[#allocation2 + $0x17c] sm:$0x1] }
 0x4ee   : > { %4187 = vmatmul.bf16.gmra.mxu3 %v3955_v46  ;;  %v8415_v46 = vpack.c.b16 %v8373_v60, %v8372_v1  ;;  %v3828_v14 = vsel %vm12268_vm15, %v10516_v53, %v3827_v37  ;;  %v8081_v1 = vrot.slane %v8080_v18, 4  ;;  %v7518_v37 = vld [vmem:[#allocation2 + $0x144] sm:$0xf] }
 0x4ef   : > { %9352 = vmatmul.bf16.gmra.mxu1 %v15946_v51  ;;  %v3830_v51 = vrot.slane %v11527_v7, 5  ;;  %v3921_v7 = vunpack.c.l.b16 %v3828_v14  ;;  %v8098_v18 = vshrl.u32 %v7518_v37, 16 }
 0x4f0   : > { %v8086_v14 = vsel %vm11706_vm8, %v8081_v1, %v8085_v39 }
 0x4f1   : > { %v4148_v52 = vpop.f32.mrf.mxu3  ;;  %v3831_v5 = vsel %vm12268_vm15, %v3829_v49, %v3830_v51  ;;  %v11529_v49 = vld [vmem:[#allocation2 + $0x148] sm:$0xf]  ;;  %v8100_v1 = vrot.slane %v8098_v18, 4  ;;  %v15960_v18 = vld [vmem:[#allocation45_spill] sm:$0xff] }
 0x4f2   : > { %v14483_v50 = vadd.f32 %v4148_v52, %v15948_v10  ;;  %v3922_v57 = vunpack.c.l.b16 %v3831_v5  ;;  %v8091_v10 = vrot.slane %v8090_v12, 4  ;;  %v14491_v52 = vpop.f32.mrf.mxu0  ;;  %v8107_v51 = vshll.u32 %v11529_v49, 16  ;;  %v3553_v5 = vld [vmem:[#allocation2 + $0x180] sm:$0xe] }
 0x4f3   : > { %15951 = vst [vmem:[#allocation273_spill] sm:$0xff] %v14491_v52  ;;  %v8111_v54 = vshrl.u32 %v11529_v49, 16  ;;  %v3834_v12 = vrot.slane %v11530_v41, 5  ;;  %v15956_v52 = vld [vmem:[#allocation43_spill] sm:$0xff] }
 0x4f4   : > { %15949 = vst [vmem:[#allocation39_spill] sm:$0xff] %v14483_v50  ;;  %v14485_v13 = vpop.f32.mrf.mxu1  ;;  %8619 = vmatmul.bf16.gmra.mxu0 %v8415_v46  ;;  %v3956_v46 = vpack.c.b16 %v3922_v57, %v3921_v7  ;;  %v8096_v53 = vsel %vm11706_vm8, %v8091_v10, %v8095_v26  ;;  %v8101_v7 = vshll.u32 %v7518_v37, 16  ;;  %v8109_v57 = vrot.slane %v8107_v51, 5  ;;  %v11531_v50 = vld [vmem:[#allocation2 + $0x188] sm:$0x1] }
 0x4f5   : > { %15950 = vst [vmem:[#allocation272_spill] sm:$0xff] %v14485_v13  ;;  %v8375_v4 = vunpack.c.l.b16 %v8096_v53  ;;  %v8113_v10 = vrot.slane %v8111_v54, 4  ;;  %v8374_v26 = vunpack.c.l.b16 %v8086_v14  ;;  %v3836_v49 = vrot.slane %v3834_v12, 4  ;;  %v11532_v51 = vld [vmem:[#allocation2 + $0x14c] sm:$0x1] }
 0x4f6   : > { %v8103_v48 = vrot.slane %v8101_v7, 5  ;;  %v8117_v54 = vshll.u32 %v11532_v51, 16  ;;  %v15963_v51 = vld [vmem:[#allocation150_spill] sm:$0xff]  ;;  %v11535_v13 = vld [vmem:[#allocation2 + $0x194] sm:$0x1] }
 0x4f7   : > { %v8416_v39 = vpack.c.b16 %v8375_v4, %v8374_v26  ;;  %v8974_v26 = vrot.slane %v14266_v63, 5 }
 0x4f8   : > { %v8104_v14 = vor.u32 %v8103_v48, %v8100_v1  ;;  %v11533_v1 = vld [vmem:[#allocation2 + $0x154] sm:$0xf] }
 0x4f9   : > { %v4150_v60 = vpop.f32.mrf.mxu3 }
 0x4fa   : > { %v14494_v16 = vadd.f32 %v4150_v60, %v15952_v55 }
 0x4fc   : > { %15953 = vst [vmem:[#allocation41_spill] sm:$0xff] %v14494_v16  ;;  %v14501_v60 = vpop.f32.mrf.mxu1  ;;  %v10517_v16 = vrot.slane %v3553_v5, 9 }
 0x4fd   : > { %15955 = vst [vmem:[#allocation143_spill] sm:$0xff] %v14501_v60  ;;  %v8114_v60 = vor.u32 %v8113_v10, %v8109_v57  ;;  %v8119_v10 = vrot.slane %v8117_v54, 5  ;;  %v3554_v54 = vld [vmem:[#allocation2 + $0x18c] sm:$0xe] }
 0x4fe   : > { %4192 = vmatmul.bf16.gmra.mxu3 %v3956_v46  ;;  %v14506_v46 = vpop.f32.mrf.mxu0  ;;  %v3835_v53 = vsel %vm12268_vm15, %v10517_v16, %v3834_v12  ;;  %v8105_v16 = vrot.slane %v8104_v14, 4  ;;  %v8754_v12 = vld [vmem:[#allocation2 + $0xcc] sm:$0xe] }
 0x4ff   : > { %9357 = vmatmul.bf16.gmra.mxu1 %v15954_v24  ;;  %v3837_v24 = vrot.slane %v11531_v50, 5  ;;  %15958 = vst [vmem:[#allocation274_spill] sm:$0xff] %v14506_v46  ;;  %v3923_v50 = vunpack.c.l.b16 %v3835_v53  ;;  %v8135_v53 = vshrl.u32 %v11533_v1, 16  ;;  %v11110_v14 = vrot.slane %v8754_v12, 9 }
 0x500   : > { %v8110_v63 = vsel %vm11706_vm8, %v8105_v16, %v8109_v57 }
 0x501   : > { %v4153_v55 = vpop.f32.mrf.mxu3  ;;  %v3838_v37 = vsel %vm12268_vm15, %v3836_v49, %v3837_v24  ;;  %v8975_v57 = vsel %vm12268_vm15, %v11110_v14, %v8974_v26 }
 0x502   : > { %v14504_v41 = vadd.f32 %v4153_v55, %v15956_v52  ;;  %v3924_v5 = vunpack.c.l.b16 %v3838_v37  ;;  %v8115_v52 = vrot.slane %v8114_v60, 4  ;;  %v7521_v55 = vld [vmem:[#allocation2 + $0x150] sm:$0xf]  ;;  %v8131_v60 = vshll.u32 %v11533_v1, 16 }
 0x503   : > { %v8125_v49 = vshll.u32 %v7521_v55, 16  ;;  %v8137_v1 = vrot.slane %v8135_v53, 4  ;;  %v9138_v53 = vunpack.c.l.b16 %v8975_v57 }
 0x504   : > { %15957 = vst [vmem:[#allocation43_spill] sm:$0xff] %v14504_v41  ;;  %8624 = vmatmul.bf16.gmra.mxu0 %v8416_v39  ;;  %v14512_v41 = vpop.f32.mrf.mxu1  ;;  %v8122_v39 = vshrl.u32 %v7521_v55, 16  ;;  %v3957_v24 = vpack.c.b16 %v3924_v5, %v3923_v50  ;;  %v8120_v48 = vsel %vm11706_vm8, %v8115_v52, %v8119_v10  ;;  %v8976_v55 = vrot.slane %v8974_v26, 4 }
 0x505   : > { %15959 = vst [vmem:[#allocation275_spill] sm:$0xff] %v14512_v41  ;;  %v8977_v50 = vrot.slane %v14281_v20, 5  ;;  %v8377_v5 = vunpack.c.l.b16 %v8120_v48  ;;  %v8127_v10 = vrot.slane %v8125_v49, 5  ;;  %v10518_v41 = vrot.slane %v3554_v54, 9  ;;  %v11536_v48 = vld [vmem:[#allocation2 + $0x158] sm:$0x1] }
 0x506   : > { %v14520_v37 = vpop.f32.mrf.mxu0  ;;  %v8124_v52 = vrot.slane %v8122_v39, 4 }
 0x507   : > { %15962 = vst [vmem:[#allocation276_spill] sm:$0xff] %v14520_v37  ;;  %v8376_v37 = vunpack.c.l.b16 %v8110_v63  ;;  %v8978_v20 = vsel %vm12268_vm15, %v8976_v55, %v8977_v50 }
 0x508   : > { %v8128_v39 = vor.u32 %v8127_v10, %v8124_v52  ;;  %v9139_v63 = vunpack.c.l.b16 %v8978_v20  ;;  %v11537_v20 = vld [vmem:[#allocation2 + $0x160] sm:$0xf] }
 0x509   : > { %v4155_v4 = vpop.f32.mrf.mxu3  ;;  %v8417_v12 = vpack.c.b16 %v8377_v5, %v8376_v37  ;;  %v7524_v5 = vld [vmem:[#allocation2 + $0x15c] sm:$0xf] }
 0x50a   : > { %v14515_v7 = vadd.f32 %v4155_v4, %v15960_v18  ;;  %v11534_v4 = vld [vmem:[#allocation2 + $0x190] sm:$0xf]  ;;  %v8129_v54 = vrot.slane %v8128_v39, 4  ;;  %v9187_v10 = vpack.c.b16 %v9139_v63, %v9138_v53  ;;  %v8159_v39 = vshrl.u32 %v11537_v20, 16 }
 0x50b   : > { %v3841_v18 = vrot.slane %v11534_v4, 5  ;;  %v3844_v4 = vrot.slane %v11535_v13, 5 }
 0x50c   : > { %15961 = vst [vmem:[#allocation45_spill] sm:$0xff] %v14515_v7  ;;  %v8133_v7 = vrot.slane %v8131_v60, 5  ;;  %v14533_v16 = vpop.f32.mrf.mxu1  ;;  %v8141_v60 = vshll.u32 %v11536_v48, 16  ;;  %v8161_v63 = vrot.slane %v8159_v39, 4  ;;  %v15972_v39 = vld [vmem:[#allocation53_spill] sm:$0xff] }
 0x50d   : > { %v3842_v13 = vsel %vm12268_vm15, %v10518_v41, %v3841_v18 }
 0x50e   : > { %4197 = vmatmul.bf16.gmra.mxu3 %v3957_v24  ;;  %v15964_v24 = vld [vmem:[#allocation47_spill] sm:$0xff]  ;;  %v8138_v49 = vor.u32 %v8137_v1, %v8133_v7  ;;  %v14539_v26 = vpop.f32.mrf.mxu0  ;;  %v3925_v14 = vunpack.c.l.b16 %v3842_v13  ;;  %v8143_v37 = vrot.slane %v8141_v60, 5  ;;  %v15967_v1 = vld [vmem:[#allocation49_spill] sm:$0xff]  ;;  %v8134_v41 = vsel %vm11706_vm8, %v8129_v54, %v8133_v7 }
 0x50f   : > { %9362 = vmatmul.bf16.gmra.mxu1 %v15963_v51  ;;  %v3843_v51 = vrot.slane %v3841_v18, 4  ;;  %15966 = vst [vmem:[#allocation47_spill] sm:$0xff] %v14539_v26  ;;  %v8146_v18 = vshrl.u32 %v7524_v5, 16  ;;  %v8378_v48 = vunpack.c.l.b16 %v8134_v41 }
 0x510   : > { %v8139_v50 = vrot.slane %v8138_v49, 4 }
 0x511   : > { %v4158_v46 = vpop.f32.mrf.mxu3  ;;  %v8148_v13 = vrot.slane %v8146_v18, 4  ;;  %v7527_v18 = vld [vmem:[#allocation2 + $0x168] sm:$0xf] }
 0x512   : > { %v14527_v44 = vadd.f32 %v4158_v46, %v15964_v24  ;;  %v3845_v46 = vsel %vm12268_vm15, %v3843_v51, %v3844_v4  ;;  %v8149_v51 = vshll.u32 %v7524_v5, 16  ;;  %v8144_v57 = vsel %vm11706_vm8, %v8139_v50, %v8143_v37 }
 0x513   : > { %v3926_v55 = vunpack.c.l.b16 %v3845_v46  ;;  %v8379_v60 = vunpack.c.l.b16 %v8144_v57 }
 0x514   : > { %15965 = vst [vmem:[#allocation150_spill] sm:$0xff] %v14527_v44  ;;  %8629 = vmatmul.bf16.gmra.mxu0 %v8417_v12  ;;  %v8155_v12 = vshll.u32 %v11537_v20, 16  ;;  %v14548_v49 = vpop.f32.mrf.mxu1  ;;  %v8151_v46 = vrot.slane %v8149_v51, 5  ;;  %v14560_v20 = vld [vmem:[#allocation2 + $0x16c] sm:$0xf] }
 0x515   : > { %v3958_v4 = vpack.c.b16 %v3926_v55, %v3925_v14  ;;  %v15970_v14 = vld [vmem:[#allocation51_spill] sm:$0xff]  ;;  %v8418_v50 = vpack.c.b16 %v8379_v60, %v8378_v48  ;;  %v8170_v60 = vshrl.u32 %v7527_v18, 16 }
 0x516   : > { %v8157_v53 = vrot.slane %v8155_v12, 5  ;;  %v14550_v7 = vpop.f32.mrf.mxu0  ;;  %v8152_v37 = vor.u32 %v8151_v46, %v8148_v13  ;;  %v8173_v13 = vshll.u32 %v7527_v18, 16  ;;  %v14576_v44 = vld [vmem:[#allocation2 + $0x170] sm:$0x1] }
 0x517   : > { %15969 = vst [vmem:[#allocation277_spill] sm:$0xff] %v14550_v7  ;;  %v7530_v7 = vld [vmem:[#allocation2 + $0x174] sm:$0xf] }
 0x518   : > { %v8162_v5 = vor.u32 %v8161_v63, %v8157_v53  ;;  %v8153_v51 = vrot.slane %v8152_v37, 4  ;;  %v8179_v63 = vshll.u32 %v14560_v20, 16 }
 0x519   : > { %v4160_v52 = vpop.f32.mrf.mxu3 }
 0x51a   : > { %v14542_v24 = vadd.f32 %v4160_v52, %v15967_v1  ;;  %v11538_v52 = vld [vmem:[#allocation2 + $0x164] sm:$0x1] }
 0x51b   : > { %v8165_v1 = vshll.u32 %v11538_v52, 16  ;;  %v8172_v52 = vrot.slane %v8170_v60, 4  ;;  %v8189_v60 = vshll.u32 %v14576_v44, 16 }
 0x51c   : > { %15968 = vst [vmem:[#allocation49_spill] sm:$0xff] %v14542_v24  ;;  %v14558_v41 = vpop.f32.mrf.mxu1 }
 0x51d   : > { %v8167_v57 = vrot.slane %v8165_v1, 5  ;;  %v8175_v1 = vrot.slane %v8173_v13, 5 }
 0x51e   : > { %4202 = vmatmul.bf16.gmra.mxu3 %v3958_v4  ;;  %v8163_v4 = vrot.slane %v8162_v5, 4  ;;  %v14565_v46 = vpop.f32.mrf.mxu0  ;;  %v15975_v5 = vld [vmem:[#allocation176_spill] sm:$0xff] }
 0x51f   : > { %9367 = vmatmul.bf16.gmra.mxu1 %v9187_v10  ;;  %v11381_v10 = vld [vmem:[%s15575_s3 + $0x8] sm:$0xff]  ;;  %15974 = vst [vmem:[#allocation278_spill] sm:$0xff] %v14565_v46 }
 0x520   : > { %9755 = vmatpush.bf16.msra.mxu2 %v11381_v10  ;;  %v8168_v37 = vsel %vm11706_vm8, %v8163_v4, %v8167_v57  ;;  %v8176_v57 = vor.u32 %v8175_v1, %v8172_v52 }
 0x521   : > { %v4163_v54 = vpop.f32.mrf.mxu3  ;;  %v8381_v18 = vunpack.c.l.b16 %v8168_v37 }
 0x522   : > { %v14553_v55 = vadd.f32 %v4163_v54, %v15970_v14  ;;  %v8183_v54 = vshrl.u32 %v14560_v20, 16  ;;  %v11324_v14 = vld [vmem:[#allocation2 + $0x18] sm:$0xff] }
 0x524   : > { %15971 = vst [vmem:[#allocation51_spill] sm:$0xff] %v14553_v55  ;;  %8634 = vmatmul.bf16.gmra.mxu0 %v8418_v50  ;;  %v8158_v50 = vsel %vm11706_vm8, %v8153_v51, %v8157_v53  ;;  %v15977_v55 = vld [vmem:[#allocation123_spill] sm:$0xff]  ;;  %v14578_v46 = vpop.f32.mrf.mxu1 }
 0x525   : > { %v8380_v10 = vunpack.c.l.b16 %v8158_v50  ;;  %15978 = vst [vmem:[#allocation176_spill] sm:$0xff] %v14578_v46  ;;  %v15981_v50 = vld [vmem:[#allocation62_spill] sm:$0xff]  ;;  %v11540_v46 = vld [vmem:[#allocation2 + $0x17c] sm:$0x1] }
 0x526   : > { %v14583_v13 = vpop.f32.mrf.mxu0 }
 0x527   : > { %v8419_v4 = vpack.c.b16 %v8381_v18, %v8380_v10  ;;  %15980 = vst [vmem:[#allocation123_spill] sm:$0xff] %v14583_v13  ;;  %v11325_v10 = vld [vmem:[#allocation2 + $0x24] sm:$0xff]  ;;  %v8194_v18 = vshrl.u32 %v7530_v7, 16 }
 0x529   : > { %v4165_v12 = vpop.f32.mrf.mxu3 }
 0x52a   : > { %v14563_v48 = vadd.f32 %v4165_v12, %v15972_v39  ;;  %v8181_v12 = vrot.slane %v8179_v63, 5  ;;  %v8185_v39 = vrot.slane %v8183_v54, 4  ;;  %v8177_v63 = vrot.slane %v8176_v57, 4 }
 0x52c   : > { %15973 = vst [vmem:[#allocation53_spill] sm:$0xff] %v14563_v48  ;;  %v15976_v48 = vld [vmem:[#allocation58_spill] sm:$0xff]  ;;  %v8182_v52 = vsel %vm11706_vm8, %v8177_v63, %v8181_v12 }
 0x52d   : > { %v3484_v24 = vadd.f32 %v15977_v55, %v15976_v48  ;;  %v15982_v55 = vld [vmem:[#allocation127_spill] sm:$0xff] }
 0x52e   : > { %7224 = vmatmul.bf16.vlgmr.msra.gmra.mxu3 %v11324_v14  ;;  %v8191_v14 = vrot.slane %v8189_v60, 5  ;;  %v3486_v48 = vadd.f32 %v15982_v55, %v15981_v50  ;;  %v15986_v60 = vld [vmem:[#allocation66_spill] sm:$0xff]  ;;  %v15987_v50 = vld [vmem:[#allocation132_spill] sm:$0xff] }
 0x52f   : > { %9372 = vmatmul.bf16.gmra.mxu1 %v15975_v5  ;;  %v8186_v5 = vor.u32 %v8185_v39, %v8181_v12  ;;  %v8197_v39 = vshll.u32 %v7530_v7, 16  ;;  %v3489_v55 = vadd.f32 %v15987_v50, %v15986_v60  ;;  %v8196_v12 = vrot.slane %v8194_v18, 4  ;;  %v7533_v60 = vld [vmem:[#allocation2 + $0x180] sm:$0xf]  ;;  %v15991_v50 = vld [vmem:[#allocation70_spill] sm:$0xff] }
 0x531   : > { %v4168_v53 = vpop.f32.mrf.mxu3  ;;  %v8187_v54 = vrot.slane %v8186_v5, 4  ;;  %v15985_v5 = vld [vmem:[#allocation188_spill] sm:$0xff]  ;;  %v8199_v63 = vrot.slane %v8197_v39, 5 }
 0x532   : > { %v14580_v51 = vadd.f32 %v4168_v53, %v3484_v24  ;;  %v14589_v24 = vpop.f32.mrf.mxu1  ;;  %v11539_v53 = vld [vmem:[#allocation2 + $0x178] sm:$0xf] }
 0x533   : > { %15984 = vst [vmem:[#allocation127_spill] sm:$0xff] %v14589_v24  ;;  %v8192_v1 = vsel %vm11706_vm8, %v8187_v54, %v8191_v14  ;;  %v8207_v57 = vshrl.u32 %v11539_v53, 16  ;;  %v8200_v24 = vor.u32 %v8199_v63, %v8196_v12  ;;  %v11326_v63 = vld [vmem:[#allocation2 + $0x30] sm:$0xff] }
 0x534   : > { %15979 = vst [vmem:[#allocation58_spill] sm:$0xff] %v14580_v51  ;;  %8639 = vmatmul.bf16.gmra.mxu0 %v8419_v4  ;;  %v8203_v4 = vshll.u32 %v11539_v53, 16 }
 0x535   : > { %v8209_v54 = vrot.slane %v8207_v57, 4 }
 0x536   : > { %v8205_v51 = vrot.slane %v8203_v4, 5 }
 0x538   : > { %v8210_v53 = vor.u32 %v8209_v54, %v8205_v51 }
 0x539   : > { %v4170_v37 = vpop.f32.mrf.mxu3 }
 0x53a   : > { %v14587_v26 = vadd.f32 %v4170_v37, %v3486_v48  ;;  %v14598_v48 = vpop.f32.mrf.mxu0  ;;  %v8382_v37 = vunpack.c.l.b16 %v8182_v52  ;;  %v8211_v18 = vrot.slane %v8210_v53, 4 }
 0x53b   : > { %15988 = vst [vmem:[#allocation188_spill] sm:$0xff] %v14598_v48  ;;  %v15992_v48 = vld [vmem:[#allocation137_spill] sm:$0xff] }
 0x53c   : > { %15983 = vst [vmem:[#allocation62_spill] sm:$0xff] %v14587_v26  ;;  %v8383_v26 = vunpack.c.l.b16 %v8192_v1  ;;  %v3491_v52 = vadd.f32 %v15992_v48, %v15991_v50  ;;  %v8201_v1 = vrot.slane %v8200_v24, 4 }
 0x53e   : > { %7229 = vmatmul.bf16.gmra.mxu3 %v11325_v10  ;;  %v8420_v7 = vpack.c.b16 %v8383_v26, %v8382_v37  ;;  %v14602_v10 = vpop.f32.mrf.mxu1  ;;  %v8221_v26 = vshll.u32 %v7533_v60, 16  ;;  %v11541_v37 = vld [vmem:[#allocation2 + $0x184] sm:$0xf]  ;;  %v8206_v54 = vsel %vm11706_vm8, %v8201_v1, %v8205_v51 }
 0x53f   : > { %9377 = vmatmul.bf16.gmra.mxu1 %v15985_v5  ;;  %v8213_v5 = vshll.u32 %v11540_v46, 16  ;;  %15990 = vst [vmem:[#allocation132_spill] sm:$0xff] %v14602_v10  ;;  %v8227_v12 = vshll.u32 %v11541_v37, 16  ;;  %v8231_v46 = vshrl.u32 %v11541_v37, 16  ;;  %v15997_v37 = vld [vmem:[#allocation140_spill] sm:$0xff] }
 0x541   : > { %v4173_v14 = vpop.f32.mrf.mxu3  ;;  %v8215_v39 = vrot.slane %v8213_v5, 5  ;;  %v8229_v53 = vrot.slane %v8227_v12, 5  ;;  %v8233_v5 = vrot.slane %v8231_v46, 4 }
 0x542   : > { %v14600_v13 = vadd.f32 %v4173_v14, %v3489_v55  ;;  %v14606_v4 = vpop.f32.mrf.mxu0  ;;  %v8218_v55 = vshrl.u32 %v7533_v60, 16  ;;  %v8384_v60 = vunpack.c.l.b16 %v8206_v54  ;;  %v16000_v54 = vld [vmem:[#allocation145_spill] sm:$0xff] }
 0x543   : > { %15993 = vst [vmem:[#allocation70_spill] sm:$0xff] %v14606_v4  ;;  %v8216_v48 = vsel %vm11706_vm8, %v8211_v18, %v8215_v39  ;;  %v8234_v1 = vor.u32 %v8233_v5, %v8229_v53  ;;  %v11542_v18 = vld [vmem:[#allocation2 + $0x188] sm:$0x1] }
 0x544   : > { %15989 = vst [vmem:[#allocation66_spill] sm:$0xff] %v14600_v13  ;;  %8644 = vmatmul.bf16.gmra.mxu0 %v8420_v7  ;;  %v8220_v24 = vrot.slane %v8218_v55, 4  ;;  %v8223_v7 = vrot.slane %v8221_v26, 5  ;;  %v8237_v39 = vshll.u32 %v11542_v18, 16  ;;  %v9009_v18 = vrot.slane %v14406_v40, 5 }
 0x545   : > { %v8235_v12 = vrot.slane %v8234_v1, 4  ;;  %v11327_v1 = vld [vmem:[#allocation2 + $0x3c] sm:$0xff]  ;;  %v9012_v40 = vrot.slane %v14430_v36, 5 }
 0x546   : > { %v14615_v50 = vpop.f32.mrf.mxu1  ;;  %v8224_v51 = vor.u32 %v8223_v7, %v8220_v24  ;;  %v8239_v46 = vrot.slane %v8237_v39, 5  ;;  %v14633_v7 = vpop.f32.mrf.mxu2 }
 0x547   : > { %15995 = vst [vmem:[#allocation279_spill] sm:$0xff] %v14615_v50  ;;  %v7536_v50 = vld [vmem:[#allocation2 + $0x18c] sm:$0xf] }
 0x548   : > { %v8225_v26 = vrot.slane %v8224_v51, 4  ;;  %v8240_v24 = vsel %vm11706_vm8, %v8235_v12, %v8239_v46  ;;  %v8242_v5 = vshrl.u32 %v7536_v50, 16 }
 0x549   : > { %v4175_v57 = vpop.f32.mrf.mxu3 }
 0x54a   : > { %v14608_v14 = vadd.f32 %v4175_v57, %v3491_v52  ;;  %v8385_v52 = vunpack.c.l.b16 %v8216_v48  ;;  %v15996_v57 = vld [vmem:[#allocation74_spill] sm:$0xff] }
 0x54c   : > { %15994 = vst [vmem:[#allocation137_spill] sm:$0xff] %v14608_v14  ;;  %v3494_v14 = vadd.f32 %v15997_v37, %v15996_v57  ;;  %v8421_v55 = vpack.c.b16 %v8385_v52, %v8384_v60  ;;  %v8245_v60 = vshll.u32 %v7536_v50, 16  ;;  %v11543_v52 = vld [vmem:[#allocation2 + $0x190] sm:$0xf] }
 0x54d   : > { %v8251_v37 = vshll.u32 %v11543_v52, 16  ;;  %v8255_v51 = vshrl.u32 %v11543_v52, 16  ;;  %v8759_v52 = vld [vmem:[#allocation2 + $0x120] sm:$0xe] }
 0x54e   : > { %7234 = vmatmul.bf16.gmra.mxu3 %v11326_v63  ;;  %v15999_v63 = vld [vmem:[#allocation78_spill] sm:$0xff]  ;;  %v14625_v10 = vpop.f32.mrf.mxu1 }
 0x54f   : > { %9382 = vmatmul.bf16.gmra.mxu1 %v13793_v29  ;;  %v14621_v29 = vpop.f32.mrf.mxu0  ;;  %v3496_v48 = vadd.f32 %v16000_v54, %v15999_v63  ;;  %16002 = vst [vmem:[#allocation78_spill] sm:$0xff] %v14633_v7  ;;  %v8247_v63 = vrot.slane %v8245_v60, 5  ;;  %v8253_v12 = vrot.slane %v8251_v37, 5  ;;  %v8257_v46 = vrot.slane %v8255_v51, 4  ;;  %v16003_v54 = vld [vmem:[#allocation82_spill] sm:$0xff]  ;;  %v14648_v51 = vpop.f32.mrf.mxu2 }
 0x550   : > { %v11115_v60 = vrot.slane %v8759_v52, 9  ;;  %16006 = vst [vmem:[#allocation82_spill] sm:$0xff] %v14648_v51 }
 0x551   : > { %v4178_v13 = vpop.f32.mrf.mxu3 }
 0x552   : > { %v14619_v4 = vadd.f32 %v4178_v13, %v3494_v14  ;;  %v8230_v14 = vsel %vm11706_vm8, %v8225_v26, %v8229_v53  ;;  %v8387_v53 = vunpack.c.l.b16 %v8240_v24  ;;  %v8244_v26 = vrot.slane %v8242_v5, 4  ;;  %v11544_v24 = vld [vmem:[#allocation2 + $0x194] sm:$0x1] }
 0x553   : > { %v8261_v5 = vshll.u32 %v11544_v24, 16  ;;  %v9010_v36 = vsel %vm12268_vm15, %v11115_v60, %v9009_v18 }
 0x554   : > { %15998 = vst [vmem:[#allocation74_spill] sm:$0xff] %v14619_v4  ;;  %8649 = vmatmul.bf16.gmra.mxu0 %v8421_v55  ;;  %v8386_v55 = vunpack.c.l.b16 %v8230_v14  ;;  %v8258_v14 = vor.u32 %v8257_v46, %v8253_v12  ;;  %v16008_v46 = vld [vmem:[#allocation86_spill] sm:$0xff]  ;;  %v9148_v52 = vunpack.c.l.b16 %v9010_v36 }
 0x556   : > { %v14644_v7 = vpop.f32.mrf.mxu1 }
 0x557   : > { %v14636_v39 = vpop.f32.mrf.mxu0 }
 0x559   : > { %v4180_v57 = vpop.f32.mrf.mxu3 }
 0x55a   : > { %v14627_v13 = vadd.f32 %v4180_v57, %v3496_v48  ;;  %v16004_v48 = vld [vmem:[#allocation149_spill] sm:$0xff]  ;;  %v9011_v57 = vrot.slane %v9009_v18, 4 }
 0x55b   : > { %v3499_v50 = vadd.f32 %v16004_v48, %v16003_v54  ;;  %v16009_v48 = vld [vmem:[#allocation154_spill] sm:$0xff] }
 0x55c   : > { %16001 = vst [vmem:[#allocation140_spill] sm:$0xff] %v14627_v13  ;;  %v9013_v37 = vsel %vm12268_vm15, %v9011_v57, %v9012_v40  ;;  %v7539_v40 = vld [vmem:[#allocation2 + $0x198] sm:$0xf] }
 0x55d   : > { %v8269_v60 = vshll.u32 %v7539_v40, 16 }
 0x55e   : > { %7239 = vmatmul.bf16.gmra.mxu3 %v11327_v1  ;;  %v8248_v1 = vor.u32 %v8247_v63, %v8244_v26  ;;  %v8259_v26 = vrot.slane %v8258_v14, 4  ;;  %v8263_v63 = vrot.slane %v8261_v5, 5  ;;  %v11328_v14 = vld [vmem:[#allocation2 + $0x48] sm:$0xff]  ;;  %v8266_v5 = vshrl.u32 %v7539_v40, 16  ;;  %v14668_v36 = vpop.f32.mrf.mxu1 }
 0x55f   : > { %9387 = vmatmul.bf16.gmra.mxu1 %v14033_v45  ;;  %v8422_v45 = vpack.c.b16 %v8387_v53, %v8386_v55  ;;  %v14655_v54 = vpop.f32.mrf.mxu0  ;;  %v9149_v55 = vunpack.c.l.b16 %v9013_v37  ;;  %v8275_v37 = vshll.u32 %v14360_v43, 16 }
 0x560   : > { %16007 = vst [vmem:[#allocation149_spill] sm:$0xff] %v14655_v54  ;;  %v8249_v53 = vrot.slane %v8248_v1, 4  ;;  %v8264_v18 = vsel %vm11706_vm8, %v8259_v26, %v8263_v63  ;;  %v9016_v1 = vrot.slane %v14437_v58, 5  ;;  %v8760_v58 = vld [vmem:[#allocation2 + $0x12c] sm:$0xe] }
 0x561   : > { %v4183_v13 = vpop.f32.mrf.mxu3  ;;  %v9192_v24 = vpack.c.b16 %v9149_v55, %v9148_v52  ;;  %v16011_v55 = vld [vmem:[#allocation90_spill] sm:$0xff]  ;;  %v8389_v26 = vunpack.c.l.b16 %v8264_v18  ;;  %v8277_v52 = vrot.slane %v8275_v37, 5  ;;  %v11116_v54 = vrot.slane %v8760_v58, 9 }
 0x562   : > { %v14641_v4 = vadd.f32 %v4183_v13, %v3499_v50  ;;  %v11380_v13 = vld [vmem:[%s15575_s3] sm:$0xff]  ;;  %v3501_v50 = vadd.f32 %v16009_v48, %v16008_v46  ;;  %v16012_v46 = vld [vmem:[#allocation158_spill] sm:$0xff]  ;;  %v9018_v63 = vrot.slane %v9016_v1, 4 }
 0x563   : > { %9756 = vmatpush.bf16.msra.mxu2 %v11380_v13  ;;  %v8279_v13 = vshrl.u32 %v14360_v43, 16  ;;  %v3504_v48 = vadd.f32 %v16012_v46, %v16011_v55  ;;  %v11545_v46 = vld [vmem:[#allocation2 + $0x1a0] sm:$0x1] }
 0x564   : > { %16005 = vst [vmem:[#allocation145_spill] sm:$0xff] %v14641_v4  ;;  %8654 = vmatmul.bf16.gmra.mxu0 %v8422_v45  ;;  %v8254_v4 = vsel %vm11706_vm8, %v8249_v53, %v8253_v12  ;;  %v14672_v12 = vpop.f32.mrf.mxu2 }
 0x565   : > { %16013 = vst [vmem:[#allocation154_spill] sm:$0xff] %v14672_v12  ;;  %v8388_v53 = vunpack.c.l.b16 %v8254_v4  ;;  %v8281_v40 = vrot.slane %v8279_v13, 4  ;;  %v8285_v12 = vshll.u32 %v11545_v46, 16  ;;  %v16015_v13 = vld [vmem:[#allocation94_spill] sm:$0xff] }
 0x567   : > { %v8282_v18 = vor.u32 %v8281_v40, %v8277_v52 }
 0x569   : > { %v4185_v57 = vpop.f32.mrf.mxu3 }
 0x56a   : > { %v14659_v45 = vadd.f32 %v4185_v57, %v3501_v50  ;;  %v8268_v50 = vrot.slane %v8266_v5, 4  ;;  %v8271_v57 = vrot.slane %v8269_v60, 5  ;;  %v9017_v5 = vsel %vm12268_vm15, %v11116_v54, %v9016_v1  ;;  %v14683_v60 = vpop.f32.mrf.mxu1 }
 0x56c   : > { %16010 = vst [vmem:[#allocation86_spill] sm:$0xff] %v14659_v45  ;;  %v14674_v45 = vpop.f32.mrf.mxu0  ;;  %v8272_v4 = vor.u32 %v8271_v57, %v8268_v50  ;;  %v14687_v58 = vpop.f32.mrf.mxu2  ;;  %v9150_v50 = vunpack.c.l.b16 %v9017_v5 }
 0x56d   : > { %16017 = vst [vmem:[#allocation158_spill] sm:$0xff] %v14687_v58 }
 0x56e   : > { %7244 = vmatmul.bf16.gmra.mxu3 %v11328_v14  ;;  %v8423_v14 = vpack.c.b16 %v8389_v26, %v8388_v53  ;;  %v8283_v53 = vrot.slane %v8282_v18, 4  ;;  %v8287_v26 = vrot.slane %v8285_v12, 5  ;;  %v16020_v18 = vld [vmem:[#allocation165_spill] sm:$0xff] }
 0x56f   : > { %9392 = vmatmul.bf16.gmra.mxu1 %v9192_v24  ;;  %v9019_v24 = vrot.slane %v14458_v38, 5  ;;  %v8273_v38 = vrot.slane %v8272_v4, 4  ;;  %v16019_v4 = vld [vmem:[#allocation98_spill] sm:$0xff] }
 0x570   : > { %v8288_v1 = vsel %vm11706_vm8, %v8283_v53, %v8287_v26  ;;  %v3509_v46 = vadd.f32 %v16020_v18, %v16019_v4  ;;  %v16028_v4 = vld [vmem:[#allocation173_spill] sm:$0xff] }
 0x571   : > { %v4188_v43 = vpop.f32.mrf.mxu3  ;;  %v9020_v55 = vsel %vm12268_vm15, %v9018_v63, %v9019_v24  ;;  %v8278_v54 = vsel %vm11706_vm8, %v8273_v38, %v8277_v52  ;;  %v8391_v12 = vunpack.c.l.b16 %v8288_v1  ;;  %v16023_v52 = vld [vmem:[#allocation102_spill] sm:$0xff]  ;;  %v16024_v38 = vld [vmem:[#allocation169_spill] sm:$0xff]  ;;  %v16027_v1 = vld [vmem:[#allocation107_spill] sm:$0xff] }
 0x572   : > { %v14676_v51 = vadd.f32 %v4188_v43, %v3504_v48  ;;  %v9151_v37 = vunpack.c.l.b16 %v9020_v55  ;;  %v16016_v48 = vld [vmem:[#allocation161_spill] sm:$0xff]  ;;  %v8390_v55 = vunpack.c.l.b16 %v8278_v54  ;;  %v14699_v5 = vpop.f32.mrf.mxu1  ;;  %v3511_v53 = vadd.f32 %v16024_v38, %v16023_v52  ;;  %v16032_v52 = vld [vmem:[#allocation178_spill] sm:$0xff] }
 0x573   : > { %v3506_v43 = vadd.f32 %v16016_v48, %v16015_v13 }
 0x574   : > { %16014 = vst [vmem:[#allocation90_spill] sm:$0xff] %v14676_v51  ;;  %8659 = vmatmul.bf16.gmra.mxu0 %v8423_v14  ;;  %v14691_v40 = vpop.f32.mrf.mxu0  ;;  %v9193_v24 = vpack.c.b16 %v9151_v37, %v9150_v50  ;;  %v11329_v14 = vld [vmem:[#allocation2 + $0x54] sm:$0xff]  ;;  %v14703_v37 = vpop.f32.mrf.mxu2 }
 0x575   : > { %16022 = vst [vmem:[#allocation98_spill] sm:$0xff] %v14703_v37  ;;  %v16043_v51 = vld [vmem:[#allocation4_spill] sm:$0xff] }
 0x579   : > { %v4190_v63 = vpop.f32.mrf.mxu3 }
 0x57a   : > { %v14689_v57 = vadd.f32 %v4190_v63, %v3506_v43  ;;  %v8424_v43 = vpack.c.b16 %v8391_v12, %v8390_v55  ;;  %v3514_v55 = vadd.f32 %v16028_v4, %v16027_v1  ;;  %v16035_v1 = vld [vmem:[#allocation181_spill] sm:$0xff] }
 0x57c   : > { %16018 = vst [vmem:[#allocation94_spill] sm:$0xff] %v14689_v57  ;;  %v14705_v63 = vpop.f32.mrf.mxu0  ;;  %v14713_v54 = vpop.f32.mrf.mxu2  ;;  %v16039_v57 = vld [vmem:[#allocation185_spill] sm:$0xff] }
 0x57d   : > { %16026 = vst [vmem:[#allocation102_spill] sm:$0xff] %v14713_v54 }
 0x57e   : > { %7249 = vmatmul.bf16.gmra.mxu3 %v11329_v14  ;;  %v11330_v14 = vld [vmem:[#allocation2 + $0x60] sm:$0xff] }
 0x57f   : > { %9397 = vmatmul.bf16.gmra.mxu1 %v9193_v24  ;;  %v14711_v24 = vpop.f32.mrf.mxu1 }
 0x581   : > { %v4193_v13 = vpop.f32.mrf.mxu3 }
 0x582   : > { %v14701_v48 = vadd.f32 %v4193_v13, %v3509_v46 }
 0x584   : > { %16021 = vst [vmem:[#allocation161_spill] sm:$0xff] %v14701_v48  ;;  %8664 = vmatmul.bf16.gmra.mxu0 %v8424_v43  ;;  %v14722_v13 = vpop.f32.mrf.mxu2  ;;  %v16031_v43 = vld [vmem:[#allocation111_spill] sm:$0xff] }
 0x585   : > { %16030 = vst [vmem:[#allocation107_spill] sm:$0xff] %v14722_v13  ;;  %v3516_v38 = vadd.f32 %v16032_v52, %v16031_v43  ;;  %v16038_v48 = vld [vmem:[#allocation119_spill] sm:$0xff]  ;;  %v16040_v52 = vld [vmem:[#allocation190_spill] sm:$0xff] }
 0x586   : > { %v3521_v43 = vadd.f32 %v16039_v57, %v16038_v48  ;;  %v16046_v57 = vld [vmem:[#allocation22_spill] sm:$0xff] }
 0x587   : > { %v14720_v46 = vpop.f32.mrf.mxu1 }
 0x589   : > { %v4195_v26 = vpop.f32.mrf.mxu3 }
 0x58a   : > { %v14709_v50 = vadd.f32 %v4195_v26, %v3511_v53 }
 0x58c   : > { %16025 = vst [vmem:[#allocation165_spill] sm:$0xff] %v14709_v50  ;;  %v11331_v50 = vld [vmem:[#allocation2 + $0x6c] sm:$0xff] }
 0x58e   : > { %7254 = vmatmul.bf16.gmra.mxu3 %v11330_v14  ;;  %v16034_v14 = vld [vmem:[#allocation116_spill] sm:$0xff] }
 0x58f   : > { %9402 = vmatmul.bf16.gmra.mxu1 %v14101_v8  ;;  %v14729_v8 = vpop.f32.mrf.mxu1  ;;  %v3519_v4 = vadd.f32 %v16035_v1, %v16034_v14  ;;  %v16044_v1 = vld [vmem:[#allocation194_spill] sm:$0xff] }
 0x591   : > { %v4198_v12 = vpop.f32.mrf.mxu3 }
 0x592   : > { %v14718_v18 = vadd.f32 %v4198_v12, %v3514_v55  ;;  %v14733_v55 = vpop.f32.mrf.mxu2 }
 0x593   : > { %16036 = vst [vmem:[#allocation111_spill] sm:$0xff] %v14733_v55 }
 0x594   : > { %16029 = vst [vmem:[#allocation169_spill] sm:$0xff] %v14718_v18 }
 0x599   : > { %v4200_v53 = vpop.f32.mrf.mxu3 }
 0x59a   : > { %v14726_v26 = vadd.f32 %v4200_v53, %v3516_v38  ;;  %v16041_v38 = vld [vmem:[#allocation21_spill] sm:$0xff]  ;;  %v14747_v14 = vpop.f32.mrf.mxu2 }
 0x59b   : > { %v4762_v53 = vadd.f32 %v16041_v38, %v16040_v52  ;;  %v16047_v52 = vld [vmem:[#allocation54_spill] sm:$0xff] }
 0x59c   : > { %16033 = vst [vmem:[#allocation173_spill] sm:$0xff] %v14726_v26  ;;  %v14741_v26 = vpop.f32.mrf.mxu1 }
 0x59e   : > { %7259 = vmatmul.bf16.gmra.mxu3 %v11331_v50  ;;  %v16042_v50 = vld [vmem:[#allocation5_spill] sm:$0xff] }
 0x59f   : > { %9407 = vmatmul.bf16.gmra.mxu1 %v14128_v28  ;;  %v3366_v13 = vadd.f32 %v16043_v51, %v16042_v50  ;;  %v16048_v51 = vld [vmem:[#allocation60_spill] sm:$0xff] }
 0x5a0   : > { %v16049_v50 = vld [vmem:[#allocation24_spill] sm:$0xff] }
 0x5a1   : > { %v4203_v12 = vpop.f32.mrf.mxu3  ;;  %v4209_v55 = vadd.f32 %v16044_v1, %v3366_v13  ;;  %v16050_v1 = vld [vmem:[#allocation57_spill] sm:$0xff] }
 0x5a2   : > { %v14735_v18 = vadd.f32 %v4203_v12, %v3519_v4  ;;  %v11332_v4 = vld [vmem:[#allocation2 + $0x78] sm:$0xff] }
 0x5a3   : > { %v16045_v12 = vld [vmem:[#allocation56_spill] sm:$0xff]  ;;  %v4763_v48 = vadd.f32 %v16046_v57, %v4209_v55  ;;  %v11333_v57 = vld [vmem:[#allocation2 + $0x84] sm:$0xff] }
 0x5a4   : > { %16037 = vst [vmem:[#allocation178_spill] sm:$0xff] %v14735_v18  ;;  %v6052_v18 = vadd.f32 %v16045_v12, %v4762_v53  ;;  %v14754_v58 = vpop.f32.mrf.mxu1  ;;  %v4764_v53 = vadd.f32 %v16049_v50, %v13776_v32 }
 0x5a6   : > { %v6830_v38 = vadd.f32 %v16047_v52, %v6052_v18 }
 0x5a9   : > { %v4205_v28 = vpop.f32.mrf.mxu3 }
 0x5aa   : > { %v14745_v54 = vadd.f32 %v4205_v28, %v3521_v43  ;;  %v6053_v43 = vadd.f32 %v16048_v51, %v4763_v48  ;;  %v14757_v28 = vpop.f32.mrf.mxu2  ;;  %v16051_v48 = vld [vmem:[#allocation64_spill] sm:$0xff]  ;;  %v16052_v51 = vld [vmem:[#allocation26_spill] sm:$0xff] }
 0x5ab   : > { %v6054_v52 = vadd.f32 %v16051_v48, %v4764_v53  ;;  %v16053_v53 = vld [vmem:[#allocation61_spill] sm:$0xff] }
 0x5ac   : > { %v14772_v32 = vpop.f32.mrf.mxu1 }
 0x5ae   : > { %7264 = vmatmul.bf16.gmra.mxu3 %v11332_v4 }
 0x5af   : > { %9412 = vmatmul.bf16.gmra.mxu1 %v14143_v62  ;;  %v6831_v62 = vadd.f32 %v16050_v1, %v6053_v43  ;;  %v4765_v43 = vadd.f32 %v16052_v51, %v13807_v15  ;;  %v6832_v1 = vadd.f32 %v16053_v53, %v6054_v52 }
 0x5b1   : > { %v7225_v37 = vpop.f32.mrf.mxu3 }
 0x5b2   : > { %v7385_v0 = vadd.f32 %v7225_v37, %v6830_v38  ;;  %v14767_v37 = vld [vmem:[%s15577_s5] ss:$0 sm:$0xff] }
 0x5b4   : > { %v8675_v13 = vadd.f32 %v14099_v17, %v7385_v0  ;;  %v8765_v0 = vld [vmem:[#allocation2 + $0x168] sm:$0xe]  ;;  %v9051_v17 = vrot.slane %v14560_v20, 5  ;;  %v14790_v52 = vpop.f32.mrf.mxu1 }
 0x5b6   : > { %v9453_v55 = vadd.f32 %v14356_v47, %v8675_v13  ;;  %v14779_v13 = vpop.f32.mrf.mxu2  ;;  %v9053_v20 = vrot.slane %v9051_v17, 4 }
 0x5b8   : > { %v9521_v47 = vadd.f32 %v14767_v37, %v9453_v55 }
 0x5b9   : > { %v7227_v4 = vpop.f32.mrf.mxu3 }
 0x5ba   : > { %v7386_v18 = vadd.f32 %v7227_v4, %v6831_v62  ;;  %v9054_v62 = vrot.slane %v14576_v44, 5 }
 0x5bc   : > { %v8676_v12 = vadd.f32 %v14116_v21, %v7386_v18  ;;  %v11121_v21 = vrot.slane %v8765_v0, 9 }
 0x5be   : > { %v9454_v38 = vadd.f32 %v14373_v31, %v8676_v12  ;;  %7269 = vmatmul.bf16.gmra.mxu3 %v11333_v57  ;;  %v16054_v31 = vld [vmem:[#allocation68_spill] sm:$0xff]  ;;  %v9052_v15 = vsel %vm12268_vm15, %v11121_v21, %v9051_v17  ;;  %v9055_v57 = vsel %vm12268_vm15, %v9053_v20, %v9054_v62 }
 0x5bf   : > { %9417 = vmatmul.bf16.gmra.mxu1 %v14172_v25  ;;  %v9585_v25 = vmax.f32 %v9521_v47, 0.0  ;;  %v6055_v12 = vadd.f32 %v16054_v31, %v4765_v43  ;;  %v9161_v44 = vunpack.c.l.b16 %v9055_v57  ;;  %v16055_v47 = vld [vmem:[#allocation28_spill] sm:$0xff]  ;;  %v16059_v31 = vld [vmem:[#allocation69_spill] sm:$0xff] }
 0x5c0   : > { %v9522_v50 = vadd.f32 %v14767_v37, %v9454_v38  ;;  %v9160_v38 = vunpack.c.l.b16 %v9052_v15  ;;  %v4766_v51 = vadd.f32 %v16055_v47, %v13832_v59  ;;  %v16057_v62 = vld [vmem:[#allocation72_spill] sm:$0xff]  ;;  %v14806_v15 = vpop.f32.mrf.mxu1 }
 0x5c1   : > { %v7230_v4 = vpop.f32.mrf.mxu3 }
 0x5c2   : > { %v9586_v18 = vmax.f32 %v9522_v50, 0.0  ;;  %v7387_v55 = vadd.f32 %v7230_v4, %v6832_v1  ;;  %v16056_v50 = vld [vmem:[#allocation65_spill] sm:$0xff]  ;;  %v14795_v1 = vpop.f32.mrf.mxu2  ;;  %v9198_v4 = vpack.c.b16 %v9161_v44, %v9160_v38 }
 0x5c3   : > { %v6833_v53 = vadd.f32 %v16056_v50, %v6055_v12 }
 0x5c4   : > { %v9649_v48 = vpack.c.bf16 %v9586_v18, %v9585_v25  ;;  %v8677_v0 = vadd.f32 %v14135_v19, %v7387_v55  ;;  %v11334_v19 = vld [vmem:[#allocation2 + $0x90] sm:$0xff]  ;;  %v6056_v25 = vadd.f32 %v16057_v62, %v4766_v51  ;;  %v16058_v55 = vld [vmem:[#allocation30_spill] sm:$0xff] }
 0x5c6   : > { %9757 = vmatmul.bf16.vlgmr.msra.gmra.mxu2 %v9649_v48  ;;  %v9455_v17 = vadd.f32 %v14386_v34, %v8677_v0  ;;  %v4767_v48 = vadd.f32 %v16058_v55, %v13871_v42  ;;  %v6834_v12 = vadd.f32 %v16059_v31, %v6056_v25  ;;  %v16061_v42 = vld [vmem:[#allocation32_spill] sm:$0xff]  ;;  %v16065_v31 = vld [vmem:[#allocation77_spill] sm:$0xff] }
 0x5c7   : > { %v11335_v25 = vld [vmem:[#allocation2 + $0x9c] sm:$0xff] }
 0x5c8   : > { %v9523_v59 = vadd.f32 %v14767_v37, %v9455_v17 }
 0x5c9   : > { %v7232_v43 = vpop.f32.mrf.mxu3 }
 0x5ca   : > { %v7388_v21 = vadd.f32 %v7232_v43, %v6833_v53  ;;  %v9587_v0 = vmax.f32 %v9523_v59, 0.0  ;;  %v14808_v44 = vpop.f32.mrf.mxu2  ;;  %v4768_v53 = vadd.f32 %v16061_v42, %v13891_v33  ;;  %v16062_v43 = vld [vmem:[#allocation73_spill] sm:$0xff] }
 0x5cb   : > { %v16068_v42 = vld [vmem:[#allocation81_spill] sm:$0xff] }
 0x5cc   : > { %v8678_v20 = vadd.f32 %v14152_v56, %v7388_v21 }
 0x5ce   : > { %v9456_v18 = vadd.f32 %v14398_v9, %v8678_v20  ;;  %7274 = vmatmul.bf16.gmra.mxu3 %v11334_v19  ;;  %v16060_v9 = vld [vmem:[#allocation76_spill] sm:$0xff]  ;;  %v14816_v19 = vpop.f32.mrf.mxu1 }
 0x5cf   : > { %9422 = vmatmul.bf16.gmra.mxu1 %v9198_v4  ;;  %v6057_v51 = vadd.f32 %v16060_v9, %v4767_v48  ;;  %v16064_v48 = vld [vmem:[#allocation34_spill] sm:$0xff] }
 0x5d0   : > { %v9524_v34 = vadd.f32 %v14767_v37, %v9456_v18  ;;  %v16063_v18 = vld [vmem:[#allocation80_spill] sm:$0xff] }
 0x5d1   : > { %v7235_v57 = vpop.f32.mrf.mxu3  ;;  %v6835_v17 = vadd.f32 %v16062_v43, %v6057_v51  ;;  %v6058_v59 = vadd.f32 %v16063_v18, %v4768_v53 }
 0x5d2   : > { %v7389_v56 = vadd.f32 %v7235_v57, %v6834_v12  ;;  %v9588_v38 = vmax.f32 %v9524_v34, 0.0  ;;  %v14820_v55 = vpop.f32.mrf.mxu2 }
 0x5d3   : > { %v6836_v12 = vadd.f32 %v16065_v31, %v6058_v59  ;;  %v16071_v59 = vld [vmem:[#allocation249_spill] sm:$0xff] }
 0x5d4   : > { %v9650_v47 = vpack.c.bf16 %v9588_v38, %v9587_v0  ;;  %v8679_v50 = vadd.f32 %v14164_v27, %v7389_v56 }
 0x5d6   : > { %9762 = vmatmul.bf16.gmra.mxu2 %v9650_v47  ;;  %v9457_v4 = vadd.f32 %v14411_v22, %v8679_v50  ;;  %v4769_v22 = vadd.f32 %v16064_v48, %v13925_v23  ;;  %v16066_v47 = vld [vmem:[#allocation84_spill] sm:$0xff] }
 0x5d7   : > { %v16067_v23 = vld [vmem:[#allocation36_spill] sm:$0xff] }
 0x5d8   : > { %v9525_v33 = vadd.f32 %v14767_v37, %v9457_v4  ;;  %v6059_v9 = vadd.f32 %v16066_v47, %v4769_v22  ;;  %v4770_v50 = vadd.f32 %v16067_v23, %v13942_v2  ;;  %v16069_v4 = vld [vmem:[#allocation243_spill] sm:$0xff]  ;;  %v16073_v2 = vld [vmem:[#allocation217_spill] sm:$0xff]  ;;  %v16074_v22 = vld [vmem:[#allocation38_spill] sm:$0xff] }
 0x5d9   : > { %v7237_v21 = vpop.f32.mrf.mxu3  ;;  %v4771_v31 = vadd.f32 %v16074_v22, %v16073_v2  ;;  %v16077_v23 = vld [vmem:[#allocation245_spill] sm:$0xff]  ;;  %v16083_v2 = vld [vmem:[#allocation96_spill] sm:$0xff] }
 0x5da   : > { %v7390_v20 = vadd.f32 %v7237_v21, %v6835_v17  ;;  %v9589_v56 = vmax.f32 %v9525_v33, 0.0  ;;  %v14833_v51 = vpop.f32.mrf.mxu2  ;;  %v6837_v53 = vadd.f32 %v16068_v42, %v6059_v9  ;;  %v16076_v9 = vld [vmem:[#allocation92_spill] sm:$0xff]  ;;  %v16078_v42 = vld [vmem:[#allocation221_spill] sm:$0xff] }
 0x5dc   : > { %v8680_v62 = vadd.f32 %v14181_v3, %v7390_v20 }
 0x5de   : > { %v9458_v27 = vadd.f32 %v14428_v11, %v8680_v62  ;;  %7279 = vmatmul.bf16.gmra.mxu3 %v11335_v25  ;;  %v11336_v62 = vld [vmem:[#allocation2 + $0xa8] sm:$0xff]  ;;  %v16070_v25 = vld [vmem:[#allocation88_spill] sm:$0xff] }
 0x5df   : > { %9427 = vmatmul.bf16.gmra.mxu1 %v14230_v6  ;;  %v14830_v6 = vpop.f32.mrf.mxu1  ;;  %v6060_v18 = vadd.f32 %v16070_v25, %v4770_v50 }
 0x5e0   : > { %v9526_v34 = vadd.f32 %v14767_v37, %v9458_v27 }
 0x5e1   : > { %v7240_v3 = vpop.f32.mrf.mxu3 }
 0x5e2   : > { %v7391_v57 = vadd.f32 %v7240_v3, %v6836_v12  ;;  %v9590_v0 = vmax.f32 %v9526_v34, 0.0  ;;  %v16075_v12 = vld [vmem:[#allocation85_spill] sm:$0xff]  ;;  %v14850_v3 = vpop.f32.mrf.mxu2 }
 0x5e4   : > { %v9651_v38 = vpack.c.bf16 %v9590_v0, %v9589_v56  ;;  %v8681_v11 = vadd.f32 %v14196_v30, %v7391_v57  ;;  %v16072_v30 = vld [vmem:[#allocation35_spill] sm:$0xff] }
 0x5e6   : > { %9767 = vmatmul.bf16.gmra.mxu2 %v9651_v38  ;;  %v9459_v17 = vadd.f32 %v14442_v61, %v8681_v11  ;;  %v6838_v61 = vadd.f32 %v16075_v12, %v6060_v18  ;;  %v6061_v11 = vadd.f32 %v16076_v9, %v4771_v31  ;;  %v16084_v31 = vld [vmem:[#allocation254_spill] sm:$0xff]  ;;  %v16085_v12 = vld [vmem:[#allocation272_spill] sm:$0xff] }
 0x5e7   : > { %v14844_v48 = vpop.f32.mrf.mxu1 }
 0x5e8   : > { %v9527_v33 = vadd.f32 %v14767_v37, %v9459_v17  ;;  %v16080_v17 = vld [vmem:[#allocation89_spill] sm:$0xff] }
 0x5e9   : > { %v7242_v43 = vpop.f32.mrf.mxu3 }
 0x5ea   : > { %v7392_v21 = vadd.f32 %v7242_v43, %v6837_v53  ;;  %v9591_v0 = vmax.f32 %v9527_v33, 0.0  ;;  %v16079_v53 = vld [vmem:[#allocation40_spill] sm:$0xff] }
 0x5eb   : > { %v4772_v43 = vadd.f32 %v16079_v53, %v16078_v42  ;;  %v11337_v33 = vld [vmem:[#allocation2 + $0xb4] sm:$0xff] }
 0x5ec   : > { %v8682_v20 = vadd.f32 %v16069_v4, %v7392_v21  ;;  %v6839_v21 = vadd.f32 %v16080_v17, %v6061_v11  ;;  %v16089_v17 = vld [vmem:[#allocation100_spill] sm:$0xff] }
 0x5ed   : > { %v6062_v22 = vadd.f32 %v16083_v2, %v4772_v43 }
 0x5ee   : > { %v9460_v27 = vadd.f32 %v16072_v30, %v8682_v20  ;;  %7284 = vmatmul.bf16.gmra.mxu3 %v11336_v62  ;;  %v16081_v62 = vld [vmem:[#allocation271_spill] sm:$0xff] }
 0x5ef   : > { %9432 = vmatmul.bf16.gmra.mxu1 %v16071_v59  ;;  %v14857_v4 = vpop.f32.mrf.mxu1  ;;  %v14860_v59 = vpop.f32.mrf.mxu2  ;;  %v16082_v30 = vld [vmem:[#allocation247_spill] sm:$0xff] }
 0x5f0   : > { %v9528_v34 = vadd.f32 %v14767_v37, %v9460_v27 }
 0x5f1   : > { %v7245_v57 = vpop.f32.mrf.mxu3 }
 0x5f2   : > { %v7393_v56 = vadd.f32 %v7245_v57, %v6838_v61  ;;  %v9592_v38 = vmax.f32 %v9528_v34, 0.0  ;;  %v16086_v57 = vld [vmem:[#allocation225_spill] sm:$0xff] }
 0x5f4   : > { %v9652_v47 = vpack.c.bf16 %v9592_v38, %v9591_v0  ;;  %v8683_v50 = vadd.f32 %v16077_v23, %v7393_v56  ;;  %v16087_v56 = vld [vmem:[#allocation42_spill] sm:$0xff]  ;;  %v16088_v38 = vld [vmem:[#allocation93_spill] sm:$0xff] }
 0x5f5   : > { %v4773_v0 = vadd.f32 %v16087_v56, %v16086_v57  ;;  %v11338_v56 = vld [vmem:[#allocation2 + $0xc0] sm:$0xff] }
 0x5f6   : > { %9772 = vmatmul.bf16.gmra.mxu2 %v9652_v47  ;;  %v9461_v25 = vadd.f32 %v16081_v62, %v8683_v50  ;;  %v6840_v47 = vadd.f32 %v16088_v38, %v6062_v22  ;;  %v16090_v62 = vld [vmem:[#allocation250_spill] sm:$0xff]  ;;  %v16096_v38 = vld [vmem:[#allocation104_spill] sm:$0xff] }
 0x5f7   : > { %v14871_v53 = vpop.f32.mrf.mxu1 }
 0x5f8   : > { %v9529_v34 = vadd.f32 %v14767_v37, %v9461_v25 }
 0x5f9   : > { %v7247_v20 = vpop.f32.mrf.mxu3 }
 0x5fa   : > { %v7394_v18 = vadd.f32 %v7247_v20, %v6839_v21  ;;  %v9593_v50 = vmax.f32 %v9529_v34, 0.0  ;;  %v6063_v21 = vadd.f32 %v16089_v17, %v4773_v0  ;;  %v14874_v20 = vpop.f32.mrf.mxu2  ;;  %v16095_v34 = vld [vmem:[#allocation252_spill] sm:$0xff]  ;;  %v16100_v17 = vld [vmem:[#allocation46_spill] sm:$0xff] }
 0x5fc   : > { %v8684_v27 = vadd.f32 %v16082_v30, %v7394_v18  ;;  %v16091_v18 = vld [vmem:[#allocation229_spill] sm:$0xff]  ;;  %v16092_v30 = vld [vmem:[#allocation44_spill] sm:$0xff] }
 0x5fe   : > { %v9462_v61 = vadd.f32 %v16085_v12, %v8684_v27  ;;  %7289 = vmatmul.bf16.gmra.mxu3 %v11337_v33  ;;  %v4774_v27 = vadd.f32 %v16092_v30, %v16091_v18  ;;  %v16093_v33 = vld [vmem:[#allocation97_spill] sm:$0xff] }
 0x5ff   : > { %9437 = vmatmul.bf16.gmra.mxu1 %v16084_v31  ;;  %v6841_v2 = vadd.f32 %v16093_v33, %v6063_v21  ;;  %v16094_v31 = vld [vmem:[#allocation143_spill] sm:$0xff]  ;;  %v14883_v0 = vpop.f32.mrf.mxu1 }
 0x600   : > { %v9530_v9 = vadd.f32 %v14767_v37, %v9462_v61 }
 0x601   : > { %v7250_v11 = vpop.f32.mrf.mxu3 }
 0x602   : > { %v7395_v23 = vadd.f32 %v7250_v11, %v6840_v47  ;;  %v9594_v42 = vmax.f32 %v9530_v9, 0.0  ;;  %v6064_v47 = vadd.f32 %v16096_v38, %v4774_v27  ;;  %v16097_v9 = vld [vmem:[#allocation267_spill] sm:$0xff] }
 0x603   : > { %v16098_v11 = vld [vmem:[#allocation275_spill] sm:$0xff] }
 0x604   : > { %v9653_v43 = vpack.c.bf16 %v9594_v42, %v9593_v50  ;;  %v8685_v25 = vadd.f32 %v16090_v62, %v7395_v23  ;;  %v14888_v42 = vpop.f32.mrf.mxu2  ;;  %v16101_v62 = vld [vmem:[#allocation101_spill] sm:$0xff] }
 0x606   : > { %9777 = vmatmul.bf16.gmra.mxu2 %v9653_v43  ;;  %v9463_v12 = vadd.f32 %v16094_v31, %v8685_v25  ;;  %v16099_v43 = vld [vmem:[#allocation232_spill] sm:$0xff]  ;;  %v6842_v25 = vadd.f32 %v16101_v62, %v6064_v47  ;;  %v16102_v31 = vld [vmem:[#allocation109_spill] sm:$0xff]  ;;  %v11339_v62 = vld [vmem:[#allocation2 + $0xcc] sm:$0xff] }
 0x607   : > { %v4775_v21 = vadd.f32 %v16100_v17, %v16099_v43 }
 0x608   : > { %v9531_v50 = vadd.f32 %v14767_v37, %v9463_v12  ;;  %v16104_v12 = vld [vmem:[#allocation6_spill] sm:$0xff] }
 0x609   : > { %v7252_v22 = vpop.f32.mrf.mxu3 }
 0x60a   : > { %v7396_v61 = vadd.f32 %v7252_v22, %v6841_v2  ;;  %v9595_v33 = vmax.f32 %v9531_v50, 0.0  ;;  %v16107_v50 = vld [vmem:[#allocation258_spill] sm:$0xff] }
 0x60c   : > { %v8686_v57 = vadd.f32 %v16095_v34, %v7396_v61  ;;  %v6065_v61 = vadd.f32 %v16102_v31, %v4775_v21  ;;  %v16103_v34 = vld [vmem:[#allocation256_spill] sm:$0xff]  ;;  %v14899_v43 = vpop.f32.mrf.mxu2  ;;  %v16111_v31 = vld [vmem:[#allocation110_spill] sm:$0xff] }
 0x60e   : > { %v9464_v23 = vadd.f32 %v16098_v11, %v8686_v57  ;;  %7294 = vmatmul.bf16.gmra.mxu3 %v11338_v56  ;;  %v16105_v56 = vld [vmem:[#allocation48_spill] sm:$0xff] }
 0x60f   : > { %9442 = vmatmul.bf16.gmra.mxu1 %v16097_v9  ;;  %v4776_v38 = vadd.f32 %v16105_v56, %v16104_v12  ;;  %v16106_v9 = vld [vmem:[#allocation105_spill] sm:$0xff] }
 0x610   : > { %v9532_v18 = vadd.f32 %v14767_v37, %v9464_v23  ;;  %v6843_v11 = vadd.f32 %v16106_v9, %v6065_v61 }
 0x611   : > { %v7255_v30 = vpop.f32.mrf.mxu3 }
 0x612   : > { %v7397_v27 = vadd.f32 %v7255_v30, %v6842_v25  ;;  %v9596_v2 = vmax.f32 %v9532_v18, 0.0  ;;  %v16108_v18 = vld [vmem:[#allocation113_spill] sm:$0xff] }
 0x613   : > { %v6066_v30 = vadd.f32 %v16108_v18, %v4776_v38  ;;  %v16112_v38 = vld [vmem:[#allocation118_spill] sm:$0xff] }
 0x614   : > { %v9654_v22 = vpack.c.bf16 %v9596_v2, %v9595_v33  ;;  %v8687_v57 = vadd.f32 %v16103_v34, %v7397_v27  ;;  %v16109_v33 = vld [vmem:[#allocation7_spill] sm:$0xff]  ;;  %v16110_v2 = vld [vmem:[#allocation50_spill] sm:$0xff]  ;;  %v14910_v9 = vpop.f32.mrf.mxu2 }
 0x615   : > { %v6844_v61 = vadd.f32 %v16111_v31, %v6066_v30  ;;  %v11340_v31 = vld [vmem:[#allocation2 + $0xf0] sm:$0xff] }
 0x616   : > { %9782 = vmatmul.bf16.gmra.mxu2 %v9654_v22  ;;  %v9465_v23 = vadd.f32 %v14533_v16, %v8687_v57  ;;  %v4777_v22 = vadd.f32 %v16110_v2, %v16109_v33  ;;  %v16117_v2 = vld [vmem:[#allocation264_spill] sm:$0xff] }
 0x618   : > { %v9533_v27 = vadd.f32 %v14767_v37, %v9465_v23  ;;  %v16114_v23 = vld [vmem:[#allocation8_spill] sm:$0xff] }
 0x619   : > { %v7257_v47 = vpop.f32.mrf.mxu3 }
 0x61a   : > { %v7398_v17 = vadd.f32 %v7257_v47, %v6843_v11  ;;  %v9597_v57 = vmax.f32 %v9533_v27, 0.0  ;;  %v6067_v47 = vadd.f32 %v16112_v38, %v4777_v22  ;;  %v16119_v22 = vld [vmem:[#allocation176_spill] sm:$0xff] }
 0x61c   : > { %v8688_v25 = vadd.f32 %v16107_v50, %v7398_v17 }
 0x61e   : > { %v9466_v21 = vadd.f32 %v14548_v49, %v8688_v25  ;;  %7299 = vmatmul.bf16.gmra.mxu3 %v11339_v62  ;;  %v16113_v49 = vld [vmem:[#allocation261_spill] sm:$0xff]  ;;  %v16115_v62 = vld [vmem:[#allocation52_spill] sm:$0xff]  ;;  %v16116_v25 = vld [vmem:[#allocation115_spill] sm:$0xff] }
 0x61f   : > { %v4778_v50 = vadd.f32 %v16115_v62, %v16114_v23  ;;  %v6845_v18 = vadd.f32 %v16116_v25, %v6067_v47  ;;  %v16122_v47 = vld [vmem:[#allocation122_spill] sm:$0xff] }
 0x620   : > { %v9534_v34 = vadd.f32 %v14767_v37, %v9466_v21 }
 0x621   : > { %v7260_v12 = vpop.f32.mrf.mxu3 }
 0x622   : > { %v7399_v16 = vadd.f32 %v7260_v12, %v6844_v61  ;;  %v9598_v56 = vmax.f32 %v9534_v34, 0.0  ;;  %v16118_v61 = vld [vmem:[#allocation121_spill] sm:$0xff]  ;;  %v14920_v12 = vpop.f32.mrf.mxu2 }
 0x623   : > { %v6068_v34 = vadd.f32 %v16118_v61, %v4778_v50  ;;  %v16123_v50 = vld [vmem:[#allocation125_spill] sm:$0xff] }
 0x624   : > { %v9655_v11 = vpack.c.bf16 %v9598_v56, %v9597_v57  ;;  %v8689_v17 = vadd.f32 %v16113_v49, %v7399_v16  ;;  %v16120_v56 = vld [vmem:[#allocation9_spill] sm:$0xff] }
 0x625   : > { %v6846_v49 = vadd.f32 %v16122_v47, %v6068_v34 }
 0x626   : > { %9787 = vmatmul.bf16.gmra.mxu2 %v9655_v11  ;;  %v9467_v21 = vadd.f32 %v14558_v41, %v8689_v17  ;;  %v16121_v11 = vld [vmem:[#allocation55_spill] sm:$0xff] }
 0x627   : > { %v4779_v38 = vadd.f32 %v16121_v11, %v16120_v56  ;;  %v16129_v11 = vld [vmem:[#allocation127_spill] sm:$0xff] }
 0x628   : > { %v9535_v16 = vadd.f32 %v14767_v37, %v9467_v21  ;;  %v16126_v21 = vld [vmem:[#allocation10_spill] sm:$0xff] }
 0x629   : > { %v7262_v30 = vpop.f32.mrf.mxu3 }
 0x62a   : > { %v7400_v33 = vadd.f32 %v7262_v30, %v6845_v18  ;;  %v9599_v62 = vmax.f32 %v9535_v16, 0.0  ;;  %v6069_v30 = vadd.f32 %v16123_v50, %v4779_v38  ;;  %v16132_v38 = vld [vmem:[#allocation132_spill] sm:$0xff]  ;;  %v16134_v50 = vld [vmem:[#allocation63_spill] sm:$0xff] }
 0x62c   : > { %v8690_v27 = vadd.f32 %v16117_v2, %v7400_v33  ;;  %v16124_v33 = vld [vmem:[#allocation266_spill] sm:$0xff] }
 0x62e   : > { %v9468_v57 = vadd.f32 %v16119_v22, %v8690_v27  ;;  %7304 = vmatmul.bf16.gmra.mxu3 %v11340_v31  ;;  %v14930_v27 = vpop.f32.mrf.mxu2  ;;  %v16127_v31 = vld [vmem:[#allocation59_spill] sm:$0xff]  ;;  %v16128_v22 = vld [vmem:[#allocation126_spill] sm:$0xff] }
 0x62f   : > { %16125 = vst [vmem:[#allocation116_spill] sm:$0xff] %v14930_v27  ;;  %v4780_v61 = vadd.f32 %v16127_v31, %v16126_v21  ;;  %v6847_v56 = vadd.f32 %v16128_v22, %v6069_v30  ;;  %v16135_v21 = vld [vmem:[#allocation131_spill] sm:$0xff] }
 0x630   : > { %v9536_v41 = vadd.f32 %v14767_v37, %v9468_v57 }
 0x631   : > { %v7265_v17 = vpop.f32.mrf.mxu3 }
 0x632   : > { %v7401_v23 = vadd.f32 %v7265_v17, %v6846_v49  ;;  %v9600_v25 = vmax.f32 %v9536_v41, 0.0  ;;  %v16130_v49 = vld [vmem:[#allocation268_spill] sm:$0xff]  ;;  %v16131_v17 = vld [vmem:[#allocation130_spill] sm:$0xff] }
 0x633   : > { %v11341_v41 = vld [vmem:[#allocation2 + $0xfc] sm:$0xff] }
 0x634   : > { %v9656_v18 = vpack.c.bf16 %v9600_v25, %v9599_v62  ;;  %v8691_v2 = vadd.f32 %v16124_v33, %v7401_v23  ;;  %v6070_v62 = vadd.f32 %v16131_v17, %v4780_v61  ;;  %v16139_v17 = vld [vmem:[#allocation12_spill] sm:$0xff] }
 0x636   : > { %9792 = vmatmul.bf16.gmra.mxu2 %v9656_v18  ;;  %v9469_v57 = vadd.f32 %v16129_v11, %v8691_v2  ;;  %v16133_v18 = vld [vmem:[#allocation11_spill] sm:$0xff]  ;;  %v6848_v31 = vadd.f32 %v16135_v21, %v6070_v62  ;;  %v14944_v2 = vpop.f32.mrf.mxu2  ;;  %v9918_v21 = vld [vmem:[%s11617_s9] sm:$0xff] }
 0x637   : > { %v4781_v33 = vadd.f32 %v16134_v50, %v16133_v18  ;;  %16136 = vst [vmem:[#allocation181_spill] sm:$0xff] %v14944_v2  ;;  %v16140_v62 = vld [vmem:[#allocation67_spill] sm:$0xff]  ;;  %v16152_v2 = vld [vmem:[#allocation148_spill] sm:$0xff] }
 0x638   : > { %v9537_v23 = vadd.f32 %v14767_v37, %v9469_v57 }
 0x639   : > { %v7267_v34 = vpop.f32.mrf.mxu3 }
 0x63a   : > { %v7402_v47 = vadd.f32 %v7267_v34, %v6847_v56  ;;  %v9601_v34 = vmax.f32 %v9537_v23, 0.0 }
 0x63c   : > { %v8692_v16 = vadd.f32 %v16130_v49, %v7402_v47  ;;  %v16137_v47 = vld [vmem:[#allocation134_spill] sm:$0xff] }
 0x63d   : > { %v6071_v49 = vadd.f32 %v16137_v47, %v4781_v33  ;;  %v16144_v47 = vld [vmem:[#allocation139_spill] sm:$0xff] }
 0x63e   : > { %v9470_v25 = vadd.f32 %v16132_v38, %v8692_v16  ;;  %7309 = vmatmul.bf16.gmra.mxu3 %v11341_v41  ;;  %v16138_v16 = vld [vmem:[#allocation27_spill] sm:$0xff]  ;;  %v14951_v41 = vld [vmem:[%s15578_s6] ss:$0 sm:$0xff]  ;;  %v4782_v38 = vadd.f32 %v16140_v62, %v16139_v17 }
 0x63f   : > { %v16145_v62 = vld [vmem:[#allocation13_spill] sm:$0xff] }
 0x640   : > { %v9538_v30 = vadd.f32 %v14767_v37, %v9470_v25  ;;  %v16141_v25 = vld [vmem:[#allocation136_spill] sm:$0xff] }
 0x641   : > { %v7270_v22 = vpop.f32.mrf.mxu3  ;;  %v6849_v18 = vadd.f32 %v16141_v25, %v6071_v49  ;;  %v16146_v25 = vld [vmem:[#allocation71_spill] sm:$0xff] }
 0x642   : > { %v7403_v56 = vadd.f32 %v7270_v22, %v6848_v31  ;;  %v9602_v11 = vmax.f32 %v9538_v30, 0.0  ;;  %v16142_v31 = vld [vmem:[#allocation279_spill] sm:$0xff] }
 0x644   : > { %v9657_v61 = vpack.c.bf16 %v9602_v11, %v9601_v34  ;;  %v8693_v57 = vadd.f32 %v16138_v16, %v7403_v56  ;;  %v16143_v56 = vld [vmem:[#allocation114_spill] sm:$0xff]  ;;  %v6072_v16 = vadd.f32 %v16144_v47, %v4782_v38 }
 0x646   : > { %9797 = vmatmul.bf16.gmra.mxu2 %v9657_v61  ;;  %v9471_v30 = vadd.f32 %v16142_v31, %v8693_v57  ;;  %v11342_v61 = vld [vmem:[#allocation2 + $0x108] sm:$0xff] }
 0x648   : > { %v9539_v17 = vadd.f32 %v14767_v37, %v9471_v30 }
 0x649   : > { %v7272_v50 = vpop.f32.mrf.mxu3  ;;  %v9758_v23 = vpop.f32.mrf.mxu2 }
 0x64a   : > { %v7404_v33 = vadd.f32 %v7272_v50, %v6849_v18  ;;  %v9759_v22 = vadd.f32 %v14951_v41, %v9758_v23  ;;  %v4783_v18 = vadd.f32 %v16146_v25, %v16145_v62  ;;  %v16147_v50 = vld [vmem:[#allocation144_spill] sm:$0xff]  ;;  %v16149_v62 = vld [vmem:[#allocation269_spill] sm:$0xff] }
 0x64b   : > { %v6850_v38 = vadd.f32 %v16147_v50, %v6072_v16  ;;  %v16150_v16 = vld [vmem:[#allocation14_spill] sm:$0xff]  ;;  %v16151_v50 = vld [vmem:[#allocation75_spill] sm:$0xff] }
 0x64c   : > { %v8694_v34 = vadd.f32 %v16143_v56, %v7404_v33  ;;  %v9982_v11 = vadd.f32 %v9918_v21, %v9759_v22  ;;  %v9919_v33 = vld [vmem:[%s11617_s9 + $0x8] sm:$0xff]  ;;  %v9603_v56 = vmax.f32 %v9539_v17, 0.0  ;;  %v9920_v17 = vld [vmem:[%s11617_s9 + $0x10] sm:$0xff] }
 0x64e   : > { %v9472_v49 = vadd.f32 %v14625_v10, %v8694_v34  ;;  %v10046_v57 = vmax.f32 %v9982_v11, 0.0  ;;  %7314 = vmatmul.bf16.gmra.mxu3 %v11342_v61  ;;  %v16148_v61 = vld [vmem:[#allocation142_spill] sm:$0xff] }
 0x64f   : > { %v6073_v47 = vadd.f32 %v16148_v61, %v4783_v18 }
 0x650   : > { %10110 = vst.msk [vmem:[%s14966_s12] sm:$0xff] %vm396_vm0, %v10046_v57  ;;  %v9540_v23 = vadd.f32 %v14767_v37, %v9472_v49  ;;  %v4784_v49 = vadd.f32 %v16151_v50, %v16150_v16 }
 0x651   : > { %v7275_v21 = vpop.f32.mrf.mxu3  ;;  %v9760_v31 = vpop.f32.mrf.mxu2  ;;  %v6851_v27 = vadd.f32 %v16152_v2, %v6073_v47  ;;  %v16155_v47 = vld [vmem:[#allocation15_spill] sm:$0xff] }
 0x652   : > { %v7405_v22 = vadd.f32 %v7275_v21, %v6850_v38  ;;  %v9761_v10 = vadd.f32 %v14951_v41, %v9760_v31  ;;  %v9604_v34 = vmax.f32 %v9540_v23, 0.0 }
 0x654   : > { %v9983_v30 = vadd.f32 %v9919_v33, %v9761_v10  ;;  %v9658_v11 = vpack.c.bf16 %v9604_v34, %v9603_v56  ;;  %v8695_v57 = vadd.f32 %v16149_v62, %v7405_v22  ;;  %v16153_v33 = vld [vmem:[#allocation270_spill] sm:$0xff]  ;;  %v11343_v56 = vld [vmem:[#allocation2 + $0x114] sm:$0xff] }
 0x655   : > { %v16154_v34 = vld [vmem:[#allocation147_spill] sm:$0xff] }
 0x656   : > { %v10047_v25 = vmax.f32 %v9983_v30, 0.0  ;;  %9802 = vmatmul.bf16.gmra.mxu2 %v9658_v11  ;;  %v9473_v23 = vadd.f32 %v14644_v7, %v8695_v57  ;;  %v6074_v30 = vadd.f32 %v16154_v34, %v4784_v49  ;;  %v16156_v62 = vld [vmem:[#allocation79_spill] sm:$0xff]  ;;  %v16157_v7 = vld [vmem:[#allocation153_spill] sm:$0xff]  ;;  %v16160_v34 = vld [vmem:[#allocation16_spill] sm:$0xff] }
 0x658   : > { %10111 = vst.msk [vmem:[%s14966_s12 + $0x8] sm:$0xff] %vm396_vm0, %v10047_v25  ;;  %v9541_v2 = vadd.f32 %v14767_v37, %v9473_v23  ;;  %v4785_v25 = vadd.f32 %v16156_v62, %v16155_v47 }
 0x659   : > { %v7277_v38 = vpop.f32.mrf.mxu3  ;;  %v9763_v21 = vpop.f32.mrf.mxu2 }
 0x65a   : > { %v7406_v31 = vadd.f32 %v7277_v38, %v6851_v27  ;;  %v9764_v18 = vadd.f32 %v14951_v41, %v9763_v21  ;;  %v6852_v27 = vadd.f32 %v16157_v7, %v6074_v30  ;;  %v9921_v38 = vld [vmem:[%s11617_s9 + $0x18] sm:$0xff]  ;;  %v9605_v21 = vmax.f32 %v9541_v2, 0.0  ;;  %v16161_v30 = vld [vmem:[#allocation83_spill] sm:$0xff]  ;;  %v9922_v2 = vld [vmem:[%s11617_s9 + $0x20] sm:$0xff] }
 0x65c   : > { %v8696_v22 = vadd.f32 %v16153_v33, %v7406_v31  ;;  %v9984_v10 = vadd.f32 %v9920_v17, %v9764_v18  ;;  %v16158_v18 = vld [vmem:[#allocation152_spill] sm:$0xff] }
 0x65d   : > { %v6075_v33 = vadd.f32 %v16158_v18, %v4785_v25  ;;  %v16165_v18 = vld [vmem:[#allocation17_spill] sm:$0xff] }
 0x65e   : > { %v9474_v11 = vadd.f32 %v14668_v36, %v8696_v22  ;;  %v10048_v61 = vmax.f32 %v9984_v10, 0.0  ;;  %7319 = vmatmul.bf16.gmra.mxu3 %v11343_v56  ;;  %v16159_v22 = vld [vmem:[#allocation135_spill] sm:$0xff] }
 0x660   : > { %10112 = vst.msk [vmem:[%s14966_s12 + $0x10] sm:$0xff] %vm396_vm0, %v10048_v61  ;;  %v9542_v57 = vadd.f32 %v14767_v37, %v9474_v11  ;;  %v4786_v11 = vadd.f32 %v16161_v30, %v16160_v34  ;;  %v16162_v61 = vld [vmem:[#allocation157_spill] sm:$0xff] }
 0x661   : > { %v7280_v16 = vpop.f32.mrf.mxu3  ;;  %v9765_v50 = vpop.f32.mrf.mxu2  ;;  %v6853_v47 = vadd.f32 %v16162_v61, %v6075_v33  ;;  %v16166_v33 = vld [vmem:[#allocation87_spill] sm:$0xff]  ;;  %v9923_v61 = vld [vmem:[%s11617_s9 + $0x28] sm:$0xff] }
 0x662   : > { %v7407_v49 = vadd.f32 %v7280_v16, %v6852_v27  ;;  %v9766_v36 = vadd.f32 %v14951_v41, %v9765_v50  ;;  %v9606_v17 = vmax.f32 %v9542_v57, 0.0  ;;  %v16163_v16 = vld [vmem:[#allocation273_spill] sm:$0xff] }
 0x664   : > { %v9985_v23 = vadd.f32 %v9921_v38, %v9766_v36  ;;  %v9659_v31 = vpack.c.bf16 %v9606_v17, %v9605_v21  ;;  %v8697_v10 = vadd.f32 %v16159_v22, %v7407_v49  ;;  %v11344_v49 = vld [vmem:[#allocation2 + $0x120] sm:$0xff]  ;;  %v16164_v36 = vld [vmem:[#allocation156_spill] sm:$0xff]  ;;  %v4787_v22 = vadd.f32 %v16166_v33, %v16165_v18 }
 0x665   : > { %v6076_v21 = vadd.f32 %v16164_v36, %v4786_v11 }
 0x666   : > { %v10049_v56 = vmax.f32 %v9985_v23, 0.0  ;;  %9807 = vmatmul.bf16.gmra.mxu2 %v9659_v31  ;;  %v9475_v27 = vadd.f32 %v14683_v60, %v8697_v10  ;;  %v16167_v60 = vld [vmem:[#allocation164_spill] sm:$0xff] }
 0x667   : > { %v6854_v10 = vadd.f32 %v16167_v60, %v6076_v21  ;;  %v16172_v21 = vld [vmem:[#allocation168_spill] sm:$0xff] }
 0x668   : > { %10113 = vst.msk [vmem:[%s14966_s12 + $0x18] sm:$0xff] %vm396_vm0, %v10049_v56  ;;  %v9543_v31 = vadd.f32 %v14767_v37, %v9475_v27  ;;  %v16168_v27 = vld [vmem:[#allocation160_spill] sm:$0xff] }
 0x669   : > { %v7282_v62 = vpop.f32.mrf.mxu3  ;;  %v9768_v7 = vpop.f32.mrf.mxu2 }
 0x66a   : > { %v7408_v57 = vadd.f32 %v7282_v62, %v6853_v47  ;;  %v9769_v25 = vadd.f32 %v14951_v41, %v9768_v7  ;;  %v9607_v47 = vmax.f32 %v9543_v31, 0.0  ;;  %v9924_v31 = vld [vmem:[%s11617_s9 + $0x30] sm:$0xff] }
 0x66c   : > { %v8698_v50 = vadd.f32 %v16163_v16, %v7408_v57  ;;  %v9986_v38 = vadd.f32 %v9922_v2, %v9769_v25  ;;  %v6077_v57 = vadd.f32 %v16168_v27, %v4787_v22  ;;  %v16169_v25 = vld [vmem:[#allocation274_spill] sm:$0xff] }
 0x66e   : > { %v9476_v17 = vadd.f32 %v14699_v5, %v8698_v50  ;;  %v10050_v23 = vmax.f32 %v9986_v38, 0.0  ;;  %7324 = vmatmul.bf16.gmra.mxu3 %v11344_v49  ;;  %v16170_v38 = vld [vmem:[#allocation18_spill] sm:$0xff]  ;;  %v16171_v49 = vld [vmem:[#allocation91_spill] sm:$0xff] }
 0x66f   : > { %v4788_v36 = vadd.f32 %v16171_v49, %v16170_v38  ;;  %v9925_v38 = vld [vmem:[%s11617_s9 + $0x38] sm:$0xff] }
 0x670   : > { %10114 = vst.msk [vmem:[%s14966_s12 + $0x20] sm:$0xff] %vm396_vm0, %v10050_v23  ;;  %v9544_v56 = vadd.f32 %v14767_v37, %v9476_v17  ;;  %v6855_v17 = vadd.f32 %v16172_v21, %v6077_v57 }
 0x671   : > { %v7285_v34 = vpop.f32.mrf.mxu3  ;;  %v9770_v30 = vpop.f32.mrf.mxu2 }
 0x672   : > { %v7409_v11 = vadd.f32 %v7285_v34, %v6854_v10  ;;  %v9771_v5 = vadd.f32 %v14951_v41, %v9770_v30  ;;  %v9608_v62 = vmax.f32 %v9544_v56, 0.0  ;;  %v16173_v10 = vld [vmem:[#allocation276_spill] sm:$0xff]  ;;  %v11345_v30 = vld [vmem:[#allocation2 + $0x12c] sm:$0xff] }
 0x674   : > { %v9987_v7 = vadd.f32 %v9923_v61, %v9771_v5  ;;  %v9660_v2 = vpack.c.bf16 %v9608_v62, %v9607_v47  ;;  %v8699_v16 = vadd.f32 %v16169_v25, %v7409_v11  ;;  %v16174_v61 = vld [vmem:[#allocation163_spill] sm:$0xff] }
 0x675   : > { %v6078_v11 = vadd.f32 %v16174_v61, %v4788_v36 }
 0x676   : > { %v10051_v50 = vmax.f32 %v9987_v7, 0.0  ;;  %9812 = vmatmul.bf16.gmra.mxu2 %v9660_v2  ;;  %v9477_v33 = vadd.f32 %v14711_v24, %v8699_v16  ;;  %v16175_v7 = vld [vmem:[#allocation19_spill] sm:$0xff]  ;;  %v16177_v24 = vld [vmem:[#allocation172_spill] sm:$0xff] }
 0x677   : > { %v16176_v2 = vld [vmem:[#allocation95_spill] sm:$0xff]  ;;  %v6856_v57 = vadd.f32 %v16177_v24, %v6078_v11 }
 0x678   : > { %10115 = vst.msk [vmem:[%s14966_s12 + $0x28] sm:$0xff] %vm396_vm0, %v10051_v50  ;;  %v9545_v62 = vadd.f32 %v14767_v37, %v9477_v33  ;;  %v4789_v27 = vadd.f32 %v16176_v2, %v16175_v7  ;;  %v16179_v33 = vld [vmem:[#allocation47_spill] sm:$0xff] }
 0x679   : > { %v7287_v23 = vpop.f32.mrf.mxu3  ;;  %v9773_v18 = vpop.f32.mrf.mxu2 }
 0x67a   : > { %v7410_v60 = vadd.f32 %v7287_v23, %v6855_v17  ;;  %v9774_v22 = vadd.f32 %v14951_v41, %v9773_v18  ;;  %v9609_v36 = vmax.f32 %v9545_v62, 0.0  ;;  %v16178_v18 = vld [vmem:[#allocation167_spill] sm:$0xff] }
 0x67c   : > { %v8700_v56 = vadd.f32 %v16173_v10, %v7410_v60  ;;  %v9988_v34 = vadd.f32 %v9924_v31, %v9774_v22  ;;  %v6079_v31 = vadd.f32 %v16178_v18, %v4789_v27  ;;  %v16180_v10 = vld [vmem:[#allocation20_spill] sm:$0xff]  ;;  %v16183_v27 = vld [vmem:[#allocation277_spill] sm:$0xff] }
 0x67e   : > { %v9478_v5 = vadd.f32 %v14720_v46, %v8700_v56  ;;  %v10052_v47 = vmax.f32 %v9988_v34, 0.0  ;;  %7329 = vmatmul.bf16.gmra.mxu3 %v11345_v30  ;;  %v16181_v56 = vld [vmem:[#allocation99_spill] sm:$0xff]  ;;  %v16182_v30 = vld [vmem:[#allocation177_spill] sm:$0xff] }
 0x67f   : > { %v4790_v34 = vadd.f32 %v16181_v56, %v16180_v10  ;;  %v6857_v61 = vadd.f32 %v16182_v30, %v6079_v31 }
 0x680   : > { %10116 = vst.msk [vmem:[%s14966_s12 + $0x30] sm:$0xff] %vm396_vm0, %v10052_v47  ;;  %v9546_v25 = vadd.f32 %v14767_v37, %v9478_v5  ;;  %v9926_v47 = vld [vmem:[%s11617_s9 + $0x40] sm:$0xff] }
 0x681   : > { %v7290_v16 = vpop.f32.mrf.mxu3  ;;  %v9775_v50 = vpop.f32.mrf.mxu2 }
 0x682   : > { %v7411_v49 = vadd.f32 %v7290_v16, %v6856_v57  ;;  %v9776_v46 = vadd.f32 %v14951_v41, %v9775_v50  ;;  %v9610_v21 = vmax.f32 %v9546_v25, 0.0  ;;  %v11346_v25 = vld [vmem:[#allocation2 + $0x138] sm:$0xff]  ;;  %v16184_v16 = vld [vmem:[#allocation171_spill] sm:$0xff] }
 0x683   : > { %v6080_v50 = vadd.f32 %v16184_v16, %v4790_v34 }
 0x684   : > { %v9989_v17 = vadd.f32 %v9925_v38, %v9776_v46  ;;  %v9661_v23 = vpack.c.bf16 %v9610_v21, %v9609_v36  ;;  %v8701_v60 = vadd.f32 %v16179_v33, %v7411_v49  ;;  %v16185_v36 = vld [vmem:[#allocation259_spill] sm:$0xff] }
 0x685   : > { %v16186_v21 = vld [vmem:[#allocation103_spill] sm:$0xff] }
 0x686   : > { %v10053_v22 = vmax.f32 %v9989_v17, 0.0  ;;  %9817 = vmatmul.bf16.gmra.mxu2 %v9661_v23  ;;  %v9479_v62 = vadd.f32 %v14729_v8, %v8701_v60  ;;  %v4791_v17 = vadd.f32 %v16186_v21, %v16185_v36  ;;  %v16187_v8 = vld [vmem:[#allocation184_spill] sm:$0xff]  ;;  %v9927_v60 = vld [vmem:[%s11617_s9 + $0x48] sm:$0xff]  ;;  %v16193_v36 = vld [vmem:[#allocation123_spill] sm:$0xff] }
 0x687   : > { %v6858_v23 = vadd.f32 %v16187_v8, %v6080_v50  ;;  %v9928_v50 = vld [vmem:[%s11617_s9 + $0x50] sm:$0xff]  ;;  %v11347_v8 = vld [vmem:[#allocation2 + $0x144] sm:$0xff] }
 0x688   : > { %10117 = vst.msk [vmem:[%s14966_s12 + $0x38] sm:$0xff] %vm396_vm0, %v10053_v22  ;;  %v9547_v46 = vadd.f32 %v14767_v37, %v9479_v62 }
 0x689   : > { %v7292_v11 = vpop.f32.mrf.mxu3  ;;  %v9778_v5 = vpop.f32.mrf.mxu2 }
 0x68a   : > { %v7412_v7 = vadd.f32 %v7292_v11, %v6857_v61  ;;  %v9779_v2 = vadd.f32 %v14951_v41, %v9778_v5  ;;  %v9611_v10 = vmax.f32 %v9547_v46, 0.0  ;;  %v16188_v61 = vld [vmem:[#allocation175_spill] sm:$0xff]  ;;  %v16189_v5 = vld [vmem:[#allocation278_spill] sm:$0xff] }
 0x68b   : > { %v6081_v11 = vadd.f32 %v16188_v61, %v4791_v17 }
 0x68c   : > { %v8702_v24 = vadd.f32 %v16183_v27, %v7412_v7  ;;  %v9990_v57 = vadd.f32 %v9926_v47, %v9779_v2  ;;  %v16190_v7 = vld [vmem:[#allocation262_spill] sm:$0xff]  ;;  %v16191_v2 = vld [vmem:[#allocation108_spill] sm:$0xff] }
 0x68d   : > { %v4792_v27 = vadd.f32 %v16191_v2, %v16190_v7 }
 0x68e   : > { %v9480_v38 = vadd.f32 %v14741_v26, %v8702_v24  ;;  %v10054_v49 = vmax.f32 %v9990_v57, 0.0  ;;  %7334 = vmatmul.bf16.gmra.mxu3 %v11346_v25  ;;  %v16192_v24 = vld [vmem:[#allocation189_spill] sm:$0xff] }
 0x68f   : > { %v6859_v57 = vadd.f32 %v16192_v24, %v6081_v11  ;;  %v9929_v11 = vld [vmem:[%s11617_s9 + $0x58] sm:$0xff] }
 0x690   : > { %10118 = vst.msk [vmem:[%s14966_s12 + $0x40] sm:$0xff] %vm396_vm0, %v10054_v49  ;;  %v9548_v18 = vadd.f32 %v14767_v37, %v9480_v38 }
 0x691   : > { %v7295_v31 = vpop.f32.mrf.mxu3  ;;  %v9780_v33 = vpop.f32.mrf.mxu2 }
 0x692   : > { %v7413_v22 = vadd.f32 %v7295_v31, %v6858_v23  ;;  %v9781_v26 = vadd.f32 %v14951_v41, %v9780_v33  ;;  %v9612_v56 = vmax.f32 %v9548_v18, 0.0  ;;  %v16194_v23 = vld [vmem:[#allocation180_spill] sm:$0xff] }
 0x693   : > { %v6082_v18 = vadd.f32 %v16194_v23, %v4792_v27  ;;  %v16198_v27 = vld [vmem:[#allocation183_spill] sm:$0xff] }
 0x694   : > { %v9991_v34 = vadd.f32 %v9927_v60, %v9781_v26  ;;  %v9662_v30 = vpack.c.bf16 %v9612_v56, %v9611_v10  ;;  %v8703_v47 = vadd.f32 %v16189_v5, %v7413_v22  ;;  %v16195_v22 = vld [vmem:[#allocation265_spill] sm:$0xff]  ;;  %v16196_v26 = vld [vmem:[#allocation112_spill] sm:$0xff] }
 0x695   : > { %v4793_v10 = vadd.f32 %v16196_v26, %v16195_v22  ;;  %v11348_v26 = vld [vmem:[#allocation2 + $0x150] sm:$0xff] }
 0x696   : > { %v10055_v62 = vmax.f32 %v9991_v34, 0.0  ;;  %9822 = vmatmul.bf16.gmra.mxu2 %v9662_v30  ;;  %v9481_v38 = vadd.f32 %v14754_v58, %v8703_v47  ;;  %v16197_v58 = vld [vmem:[#allocation193_spill] sm:$0xff] }
 0x697   : > { %v6860_v56 = vadd.f32 %v16197_v58, %v6082_v18  ;;  %v6083_v24 = vadd.f32 %v16198_v27, %v4793_v10  ;;  %v16204_v10 = vld [vmem:[#allocation187_spill] sm:$0xff]  ;;  %v15109_v27 = vpop.f32.mrf.mxu0 }
 0x698   : > { %10119 = vst.msk [vmem:[%s14966_s12 + $0x48] sm:$0xff] %vm396_vm0, %v10055_v62  ;;  %v9549_v60 = vadd.f32 %v14767_v37, %v9481_v38  ;;  %v16201_v38 = vld [vmem:[#allocation117_spill] sm:$0xff] }
 0x699   : > { %v7297_v25 = vpop.f32.mrf.mxu3  ;;  %v9783_v16 = vpop.f32.mrf.mxu2 }
 0x69a   : > { %v7414_v49 = vadd.f32 %v7297_v25, %v6859_v57  ;;  %v9784_v46 = vadd.f32 %v14951_v41, %v9783_v16  ;;  %v9613_v47 = vmax.f32 %v9549_v60, 0.0  ;;  %v16199_v57 = vld [vmem:[#allocation188_spill] sm:$0xff] }
 0x69c   : > { %v8704_v21 = vadd.f32 %v16193_v36, %v7414_v49  ;;  %v9992_v17 = vadd.f32 %v9928_v50, %v9784_v46  ;;  %v16200_v50 = vld [vmem:[#allocation23_spill] sm:$0xff]  ;;  %v16202_v46 = vld [vmem:[#allocation197_spill] sm:$0xff] }
 0x69d   : > { %v4794_v49 = vadd.f32 %v16201_v38, %v16200_v50  ;;  %v6861_v36 = vadd.f32 %v16202_v46, %v6083_v24 }
 0x69e   : > { %v9482_v31 = vadd.f32 %v14772_v32, %v8704_v21  ;;  %v10056_v33 = vmax.f32 %v9992_v17, 0.0  ;;  %7339 = vmatmul.bf16.gmra.mxu3 %v11347_v8  ;;  %v9930_v8 = vld [vmem:[%s11617_s9 + $0x60] sm:$0xff] }
 0x69f   : > { %v6084_v58 = vadd.f32 %v16204_v10, %v4794_v49  ;;  %v16208_v49 = vld [vmem:[#allocation192_spill] sm:$0xff] }
 0x6a0   : > { %10120 = vst.msk [vmem:[%s14966_s12 + $0x50] sm:$0xff] %vm396_vm0, %v10056_v33  ;;  %v9550_v34 = vadd.f32 %v14767_v37, %v9482_v31  ;;  %v16203_v33 = vld [vmem:[#allocation70_spill] sm:$0xff] }
 0x6a1   : > { %v7300_v30 = vpop.f32.mrf.mxu3  ;;  %v9785_v61 = vpop.f32.mrf.mxu2 }
 0x6a2   : > { %v7415_v5 = vadd.f32 %v7300_v30, %v6860_v56  ;;  %v9786_v32 = vadd.f32 %v14951_v41, %v9785_v61  ;;  %v9614_v62 = vmax.f32 %v9550_v34, 0.0  ;;  %v16205_v61 = vld [vmem:[#allocation25_spill] sm:$0xff] }
 0x6a4   : > { %v9993_v7 = vadd.f32 %v9929_v11, %v9786_v32  ;;  %v9663_v2 = vpack.c.bf16 %v9614_v62, %v9613_v47  ;;  %v8705_v25 = vadd.f32 %v16199_v57, %v7415_v5  ;;  %v16206_v11 = vld [vmem:[#allocation120_spill] sm:$0xff] }
 0x6a5   : > { %v4795_v5 = vadd.f32 %v16206_v11, %v16205_v61  ;;  %v16212_v61 = vld [vmem:[#allocation196_spill] sm:$0xff] }
 0x6a6   : > { %v10057_v16 = vmax.f32 %v9993_v7, 0.0  ;;  %9827 = vmatmul.bf16.gmra.mxu2 %v9663_v2  ;;  %v9483_v23 = vadd.f32 %v14790_v52, %v8705_v25  ;;  %v16207_v52 = vld [vmem:[#allocation202_spill] sm:$0xff] }
 0x6a7   : > { %v6862_v32 = vadd.f32 %v16207_v52, %v6084_v58  ;;  %v9931_v2 = vld [vmem:[%s11617_s9 + $0x68] sm:$0xff]  ;;  %v6085_v46 = vadd.f32 %v16208_v49, %v4795_v5 }
 0x6a8   : > { %10121 = vst.msk [vmem:[%s14966_s12 + $0x58] sm:$0xff] %vm396_vm0, %v10057_v16  ;;  %v9551_v30 = vadd.f32 %v14767_v37, %v9483_v23  ;;  %v15112_v16 = vpop.f32.mrf.mxu1 }
 0x6a9   : > { %v7302_v21 = vpop.f32.mrf.mxu3  ;;  %v9788_v17 = vpop.f32.mrf.mxu2 }
 0x6aa   : > { %v7416_v18 = vadd.f32 %v7302_v21, %v6861_v36  ;;  %v9789_v31 = vadd.f32 %v14951_v41, %v9788_v17  ;;  %v9615_v57 = vmax.f32 %v9551_v30, 0.0  ;;  %v16209_v17 = vld [vmem:[#allocation106_spill] sm:$0xff]  ;;  %v11349_v30 = vld [vmem:[#allocation2 + $0x15c] sm:$0xff] }
 0x6ac   : > { %v8706_v60 = vadd.f32 %v16203_v33, %v7416_v18  ;;  %v9994_v22 = vadd.f32 %v9930_v8, %v9789_v31  ;;  %v16210_v8 = vld [vmem:[#allocation124_spill] sm:$0xff]  ;;  %v16211_v18 = vld [vmem:[#allocation205_spill] sm:$0xff] }
 0x6ad   : > { %v4796_v23 = vadd.f32 %v16210_v8, %v16209_v17  ;;  %v6863_v31 = vadd.f32 %v16211_v18, %v6085_v46 }
 0x6ae   : > { %v9484_v56 = vadd.f32 %v14806_v15, %v8706_v60  ;;  %v10058_v34 = vmax.f32 %v9994_v22, 0.0  ;;  %7344 = vmatmul.bf16.gmra.mxu3 %v11348_v26  ;;  %v9932_v22 = vld [vmem:[%s11617_s9 + $0x70] sm:$0xff] }
 0x6af   : > { %v6086_v11 = vadd.f32 %v16212_v61, %v4796_v23  ;;  %v16217_v23 = vld [vmem:[#allocation149_spill] sm:$0xff] }
 0x6b0   : > { %10122 = vst.msk [vmem:[%s14966_s12 + $0x60] sm:$0xff] %vm396_vm0, %v10058_v34  ;;  %v9552_v47 = vadd.f32 %v14767_v37, %v9484_v56  ;;  %v15124_v56 = vpop.f32.mrf.mxu0  ;;  %v15128_v5 = vpop.f32.mrf.mxu1 }
 0x6b1   : > { %v7305_v62 = vpop.f32.mrf.mxu3  ;;  %v9790_v7 = vpop.f32.mrf.mxu2 }
 0x6b2   : > { %v7417_v15 = vadd.f32 %v7305_v62, %v6862_v32  ;;  %v9791_v24 = vadd.f32 %v14951_v41, %v9790_v7  ;;  %v9616_v25 = vmax.f32 %v9552_v47, 0.0  ;;  %v16213_v47 = vld [vmem:[#allocation29_spill] sm:$0xff] }
 0x6b3   : > { %v16214_v62 = vld [vmem:[#allocation129_spill] sm:$0xff] }
 0x6b4   : > { %v9995_v50 = vadd.f32 %v9931_v2, %v9791_v24  ;;  %v9664_v38 = vpack.c.bf16 %v9616_v25, %v9615_v57  ;;  %v8707_v36 = vadd.f32 %v14621_v29, %v7417_v15  ;;  %v4797_v7 = vadd.f32 %v16214_v62, %v16213_v47  ;;  %v16215_v2 = vld [vmem:[#allocation208_spill] sm:$0xff]  ;;  %v16221_v47 = vld [vmem:[#allocation201_spill] sm:$0xff] }
 0x6b5   : > { %v6864_v15 = vadd.f32 %v16215_v2, %v6086_v11  ;;  %v9933_v25 = vld [vmem:[%s11617_s9 + $0x78] sm:$0xff] }
 0x6b6   : > { %v10059_v21 = vmax.f32 %v9995_v50, 0.0  ;;  %9832 = vmatmul.bf16.gmra.mxu2 %v9664_v38  ;;  %v9485_v26 = vadd.f32 %v14816_v19, %v8707_v36 }
 0x6b8   : > { %10123 = vst.msk [vmem:[%s14966_s12 + $0x68] sm:$0xff] %vm396_vm0, %v10059_v21  ;;  %v9553_v19 = vadd.f32 %v14767_v37, %v9485_v26  ;;  %v16216_v21 = vld [vmem:[#allocation199_spill] sm:$0xff]  ;;  %v15141_v8 = vpop.f32.mrf.mxu0 }
 0x6b9   : > { %v7307_v33 = vpop.f32.mrf.mxu3  ;;  %v9793_v60 = vpop.f32.mrf.mxu2  ;;  %v6087_v17 = vadd.f32 %v16216_v21, %v4797_v7  ;;  %v16220_v26 = vld [vmem:[#allocation211_spill] sm:$0xff] }
 0x6ba   : > { %v7418_v10 = vadd.f32 %v7307_v33, %v6863_v31  ;;  %v9794_v58 = vadd.f32 %v14951_v41, %v9793_v60  ;;  %v9617_v38 = vmax.f32 %v9553_v19, 0.0  ;;  %v16219_v33 = vld [vmem:[#allocation133_spill] sm:$0xff]  ;;  %v11350_v19 = vld [vmem:[#allocation2 + $0x168] sm:$0xff] }
 0x6bc   : > { %v8708_v29 = vadd.f32 %v14636_v39, %v7418_v10  ;;  %v9996_v34 = vadd.f32 %v9932_v22, %v9794_v58  ;;  %v15146_v22 = vpop.f32.mrf.mxu1  ;;  %v6865_v10 = vadd.f32 %v16220_v26, %v6087_v17 }
 0x6be   : > { %v9486_v52 = vadd.f32 %v14830_v6, %v8708_v29  ;;  %v10060_v32 = vmax.f32 %v9996_v34, 0.0  ;;  %7349 = vmatmul.bf16.gmra.mxu3 %v11349_v30  ;;  %v9934_v34 = vld [vmem:[%s11617_s9 + $0x80] sm:$0xff] }
 0x6c0   : > { %10124 = vst.msk [vmem:[%s14966_s12 + $0x70] sm:$0xff] %vm396_vm0, %v10060_v32  ;;  %v9554_v39 = vadd.f32 %v14767_v37, %v9486_v52  ;;  %v16218_v37 = vld [vmem:[#allocation31_spill] sm:$0xff] }
 0x6c1   : > { %v7310_v24 = vpop.f32.mrf.mxu3  ;;  %v9795_v57 = vpop.f32.mrf.mxu2  ;;  %v4798_v60 = vadd.f32 %v16219_v33, %v16218_v37  ;;  %v16225_v37 = vld [vmem:[#allocation204_spill] sm:$0xff] }
 0x6c2   : > { %v7419_v50 = vadd.f32 %v7310_v24, %v6864_v15  ;;  %v9796_v6 = vadd.f32 %v14951_v41, %v9795_v57  ;;  %v9618_v49 = vmax.f32 %v9554_v39, 0.0  ;;  %v15160_v15 = vld [vmem:[%s15577_s5] ss:$0 sm:$0xff]  ;;  %v16223_v24 = vld [vmem:[#allocation138_spill] sm:$0xff] }
 0x6c3   : > { %v6088_v62 = vadd.f32 %v16221_v47, %v4798_v60  ;;  %v16222_v39 = vld [vmem:[#allocation33_spill] sm:$0xff] }
 0x6c4   : > { %v9997_v46 = vadd.f32 %v9933_v25, %v9796_v6  ;;  %v9665_v36 = vpack.c.bf16 %v9618_v49, %v9617_v38  ;;  %v8709_v18 = vadd.f32 %v16217_v23, %v7419_v50  ;;  %v4799_v57 = vadd.f32 %v16223_v24, %v16222_v39  ;;  %v16224_v25 = vld [vmem:[#allocation216_spill] sm:$0xff]  ;;  %v9935_v49 = vld [vmem:[%s11617_s9 + $0x88] sm:$0xff]  ;;  %v16229_v39 = vld [vmem:[#allocation207_spill] sm:$0xff] }
 0x6c5   : > { %v6866_v50 = vadd.f32 %v16224_v25, %v6088_v62 }
 0x6c6   : > { %v10061_v31 = vmax.f32 %v9997_v46, 0.0  ;;  %9837 = vmatmul.bf16.gmra.mxu2 %v9665_v36  ;;  %v9487_v30 = vadd.f32 %v14844_v48, %v8709_v18  ;;  %v15172_v46 = vpop.f32.mrf.mxu1  ;;  %v6089_v33 = vadd.f32 %v16225_v37, %v4799_v57 }
 0x6c8   : > { %10125 = vst.msk [vmem:[%s14966_s12 + $0x78] sm:$0xff] %vm396_vm0, %v10061_v31  ;;  %v9555_v48 = vadd.f32 %v15160_v15, %v9487_v30 }
 0x6c9   : > { %v7312_v58 = vpop.f32.mrf.mxu3  ;;  %v9798_v29 = vpop.f32.mrf.mxu2 }
 0x6ca   : > { %v7420_v61 = vadd.f32 %v7312_v58, %v6865_v10  ;;  %v9799_v11 = vadd.f32 %v14951_v41, %v9798_v29  ;;  %v9619_v17 = vmax.f32 %v9555_v48, 0.0  ;;  %v16226_v10 = vld [vmem:[#allocation128_spill] sm:$0xff]  ;;  %v16227_v58 = vld [vmem:[#allocation141_spill] sm:$0xff] }
 0x6cb   : > { %v4800_v29 = vadd.f32 %v16227_v58, %v16226_v10  ;;  %v11351_v48 = vld [vmem:[#allocation2 + $0x174] sm:$0xff] }
 0x6cc   : > { %v8710_v52 = vadd.f32 %v14674_v45, %v7420_v61  ;;  %v9998_v32 = vadd.f32 %v9934_v34, %v9799_v11  ;;  %v15165_v45 = vpop.f32.mrf.mxu0  ;;  %v16228_v34 = vld [vmem:[#allocation220_spill] sm:$0xff] }
 0x6cd   : > { %v6867_v30 = vadd.f32 %v16228_v34, %v6089_v33  ;;  %v6090_v24 = vadd.f32 %v16229_v39, %v4800_v29 }
 0x6ce   : > { %v9488_v7 = vadd.f32 %v14857_v4, %v8710_v52  ;;  %v10062_v2 = vmax.f32 %v9998_v32, 0.0  ;;  %7354 = vmatmul.bf16.gmra.mxu3 %v11350_v19  ;;  %v9936_v52 = vld [vmem:[%s11617_s9 + $0x90] sm:$0xff]  ;;  %v15187_v62 = vpop.f32.mrf.mxu1 }
 0x6d0   : > { %10126 = vst.msk [vmem:[%s14966_s12 + $0x80] sm:$0xff] %vm396_vm0, %v10062_v2  ;;  %v9556_v4 = vadd.f32 %v15160_v15, %v9488_v7 }
 0x6d1   : > { %v7315_v6 = vpop.f32.mrf.mxu3  ;;  %v9800_v38 = vpop.f32.mrf.mxu2 }
 0x6d2   : > { %v7421_v36 = vadd.f32 %v7315_v6, %v6866_v50  ;;  %v9801_v21 = vadd.f32 %v14951_v41, %v9800_v38  ;;  %v9620_v23 = vmax.f32 %v9556_v4, 0.0  ;;  %v16230_v4 = vld [vmem:[#allocation37_spill] sm:$0xff]  ;;  %v16232_v38 = vld [vmem:[#allocation224_spill] sm:$0xff] }
 0x6d4   : > { %v9999_v18 = vadd.f32 %v9935_v49, %v9801_v21  ;;  %v9666_v31 = vpack.c.bf16 %v9620_v23, %v9619_v17  ;;  %v8711_v60 = vadd.f32 %v14691_v40, %v7421_v36  ;;  %v15183_v32 = vpop.f32.mrf.mxu0  ;;  %v6868_v49 = vadd.f32 %v16232_v38, %v6090_v24  ;;  %v9937_v17 = vld [vmem:[%s11617_s9 + $0x98] sm:$0xff] }
 0x6d6   : > { %v10063_v26 = vmax.f32 %v9999_v18, 0.0  ;;  %9842 = vmatmul.bf16.gmra.mxu2 %v9666_v31  ;;  %v9489_v19 = vadd.f32 %v14871_v53, %v8711_v60  ;;  %v16231_v53 = vld [vmem:[#allocation146_spill] sm:$0xff]  ;;  %v15204_v58 = vpop.f32.mrf.mxu1 }
 0x6d7   : > { %v4801_v6 = vadd.f32 %v16231_v53, %v16230_v4 }
 0x6d8   : > { %10127 = vst.msk [vmem:[%s14966_s12 + $0x88] sm:$0xff] %vm396_vm0, %v10063_v26  ;;  %v9557_v50 = vadd.f32 %v15160_v15, %v9489_v19  ;;  %v16233_v26 = vld [vmem:[#allocation210_spill] sm:$0xff] }
 0x6d9   : > { %v7317_v61 = vpop.f32.mrf.mxu3  ;;  %v9803_v11 = vpop.f32.mrf.mxu2  ;;  %v6091_v10 = vadd.f32 %v16233_v26, %v4801_v6 }
 0x6da   : > { %v7422_v47 = vadd.f32 %v7317_v61, %v6867_v30  ;;  %v9804_v40 = vadd.f32 %v14951_v41, %v9803_v11  ;;  %v9621_v18 = vmax.f32 %v9557_v50, 0.0  ;;  %v16234_v30 = vld [vmem:[#allocation39_spill] sm:$0xff] }
 0x6db   : > { %v16235_v61 = vld [vmem:[#allocation151_spill] sm:$0xff] }
 0x6dc   : > { %v8712_v7 = vadd.f32 %v14705_v63, %v7422_v47  ;;  %v10000_v2 = vadd.f32 %v9936_v52, %v9804_v40  ;;  %v15201_v37 = vpop.f32.mrf.mxu0  ;;  %v4802_v11 = vadd.f32 %v16235_v61, %v16234_v30  ;;  %v16236_v52 = vld [vmem:[#allocation228_spill] sm:$0xff] }
 0x6dd   : > { %v6869_v19 = vadd.f32 %v16236_v52, %v6091_v10  ;;  %v16243_v52 = vld [vmem:[#allocation159_spill] sm:$0xff] }
 0x6de   : > { %v9490_v57 = vadd.f32 %v14883_v0, %v8712_v7  ;;  %v10064_v25 = vmax.f32 %v10000_v2, 0.0  ;;  %7359 = vmatmul.bf16.gmra.mxu3 %v11351_v48  ;;  %v9938_v7 = vld [vmem:[%s11617_s9 + $0xa0] sm:$0xff] }
 0x6e0   : > { %10128 = vst.msk [vmem:[%s14966_s12 + $0x90] sm:$0xff] %vm396_vm0, %v10064_v25  ;;  %v9558_v36 = vadd.f32 %v15160_v15, %v9490_v57  ;;  %v11352_v57 = vld [vmem:[#allocation2 + $0x180] sm:$0xff] }
 0x6e1   : > { %v7320_v63 = vpop.f32.mrf.mxu3  ;;  %v9805_v21 = vpop.f32.mrf.mxu2  ;;  %v16237_v25 = vld [vmem:[#allocation213_spill] sm:$0xff] }
 0x6e2   : > { %v7423_v23 = vadd.f32 %v7320_v63, %v6868_v49  ;;  %v9806_v0 = vadd.f32 %v14951_v41, %v9805_v21  ;;  %v9622_v31 = vmax.f32 %v9558_v36, 0.0  ;;  %v6092_v50 = vadd.f32 %v16237_v25, %v4802_v11  ;;  %v16238_v49 = vld [vmem:[#allocation41_spill] sm:$0xff]  ;;  %v15223_v63 = vpop.f32.mrf.mxu1  ;;  %v16242_v11 = vld [vmem:[#allocation43_spill] sm:$0xff] }
 0x6e4   : > { %v10001_v33 = vadd.f32 %v9937_v17, %v9806_v0  ;;  %v9667_v60 = vpack.c.bf16 %v9622_v31, %v9621_v18  ;;  %v8713_v29 = vadd.f32 %v15109_v27, %v7423_v23  ;;  %v15217_v4 = vpop.f32.mrf.mxu0  ;;  %v9939_v18 = vld [vmem:[%s11617_s9 + $0xa8] sm:$0xff] }
 0x6e6   : > { %v10065_v34 = vmax.f32 %v10001_v33, 0.0  ;;  %9847 = vmatmul.bf16.gmra.mxu2 %v9667_v60  ;;  %v9491_v2 = vadd.f32 %v15112_v16, %v8713_v29  ;;  %v16239_v16 = vld [vmem:[#allocation155_spill] sm:$0xff] }
 0x6e7   : > { %v4803_v36 = vadd.f32 %v16239_v16, %v16238_v49 }
 0x6e8   : > { %10129 = vst.msk [vmem:[%s14966_s12 + $0x98] sm:$0xff] %vm396_vm0, %v10065_v34  ;;  %v9559_v38 = vadd.f32 %v15160_v15, %v9491_v2  ;;  %v16241_v34 = vld [vmem:[#allocation215_spill] sm:$0xff] }
 0x6e9   : > { %v7322_v47 = vpop.f32.mrf.mxu3  ;;  %v9808_v40 = vpop.f32.mrf.mxu2  ;;  %v6093_v30 = vadd.f32 %v16241_v34, %v4803_v36  ;;  %v9941_v36 = vld [vmem:[%s11617_s9 + $0xb8] sm:$0xff] }
 0x6ea   : > { %v7424_v48 = vadd.f32 %v7322_v47, %v6869_v19  ;;  %v9809_v39 = vadd.f32 %v14951_v41, %v9808_v40  ;;  %v9623_v33 = vmax.f32 %v9559_v38, 0.0  ;;  %v4804_v19 = vadd.f32 %v16243_v52, %v16242_v11 }
 0x6ec   : > { %v8714_v27 = vadd.f32 %v15124_v56, %v7424_v48  ;;  %v10002_v24 = vadd.f32 %v9938_v7, %v9809_v39  ;;  %v16240_v56 = vld [vmem:[#allocation78_spill] sm:$0xff]  ;;  %v15235_v47 = vpop.f32.mrf.mxu0  ;;  %v9940_v39 = vld [vmem:[%s11617_s9 + $0xb0] sm:$0xff] }
 0x6ed   : > { %v6870_v21 = vadd.f32 %v16240_v56, %v6092_v50  ;;  %v16244_v7 = vld [vmem:[#allocation82_spill] sm:$0xff]  ;;  %v16246_v56 = vld [vmem:[#allocation45_spill] sm:$0xff] }
 0x6ee   : > { %v9492_v53 = vadd.f32 %v15128_v5, %v8714_v27  ;;  %v10066_v6 = vmax.f32 %v10002_v24, 0.0  ;;  %7364 = vmatmul.bf16.gmra.mxu3 %v11352_v57  ;;  %v6871_v2 = vadd.f32 %v16244_v7, %v6093_v30  ;;  %v15242_v27 = vpop.f32.mrf.mxu1 }
 0x6f0   : > { %10130 = vst.msk [vmem:[%s14966_s12 + $0xa0] sm:$0xff] %vm396_vm0, %v10066_v6  ;;  %v9560_v17 = vadd.f32 %v15160_v15, %v9492_v53  ;;  %v11353_v53 = vld [vmem:[#allocation2 + $0x18c] sm:$0xff] }
 0x6f1   : > { %v7325_v23 = vpop.f32.mrf.mxu3  ;;  %v9810_v0 = vpop.f32.mrf.mxu2  ;;  %v16245_v6 = vld [vmem:[#allocation219_spill] sm:$0xff] }
 0x6f2   : > { %v7425_v5 = vadd.f32 %v7325_v23, %v6870_v21  ;;  %v9811_v31 = vadd.f32 %v14951_v41, %v9810_v0  ;;  %v9624_v60 = vmax.f32 %v9560_v17, 0.0  ;;  %v16247_v21 = vld [vmem:[#allocation162_spill] sm:$0xff] }
 0x6f3   : > { %v4805_v17 = vadd.f32 %v16247_v21, %v16246_v56  ;;  %v16248_v23 = vld [vmem:[#allocation154_spill] sm:$0xff] }
 0x6f4   : > { %v8715_v26 = vadd.f32 %v15141_v8, %v7425_v5  ;;  %v10003_v10 = vadd.f32 %v9939_v18, %v9811_v31  ;;  %v9668_v29 = vpack.c.bf16 %v9624_v60, %v9623_v33  ;;  %v7542_v5 = vld [vmem:[#allocation2 + $0x1a4] sm:$0xf]  ;;  %v7543_v31 = vld [vmem:[#allocation2 + $0x1a8] sm:$0xf]  ;;  %v15256_v30 = vpop.f32.mrf.mxu0 }
 0x6f5   : > { %v8303_v34 = vshrl.u32 %v7543_v31, 16 }
 0x6f6   : > { %v10067_v61 = vmax.f32 %v10003_v10, 0.0  ;;  %9852 = vmatmul.bf16.gmra.mxu2 %v9668_v29  ;;  %v9493_v40 = vadd.f32 %v15146_v22, %v8715_v26  ;;  %v6094_v22 = vadd.f32 %v16245_v6, %v4804_v19  ;;  %v7544_v26 = vld [vmem:[#allocation2 + $0x1ac] sm:$0x1]  ;;  %v8290_v10 = vshrl.u32 %v7542_v5, 16 }
 0x6f7   : > { %v8299_v29 = vshll.u32 %v7543_v31, 16  ;;  %v8309_v19 = vshll.u32 %v7544_v26, 16  ;;  %v9089_v21 = vrot.slane %v7544_v26, 5 }
 0x6f8   : > { %10131 = vst.msk [vmem:[%s14966_s12 + $0xa8] sm:$0xff] %vm396_vm0, %v10067_v61  ;;  %v9561_v38 = vadd.f32 %v15160_v15, %v9493_v40  ;;  %v6872_v0 = vadd.f32 %v16248_v23, %v6094_v22  ;;  %v8770_v40 = vld [vmem:[#allocation2 + $0x1a4] sm:$0xe]  ;;  %v8292_v7 = vrot.slane %v8290_v10, 4 }
 0x6f9   : > { %v7327_v48 = vpop.f32.mrf.mxu3  ;;  %v9813_v8 = vpop.f32.mrf.mxu2 }
 0x6fa   : > { %v7426_v24 = vadd.f32 %v7327_v48, %v6871_v2  ;;  %v9814_v57 = vadd.f32 %v14951_v41, %v9813_v8  ;;  %v9625_v18 = vmax.f32 %v9561_v38, 0.0  ;;  %v8301_v48 = vrot.slane %v8299_v29, 5 }
 0x6fb   : > { %v8305_v8 = vrot.slane %v8303_v34, 4  ;;  %v11126_v38 = vrot.slane %v8770_v40, 9 }
 0x6fc   : > { %v8716_v25 = vadd.f32 %v15165_v45, %v7426_v24  ;;  %v10004_v50 = vadd.f32 %v9940_v39, %v9814_v57  ;;  %v15259_v39 = vpop.f32.mrf.mxu1 }
 0x6fd   : > { %v8306_v22 = vor.u32 %v8305_v8, %v8301_v48  ;;  %v15279_v8 = vpop.f32.mrf.mxu0 }
 0x6fe   : > { %v9494_v49 = vadd.f32 %v15172_v46, %v8716_v25  ;;  %v10068_v16 = vmax.f32 %v10004_v50, 0.0  ;;  %7369 = vmatmul.bf16.gmra.mxu3 %v11353_v53  ;;  %v8293_v46 = vshll.u32 %v7542_v5, 16  ;;  %v16249_v25 = vld [vmem:[#allocation223_spill] sm:$0xff]  ;;  %v8311_v53 = vrot.slane %v8309_v19, 5  ;;  %v16251_v5 = vld [vmem:[#allocation166_spill] sm:$0xff] }
 0x6ff   : > { %v6095_v50 = vadd.f32 %v16249_v25, %v4805_v17  ;;  %v16254_v25 = vld [vmem:[#allocation227_spill] sm:$0xff] }
 0x700   : > { %10132 = vst.msk [vmem:[%s14966_s12 + $0xb0] sm:$0xff] %vm396_vm0, %v10068_v16  ;;  %v9562_v45 = vadd.f32 %v15160_v15, %v9494_v49  ;;  %v8295_v2 = vrot.slane %v8293_v46, 5  ;;  %v9086_v49 = vrot.slane %v7543_v31, 5  ;;  %v9942_v46 = vld [vmem:[%s11617_s9 + $0xc0] sm:$0xff] }
 0x701   : > { %v7330_v33 = vpop.f32.mrf.mxu3  ;;  %v9815_v60 = vpop.f32.mrf.mxu2 }
 0x702   : > { %v7427_v61 = vadd.f32 %v7330_v33, %v6872_v0  ;;  %v9816_v11 = vadd.f32 %v14951_v41, %v9815_v60  ;;  %v9626_v52 = vmax.f32 %v9562_v45, 0.0  ;;  %v8296_v6 = vor.u32 %v8295_v2, %v8292_v7  ;;  %v16252_v33 = vld [vmem:[#allocation158_spill] sm:$0xff] }
 0x703   : > { %v8307_v0 = vrot.slane %v8306_v22, 4  ;;  %v9088_v45 = vrot.slane %v9086_v49, 4  ;;  %v6873_v60 = vadd.f32 %v16252_v33, %v6095_v50 }
 0x704   : > { %v10005_v24 = vadd.f32 %v9941_v36, %v9816_v11  ;;  %v9669_v57 = vpack.c.bf16 %v9626_v52, %v9625_v18  ;;  %v8717_v16 = vadd.f32 %v15183_v32, %v7427_v61  ;;  %v8297_v23 = vrot.slane %v8296_v6, 4  ;;  %v16250_v18 = vld [vmem:[#allocation150_spill] sm:$0xff]  ;;  %v15283_v6 = vpop.f32.mrf.mxu1 }
 0x705   : > { %v9087_v36 = vsel %vm12268_vm15, %v11126_v38, %v9086_v49  ;;  %v4806_v17 = vadd.f32 %v16251_v5, %v16250_v18  ;;  %v8312_v26 = vsel %vm11706_vm8, %v8307_v0, %v8311_v53  ;;  %v9090_v34 = vsel %vm12268_vm15, %v9088_v45, %v9089_v21  ;;  %v16255_v49 = vld [vmem:[#allocation49_spill] sm:$0xff]  ;;  %v9943_v45 = vld [vmem:[%s11617_s9 + $0xc8] sm:$0xff] }
 0x706   : > { %v10069_v56 = vmax.f32 %v10005_v24, 0.0  ;;  %9857 = vmatmul.bf16.gmra.mxu2 %v9669_v57  ;;  %v8302_v29 = vsel %vm11706_vm8, %v8297_v23, %v8301_v48  ;;  %v9170_v61 = vunpack.c.l.b16 %v9087_v36  ;;  %v9495_v11 = vadd.f32 %v15187_v62, %v8717_v16  ;;  %v11354_v57 = vld [vmem:[#allocation2 + $0x198] sm:$0xff]  ;;  %v16256_v16 = vld [vmem:[#allocation170_spill] sm:$0xff] }
 0x707   : > { %v8392_v40 = vunpack.c.l.b16 %v8302_v29  ;;  %v8393_v7 = vunpack.c.l.b16 %v8312_v26  ;;  %v9171_v2 = vunpack.c.l.b16 %v9090_v34  ;;  %v6096_v50 = vadd.f32 %v16254_v25, %v4806_v17  ;;  %v16259_v26 = vld [vmem:[#allocation51_spill] sm:$0xff]  ;;  %v16260_v34 = vld [vmem:[#allocation174_spill] sm:$0xff] }
 0x708   : > { %10133 = vst.msk [vmem:[%s14966_s12 + $0xb8] sm:$0xff] %vm396_vm0, %v10069_v56  ;;  %v9563_v38 = vadd.f32 %v15160_v15, %v9495_v11  ;;  %v16257_v56 = vld [vmem:[#allocation98_spill] sm:$0xff] }
 0x709   : > { %v7332_v10 = vpop.f32.mrf.mxu3  ;;  %v9818_v31 = vpop.f32.mrf.mxu2  ;;  %v8425_v35 = vpack.c.b16 %v8393_v7, %v8392_v40  ;;  %v9203_v53 = vpack.c.b16 %v9171_v2, %v9170_v61  ;;  %v6874_v21 = vadd.f32 %v16257_v56, %v6096_v50  ;;  %v4808_v61 = vadd.f32 %v16260_v34, %v16259_v26  ;;  %v9944_v2 = vld [vmem:[%s11617_s9 + $0xd0] sm:$0xff]  ;;  %v16268_v26 = vld [vmem:[#allocation182_spill] sm:$0xff] }
 0x70a   : > { %v7428_v52 = vadd.f32 %v7332_v10, %v6873_v60  ;;  %v9819_v19 = vadd.f32 %v14951_v41, %v9818_v31  ;;  %v9627_v5 = vmax.f32 %v9563_v38, 0.0  ;;  %v16258_v10 = vld [vmem:[#allocation231_spill] sm:$0xff] }
 0x70b   : > { %8669 = vmatmul.bf16.gmra.mxu0 %v8425_v35  ;;  %9447 = vmatmul.bf16.gmra.mxu1 %v9203_v53  ;;  %v16262_v35 = vld [vmem:[#allocation234_spill] sm:$0xff] }
 0x70c   : > { %v8718_v48 = vadd.f32 %v15201_v37, %v7428_v52  ;;  %v10006_v24 = vadd.f32 %v9942_v46, %v9819_v19  ;;  %v4807_v37 = vadd.f32 %v16256_v16, %v16255_v49  ;;  %v15296_v46 = vpop.f32.mrf.mxu0  ;;  %v15301_v11 = vpop.f32.mrf.mxu1  ;;  %v16261_v52 = vld [vmem:[#allocation102_spill] sm:$0xff]  ;;  %v6098_v53 = vadd.f32 %v16262_v35, %v4808_v61  ;;  %v16263_v49 = vld [vmem:[#allocation53_spill] sm:$0xff]  ;;  %v16264_v16 = vld [vmem:[#allocation179_spill] sm:$0xff] }
 0x70d   : > { %v16269_v61 = vld [vmem:[#allocation111_spill] sm:$0xff] }
 0x70e   : > { %v9496_v62 = vadd.f32 %v15204_v58, %v8718_v48  ;;  %v10070_v22 = vmax.f32 %v10006_v24, 0.0  ;;  %7374 = vmatmul.bf16.gmra.mxu3 %v11354_v57  ;;  %v6097_v31 = vadd.f32 %v16258_v10, %v4807_v37  ;;  %v11355_v57 = vld [vmem:[#allocation2 + $0x1a4] sm:$0xff]  ;;  %v4809_v37 = vadd.f32 %v16264_v16, %v16263_v49 }
 0x70f   : > { %v16272_v49 = vld [vmem:[#allocation186_spill] sm:$0xff] }
 0x710   : > { %10134 = vst.msk [vmem:[%s14966_s12 + $0xc0] sm:$0xff] %vm396_vm0, %v10070_v22  ;;  %v9564_v23 = vadd.f32 %v15160_v15, %v9496_v62  ;;  %v6875_v19 = vadd.f32 %v16261_v52, %v6097_v31 }
 0x711   : > { %v7335_v0 = vpop.f32.mrf.mxu3  ;;  %v9820_v36 = vpop.f32.mrf.mxu2 }
 0x712   : > { %v7429_v58 = vadd.f32 %v7335_v0, %v6874_v21  ;;  %v9821_v18 = vadd.f32 %v14951_v41, %v9820_v36  ;;  %v9628_v17 = vmax.f32 %v9564_v23, 0.0  ;;  %v9945_v0 = vld [vmem:[%s11617_s9 + $0xd8] sm:$0xff] }
 0x714   : > { %v10007_v33 = vadd.f32 %v9943_v45, %v9821_v18  ;;  %v9670_v60 = vpack.c.bf16 %v9628_v17, %v9627_v5  ;;  %v8719_v32 = vadd.f32 %v15217_v4, %v7429_v58  ;;  %v15325_v45 = vld [vmem:[%s15578_s6] ss:$0 sm:$0xff] }
 0x716   : > { %v10071_v29 = vmax.f32 %v10007_v33, 0.0  ;;  %9862 = vmatmul.bf16.gmra.mxu2 %v9670_v60  ;;  %v9497_v48 = vadd.f32 %v15223_v63, %v8719_v32  ;;  %v15315_v63 = vpop.f32.mrf.mxu0  ;;  %v16266_v60 = vld [vmem:[#allocation235_spill] sm:$0xff] }
 0x717   : > { %v6099_v10 = vadd.f32 %v16266_v60, %v4809_v37  ;;  %v16274_v60 = vld [vmem:[#allocation66_spill] sm:$0xff] }
 0x718   : > { %10135 = vst.msk [vmem:[%s14966_s12 + $0xc8] sm:$0xff] %vm396_vm0, %v10071_v29  ;;  %v9565_v38 = vadd.f32 %v15160_v15, %v9497_v48  ;;  %v16267_v29 = vld [vmem:[#allocation58_spill] sm:$0xff] }
 0x719   : > { %v7337_v40 = vpop.f32.mrf.mxu3  ;;  %v9823_v7 = vpop.f32.mrf.mxu2  ;;  %v4810_v34 = vadd.f32 %v16268_v26, %v16267_v29  ;;  %v6877_v52 = vadd.f32 %v16269_v61, %v6099_v10  ;;  %v16275_v10 = vld [vmem:[#allocation191_spill] sm:$0xff] }
 0x71a   : > { %v7430_v24 = vadd.f32 %v7337_v40, %v6875_v19  ;;  %v9824_v4 = vadd.f32 %v14951_v41, %v9823_v7  ;;  %v16265_v41 = vld [vmem:[#allocation107_spill] sm:$0xff]  ;;  %v9629_v18 = vmax.f32 %v9565_v38, 0.0  ;;  %v9946_v7 = vld [vmem:[%s11617_s9 + $0xe0] sm:$0xff]  ;;  %v16271_v38 = vld [vmem:[#allocation62_spill] sm:$0xff] }
 0x71b   : > { %v6876_v56 = vadd.f32 %v16265_v41, %v6098_v53  ;;  %v4811_v16 = vadd.f32 %v16272_v49, %v16271_v38  ;;  %v9949_v38 = vld [vmem:[%s11617_s9 + $0xf8] sm:$0xff] }
 0x71c   : > { %v8720_v25 = vadd.f32 %v15235_v47, %v7430_v24  ;;  %v10008_v50 = vadd.f32 %v9944_v2, %v9824_v4 }
 0x71e   : > { %v9498_v62 = vadd.f32 %v15242_v27, %v8720_v25  ;;  %v10072_v22 = vmax.f32 %v10008_v50, 0.0  ;;  %7379 = vmatmul.bf16.gmra.mxu3 %v11355_v57  ;;  %v9415_v27 = vpop.f32.mrf.mxu1  ;;  %v8640_v2 = vpop.f32.mrf.mxu0  ;;  %v16270_v50 = vld [vmem:[#allocation236_spill] sm:$0xff] }
 0x71f   : > { %v6100_v35 = vadd.f32 %v16270_v50, %v4810_v34  ;;  %v9948_v34 = vld [vmem:[%s11617_s9 + $0xf0] sm:$0xff] }
 0x720   : > { %10136 = vst.msk [vmem:[%s14966_s12 + $0xd0] sm:$0xff] %vm396_vm0, %v10072_v22  ;;  %v9566_v47 = vadd.f32 %v15160_v15, %v9498_v62  ;;  %v16278_v50 = vld [vmem:[#allocation195_spill] sm:$0xff] }
 0x721   : > { %v7340_v21 = vpop.f32.mrf.mxu3  ;;  %v9825_v23 = vpop.f32.mrf.mxu2 }
 0x722   : > { %v7431_v36 = vadd.f32 %v7340_v21, %v6876_v56  ;;  %v9826_v58 = vadd.f32 %v15325_v45, %v9825_v23  ;;  %v9630_v5 = vmax.f32 %v9566_v47, 0.0  ;;  %v9947_v56 = vld [vmem:[%s11617_s9 + $0xe8] sm:$0xff] }
 0x724   : > { %v10009_v17 = vadd.f32 %v9945_v0, %v9826_v58  ;;  %v9671_v33 = vpack.c.bf16 %v9630_v5, %v9629_v18  ;;  %v8721_v31 = vadd.f32 %v15256_v30, %v7431_v36  ;;  %v16273_v18 = vld [vmem:[#allocation237_spill] sm:$0xff] }
 0x725   : > { %v6101_v5 = vadd.f32 %v16273_v18, %v4811_v16 }
 0x726   : > { %v10073_v32 = vmax.f32 %v10009_v17, 0.0  ;;  %9867 = vmatmul.bf16.gmra.mxu2 %v9671_v33  ;;  %v9499_v48 = vadd.f32 %v15259_v39, %v8721_v31  ;;  %v15338_v4 = vpop.f32.mrf.mxu1  ;;  %v6878_v39 = vadd.f32 %v14747_v14, %v6100_v35  ;;  %v8642_v0 = vpop.f32.mrf.mxu0  ;;  %v4812_v31 = vadd.f32 %v16275_v10, %v16274_v60 }
 0x728   : > { %10137 = vst.msk [vmem:[%s14966_s12 + $0xd8] sm:$0xff] %vm396_vm0, %v10073_v32  ;;  %v9567_v22 = vadd.f32 %v15160_v15, %v9499_v48  ;;  %v6879_v32 = vadd.f32 %v14757_v28, %v6101_v5 }
 0x729   : > { %v7342_v19 = vpop.f32.mrf.mxu3  ;;  %v9828_v40 = vpop.f32.mrf.mxu2 }
 0x72a   : > { %v7432_v24 = vadd.f32 %v7342_v19, %v6877_v52  ;;  %v9829_v30 = vadd.f32 %v15325_v45, %v9828_v40 }
 0x72c   : > { %v8722_v57 = vadd.f32 %v15279_v8, %v7432_v24  ;;  %v10010_v25 = vadd.f32 %v9946_v7, %v9829_v30  ;;  %v16276_v7 = vld [vmem:[#allocation238_spill] sm:$0xff] }
 0x72d   : > { %v6102_v48 = vadd.f32 %v16276_v7, %v4812_v31 }
 0x72e   : > { %v9500_v53 = vadd.f32 %v15283_v6, %v8722_v57  ;;  %v10074_v62 = vmax.f32 %v10010_v25, 0.0  ;;  %v9631_v6 = vmax.f32 %v9567_v22, 0.0  ;;  %v9420_v17 = vpop.f32.mrf.mxu1  ;;  %v8645_v24 = vpop.f32.mrf.mxu0  ;;  %v16277_v25 = vld [vmem:[#allocation137_spill] sm:$0xff] }
 0x72f   : > { %v4813_v35 = vadd.f32 %v16278_v50, %v16277_v25 }
 0x730   : > { %10138 = vst.msk [vmem:[%s14966_s12 + $0xe0] sm:$0xff] %vm396_vm0, %v10074_v62  ;;  %v9568_v37 = vadd.f32 %v15160_v15, %v9500_v53 }
 0x731   : > { %v7345_v41 = vpop.f32.mrf.mxu3  ;;  %v9830_v8 = vpop.f32.mrf.mxu2 }
 0x732   : > { %v7433_v47 = vadd.f32 %v7345_v41, %v6878_v39  ;;  %v9831_v21 = vadd.f32 %v15325_v45, %v9830_v8  ;;  %v9632_v23 = vmax.f32 %v9568_v37, 0.0  ;;  %v16279_v8 = vld [vmem:[#allocation239_spill] sm:$0xff] }
 0x734   : > { %v10011_v36 = vadd.f32 %v9947_v56, %v9831_v21  ;;  %v9672_v58 = vpack.c.bf16 %v9632_v23, %v9631_v6  ;;  %v8723_v14 = vadd.f32 %v15296_v46, %v7433_v47  ;;  %v6103_v56 = vadd.f32 %v16279_v8, %v4813_v35  ;;  %v16281_v6 = vld [vmem:[#allocation198_spill] sm:$0xff] }
 0x736   : > { %v10075_v33 = vmax.f32 %v10011_v36, 0.0  ;;  %9872 = vmatmul.bf16.gmra.mxu2 %v9672_v58  ;;  %v9501_v61 = vadd.f32 %v15301_v11, %v8723_v14  ;;  %v9423_v53 = vpop.f32.mrf.mxu1  ;;  %v6880_v11 = vadd.f32 %v14779_v13, %v6102_v48  ;;  %v16280_v13 = vld [vmem:[#allocation74_spill] sm:$0xff]  ;;  %v8647_v36 = vpop.f32.mrf.mxu0  ;;  %v6881_v58 = vadd.f32 %v14795_v1, %v6103_v56  ;;  %v9950_v14 = vld [vmem:[%s11617_s9 + $0x100] sm:$0xff]  ;;  %v16284_v1 = vld [vmem:[#allocation200_spill] sm:$0xff] }
 0x737   : > { %v4814_v23 = vadd.f32 %v16281_v6, %v16280_v13  ;;  %v16288_v6 = vld [vmem:[#allocation242_spill] sm:$0xff] }
 0x738   : > { %10139 = vst.msk [vmem:[%s14966_s12 + $0xe8] sm:$0xff] %vm396_vm0, %v10075_v33  ;;  %v9569_v28 = vadd.f32 %v15160_v15, %v9501_v61 }
 0x739   : > { %v7347_v29 = vpop.f32.mrf.mxu3  ;;  %v9833_v26 = vpop.f32.mrf.mxu2 }
 0x73a   : > { %v7434_v52 = vadd.f32 %v7347_v29, %v6879_v32  ;;  %v9834_v19 = vadd.f32 %v15325_v45, %v9833_v26  ;;  %v9633_v16 = vmax.f32 %v9569_v28, 0.0  ;;  %v16282_v29 = vld [vmem:[#allocation240_spill] sm:$0xff] }
 0x73b   : > { %v6104_v26 = vadd.f32 %v16282_v29, %v4814_v23 }
 0x73c   : > { %v8724_v46 = vadd.f32 %v15315_v63, %v7434_v52  ;;  %v10012_v40 = vadd.f32 %v9948_v34, %v9834_v19  ;;  %v16283_v19 = vld [vmem:[#allocation140_spill] sm:$0xff] }
 0x73e   : > { %v9502_v30 = vadd.f32 %v9415_v27, %v8724_v46  ;;  %v10076_v57 = vmax.f32 %v10012_v40, 0.0  ;;  %v9425_v33 = vpop.f32.mrf.mxu1  ;;  %v4815_v46 = vadd.f32 %v16284_v1, %v16283_v19  ;;  %v6882_v40 = vadd.f32 %v14808_v44, %v6104_v26  ;;  %v16291_v19 = vld [vmem:[#allocation244_spill] sm:$0xff] }
 0x740   : > { %10140 = vst.msk [vmem:[%s14966_s12 + $0xf0] sm:$0xff] %vm396_vm0, %v10076_v57  ;;  %v9570_v62 = vadd.f32 %v15160_v15, %v9502_v30  ;;  %v8650_v30 = vpop.f32.mrf.mxu0 }
 0x741   : > { %v7350_v63 = vpop.f32.mrf.mxu3  ;;  %v9835_v22 = vpop.f32.mrf.mxu2 }
 0x742   : > { %v7435_v49 = vadd.f32 %v7350_v63, %v6880_v11  ;;  %v9836_v27 = vadd.f32 %v15325_v45, %v9835_v22  ;;  %v9634_v39 = vmax.f32 %v9570_v62, 0.0  ;;  %v16285_v62 = vld [vmem:[#allocation241_spill] sm:$0xff] }
 0x743   : > { %v6105_v63 = vadd.f32 %v16285_v62, %v4815_v46 }
 0x744   : > { %v10013_v37 = vadd.f32 %v9949_v38, %v9836_v27  ;;  %v9673_v41 = vpack.c.bf16 %v9634_v39, %v9633_v16  ;;  %v8725_v47 = vadd.f32 %v8640_v2, %v7435_v49  ;;  %v16286_v38 = vld [vmem:[#allocation145_spill] sm:$0xff]  ;;  %v16287_v49 = vld [vmem:[#allocation203_spill] sm:$0xff] }
 0x745   : > { %v4816_v27 = vadd.f32 %v16287_v49, %v16286_v38  ;;  %v6883_v16 = vadd.f32 %v14820_v55, %v6105_v63  ;;  %v16289_v55 = vld [vmem:[#allocation86_spill] sm:$0xff] }
 0x746   : > { %v10077_v21 = vmax.f32 %v10013_v37, 0.0  ;;  %9877 = vmatmul.bf16.gmra.mxu2 %v9673_v41  ;;  %v9503_v60 = vadd.f32 %v15338_v4, %v8725_v47  ;;  %v9428_v50 = vpop.f32.mrf.mxu1  ;;  %v9952_v41 = vld [vmem:[%s11617_s9 + $0x110] sm:$0xff] }
 0x747   : > { %v6106_v23 = vadd.f32 %v16288_v6, %v4816_v27 }
 0x748   : > { %10141 = vst.msk [vmem:[%s14966_s12 + $0xf8] sm:$0xff] %vm396_vm0, %v10077_v21  ;;  %v9571_v52 = vadd.f32 %v15160_v15, %v9503_v60  ;;  %v8652_v21 = vpop.f32.mrf.mxu0  ;;  %v16290_v60 = vld [vmem:[#allocation206_spill] sm:$0xff] }
 0x749   : > { %v7352_v18 = vpop.f32.mrf.mxu3  ;;  %v9838_v5 = vpop.f32.mrf.mxu2 }
 0x74a   : > { %v7436_v10 = vadd.f32 %v7352_v18, %v6881_v58  ;;  %v9839_v2 = vadd.f32 %v15325_v45, %v9838_v5  ;;  %v9635_v28 = vmax.f32 %v9571_v52, 0.0 }
 0x74c   : > { %v8726_v31 = vadd.f32 %v8642_v0, %v7436_v10  ;;  %v10014_v32 = vadd.f32 %v9950_v14, %v9839_v2  ;;  %v9951_v0 = vld [vmem:[%s11617_s9 + $0x108] sm:$0xff]  ;;  %v4817_v10 = vadd.f32 %v16290_v60, %v16289_v55 }
 0x74e   : > { %v9504_v34 = vadd.f32 %v9420_v17, %v8726_v31  ;;  %v10078_v61 = vmax.f32 %v10014_v32, 0.0  ;;  %v9430_v58 = vpop.f32.mrf.mxu1  ;;  %v9953_v32 = vld [vmem:[%s11617_s9 + $0x118] sm:$0xff]  ;;  %v6107_v1 = vadd.f32 %v16291_v19, %v4817_v10  ;;  %v16299_v10 = vld [vmem:[#allocation214_spill] sm:$0xff] }
 0x750   : > { %10142 = vst.msk [vmem:[%s14966_s12 + $0x100] sm:$0xff] %vm396_vm0, %v10078_v61  ;;  %v9572_v4 = vadd.f32 %v15160_v15, %v9504_v34  ;;  %v8655_v46 = vpop.f32.mrf.mxu0 }
 0x751   : > { %v7355_v7 = vpop.f32.mrf.mxu3  ;;  %v9840_v48 = vpop.f32.mrf.mxu2 }
 0x752   : > { %v7437_v57 = vadd.f32 %v7355_v7, %v6882_v40  ;;  %v9841_v17 = vadd.f32 %v15325_v45, %v9840_v48  ;;  %v9636_v25 = vmax.f32 %v9572_v4, 0.0  ;;  %v16293_v7 = vld [vmem:[#allocation209_spill] sm:$0xff] }
 0x754   : > { %v10015_v35 = vadd.f32 %v9951_v0, %v9841_v17  ;;  %v9674_v11 = vpack.c.bf16 %v9636_v25, %v9635_v28  ;;  %v8727_v22 = vadd.f32 %v8645_v24, %v7437_v57  ;;  %v6885_v57 = vadd.f32 %v14850_v3, %v6107_v1  ;;  %v9954_v25 = vld [vmem:[%s11617_s9 + $0x120] sm:$0xff]  ;;  %v16300_v1 = vld [vmem:[#allocation251_spill] sm:$0xff] }
 0x756   : > { %v10079_v44 = vmax.f32 %v10015_v35, 0.0  ;;  %9882 = vmatmul.bf16.gmra.mxu2 %v9674_v11  ;;  %v9505_v8 = vadd.f32 %v9423_v53, %v8727_v22  ;;  %v6884_v53 = vadd.f32 %v14833_v51, %v6106_v23  ;;  %v16292_v51 = vld [vmem:[#allocation90_spill] sm:$0xff]  ;;  %v9433_v0 = vpop.f32.mrf.mxu1 }
 0x757   : > { %v4818_v48 = vadd.f32 %v16293_v7, %v16292_v51  ;;  %v16294_v22 = vld [vmem:[#allocation246_spill] sm:$0xff] }
 0x758   : > { %10143 = vst.msk [vmem:[%s14966_s12 + $0x108] sm:$0xff] %vm396_vm0, %v10079_v44  ;;  %v9573_v14 = vadd.f32 %v15160_v15, %v9505_v8  ;;  %v8657_v3 = vpop.f32.mrf.mxu0  ;;  %v16302_v7 = vld [vmem:[#allocation218_spill] sm:$0xff] }
 0x759   : > { %v7357_v39 = vpop.f32.mrf.mxu3  ;;  %v9843_v37 = vpop.f32.mrf.mxu2  ;;  %v6108_v44 = vadd.f32 %v16294_v22, %v4818_v48 }
 0x75a   : > { %v7438_v56 = vadd.f32 %v7357_v39, %v6883_v16  ;;  %v9844_v47 = vadd.f32 %v15325_v45, %v9843_v37  ;;  %v16295_v16 = vld [vmem:[#allocation94_spill] sm:$0xff]  ;;  %v16296_v39 = vld [vmem:[#allocation212_spill] sm:$0xff] }
 0x75b   : > { %v4819_v37 = vadd.f32 %v16296_v39, %v16295_v16  ;;  %v16304_v39 = vld [vmem:[#allocation169_spill] sm:$0xff] }
 0x75c   : > { %v8728_v24 = vadd.f32 %v8647_v36, %v7438_v56  ;;  %v10016_v13 = vadd.f32 %v9952_v41, %v9844_v47  ;;  %v9955_v47 = vld [vmem:[%s11617_s9 + $0x128] sm:$0xff] }
 0x75e   : > { %v9506_v18 = vadd.f32 %v9425_v33, %v8728_v24  ;;  %v10080_v5 = vmax.f32 %v10016_v13, 0.0  ;;  %v9637_v33 = vmax.f32 %v9573_v14, 0.0 }
 0x760   : > { %10144 = vst.msk [vmem:[%s14966_s12 + $0x110] sm:$0xff] %vm396_vm0, %v10080_v5  ;;  %v9574_v2 = vadd.f32 %v15160_v15, %v9506_v18  ;;  %v16297_v5 = vld [vmem:[#allocation248_spill] sm:$0xff] }
 0x761   : > { %v7360_v31 = vpop.f32.mrf.mxu3  ;;  %v9845_v36 = vpop.f32.mrf.mxu2  ;;  %v6109_v14 = vadd.f32 %v16297_v5, %v4819_v37  ;;  %v16305_v37 = vld [vmem:[#allocation222_spill] sm:$0xff] }
 0x762   : > { %v7439_v29 = vadd.f32 %v7360_v31, %v6884_v53  ;;  %v9846_v26 = vadd.f32 %v15325_v45, %v9845_v36  ;;  %v9638_v34 = vmax.f32 %v9574_v2, 0.0 }
 0x763   : > { %v6887_v2 = vadd.f32 %v14874_v20, %v6109_v14  ;;  %v16301_v20 = vld [vmem:[#allocation165_spill] sm:$0xff] }
 0x764   : > { %v10017_v61 = vadd.f32 %v9953_v32, %v9846_v26  ;;  %v9675_v52 = vpack.c.bf16 %v9638_v34, %v9637_v33  ;;  %v8729_v40 = vadd.f32 %v8650_v30, %v7439_v29  ;;  %v9956_v32 = vld [vmem:[%s11617_s9 + $0x130] sm:$0xff]  ;;  %v8660_v29 = vpop.f32.mrf.mxu0  ;;  %v4821_v48 = vadd.f32 %v16302_v7, %v16301_v20 }
 0x766   : > { %v10081_v4 = vmax.f32 %v10017_v61, 0.0  ;;  %9887 = vmatmul.bf16.gmra.mxu2 %v9675_v52  ;;  %v9507_v35 = vadd.f32 %v9428_v50, %v8729_v40  ;;  %v6886_v50 = vadd.f32 %v14860_v59, %v6108_v44  ;;  %v16298_v59 = vld [vmem:[#allocation161_spill] sm:$0xff] }
 0x767   : > { %v4820_v53 = vadd.f32 %v16299_v10, %v16298_v59 }
 0x768   : > { %10145 = vst.msk [vmem:[%s14966_s12 + $0x118] sm:$0xff] %vm396_vm0, %v10081_v4  ;;  %v9575_v27 = vadd.f32 %v15160_v15, %v9507_v35 }
 0x769   : > { %v7362_v17 = vpop.f32.mrf.mxu3  ;;  %v9848_v28 = vpop.f32.mrf.mxu2 }
 0x76a   : > { %v7440_v11 = vadd.f32 %v7362_v17, %v6885_v57  ;;  %v9849_v62 = vadd.f32 %v15325_v45, %v9848_v28  ;;  %v9639_v6 = vmax.f32 %v9575_v27, 0.0 }
 0x76c   : > { %v8730_v30 = vadd.f32 %v8652_v21, %v7440_v11  ;;  %v10018_v63 = vadd.f32 %v9954_v25, %v9849_v62  ;;  %v9435_v21 = vpop.f32.mrf.mxu1  ;;  %v9957_v25 = vld [vmem:[%s11617_s9 + $0x138] sm:$0xff] }
 0x76e   : > { %v9508_v38 = vadd.f32 %v9430_v58, %v8730_v30  ;;  %v10082_v49 = vmax.f32 %v10018_v63, 0.0  ;;  %v8662_v63 = vpop.f32.mrf.mxu0 }
 0x770   : > { %10146 = vst.msk [vmem:[%s14966_s12 + $0x120] sm:$0xff] %vm396_vm0, %v10082_v49  ;;  %v9576_v41 = vadd.f32 %v15160_v15, %v9508_v38  ;;  %v16303_v38 = vld [vmem:[#allocation253_spill] sm:$0xff] }
 0x771   : > { %v7365_v8 = vpop.f32.mrf.mxu3  ;;  %v9850_v56 = vpop.f32.mrf.mxu2  ;;  %v6111_v49 = vadd.f32 %v16303_v38, %v4821_v48 }
 0x772   : > { %v7441_v24 = vadd.f32 %v7365_v8, %v6886_v50  ;;  %v9851_v13 = vadd.f32 %v15325_v45, %v9850_v56  ;;  %v9640_v23 = vmax.f32 %v9576_v41, 0.0  ;;  %v9958_v56 = vld [vmem:[%s11617_s9 + $0x140] sm:$0xff] }
 0x773   : > { %v6889_v50 = vadd.f32 %v14899_v43, %v6111_v49  ;;  %v16308_v43 = vld [vmem:[#allocation226_spill] sm:$0xff]  ;;  %v16313_v49 = vld [vmem:[#allocation233_spill] sm:$0xff] }
 0x774   : > { %v10019_v58 = vadd.f32 %v9955_v47, %v9851_v13  ;;  %v9676_v18 = vpack.c.bf16 %v9640_v23, %v9639_v6  ;;  %v8731_v55 = vadd.f32 %v8655_v46, %v7441_v24  ;;  %v9438_v61 = vpop.f32.mrf.mxu1  ;;  %v6110_v46 = vadd.f32 %v16300_v1, %v4820_v53  ;;  %v16306_v23 = vld [vmem:[#allocation255_spill] sm:$0xff] }
 0x776   : > { %v10083_v60 = vmax.f32 %v10019_v58, 0.0  ;;  %9892 = vmatmul.bf16.gmra.mxu2 %v9676_v18  ;;  %v9509_v26 = vadd.f32 %v9433_v0, %v8731_v55  ;;  %v6888_v0 = vadd.f32 %v14888_v42, %v6110_v46  ;;  %v8665_v18 = vpop.f32.mrf.mxu0 }
 0x778   : > { %10147 = vst.msk [vmem:[%s14966_s12 + $0x128] sm:$0xff] %vm396_vm0, %v10083_v60  ;;  %v9577_v51 = vadd.f32 %v15160_v15, %v9509_v26  ;;  %v16307_v60 = vld [vmem:[#allocation173_spill] sm:$0xff] }
 0x779   : > { %v7367_v31 = vpop.f32.mrf.mxu3  ;;  %v9853_v36 = vpop.f32.mrf.mxu2  ;;  %v4823_v59 = vadd.f32 %v16308_v43, %v16307_v60 }
 0x77a   : > { %v7442_v33 = vadd.f32 %v7367_v31, %v6887_v2  ;;  %v9854_v34 = vadd.f32 %v15325_v45, %v9853_v36  ;;  %v9641_v62 = vmax.f32 %v9577_v51, 0.0 }
 0x77c   : > { %v8732_v52 = vadd.f32 %v8657_v3, %v7442_v33  ;;  %v10020_v19 = vadd.f32 %v9956_v32, %v9854_v34  ;;  %v9440_v27 = vpop.f32.mrf.mxu1  ;;  %v4822_v3 = vadd.f32 %v16305_v37, %v16304_v39  ;;  %v9959_v32 = vld [vmem:[%s11617_s9 + $0x148] sm:$0xff] }
 0x77e   : > { %v9510_v40 = vadd.f32 %v9435_v21, %v8732_v52  ;;  %v10084_v4 = vmax.f32 %v10020_v19, 0.0  ;;  %v6112_v58 = vadd.f32 %v16306_v23, %v4822_v3  ;;  %v16309_v19 = vld [vmem:[#allocation257_spill] sm:$0xff]  ;;  %v8667_v20 = vpop.f32.mrf.mxu0 }
 0x77f   : > { %v6113_v1 = vadd.f32 %v16309_v19, %v4823_v59 }
 0x780   : > { %10148 = vst.msk [vmem:[%s14966_s12 + $0x130] sm:$0xff] %vm396_vm0, %v10084_v4  ;;  %v9578_v57 = vadd.f32 %v15160_v15, %v9510_v40  ;;  %v6890_v53 = vadd.f32 %v14910_v9, %v6112_v58  ;;  %v16310_v9 = vld [vmem:[#allocation178_spill] sm:$0xff] }
 0x781   : > { %v7370_v17 = vpop.f32.mrf.mxu3  ;;  %v9855_v28 = vpop.f32.mrf.mxu2  ;;  %v16311_v4 = vld [vmem:[#allocation230_spill] sm:$0xff]  ;;  %v6891_v7 = vadd.f32 %v14920_v12, %v6113_v1  ;;  %v4825_v12 = vadd.f32 %v16313_v49, %v14745_v54 }
 0x782   : > { %v7443_v35 = vadd.f32 %v7370_v17, %v6888_v0  ;;  %v9856_v11 = vadd.f32 %v15325_v45, %v9855_v28  ;;  %v9642_v30 = vmax.f32 %v9578_v57, 0.0  ;;  %v4824_v51 = vadd.f32 %v16311_v4, %v16310_v9  ;;  %v9960_v57 = vld [vmem:[%s11617_s9 + $0x150] sm:$0xff] }
 0x784   : > { %v10021_v22 = vadd.f32 %v9957_v25, %v9856_v11  ;;  %v9677_v44 = vpack.c.bf16 %v9642_v30, %v9641_v62  ;;  %v8733_v16 = vadd.f32 %v8660_v29, %v7443_v35  ;;  %v9443_v10 = vpop.f32.mrf.mxu1  ;;  %v16312_v30 = vld [vmem:[#allocation260_spill] sm:$0xff] }
 0x786   : > { %v10085_v42 = vmax.f32 %v10021_v22, 0.0  ;;  %9897 = vmatmul.bf16.gmra.mxu2 %v9677_v44  ;;  %v9511_v47 = vadd.f32 %v9438_v61, %v8733_v16  ;;  %v16314_v16 = vld [vmem:[#allocation116_spill] sm:$0xff] }
 0x788   : > { %10149 = vst.msk [vmem:[%s14966_s12 + $0x138] sm:$0xff] %vm396_vm0, %v10085_v42  ;;  %v9579_v55 = vadd.f32 %v15160_v15, %v9511_v47 }
 0x789   : > { %v7372_v41 = vpop.f32.mrf.mxu3  ;;  %v9858_v8 = vpop.f32.mrf.mxu2 }
 0x78a   : > { %v7444_v21 = vadd.f32 %v7372_v41, %v6889_v50  ;;  %v9859_v24 = vadd.f32 %v15325_v45, %v9858_v8  ;;  %v9643_v33 = vmax.f32 %v9579_v55, 0.0  ;;  %v9961_v50 = vld [vmem:[%s11617_s9 + $0x158] sm:$0xff]  ;;  %v9962_v55 = vld [vmem:[%s11617_s9 + $0x160] sm:$0xff] }
 0x78c   : > { %v8734_v13 = vadd.f32 %v8662_v63, %v7444_v21  ;;  %v10022_v6 = vadd.f32 %v9958_v56, %v9859_v24  ;;  %v9445_v35 = vpop.f32.mrf.mxu1  ;;  %v6114_v63 = vadd.f32 %v16312_v30, %v4824_v51  ;;  %v9964_v51 = vld [vmem:[%s11617_s9 + $0x170] sm:$0xff] }
 0x78e   : > { %v9512_v5 = vadd.f32 %v9440_v27, %v8734_v13  ;;  %v10086_v14 = vmax.f32 %v10022_v6, 0.0  ;;  %v8670_v27 = vpop.f32.mrf.mxu0  ;;  %v6892_v42 = vadd.f32 %v16314_v16, %v6114_v63  ;;  %v16315_v13 = vld [vmem:[#allocation263_spill] sm:$0xff] }
 0x78f   : > { %v6115_v6 = vadd.f32 %v16315_v13, %v4825_v12  ;;  %v9968_v16 = vld [vmem:[%s11617_s9 + $0x190] sm:$0xff] }
 0x790   : > { %10150 = vst.msk [vmem:[%s14966_s12 + $0x140] sm:$0xff] %vm396_vm0, %v10086_v14  ;;  %v9580_v2 = vadd.f32 %v15160_v15, %v9512_v5 }
 0x791   : > { %v7375_v31 = vpop.f32.mrf.mxu3  ;;  %v9860_v36 = vpop.f32.mrf.mxu2 }
 0x792   : > { %v7445_v29 = vadd.f32 %v7375_v31, %v6890_v53  ;;  %v9861_v26 = vadd.f32 %v15325_v45, %v9860_v36  ;;  %v9644_v34 = vmax.f32 %v9580_v2, 0.0 }
 0x794   : > { %v10023_v61 = vadd.f32 %v9959_v32, %v9861_v26  ;;  %v9678_v52 = vpack.c.bf16 %v9644_v34, %v9643_v33  ;;  %v8735_v46 = vadd.f32 %v8665_v18, %v7445_v29  ;;  %v9448_v21 = vpop.f32.mrf.mxu1  ;;  %v11548_v29 = vld [vmem:[%s15577_s5] ss:$0 sm:$0xff] }
 0x796   : > { %v10087_v40 = vmax.f32 %v10023_v61, 0.0  ;;  %9902 = vmatmul.bf16.gmra.mxu2 %v9678_v52  ;;  %v9513_v17 = vadd.f32 %v9443_v10, %v8735_v46  ;;  %v8672_v10 = vpop.f32.mrf.mxu0  ;;  %v9963_v61 = vld [vmem:[%s11617_s9 + $0x168] sm:$0xff] }
 0x798   : > { %10151 = vst.msk [vmem:[%s14966_s12 + $0x148] sm:$0xff] %vm396_vm0, %v10087_v40  ;;  %v9581_v38 = vadd.f32 %v15160_v15, %v9513_v17 }
 0x799   : > { %v7377_v48 = vpop.f32.mrf.mxu3  ;;  %v9863_v0 = vpop.f32.mrf.mxu2 }
 0x79a   : > { %v7446_v28 = vadd.f32 %v7377_v48, %v6891_v7  ;;  %v9864_v25 = vadd.f32 %v15325_v45, %v9863_v0  ;;  %v9645_v56 = vmax.f32 %v9581_v38, 0.0 }
 0x79c   : > { %v8736_v11 = vadd.f32 %v8667_v20, %v7446_v28  ;;  %v10024_v62 = vadd.f32 %v9960_v57, %v9864_v25  ;;  %v9450_v31 = vpop.f32.mrf.mxu1  ;;  %v9965_v57 = vld [vmem:[%s11617_s9 + $0x178] sm:$0xff] }
 0x79e   : > { %v9514_v22 = vadd.f32 %v9445_v35, %v8736_v11  ;;  %v10088_v44 = vmax.f32 %v10024_v62, 0.0  ;;  %v9966_v11 = vld [vmem:[%s11617_s9 + $0x180] sm:$0xff] }
 0x7a0   : > { %10152 = vst.msk [vmem:[%s14966_s12 + $0x150] sm:$0xff] %vm396_vm0, %v10088_v44  ;;  %v9582_v39 = vadd.f32 %v15160_v15, %v9514_v22  ;;  %v16316_v15 = vld [vmem:[#allocation181_spill] sm:$0xff]  ;;  %v9967_v44 = vld [vmem:[%s11617_s9 + $0x188] sm:$0xff] }
 0x7a1   : > { %v7380_v37 = vpop.f32.mrf.mxu3  ;;  %v9865_v3 = vpop.f32.mrf.mxu2  ;;  %v6893_v18 = vadd.f32 %v16316_v15, %v6115_v6 }
 0x7a2   : > { %v7447_v41 = vadd.f32 %v7380_v37, %v6892_v42  ;;  %v9866_v8 = vadd.f32 %v15325_v45, %v9865_v3  ;;  %v9646_v47 = vmax.f32 %v9582_v39, 0.0 }
 0x7a4   : > { %v10025_v24 = vadd.f32 %v9961_v50, %v9866_v8  ;;  %v9679_v54 = vpack.c.bf16 %v9646_v47, %v9645_v56  ;;  %v8737_v23 = vadd.f32 %v8670_v27, %v7447_v41  ;;  %v9969_v50 = vld [vmem:[%s11617_s9 + $0x198] sm:$0xff] }
 0x7a6   : > { %v10089_v58 = vmax.f32 %v10025_v24, 0.0  ;;  %9907 = vmatmul.bf16.gmra.mxu2 %v9679_v54  ;;  %v9515_v60 = vadd.f32 %v9448_v21, %v8737_v23  ;;  %v9970_v21 = vld [vmem:[%s11617_s9 + $0x1a0] sm:$0xff]  ;;  %v9971_v23 = vld [vmem:[%s11617_s9 + $0x1a8] sm:$0xff] }
 0x7a8   : > { %10153 = vst.msk [vmem:[%s14966_s12 + $0x158] sm:$0xff] %vm396_vm0, %v10089_v58  ;;  %v9583_v26 = vadd.f32 %v11548_v29, %v9515_v60 }
 0x7a9   : > { %v7382_v5 = vpop.f32.mrf.mxu3  ;;  %v9868_v14 = vpop.f32.mrf.mxu2 }
 0x7aa   : > { %v7448_v43 = vadd.f32 %v7382_v5, %v6893_v18  ;;  %v9869_v59 = vadd.f32 %v15325_v45, %v9868_v14  ;;  %v9647_v19 = vmax.f32 %v9583_v26, 0.0  ;;  %v9972_v14 = vld [vmem:[%s11617_s9 + $0x1b0] sm:$0xff] }
 0x7ac   : > { %v8738_v53 = vadd.f32 %v8672_v10, %v7448_v43  ;;  %v10026_v2 = vadd.f32 %v9962_v55, %v9869_v59  ;;  %v9973_v10 = vld [vmem:[%s11617_s9 + $0x1b8] sm:$0xff] }
 0x7ae   : > { %v9516_v36 = vadd.f32 %v9450_v31, %v8738_v53  ;;  %v10090_v32 = vmax.f32 %v10026_v2, 0.0 }
 0x7b0   : > { %10154 = vst.msk [vmem:[%s14966_s12 + $0x160] sm:$0xff] %vm396_vm0, %v10090_v32  ;;  %v9584_v33 = vadd.f32 %v11548_v29, %v9516_v36  ;;  %v9974_v32 = vld [vmem:[%s11617_s9 + $0x1c0] sm:$0xff] }
 0x7b1   : > { %v9870_v34 = vpop.f32.mrf.mxu2 }
 0x7b2   : > { %v9871_v52 = vadd.f32 %v15325_v45, %v9870_v34  ;;  %v9648_v1 = vmax.f32 %v9584_v33, 0.0 }
 0x7b4   : > { %v10027_v46 = vadd.f32 %v9963_v61, %v9871_v52  ;;  %v9680_v40 = vpack.c.bf16 %v9648_v1, %v9647_v19  ;;  %v9975_v61 = vld [vmem:[%s11617_s9 + $0x1c8] sm:$0xff] }
 0x7b6   : > { %v10091_v9 = vmax.f32 %v10027_v46, 0.0  ;;  %9912 = vmatmul.bf16.gmra.mxu2 %v9680_v40  ;;  %v9976_v40 = vld [vmem:[%s11617_s9 + $0x1d0] sm:$0xff] }
 0x7b8   : > { %10155 = vst.msk [vmem:[%s14966_s12 + $0x168] sm:$0xff] %vm396_vm0, %v10091_v9 }
 0x7b9   : > { %v9873_v4 = vpop.f32.mrf.mxu2 }
 0x7ba   : > { %v9874_v20 = vadd.f32 %v15325_v45, %v9873_v4 }
 0x7bc   : > { %v10028_v7 = vadd.f32 %v9964_v51, %v9874_v20 }
 0x7be   : > { %v10092_v48 = vmax.f32 %v10028_v7, 0.0  ;;  %v9977_v7 = vld [vmem:[%s11617_s9 + $0x1d8] sm:$0xff] }
 0x7c0   : > { %10156 = vst.msk [vmem:[%s14966_s12 + $0x170] sm:$0xff] %vm396_vm0, %v10092_v48 }
 0x7c1   : > { %v9875_v0 = vpop.f32.mrf.mxu2 }
 0x7c2   : > { %v9876_v17 = vadd.f32 %v15325_v45, %v9875_v0 }
 0x7c4   : > { %v10029_v28 = vadd.f32 %v9965_v57, %v9876_v17 }
 0x7c6   : > { %v10093_v25 = vmax.f32 %v10029_v28, 0.0  ;;  %v9978_v28 = vld [vmem:[%s11617_s9 + $0x1e0] sm:$0xff] }
 0x7c8   : > { %10157 = vst.msk [vmem:[%s14966_s12 + $0x178] sm:$0xff] %vm396_vm0, %v10093_v25 }
 0x7c9   : > { %v9878_v35 = vpop.f32.mrf.mxu2 }
 0x7ca   : > { %v9879_v62 = vadd.f32 %v15325_v45, %v9878_v35 }
 0x7cc   : > { %v10030_v30 = vadd.f32 %v9966_v11, %v9879_v62 }
 0x7ce   : > { %v10094_v63 = vmax.f32 %v10030_v30, 0.0  ;;  %v9979_v30 = vld [vmem:[%s11617_s9 + $0x1e8] sm:$0xff] }
 0x7d0   : > { %10158 = vst.msk [vmem:[%s14966_s12 + $0x180] sm:$0xff] %vm396_vm0, %v10094_v63 }
 0x7d1   : > { %v9880_v22 = vpop.f32.mrf.mxu2 }
 0x7d2   : > { %v9881_v38 = vadd.f32 %v15325_v45, %v9880_v22 }
 0x7d4   : > { %v10031_v49 = vadd.f32 %v9967_v44, %v9881_v38 }
 0x7d6   : > { %v10095_v12 = vmax.f32 %v10031_v49, 0.0  ;;  %v9980_v49 = vld [vmem:[%s11617_s9 + $0x1f0] sm:$0xff] }
 0x7d8   : > { %10159 = vst.msk [vmem:[%s14966_s12 + $0x188] sm:$0xff] %vm396_vm0, %v10095_v12 }
 0x7d9   : > { %v9883_v27 = vpop.f32.mrf.mxu2 }
 0x7da   : > { %v9884_v42 = vadd.f32 %v15325_v45, %v9883_v27 }
 0x7dc   : > { %v10032_v39 = vadd.f32 %v9968_v16, %v9884_v42 }
 0x7de   : > { %v10096_v37 = vmax.f32 %v10032_v39, 0.0  ;;  %v9981_v39 = vld [vmem:[%s11617_s9 + $0x1f8] sm:$0xff] }
 0x7e0   : > { %10160 = vst.msk [vmem:[%s14966_s12 + $0x190] sm:$0xff] %vm396_vm0, %v10096_v37 }
 0x7e1   : > { %v9885_v3 = vpop.f32.mrf.mxu2 }
 0x7e2   : > { %v9886_v41 = vadd.f32 %v15325_v45, %v9885_v3 }
 0x7e4   : > { %v10033_v8 = vadd.f32 %v9969_v50, %v9886_v41 }
 0x7e6   : > { %v10097_v56 = vmax.f32 %v10033_v8, 0.0 }
 0x7e8   : > { %10161 = vst.msk [vmem:[%s14966_s12 + $0x198] sm:$0xff] %vm396_vm0, %v10097_v56 }
 0x7e9   : > { %v9888_v47 = vpop.f32.mrf.mxu2 }
 0x7ea   : > { %v9889_v24 = vadd.f32 %v15325_v45, %v9888_v47 }
 0x7ec   : > { %v10034_v54 = vadd.f32 %v9970_v21, %v9889_v24 }
 0x7ee   : > { %v10098_v13 = vmax.f32 %v10034_v54, 0.0 }
 0x7f0   : > { %10162 = vst.msk [vmem:[%s14966_s12 + $0x1a0] sm:$0xff] %vm396_vm0, %v10098_v13 }
 0x7f1   : > { %v9890_v6 = vpop.f32.mrf.mxu2 }
 0x7f2   : > { %v9891_v58 = vadd.f32 %v15325_v45, %v9890_v6 }
 0x7f4   : > { %v10035_v15 = vadd.f32 %v9971_v23, %v9891_v58 }
 0x7f6   : > { %v10099_v18 = vmax.f32 %v10035_v15, 0.0 }
 0x7f8   : > { %10163 = vst.msk [vmem:[%s14966_s12 + $0x1a8] sm:$0xff] %vm396_vm0, %v10099_v18 }
 0x7f9   : > { %v9893_v5 = vpop.f32.mrf.mxu2 }
 0x7fa   : > { %v9894_v55 = vadd.f32 %v15325_v45, %v9893_v5 }
 0x7fc   : > { %v10036_v60 = vadd.f32 %v9972_v14, %v9894_v55 }
 0x7fe   : > { %v10100_v43 = vmax.f32 %v10036_v60, 0.0 }
 0x800   : > { %10164 = vst.msk [vmem:[%s14966_s12 + $0x1b0] sm:$0xff] %vm396_vm0, %v10100_v43 }
 0x801   : > { %v9895_v59 = vpop.f32.mrf.mxu2 }
 0x802   : > { %v9896_v53 = vadd.f32 %v15325_v45, %v9895_v59 }
 0x804   : > { %v10037_v2 = vadd.f32 %v9973_v10, %v9896_v53 }
 0x806   : > { %v10101_v31 = vmax.f32 %v10037_v2, 0.0 }
 0x808   : > { %10165 = vst.msk [vmem:[%s14966_s12 + $0x1b8] sm:$0xff] %vm396_vm0, %v10101_v31 }
 0x809   : > { %v9898_v36 = vpop.f32.mrf.mxu2 }
 0x80a   : > { %v9899_v29 = vadd.f32 %v15325_v45, %v9898_v36 }
 0x80c   : > { %v10038_v26 = vadd.f32 %v9974_v32, %v9899_v29 }
 0x80e   : > { %v10102_v33 = vmax.f32 %v10038_v26, 0.0 }
 0x810   : > { %10166 = vst.msk [vmem:[%s14966_s12 + $0x1c0] sm:$0xff] %vm396_vm0, %v10102_v33 }
 0x811   : > { %v9900_v34 = vpop.f32.mrf.mxu2 }
 0x812   : > { %v9901_v52 = vadd.f32 %v15325_v45, %v9900_v34 }
 0x814   : > { %v10039_v19 = vadd.f32 %v9975_v61, %v9901_v52 }
 0x816   : > { %v10103_v1 = vmax.f32 %v10039_v19, 0.0 }
 0x818   : > { %10167 = vst.msk [vmem:[%s14966_s12 + $0x1c8] sm:$0xff] %vm396_vm0, %v10103_v1 }
 0x819   : > { %v9903_v46 = vpop.f32.mrf.mxu2 }
 0x81a   : > { %v9904_v9 = vadd.f32 %v15325_v45, %v9903_v46 }
 0x81c   : > { %v10040_v4 = vadd.f32 %v9976_v40, %v9904_v9 }
 0x81e   : > { %v10104_v51 = vmax.f32 %v10040_v4, 0.0 }
 0x820   : > { %10168 = vst.msk [vmem:[%s14966_s12 + $0x1d0] sm:$0xff] %vm396_vm0, %v10104_v51 }
 0x821   : > { %v9905_v20 = vpop.f32.mrf.mxu2 }
 0x822   : > { %v9906_v48 = vadd.f32 %v15325_v45, %v9905_v20 }
 0x824   : > { %v10041_v0 = vadd.f32 %v9977_v7, %v9906_v48 }
 0x826   : > { %v10105_v57 = vmax.f32 %v10041_v0, 0.0 }
 0x828   : > { %10169 = vst.msk [vmem:[%s14966_s12 + $0x1d8] sm:$0xff] %vm396_vm0, %v10105_v57 }
 0x829   : > { %v9908_v17 = vpop.f32.mrf.mxu2 }
 0x82a   : > { %v9909_v25 = vadd.f32 %v15325_v45, %v9908_v17 }
 0x82c   : > { %v10042_v35 = vadd.f32 %v9978_v28, %v9909_v25 }
 0x82e   : > { %v10106_v11 = vmax.f32 %v10042_v35, 0.0 }
 0x830   : > { %10170 = vst.msk [vmem:[%s14966_s12 + $0x1e0] sm:$0xff] %vm396_vm0, %v10106_v11 }
 0x831   : > { %v9910_v62 = vpop.f32.mrf.mxu2 }
 0x832   : > { %v9911_v63 = vadd.f32 %v15325_v45, %v9910_v62 }
 0x834   : > { %v10043_v22 = vadd.f32 %v9979_v30, %v9911_v63 }
 0x836   : > { %v10107_v44 = vmax.f32 %v10043_v22, 0.0 }
 0x838   : > { %10171 = vst.msk [vmem:[%s14966_s12 + $0x1e8] sm:$0xff] %vm396_vm0, %v10107_v44 }
 0x839   : > { %v9913_v38 = vpop.f32.mrf.mxu2 }
 0x83a   : > { %v9914_v12 = vadd.f32 %v15325_v45, %v9913_v38 }
 0x83c   : > { %v10044_v27 = vadd.f32 %v9980_v49, %v9914_v12 }
 0x83e   : > { %v10108_v16 = vmax.f32 %v10044_v27, 0.0 }
 0x840   : > { %10172 = vst.msk [vmem:[%s14966_s12 + $0x1f0] sm:$0xff] %vm396_vm0, %v10108_v16 }
 0x841   : > { %v9915_v42 = vpop.f32.mrf.mxu2 }
 0x842   : > { %v9916_v37 = vadd.f32 %v15325_v45, %v9915_v42 }
 0x844   : > { %v10045_v3 = vadd.f32 %v9981_v39, %v9916_v37 }
 0x846   : > { %v10109_v50 = vmax.f32 %v10045_v3, 0.0 }
 0x848   : > { %10173 = vst.msk [vmem:[%s14966_s12 + $0x1f8] sm:$0xff] %vm396_vm0, %v10109_v50 }
 0x849 PF: > { %s17_s24 = sadd.s32 1, %s11555_s24  }
 0x84a   : > { %p14_p4 = scmp.ge.s32.totalorder %s17_s24, 6  }
 0x84c   :  { %16 = sbr.rel (!%p14_p4) target bundleno = 1 (0x1), region = 89 }

</bundles_post_ra>
